<compile_context>
chip_gen: v5e
topology: v5e:2x2
jax: 0.10.0
libtpu: 0.0.40
codegen_flags: <defaults>
</compile_context>

<pallas_src>
import functools

import jax
import jax.numpy as jnp
from jax.experimental import pallas as pl
from jax.experimental.pallas import tpu as pltpu

HALF_WIDTH = 256
LAYER_WIDTH = 512


def _round_up(x, m):
    return ((x + m - 1) // m) * m


def _pick_block(dim, cap, align):
    """Largest block <= cap that divides `dim` and is a multiple of `align`.
    Returns the full dim when dim <= cap; returns None if no aligned divisor
    exists (caller must pad)."""
    if dim <= cap:
        return dim
    t = (cap // align) * align
    while t >= align:
        if dim % t == 0:
            return t
        t -= align
    return None


# ---------------------------------------------------------------------------
# Pallas kernels
# ---------------------------------------------------------------------------
def _mm_kernel(x_ref, w_ref, b_ref, o_ref, *, relu, pool):
    """Single-K-block matmul: y = x @ w + b (+ReLU) (+2x2 pool over row groups
    of 4).  No accumulator scratch, no init/finalize phases."""
    out = jnp.dot(x_ref[...], w_ref[...], preferred_element_type=jnp.float32)
    out = out + b_ref[...]
    if relu:
        out = jnp.maximum(out, 0.0)
    if pool:
        tm, tn = out.shape
        out = jnp.max(out.reshape(tm // 4, 4, tn), axis=1)
    o_ref[...] = out.astype(o_ref.dtype)


def _mm_acc_kernel(x_ref, w_ref, b_ref, o_ref, acc_ref, *, relu, pool):
    """Multi-K-block matmul: accumulate over grid axis 2, epilogue on last step."""
    @pl.when(pl.program_id(2) == 0)
    def _init():
        acc_ref[...] = jnp.zeros_like(acc_ref)

    acc_ref[...] += jnp.dot(x_ref[...], w_ref[...],
                            preferred_element_type=jnp.float32)

    @pl.when(pl.program_id(2) == pl.num_programs(2) - 1)
    def _finalize():
        out = acc_ref[...] + b_ref[...]
        if relu:
            out = jnp.maximum(out, 0.0)
        if pool:
            tm, tn = out.shape
            out = jnp.max(out.reshape(tm // 4, 4, tn), axis=1)
        o_ref[...] = out.astype(o_ref.dtype)


def matmul_bias(x, w, b, *, relu=False, pool=False, out_dtype=jnp.bfloat16):
    """y = x @ w + b (+ReLU) (+max over consecutive groups of 4 rows).
    x: [M, K], w: [K, N], b: [N].  bf16 operands, f32 accumulation."""
    M, K = x.shape
    K2, N = w.shape
    assert K == K2 and b.shape[-1] == N
    if pool:
        assert M % 4 == 0, "pool=True requires M to be a multiple of 4"

    x = x.astype(jnp.bfloat16)
    w = w.astype(jnp.bfloat16)
    b2 = b.astype(jnp.float32).reshape(1, N)

    out_M = M // 4 if pool else M
    out_N = N

    # ---- tile selection; zero-pad a dim when no aligned divisor exists ----
    m_align = 32 if pool else 8
    tm = _pick_block(M, 256, m_align)
    if tm is None:
        Mp = _round_up(M, 256)
        x = jnp.pad(x, ((0, Mp - M), (0, 0)))
        M, tm = Mp, 256
    tn = _pick_block(N, 256, 128)
    if tn is None:
        Np = _round_up(N, 128)
        w = jnp.pad(w, ((0, 0), (0, Np - N)))
        b2 = jnp.pad(b2, ((0, 0), (0, Np - N)))
        N = Np
        tn = _pick_block(N, 256, 128)
    tk = _pick_block(K, 1024, 128)
    if tk is None:
        Kp = _round_up(K, 512)
        x = jnp.pad(x, ((0, 0), (0, Kp - K)))
        w = jnp.pad(w, ((0, Kp - K), (0, 0)))
        K, tk = Kp, 512

    tmo = tm // 4 if pool else tm
    nk = K // tk
    out_shape = jax.ShapeDtypeStruct((M // 4 if pool else M, N), out_dtype)

    if nk == 1:
        # Single K block: whole reduction in one dot, no scratch / phases.
        kernel = functools.partial(_mm_kernel, relu=relu, pool=pool)
        out = pl.pallas_call(
            kernel,
            out_shape=out_shape,
            grid_spec=pltpu.PrefetchScalarGridSpec(
                num_scalar_prefetch=0,
                grid=(M // tm, N // tn),
                in_specs=[
                    pl.BlockSpec((tm, K), lambda i, j: (i, 0)),
                    pl.BlockSpec((K, tn), lambda i, j: (0, j)),
                    pl.BlockSpec((1, tn), lambda i, j: (0, j)),
                ],
                out_specs=pl.BlockSpec((tmo, tn), lambda i, j: (i, j)),
            ),
            compiler_params=pltpu.CompilerParams(
                dimension_semantics=("parallel", "parallel")),
        )(x, w, b2)
    else:
        kernel = functools.partial(_mm_acc_kernel, relu=relu, pool=pool)
        out = pl.pallas_call(
            kernel,
            out_shape=out_shape,
            grid_spec=pltpu.PrefetchScalarGridSpec(
                num_scalar_prefetch=0,
                grid=(M // tm, N // tn, nk),
                in_specs=[
                    pl.BlockSpec((tm, tk), lambda i, j, k: (i, k)),
                    pl.BlockSpec((tk, tn), lambda i, j, k: (k, j)),
                    pl.BlockSpec((1, tn), lambda i, j, k: (0, j)),
                ],
                out_specs=pl.BlockSpec((tmo, tn), lambda i, j, k: (i, j)),
                scratch_shapes=[pltpu.VMEM((tm, tn), jnp.float32)],
            ),
            compiler_params=pltpu.CompilerParams(
                dimension_semantics=("parallel", "parallel", "arbitrary")),
        )(x, w, b2)

    if out.shape[0] != out_M or out.shape[1] != out_N:
        out = out[:out_M, :out_N]
    return out


def _spinal_kernel(feat_ref, w1_ref, b1_ref, w2_ref, b2_ref, w3_ref, b3_ref,
                   w4_ref, b4_ref, wo_ref, bo_ref, o_ref):
    """Entire spinal classifier in one kernel.  The torch.cat wiring is folded
    into row-sliced partial matmuls against each weight matrix, so x1..x4 stay
    in VMEM/vregs and never touch HBM.  Dropout is identity at inference."""
    hw = HALF_WIDTH
    lw = LAYER_WIDTH
    f0 = feat_ref[:, 0:hw]            # x[:, 0:Half_width]            (bf16)
    f1 = feat_ref[:, hw:2 * hw]       # x[:, Half_width:2*Half_width] (bf16)

    def fc(parts, w_ref, b_ref):
        # relu(concat(parts, axis=1) @ W + b); concat realised as summed dots.
        acc = b_ref[...]
        off = 0
        for p in parts:
            d = p.shape[1]
            acc = acc + jnp.dot(p, w_ref[off:off + d, :],
                                preferred_element_type=jnp.float32)
            off += d
        return jnp.maximum(acc, 0.0).astype(jnp.bfloat16)

    x1 = fc([f0], w1_ref, b1_ref)
    x2 = fc([f1, x1], w2_ref, b2_ref)
    x3 = fc([f0, x2], w3_ref, b3_ref)
    x4 = fc([f1, x3], w4_ref, b4_ref)

    logits = bo_ref[...]
    for idx, xi in enumerate((x1, x2, x3, x4)):
        logits = logits + jnp.dot(xi, wo_ref[idx * lw:(idx + 1) * lw, :],
                                  preferred_element_type=jnp.float32)
    o_ref[...] = logits


def spinal_classifier(feat, params, num_class):
    """feat: [B, 2*Half_width] (bf16).  Returns logits [B, num_class] (f32)."""
    B = feat.shape[0]
    n_pad = params["out_w"].shape[1]          # fc_out padded to 128 lanes
    args = [feat.astype(jnp.bfloat16)]
    in_specs = [pl.BlockSpec(feat.shape, lambda i: (0, 0))]
    for name in ("sp1", "sp2", "sp3", "sp4", "out"):
        w = params[f"{name}_w"]
        bias = params[f"{name}_b"].astype(jnp.float32).reshape(1, -1)
        args += [w, bias]
        in_specs += [pl.BlockSpec(w.shape, lambda i: (0, 0)),
                     pl.BlockSpec(bias.shape, lambda i: (0, 0))]
    out = pl.pallas_call(
        _spinal_kernel,
        out_shape=jax.ShapeDtypeStruct((B, n_pad), jnp.float32),
        grid=(1,),
        in_specs=in_specs,
        out_specs=pl.BlockSpec((B, n_pad), lambda i: (0, 0)),
        compiler_params=pltpu.CompilerParams(
            dimension_semantics=("arbitrary",)),
    )(*args)
    return out[:, :num_class]                 # drop zero-padded logit columns


# ---------------------------------------------------------------------------
# Model glue (im2col conv, parameters, SpinalVGG forward)
# ---------------------------------------------------------------------------
def conv3x3(x, w, b, *, pool):
    """3x3 conv, stride 1, padding 1, fused ReLU, optional fused 2x2 max-pool.
    x: [B, H, W, Cin] bf16, w: [3, 3, Cin, Cout] bf16, b: [Cout] f32."""
    # TODO(synk): replace host-side im2col with an implicit-GEMM kernel
    # (kh,kw on the reduction grid, index_maps into padded NHWC) to avoid the
    # 9x HBM expansion at realistic spatial sizes; negligible at 8x8.
    B, H, W, Cin = x.shape
    Cout = w.shape[-1]
    xp = jnp.pad(x, ((0, 0), (1, 1), (1, 1), (0, 0)))
    patches = [xp[:, kh:kh + H, kw:kw + W, :]
               for kh in range(3) for kw in range(3)]
    patches = jnp.stack(patches, axis=3).reshape(B, H, W, 9 * Cin)
    wm = w.reshape(9 * Cin, Cout)
    if pool:
        assert H % 2 == 0 and W % 2 == 0
        Ho, Wo = H // 2, W // 2
        # Order rows as (b, ho, wo, window-pos) so each 2x2 pooling window is
        # 4 consecutive GEMM rows; the matmul epilogue max-reduces the groups.
        p = patches.reshape(B, Ho, 2, Wo, 2, 9 * Cin)
        p = jnp.transpose(p, (0, 1, 3, 2, 4, 5))
        cols = p.reshape(B * Ho * Wo * 4, 9 * Cin)
        out = matmul_bias(cols, wm, b, relu=True, pool=True,
                          out_dtype=jnp.bfloat16)
        return out.reshape(B, Ho, Wo, Cout)
    cols = patches.reshape(B * H * W, 9 * Cin)
    out = matmul_bias(cols, wm, b, relu=True, pool=False,
                      out_dtype=jnp.bfloat16)
    return out.reshape(B, H, W, Cout)


def init_params(key, num_class=100):
    """Deterministic synthetic parameters.  `features` is supplied externally
    in the PyTorch module; here we build a small VGG-style stack ending in 512
    channels x 1x1 spatial so the flattened features are 512-wide
    (= 2 * Half_width, as the spinal wiring requires).  Weights are bf16;
    conv1 Cout (and conv2 Cin) are zero-padded 64 -> 128 for lane-dense stores
    (pad channels carry exact zeros, so results are unchanged)."""
    conv_cfg = [
        # (cin, cin_stored, cout, cout_stored)
        (3, 3, 64, 128),
        (64, 128, 128, 128),
        (128, 128, 256, 256),
        (256, 256, 512, 512),
    ]
    fc_cfg = [
        ("sp1", HALF_WIDTH, LAYER_WIDTH),
        ("sp2", HALF_WIDTH + LAYER_WIDTH, LAYER_WIDTH),
        ("sp3", HALF_WIDTH + LAYER_WIDTH, LAYER_WIDTH),
        ("sp4", HALF_WIDTH + LAYER_WIDTH, LAYER_WIDTH),
        ("out", 4 * LAYER_WIDTH, num_class),
    ]
    keys = jax.random.split(key, 2 * (len(conv_cfg) + len(fc_cfg)))
    params = {}
    k = 0
    for i, (cin, cin_s, cout, cout_s) in enumerate(conv_cfg, start=1):
        fan_in = 9 * cin
        w = jax.random.normal(keys[k], (3, 3, cin, cout), jnp.float32) / jnp.sqrt(fan_in)
        b = 0.01 * jax.random.normal(keys[k + 1], (cout,), jnp.float32)
        w = jnp.pad(w, ((0, 0), (0, 0), (0, cin_s - cin), (0, cout_s - cout)))
        b = jnp.pad(b, ((0, cout_s - cout),))
        params[f"conv{i}_w"] = w.astype(jnp.bfloat16)
        params[f"conv{i}_b"] = b
        k += 2
    for name, din, dout in fc_cfg:
        w = jax.random.normal(keys[k], (din, dout), jnp.float32) / jnp.sqrt(din)
        b = 0.01 * jax.random.normal(keys[k + 1], (dout,), jnp.float32)
        if name == "out":
            # Pad the head to 128 lanes with ZEROS (padded logit columns are
            # sliced off in the wrapper — any weight-loading path must also
            # pad with zeros).
            n_pad = _round_up(dout, 128)
            w = jnp.pad(w, ((0, 0), (0, n_pad - dout)))
            b = jnp.pad(b, ((0, n_pad - dout),))
        params[f"{name}_w"] = w.astype(jnp.bfloat16)
        params[f"{name}_b"] = b
        k += 2
    return params


def spinal_vgg_forward(params, x_nchw, num_class=100):
    """x_nchw: [B, 3, H, W] (PyTorch layout); returns logits [B, num_class]."""
    # NCHW -> NHWC, bf16 activations end-to-end (f32 accumulation in-kernel).
    x = jnp.transpose(x_nchw, (0, 2, 3, 1)).astype(jnp.bfloat16)
    # features: conv3x3+ReLU(+maxpool fused into the matmul epilogue) stack.
    x = conv3x3(x, params["conv1_w"], params["conv1_b"], pool=True)
    x = conv3x3(x, params["conv2_w"], params["conv2_b"], pool=True)
    x = conv3x3(x, params["conv3_w"], params["conv3_b"], pool=True)
    x = conv3x3(x, params["conv4_w"], params["conv4_b"], pool=False)
    # output.view(B, -1): spatial is 1x1 so NHWC flatten == NCHW flatten.
    feat = x.reshape(x.shape[0], -1)                    # [B, 512] bf16
    # TODO(synk): training-mode dropout (Bernoulli mask + 1/(1-p) scaling) not
    # modeled; PyTorch eval semantics (identity) assumed.
    return spinal_classifier(feat, params, num_class)   # fused 5-layer head


if __name__ == "__main__":
    key = jax.random.PRNGKey(0)
    pkey, xkey = jax.random.split(key)
    num_class = 100
    params = init_params(pkey, num_class=num_class)
    # Small input consistent with the module: NCHW, 3 channels, 8x8 spatial
    # (features reduce 8x8 -> 1x1 with 512 channels; flattened width 512 =
    # 2 * Half_width, matching the spinal classifier's slicing).
    x = jax.random.normal(xkey, (2, 3, 8, 8), jnp.float32)
    fwd = jax.jit(functools.partial(spinal_vgg_forward, num_class=num_class))
    logits = fwd(params, x)
    jax.block_until_ready(logits)
    assert logits.shape == (2, num_class) and logits.dtype == jnp.float32
    print("KERNEL_OK")
</pallas_src>

<mosaic_0001>
module attributes {stable_mosaic.version = 11 : i64} {
  func.func @_mm_kernel(%arg0: i32, %arg1: i32, %arg2: memref<128x27xbf16, #tpu.memory_space<vmem>>, %arg3: memref<27x128xbf16, #tpu.memory_space<vmem>>, %arg4: memref<1x128xf32, #tpu.memory_space<vmem>>, %arg5: memref<32x128xbf16, #tpu.memory_space<vmem>>) attributes {dimension_semantics = [#tpu.dimension_semantics<parallel>, #tpu.dimension_semantics<parallel>], iteration_bounds = array<i64: 1, 1>, scalar_prefetch = 0 : i64, scratch_operands = 0 : i64, tpu.core_type = #tpu.core_type<tc>, window_params = [{transform_indices = @transform_0, window_bounds = array<i64: 128, 27>}, {transform_indices = @transform_1, window_bounds = array<i64: 27, 128>}, {transform_indices = @transform_2, window_bounds = array<i64: 1, 128>}, {transform_indices = @transform_3, window_bounds = array<i64: 32, 128>}]} {
    %c0 = arith.constant 0 : index
    %c0_0 = arith.constant 0 : index
    %0 = vector.load %arg2[%c0, %c0_0] : memref<128x27xbf16, #tpu.memory_space<vmem>>, vector<128x27xbf16>
    %c0_1 = arith.constant 0 : index
    %c0_2 = arith.constant 0 : index
    %1 = vector.load %arg3[%c0_1, %c0_2] : memref<27x128xbf16, #tpu.memory_space<vmem>>, vector<27x128xbf16>
    %cst = arith.constant dense<0.000000e+00> : vector<128x128xf32>
    %2 = tpu.matmul %0, %1, %cst {dimension_numbers = #tpu.dot_dimension_numbers<[1], [0], [0], [1], [0, 0, 1, 1], [], []>} : vector<128x27xbf16>, vector<27x128xbf16>, vector<128x128xf32> -> vector<128x128xf32>
    %c0_3 = arith.constant 0 : index
    %c0_4 = arith.constant 0 : index
    %3 = vector.load %arg4[%c0_3, %c0_4] : memref<1x128xf32, #tpu.memory_space<vmem>>, vector<1x128xf32>
    %4 = vector.broadcast %3 : vector<1x128xf32> to vector<128x128xf32>
    %5 = arith.addf %2, %4 : vector<128x128xf32>
    %cst_5 = arith.constant 0.000000e+00 : f32
    %6 = vector.broadcast %cst_5 : f32 to vector<128x128xf32>
    %7 = arith.maximumf %5, %6 : vector<128x128xf32>
    %8 = vector.shape_cast %7 : vector<128x128xf32> to vector<32x4x128xf32>
    %cst_6 = arith.constant dense<0xFF800000> : vector<32x128xf32>
    %9 = vector.multi_reduction <maximumf>, %8, %cst_6 [1] : vector<32x4x128xf32> to vector<32x128xf32>
    %10 = arith.truncf %9 : vector<32x128xf32> to vector<32x128xbf16>
    %c0_7 = arith.constant 0 : index
    %c0_8 = arith.constant 0 : index
    %11 = vector.load %arg5[%c0_7, %c0_8] : memref<32x128xbf16, #tpu.memory_space<vmem>>, vector<32x128xbf16>
    tpu.vector_store %arg5[%c0_7, %c0_8], %10 {strides = array<i32>} : memref<32x128xbf16, #tpu.memory_space<vmem>>, vector<32x128xbf16>,
    return
  }
  func.func @transform_0(%arg0: i32, %arg1: i32) -> (i32, i32) {
    %c0_i32 = arith.constant 0 : i32
    %c0_i32_0 = arith.constant 0 : i32
    return %arg0, %c0_i32 : i32, i32
  }
  func.func @transform_1(%arg0: i32, %arg1: i32) -> (i32, i32) {
    %c0_i32 = arith.constant 0 : i32
    %c0_i32_0 = arith.constant 0 : i32
    return %c0_i32, %arg1 : i32, i32
  }
  func.func @transform_2(%arg0: i32, %arg1: i32) -> (i32, i32) {
    %c0_i32 = arith.constant 0 : i32
    %c0_i32_0 = arith.constant 0 : i32
    return %c0_i32, %arg1 : i32, i32
  }
  func.func @transform_3(%arg0: i32, %arg1: i32) -> (i32, i32) {
    %c0_i32 = arith.constant 0 : i32
    return %arg0, %arg1 : i32, i32
  }
}

module attributes {stable_mosaic.version = 11 : i64} {
  func.func @_mm_acc_kernel(%arg0: i32, %arg1: i32, %arg2: i32, %arg3: memref<32x384xbf16, #tpu.memory_space<vmem>>, %arg4: memref<384x128xbf16, #tpu.memory_space<vmem>>, %arg5: memref<1x128xf32, #tpu.memory_space<vmem>>, %arg6: memref<8x128xbf16, #tpu.memory_space<vmem>>, %arg7: memref<32x128xf32, #tpu.memory_space<vmem>>) attributes {dimension_semantics = [#tpu.dimension_semantics<parallel>, #tpu.dimension_semantics<parallel>, #tpu.dimension_semantics<arbitrary>], iteration_bounds = array<i64: 1, 1, 3>, scalar_prefetch = 0 : i64, scratch_operands = 1 : i64, tpu.core_type = #tpu.core_type<tc>, window_params = [{transform_indices = @transform_0, window_bounds = array<i64: 32, 384>}, {transform_indices = @transform_1, window_bounds = array<i64: 384, 128>}, {transform_indices = @transform_2, window_bounds = array<i64: 1, 128>}, {transform_indices = @transform_3, window_bounds = array<i64: 8, 128>}]} {
    %c0_i32 = arith.constant 0 : i32
    %0 = arith.cmpi eq, %arg2, %c0_i32 : i32
    %1 = arith.extui %0 : i1 to i32
    %c0_i32_0 = arith.constant 0 : i32
    %2 = arith.cmpi ne, %1, %c0_i32_0 : i32
    scf.if %2 {
      %cst_9 = arith.constant 0.000000e+00 : f32
      %12 = vector.broadcast %cst_9 : f32 to vector<32x128xf32>
      %c0_10 = arith.constant 0 : index
      %c0_11 = arith.constant 0 : index
      %13 = vector.load %arg7[%c0_10, %c0_11] : memref<32x128xf32, #tpu.memory_space<vmem>>, vector<32x128xf32>
      tpu.vector_store %arg7[%c0_10, %c0_11], %12 {strides = array<i32>} : memref<32x128xf32, #tpu.memory_space<vmem>>, vector<32x128xf32>,
    } else {
    }
    %c0 = arith.constant 0 : index
    %c0_1 = arith.constant 0 : index
    %3 = vector.load %arg7[%c0, %c0_1] : memref<32x128xf32, #tpu.memory_space<vmem>>, vector<32x128xf32>
    %c0_2 = arith.constant 0 : index
    %c0_3 = arith.constant 0 : index
    %4 = vector.load %arg3[%c0_2, %c0_3] : memref<32x384xbf16, #tpu.memory_space<vmem>>, vector<32x384xbf16>
    %c0_4 = arith.constant 0 : index
    %c0_5 = arith.constant 0 : index
    %5 = vector.load %arg4[%c0_4, %c0_5] : memref<384x128xbf16, #tpu.memory_space<vmem>>, vector<384x128xbf16>
    %cst = arith.constant dense<0.000000e+00> : vector<32x128xf32>
    %6 = tpu.matmul %4, %5, %cst {dimension_numbers = #tpu.dot_dimension_numbers<[1], [0], [0], [1], [0, 0, 1, 1], [], []>} : vector<32x384xbf16>, vector<384x128xbf16>, vector<32x128xf32> -> vector<32x128xf32>
    %7 = arith.addf %3, %6 : vector<32x128xf32>
    %c0_6 = arith.constant 0 : index
    %c0_7 = arith.constant 0 : index
    %8 = vector.load %arg7[%c0_6, %c0_7] : memref<32x128xf32, #tpu.memory_space<vmem>>, vector<32x128xf32>
    tpu.vector_store %arg7[%c0_6, %c0_7], %7 {strides = array<i32>} : memref<32x128xf32, #tpu.memory_space<vmem>>, vector<32x128xf32>,
    %c2_i32 = arith.constant 2 : i32
    %9 = arith.cmpi eq, %arg2, %c2_i32 : i32
    %10 = arith.extui %9 : i1 to i32
    %c0_i32_8 = arith.constant 0 : i32
    %11 = arith.cmpi ne, %10, %c0_i32_8 : i32
    scf.if %11 {
      %c0_9 = arith.constant 0 : index
      %c0_10 = arith.constant 0 : index
      %12 = vector.load %arg7[%c0_9, %c0_10] : memref<32x128xf32, #tpu.memory_space<vmem>>, vector<32x128xf32>
      %c0_11 = arith.constant 0 : index
      %c0_12 = arith.constant 0 : index
      %13 = vector.load %arg5[%c0_11, %c0_12] : memref<1x128xf32, #tpu.memory_space<vmem>>, vector<1x128xf32>
      %14 = vector.broadcast %13 : vector<1x128xf32> to vector<32x128xf32>
      %15 = arith.addf %12, %14 : vector<32x128xf32>
      %cst_13 = arith.constant 0.000000e+00 : f32
      %16 = vector.broadcast %cst_13 : f32 to vector<32x128xf32>
      %17 = arith.maximumf %15, %16 : vector<32x128xf32>
      %18 = vector.shape_cast %17 : vector<32x128xf32> to vector<8x4x128xf32>
      %cst_14 = arith.constant dense<0xFF800000> : vector<8x128xf32>
      %19 = vector.multi_reduction <maximumf>, %18, %cst_14 [1] : vector<8x4x128xf32> to vector<8x128xf32>
      %20 = arith.truncf %19 : vector<8x128xf32> to vector<8x128xbf16>
      %c0_15 = arith.constant 0 : index
      %c0_16 = arith.constant 0 : index
      %21 = vector.load %arg6[%c0_15, %c0_16] : memref<8x128xbf16, #tpu.memory_space<vmem>>, vector<8x128xbf16>
      tpu.vector_store %arg6[%c0_15, %c0_16], %20 {strides = array<i32>} : memref<8x128xbf16, #tpu.memory_space<vmem>>, vector<8x128xbf16>,
    } else {
    }
    return
  }
  func.func @transform_0(%arg0: i32, %arg1: i32, %arg2: i32) -> (i32, i32) {
    %c0_i32 = arith.constant 0 : i32
    return %arg0, %arg2 : i32, i32
  }
  func.func @transform_1(%arg0: i32, %arg1: i32, %arg2: i32) -> (i32, i32) {
    %c0_i32 = arith.constant 0 : i32
    return %arg2, %arg1 : i32, i32
  }
  func.func @transform_2(%arg0: i32, %arg1: i32, %arg2: i32) -> (i32, i32) {
    %c0_i32 = arith.constant 0 : i32
    %c0_i32_0 = arith.constant 0 : i32
    return %c0_i32, %arg1 : i32, i32
  }
  func.func @transform_3(%arg0: i32, %arg1: i32, %arg2: i32) -> (i32, i32) {
    %c0_i32 = arith.constant 0 : i32
    return %arg0, %arg1 : i32, i32
  }
}

module attributes {stable_mosaic.version = 11 : i64} {
  func.func @_mm_acc_kernel(%arg0: i32, %arg1: i32, %arg2: i32, %arg3: memref<8x384xbf16, #tpu.memory_space<vmem>>, %arg4: memref<384x256xbf16, #tpu.memory_space<vmem>>, %arg5: memref<1x256xf32, #tpu.memory_space<vmem>>, %arg6: memref<2x256xbf16, #tpu.memory_space<vmem>>, %arg7: memref<8x256xf32, #tpu.memory_space<vmem>>) attributes {dimension_semantics = [#tpu.dimension_semantics<parallel>, #tpu.dimension_semantics<parallel>, #tpu.dimension_semantics<arbitrary>], iteration_bounds = array<i64: 1, 1, 3>, scalar_prefetch = 0 : i64, scratch_operands = 1 : i64, tpu.core_type = #tpu.core_type<tc>, window_params = [{transform_indices = @transform_0, window_bounds = array<i64: 8, 384>}, {transform_indices = @transform_1, window_bounds = array<i64: 384, 256>}, {transform_indices = @transform_2, window_bounds = array<i64: 1, 256>}, {transform_indices = @transform_3, window_bounds = array<i64: 2, 256>}]} {
    %c0_i32 = arith.constant 0 : i32
    %0 = arith.cmpi eq, %arg2, %c0_i32 : i32
    %1 = arith.extui %0 : i1 to i32
    %c0_i32_0 = arith.constant 0 : i32
    %2 = arith.cmpi ne, %1, %c0_i32_0 : i32
    scf.if %2 {
      %cst_9 = arith.constant 0.000000e+00 : f32
      %12 = vector.broadcast %cst_9 : f32 to vector<8x256xf32>
      %c0_10 = arith.constant 0 : index
      %c0_11 = arith.constant 0 : index
      %13 = vector.load %arg7[%c0_10, %c0_11] : memref<8x256xf32, #tpu.memory_space<vmem>>, vector<8x256xf32>
      tpu.vector_store %arg7[%c0_10, %c0_11], %12 {strides = array<i32>} : memref<8x256xf32, #tpu.memory_space<vmem>>, vector<8x256xf32>,
    } else {
    }
    %c0 = arith.constant 0 : index
    %c0_1 = arith.constant 0 : index
    %3 = vector.load %arg7[%c0, %c0_1] : memref<8x256xf32, #tpu.memory_space<vmem>>, vector<8x256xf32>
    %c0_2 = arith.constant 0 : index
    %c0_3 = arith.constant 0 : index
    %4 = vector.load %arg3[%c0_2, %c0_3] : memref<8x384xbf16, #tpu.memory_space<vmem>>, vector<8x384xbf16>
    %c0_4 = arith.constant 0 : index
    %c0_5 = arith.constant 0 : index
    %5 = vector.load %arg4[%c0_4, %c0_5] : memref<384x256xbf16, #tpu.memory_space<vmem>>, vector<384x256xbf16>
    %cst = arith.constant dense<0.000000e+00> : vector<8x256xf32>
    %6 = tpu.matmul %4, %5, %cst {dimension_numbers = #tpu.dot_dimension_numbers<[1], [0], [0], [1], [0, 0, 1, 1], [], []>} : vector<8x384xbf16>, vector<384x256xbf16>, vector<8x256xf32> -> vector<8x256xf32>
    %7 = arith.addf %3, %6 : vector<8x256xf32>
    %c0_6 = arith.constant 0 : index
    %c0_7 = arith.constant 0 : index
    %8 = vector.load %arg7[%c0_6, %c0_7] : memref<8x256xf32, #tpu.memory_space<vmem>>, vector<8x256xf32>
    tpu.vector_store %arg7[%c0_6, %c0_7], %7 {strides = array<i32>} : memref<8x256xf32, #tpu.memory_space<vmem>>, vector<8x256xf32>,
    %c2_i32 = arith.constant 2 : i32
    %9 = arith.cmpi eq, %arg2, %c2_i32 : i32
    %10 = arith.extui %9 : i1 to i32
    %c0_i32_8 = arith.constant 0 : i32
    %11 = arith.cmpi ne, %10, %c0_i32_8 : i32
    scf.if %11 {
      %c0_9 = arith.constant 0 : index
      %c0_10 = arith.constant 0 : index
      %12 = vector.load %arg7[%c0_9, %c0_10] : memref<8x256xf32, #tpu.memory_space<vmem>>, vector<8x256xf32>
      %c0_11 = arith.constant 0 : index
      %c0_12 = arith.constant 0 : index
      %13 = vector.load %arg5[%c0_11, %c0_12] : memref<1x256xf32, #tpu.memory_space<vmem>>, vector<1x256xf32>
      %14 = vector.broadcast %13 : vector<1x256xf32> to vector<8x256xf32>
      %15 = arith.addf %12, %14 : vector<8x256xf32>
      %cst_13 = arith.constant 0.000000e+00 : f32
      %16 = vector.broadcast %cst_13 : f32 to vector<8x256xf32>
      %17 = arith.maximumf %15, %16 : vector<8x256xf32>
      %18 = vector.shape_cast %17 : vector<8x256xf32> to vector<2x4x256xf32>
      %cst_14 = arith.constant dense<0xFF800000> : vector<2x256xf32>
      %19 = vector.multi_reduction <maximumf>, %18, %cst_14 [1] : vector<2x4x256xf32> to vector<2x256xf32>
      %20 = arith.truncf %19 : vector<2x256xf32> to vector<2x256xbf16>
      %c0_15 = arith.constant 0 : index
      %c0_16 = arith.constant 0 : index
      %21 = vector.load %arg6[%c0_15, %c0_16] : memref<2x256xbf16, #tpu.memory_space<vmem>>, vector<2x256xbf16>
      tpu.vector_store %arg6[%c0_15, %c0_16], %20 {strides = array<i32>} : memref<2x256xbf16, #tpu.memory_space<vmem>>, vector<2x256xbf16>,
    } else {
    }
    return
  }
  func.func @transform_0(%arg0: i32, %arg1: i32, %arg2: i32) -> (i32, i32) {
    %c0_i32 = arith.constant 0 : i32
    return %arg0, %arg2 : i32, i32
  }
  func.func @transform_1(%arg0: i32, %arg1: i32, %arg2: i32) -> (i32, i32) {
    %c0_i32 = arith.constant 0 : i32
    return %arg2, %arg1 : i32, i32
  }
  func.func @transform_2(%arg0: i32, %arg1: i32, %arg2: i32) -> (i32, i32) {
    %c0_i32 = arith.constant 0 : i32
    %c0_i32_0 = arith.constant 0 : i32
    return %c0_i32, %arg1 : i32, i32
  }
  func.func @transform_3(%arg0: i32, %arg1: i32, %arg2: i32) -> (i32, i32) {
    %c0_i32 = arith.constant 0 : i32
    return %arg0, %arg1 : i32, i32
  }
}

module attributes {stable_mosaic.version = 11 : i64} {
  func.func @_spinal_kernel(%arg0: i32, %arg1: memref<2x512xbf16, #tpu.memory_space<vmem>>, %arg2: memref<256x512xbf16, #tpu.memory_space<vmem>>, %arg3: memref<1x512xf32, #tpu.memory_space<vmem>>, %arg4: memref<768x512xbf16, #tpu.memory_space<vmem>>, %arg5: memref<1x512xf32, #tpu.memory_space<vmem>>, %arg6: memref<768x512xbf16, #tpu.memory_space<vmem>>, %arg7: memref<1x512xf32, #tpu.memory_space<vmem>>, %arg8: memref<768x512xbf16, #tpu.memory_space<vmem>>, %arg9: memref<1x512xf32, #tpu.memory_space<vmem>>, %arg10: memref<2048x128xbf16, #tpu.memory_space<vmem>>, %arg11: memref<1x128xf32, #tpu.memory_space<vmem>>, %arg12: memref<2x128xf32, #tpu.memory_space<vmem>>) attributes {dimension_semantics = [#tpu.dimension_semantics<arbitrary>], iteration_bounds = array<i64: 1>, scalar_prefetch = 0 : i64, scratch_operands = 0 : i64, tpu.core_type = #tpu.core_type<tc>, window_params = [{pipeline_mode = #tpu.pipeline_mode<synchronous>, transform_indices = @transform_0, window_bounds = array<i64: 2, 512>}, {pipeline_mode = #tpu.pipeline_mode<synchronous>, transform_indices = @transform_1, window_bounds = array<i64: 256, 512>}, {pipeline_mode = #tpu.pipeline_mode<synchronous>, transform_indices = @transform_2, window_bounds = array<i64: 1, 512>}, {pipeline_mode = #tpu.pipeline_mode<synchronous>, transform_indices = @transform_3, window_bounds = array<i64: 768, 512>}, {pipeline_mode = #tpu.pipeline_mode<synchronous>, transform_indices = @transform_4, window_bounds = array<i64: 1, 512>}, {pipeline_mode = #tpu.pipeline_mode<synchronous>, transform_indices = @transform_5, window_bounds = array<i64: 768, 512>}, {pipeline_mode = #tpu.pipeline_mode<synchronous>, transform_indices = @transform_6, window_bounds = array<i64: 1, 512>}, {pipeline_mode = #tpu.pipeline_mode<synchronous>, transform_indices = @transform_7, window_bounds = array<i64: 768, 512>}, {pipeline_mode = #tpu.pipeline_mode<synchronous>, transform_indices = @transform_8, window_bounds = array<i64: 1, 512>}, {pipeline_mode = #tpu.pipeline_mode<synchronous>, transform_indices = @transform_9, window_bounds = array<i64: 2048, 128>}, {pipeline_mode = #tpu.pipeline_mode<synchronous>, transform_indices = @transform_10, window_bounds = array<i64: 1, 128>}, {pipeline_mode = #tpu.pipeline_mode<synchronous>, transform_indices = @transform_11, window_bounds = array<i64: 2, 128>}]} {
    %c0 = arith.constant 0 : index
    %c0_0 = arith.constant 0 : index
    %0 = vector.load %arg1[%c0, %c0_0] : memref<2x512xbf16, #tpu.memory_space<vmem>>, vector<2x256xbf16>
    %c0_1 = arith.constant 0 : index
    %c256 = arith.constant 256 : index
    %1 = vector.load %arg1[%c0_1, %c256] : memref<2x512xbf16, #tpu.memory_space<vmem>>, vector<2x256xbf16>
    %c0_2 = arith.constant 0 : index
    %c0_3 = arith.constant 0 : index
    %2 = vector.load %arg3[%c0_2, %c0_3] : memref<1x512xf32, #tpu.memory_space<vmem>>, vector<1x512xf32>
    %c0_4 = arith.constant 0 : index
    %c0_5 = arith.constant 0 : index
    %3 = vector.load %arg2[%c0_4, %c0_5] : memref<256x512xbf16, #tpu.memory_space<vmem>>, vector<256x512xbf16>
    %cst = arith.constant dense<0.000000e+00> : vector<2x512xf32>
    %4 = tpu.matmul %0, %3, %cst {dimension_numbers = #tpu.dot_dimension_numbers<[1], [0], [0], [1], [0, 0, 1, 1], [], []>} : vector<2x256xbf16>, vector<256x512xbf16>, vector<2x512xf32> -> vector<2x512xf32>
    %5 = vector.broadcast %2 : vector<1x512xf32> to vector<2x512xf32>
    %6 = arith.addf %5, %4 : vector<2x512xf32>
    %cst_6 = arith.constant 0.000000e+00 : f32
    %7 = vector.broadcast %cst_6 : f32 to vector<2x512xf32>
    %8 = arith.maximumf %6, %7 : vector<2x512xf32>
    %9 = arith.truncf %8 : vector<2x512xf32> to vector<2x512xbf16>
    %c0_7 = arith.constant 0 : index
    %c0_8 = arith.constant 0 : index
    %10 = vector.load %arg5[%c0_7, %c0_8] : memref<1x512xf32, #tpu.memory_space<vmem>>, vector<1x512xf32>
    %c0_9 = arith.constant 0 : index
    %c0_10 = arith.constant 0 : index
    %11 = vector.load %arg4[%c0_9, %c0_10] : memref<768x512xbf16, #tpu.memory_space<vmem>>, vector<256x512xbf16>
    %cst_11 = arith.constant dense<0.000000e+00> : vector<2x512xf32>
    %12 = tpu.matmul %1, %11, %cst_11 {dimension_numbers = #tpu.dot_dimension_numbers<[1], [0], [0], [1], [0, 0, 1, 1], [], []>} : vector<2x256xbf16>, vector<256x512xbf16>, vector<2x512xf32> -> vector<2x512xf32>
    %13 = vector.broadcast %10 : vector<1x512xf32> to vector<2x512xf32>
    %14 = arith.addf %13, %12 : vector<2x512xf32>
    %c256_12 = arith.constant 256 : index
    %c0_13 = arith.constant 0 : index
    %15 = vector.load %arg4[%c256_12, %c0_13] : memref<768x512xbf16, #tpu.memory_space<vmem>>, vector<512x512xbf16>
    %cst_14 = arith.constant dense<0.000000e+00> : vector<2x512xf32>
    %16 = tpu.matmul %9, %15, %cst_14 {dimension_numbers = #tpu.dot_dimension_numbers<[1], [0], [0], [1], [0, 0, 1, 1], [], []>} : vector<2x512xbf16>, vector<512x512xbf16>, vector<2x512xf32> -> vector<2x512xf32>
    %17 = arith.addf %14, %16 : vector<2x512xf32>
    %cst_15 = arith.constant 0.000000e+00 : f32
    %18 = vector.broadcast %cst_15 : f32 to vector<2x512xf32>
    %19 = arith.maximumf %17, %18 : vector<2x512xf32>
    %20 = arith.truncf %19 : vector<2x512xf32> to vector<2x512xbf16>
    %c0_16 = arith.constant 0 : index
    %c0_17 = arith.constant 0 : index
    %21 = vector.load %arg7[%c0_16, %c0_17] : memref<1x512xf32, #tpu.memory_space<vmem>>, vector<1x512xf32>
    %c0_18 = arith.constant 0 : index
    %c0_19 = arith.constant 0 : index
    %22 = vector.load %arg6[%c0_18, %c0_19] : memref<768x512xbf16, #tpu.memory_space<vmem>>, vector<256x512xbf16>
    %cst_20 = arith.constant dense<0.000000e+00> : vector<2x512xf32>
    %23 = tpu.matmul %0, %22, %cst_20 {dimension_numbers = #tpu.dot_dimension_numbers<[1], [0], [0], [1], [0, 0, 1, 1], [], []>} : vector<2x256xbf16>, vector<256x512xbf16>, vector<2x512xf32> -> vector<2x512xf32>
    %24 = vector.broadcast %21 : vector<1x512xf32> to vector<2x512xf32>
    %25 = arith.addf %24, %23 : vector<2x512xf32>
    %c256_21 = arith.constant 256 : index
    %c0_22 = arith.constant 0 : index
    %26 = vector.load %arg6[%c256_21, %c0_22] : memref<768x512xbf16, #tpu.memory_space<vmem>>, vector<512x512xbf16>
    %cst_23 = arith.constant dense<0.000000e+00> : vector<2x512xf32>
    %27 = tpu.matmul %20, %26, %cst_23 {dimension_numbers = #tpu.dot_dimension_numbers<[1], [0], [0], [1], [0, 0, 1, 1], [], []>} : vector<2x512xbf16>, vector<512x512xbf16>, vector<2x512xf32> -> vector<2x512xf32>
    %28 = arith.addf %25, %27 : vector<2x512xf32>
    %cst_24 = arith.constant 0.000000e+00 : f32
    %29 = vector.broadcast %cst_24 : f32 to vector<2x512xf32>
    %30 = arith.maximumf %28, %29 : vector<2x512xf32>
    %31 = arith.truncf %30 : vector<2x512xf32> to vector<2x512xbf16>
    %c0_25 = arith.constant 0 : index
    %c0_26 = arith.constant 0 : index
    %32 = vector.load %arg9[%c0_25, %c0_26] : memref<1x512xf32, #tpu.memory_space<vmem>>, vector<1x512xf32>
    %c0_27 = arith.constant 0 : index
    %c0_28 = arith.constant 0 : index
    %33 = vector.load %arg8[%c0_27, %c0_28] : memref<768x512xbf16, #tpu.memory_space<vmem>>, vector<256x512xbf16>
    %cst_29 = arith.constant dense<0.000000e+00> : vector<2x512xf32>
    %34 = tpu.matmul %1, %33, %cst_29 {dimension_numbers = #tpu.dot_dimension_numbers<[1], [0], [0], [1], [0, 0, 1, 1], [], []>} : vector<2x256xbf16>, vector<256x512xbf16>, vector<2x512xf32> -> vector<2x512xf32>
    %35 = vector.broadcast %32 : vector<1x512xf32> to vector<2x512xf32>
    %36 = arith.addf %35, %34 : vector<2x512xf32>
    %c256_30 = arith.constant 256 : index
    %c0_31 = arith.constant 0 : index
    %37 = vector.load %arg8[%c256_30, %c0_31] : memref<768x512xbf16, #tpu.memory_space<vmem>>, vector<512x512xbf16>
    %cst_32 = arith.constant dense<0.000000e+00> : vector<2x512xf32>
    %38 = tpu.matmul %31, %37, %cst_32 {dimension_numbers = #tpu.dot_dimension_numbers<[1], [0], [0], [1], [0, 0, 1, 1], [], []>} : vector<2x512xbf16>, vector<512x512xbf16>, vector<2x512xf32> -> vector<2x512xf32>
    %39 = arith.addf %36, %38 : vector<2x512xf32>
    %cst_33 = arith.constant 0.000000e+00 : f32
    %40 = vector.broadcast %cst_33 : f32 to vector<2x512xf32>
    %41 = arith.maximumf %39, %40 : vector<2x512xf32>
    %42 = arith.truncf %41 : vector<2x512xf32> to vector<2x512xbf16>
    %c0_34 = arith.constant 0 : index
    %c0_35 = arith.constant 0 : index
    %43 = vector.load %arg11[%c0_34, %c0_35] : memref<1x128xf32, #tpu.memory_space<vmem>>, vector<1x128xf32>
    %c0_36 = arith.constant 0 : index
    %c0_37 = arith.constant 0 : index
    %44 = vector.load %arg10[%c0_36, %c0_37] : memref<2048x128xbf16, #tpu.memory_space<vmem>>, vector<512x128xbf16>
    %cst_38 = arith.constant dense<0.000000e+00> : vector<2x128xf32>
    %45 = tpu.matmul %9, %44, %cst_38 {dimension_numbers = #tpu.dot_dimension_numbers<[1], [0], [0], [1], [0, 0, 1, 1], [], []>} : vector<2x512xbf16>, vector<512x128xbf16>, vector<2x128xf32> -> vector<2x128xf32>
    %46 = vector.broadcast %43 : vector<1x128xf32> to vector<2x128xf32>
    %47 = arith.addf %46, %45 : vector<2x128xf32>
    %c512 = arith.constant 512 : index
    %c0_39 = arith.constant 0 : index
    %48 = vector.load %arg10[%c512, %c0_39] : memref<2048x128xbf16, #tpu.memory_space<vmem>>, vector<512x128xbf16>
    %cst_40 = arith.constant dense<0.000000e+00> : vector<2x128xf32>
    %49 = tpu.matmul %20, %48, %cst_40 {dimension_numbers = #tpu.dot_dimension_numbers<[1], [0], [0], [1], [0, 0, 1, 1], [], []>} : vector<2x512xbf16>, vector<512x128xbf16>, vector<2x128xf32> -> vector<2x128xf32>
    %50 = arith.addf %47, %49 : vector<2x128xf32>
    %c1024 = arith.constant 1024 : index
    %c0_41 = arith.constant 0 : index
    %51 = vector.load %arg10[%c1024, %c0_41] : memref<2048x128xbf16, #tpu.memory_space<vmem>>, vector<512x128xbf16>
    %cst_42 = arith.constant dense<0.000000e+00> : vector<2x128xf32>
    %52 = tpu.matmul %31, %51, %cst_42 {dimension_numbers = #tpu.dot_dimension_numbers<[1], [0], [0], [1], [0, 0, 1, 1], [], []>} : vector<2x512xbf16>, vector<512x128xbf16>, vector<2x128xf32> -> vector<2x128xf32>
    %53 = arith.addf %50, %52 : vector<2x128xf32>
    %c1536 = arith.constant 1536 : index
    %c0_43 = arith.constant 0 : index
    %54 = vector.load %arg10[%c1536, %c0_43] : memref<2048x128xbf16, #tpu.memory_space<vmem>>, vector<512x128xbf16>
    %cst_44 = arith.constant dense<0.000000e+00> : vector<2x128xf32>
    %55 = tpu.matmul %42, %54, %cst_44 {dimension_numbers = #tpu.dot_dimension_numbers<[1], [0], [0], [1], [0, 0, 1, 1], [], []>} : vector<2x512xbf16>, vector<512x128xbf16>, vector<2x128xf32> -> vector<2x128xf32>
    %56 = arith.addf %53, %55 : vector<2x128xf32>
    %c0_45 = arith.constant 0 : index
    %c0_46 = arith.constant 0 : index
    %57 = vector.load %arg12[%c0_45, %c0_46] : memref<2x128xf32, #tpu.memory_space<vmem>>, vector<2x128xf32>
    tpu.vector_store %arg12[%c0_45, %c0_46], %56 {strides = array<i32>} : memref<2x128xf32, #tpu.memory_space<vmem>>, vector<2x128xf32>,
    return
  }
  func.func @transform_0(%arg0: i32) -> (i32, i32) {
    %c0_i32 = arith.constant 0 : i32
    %c0_i32_0 = arith.constant 0 : i32
    %c0_i32_1 = arith.constant 0 : i32
    return %c0_i32, %c0_i32_0 : i32, i32
  }
  func.func @transform_1(%arg0: i32) -> (i32, i32) {
    %c0_i32 = arith.constant 0 : i32
    %c0_i32_0 = arith.constant 0 : i32
    %c0_i32_1 = arith.constant 0 : i32
    return %c0_i32, %c0_i32_0 : i32, i32
  }
  func.func @transform_2(%arg0: i32) -> (i32, i32) {
    %c0_i32 = arith.constant 0 : i32
    %c0_i32_0 = arith.constant 0 : i32
    %c0_i32_1 = arith.constant 0 : i32
    return %c0_i32, %c0_i32_0 : i32, i32
  }
  func.func @transform_3(%arg0: i32) -> (i32, i32) {
    %c0_i32 = arith.constant 0 : i32
    %c0_i32_0 = arith.constant 0 : i32
    %c0_i32_1 = arith.constant 0 : i32
    return %c0_i32, %c0_i32_0 : i32, i32
  }
  func.func @transform_4(%arg0: i32) -> (i32, i32) {
    %c0_i32 = arith.constant 0 : i32
    %c0_i32_0 = arith.constant 0 : i32
    %c0_i32_1 = arith.constant 0 : i32
    return %c0_i32, %c0_i32_0 : i32, i32
  }
  func.func @transform_5(%arg0: i32) -> (i32, i32) {
    %c0_i32 = arith.constant 0 : i32
    %c0_i32_0 = arith.constant 0 : i32
    %c0_i32_1 = arith.constant 0 : i32
    return %c0_i32, %c0_i32_0 : i32, i32
  }
  func.func @transform_6(%arg0: i32) -> (i32, i32) {
    %c0_i32 = arith.constant 0 : i32
    %c0_i32_0 = arith.constant 0 : i32
    %c0_i32_1 = arith.constant 0 : i32
    return %c0_i32, %c0_i32_0 : i32, i32
  }
  func.func @transform_7(%arg0: i32) -> (i32, i32) {
    %c0_i32 = arith.constant 0 : i32
    %c0_i32_0 = arith.constant 0 : i32
    %c0_i32_1 = arith.constant 0 : i32
    return %c0_i32, %c0_i32_0 : i32, i32
  }
  func.func @transform_8(%arg0: i32) -> (i32, i32) {
    %c0_i32 = arith.constant 0 : i32
    %c0_i32_0 = arith.constant 0 : i32
    %c0_i32_1 = arith.constant 0 : i32
    return %c0_i32, %c0_i32_0 : i32, i32
  }
  func.func @transform_9(%arg0: i32) -> (i32, i32) {
    %c0_i32 = arith.constant 0 : i32
    %c0_i32_0 = arith.constant 0 : i32
    %c0_i32_1 = arith.constant 0 : i32
    return %c0_i32, %c0_i32_0 : i32, i32
  }
  func.func @transform_10(%arg0: i32) -> (i32, i32) {
    %c0_i32 = arith.constant 0 : i32
    %c0_i32_0 = arith.constant 0 : i32
    %c0_i32_1 = arith.constant 0 : i32
    return %c0_i32, %c0_i32_0 : i32, i32
  }
  func.func @transform_11(%arg0: i32) -> (i32, i32) {
    %c0_i32 = arith.constant 0 : i32
    %c0_i32_0 = arith.constant 0 : i32
    %c0_i32_1 = arith.constant 0 : i32
    return %c0_i32, %c0_i32_0 : i32, i32
  }
}

module attributes {stable_mosaic.version = 11 : i64} {
  func.func @_mm_acc_kernel(%arg0: i32, %arg1: i32, %arg2: i32, %arg3: memref<2x768xbf16, #tpu.memory_space<vmem>>, %arg4: memref<768x256xbf16, #tpu.memory_space<vmem>>, %arg5: memref<1x256xf32, #tpu.memory_space<vmem>>, %arg6: memref<2x256xbf16, #tpu.memory_space<vmem>>, %arg7: memref<2x256xf32, #tpu.memory_space<vmem>>) attributes {dimension_semantics = [#tpu.dimension_semantics<parallel>, #tpu.dimension_semantics<parallel>, #tpu.dimension_semantics<arbitrary>], iteration_bounds = array<i64: 1, 2, 3>, scalar_prefetch = 0 : i64, scratch_operands = 1 : i64, tpu.core_type = #tpu.core_type<tc>, window_params = [{transform_indices = @transform_0, window_bounds = array<i64: 2, 768>}, {transform_indices = @transform_1, window_bounds = array<i64: 768, 256>}, {transform_indices = @transform_2, window_bounds = array<i64: 1, 256>}, {transform_indices = @transform_3, window_bounds = array<i64: 2, 256>}]} {
    %c0_i32 = arith.constant 0 : i32
    %0 = arith.cmpi eq, %arg2, %c0_i32 : i32
    %1 = arith.extui %0 : i1 to i32
    %c0_i32_0 = arith.constant 0 : i32
    %2 = arith.cmpi ne, %1, %c0_i32_0 : i32
    scf.if %2 {
      %cst_9 = arith.constant 0.000000e+00 : f32
      %12 = vector.broadcast %cst_9 : f32 to vector<2x256xf32>
      %c0_10 = arith.constant 0 : index
      %c0_11 = arith.constant 0 : index
      %13 = vector.load %arg7[%c0_10, %c0_11] : memref<2x256xf32, #tpu.memory_space<vmem>>, vector<2x256xf32>
      tpu.vector_store %arg7[%c0_10, %c0_11], %12 {strides = array<i32>} : memref<2x256xf32, #tpu.memory_space<vmem>>, vector<2x256xf32>,
    } else {
    }
    %c0 = arith.constant 0 : index
    %c0_1 = arith.constant 0 : index
    %3 = vector.load %arg7[%c0, %c0_1] : memref<2x256xf32, #tpu.memory_space<vmem>>, vector<2x256xf32>
    %c0_2 = arith.constant 0 : index
    %c0_3 = arith.constant 0 : index
    %4 = vector.load %arg3[%c0_2, %c0_3] : memref<2x768xbf16, #tpu.memory_space<vmem>>, vector<2x768xbf16>
    %c0_4 = arith.constant 0 : index
    %c0_5 = arith.constant 0 : index
    %5 = vector.load %arg4[%c0_4, %c0_5] : memref<768x256xbf16, #tpu.memory_space<vmem>>, vector<768x256xbf16>
    %cst = arith.constant dense<0.000000e+00> : vector<2x256xf32>
    %6 = tpu.matmul %4, %5, %cst {dimension_numbers = #tpu.dot_dimension_numbers<[1], [0], [0], [1], [0, 0, 1, 1], [], []>} : vector<2x768xbf16>, vector<768x256xbf16>, vector<2x256xf32> -> vector<2x256xf32>
    %7 = arith.addf %3, %6 : vector<2x256xf32>
    %c0_6 = arith.constant 0 : index
    %c0_7 = arith.constant 0 : index
    %8 = vector.load %arg7[%c0_6, %c0_7] : memref<2x256xf32, #tpu.memory_space<vmem>>, vector<2x256xf32>
    tpu.vector_store %arg7[%c0_6, %c0_7], %7 {strides = array<i32>} : memref<2x256xf32, #tpu.memory_space<vmem>>, vector<2x256xf32>,
    %c2_i32 = arith.constant 2 : i32
    %9 = arith.cmpi eq, %arg2, %c2_i32 : i32
    %10 = arith.extui %9 : i1 to i32
    %c0_i32_8 = arith.constant 0 : i32
    %11 = arith.cmpi ne, %10, %c0_i32_8 : i32
    scf.if %11 {
      %c0_9 = arith.constant 0 : index
      %c0_10 = arith.constant 0 : index
      %12 = vector.load %arg7[%c0_9, %c0_10] : memref<2x256xf32, #tpu.memory_space<vmem>>, vector<2x256xf32>
      %c0_11 = arith.constant 0 : index
      %c0_12 = arith.constant 0 : index
      %13 = vector.load %arg5[%c0_11, %c0_12] : memref<1x256xf32, #tpu.memory_space<vmem>>, vector<1x256xf32>
      %14 = vector.broadcast %13 : vector<1x256xf32> to vector<2x256xf32>
      %15 = arith.addf %12, %14 : vector<2x256xf32>
      %cst_13 = arith.constant 0.000000e+00 : f32
      %16 = vector.broadcast %cst_13 : f32 to vector<2x256xf32>
      %17 = arith.maximumf %15, %16 : vector<2x256xf32>
      %18 = arith.truncf %17 : vector<2x256xf32> to vector<2x256xbf16>
      %c0_14 = arith.constant 0 : index
      %c0_15 = arith.constant 0 : index
      %19 = vector.load %arg6[%c0_14, %c0_15] : memref<2x256xbf16, #tpu.memory_space<vmem>>, vector<2x256xbf16>
      tpu.vector_store %arg6[%c0_14, %c0_15], %18 {strides = array<i32>} : memref<2x256xbf16, #tpu.memory_space<vmem>>, vector<2x256xbf16>,
    } else {
    }
    return
  }
  func.func @transform_0(%arg0: i32, %arg1: i32, %arg2: i32) -> (i32, i32) {
    %c0_i32 = arith.constant 0 : i32
    return %arg0, %arg2 : i32, i32
  }
  func.func @transform_1(%arg0: i32, %arg1: i32, %arg2: i32) -> (i32, i32) {
    %c0_i32 = arith.constant 0 : i32
    return %arg2, %arg1 : i32, i32
  }
  func.func @transform_2(%arg0: i32, %arg1: i32, %arg2: i32) -> (i32, i32) {
    %c0_i32 = arith.constant 0 : i32
    %c0_i32_0 = arith.constant 0 : i32
    return %c0_i32, %arg1 : i32, i32
  }
  func.func @transform_3(%arg0: i32, %arg1: i32, %arg2: i32) -> (i32, i32) {
    %c0_i32 = arith.constant 0 : i32
    return %arg0, %arg1 : i32, i32
  }
}

</mosaic_0001>

<bundles_post_ra>
// kernel: spinal_vgg_forward.6
= control target key start
LH: loop header
LB: loop body
LE: loop exit
PB: predicated region body
PF: predicated region fallthrough
CT: control target
= control target key end

     0   :  { %8 = vsyncpa [#allocation3], 0  ;;  %s715_s15 = smov [#allocation2]   ;;  %s910_s0 = inlined_call_operand.vmem [shape: bf16[128,27], index: 0, kind: input, shape index: {}]   ;;  %s911_s1 = inlined_call_operand.vmem [shape: bf16[27,128], index: 1, kind: input, shape index: {}]   ;;  %s912_s2 = inlined_call_operand.hbm [shape: f32[1,128], index: 2, kind: input, shape index: {}]   ;;  %s913_s3 = inlined_call_operand.vmem [shape: bf16[32,128], index: 3, kind: output, shape index: {}]  }
   0x1   :  { %s18_s14 = sshll.u32 %s912_s2, 4  ;;  %s20_s16 = sshll.u32 %s715_s15, 4  ;;  %s19_s14 = int_to_ptr.hbm [resolvable:$true] %s18_s14  ;;  %s21_s16 = int_to_ptr.vmem [resolvable:$true] %s20_s16 }
   0x2   :  { %23 = dma.hbm_to_vmem [thread:$0]  %s19_s14, 16, %s21_s16, [#allocation3]  }
   0x3   :  { %713 = dma.done.wait [#allocation3], 16  }
   0x4   :  { %714 = vsyncadd [#allocation3], 4294967280  ;;  %vm129_vm0 = vcmask 1044480   ;;  %vm130_vm1 = vcmask 1045504   ;;  %v716_v0 = vmov 65535   ;;  %v678_v7 = vld [vmem:[%s911_s1] sm:$0xff] }
   0x5   :  { %v131_v1 = vsel %vm129_vm0, 4294967295, %v716_v0  ;;  %v660_v2 = vld [vmem:[%s911_s1 + $0x8] sm:$0xf]  ;;  %v679_v3 = vld [vmem:[%s911_s1 + $0x8] sm:$0x30]  ;;  %v670_v8 = vld [vmem:[%s910_s0] sm:$0xff] }
   0x6   :  { %v132_v4 = vsel %vm130_vm1, %v131_v1, 0  ;;  %v661_v5 = vor.u32 %v679_v3, %v660_v2  ;;  %v672_v9 = vld [vmem:[%s910_s0 + $0x10] sm:$0xff]  ;;  %vm104_vm2 = vcmask 220160   ;;  %v674_v10 = vld [vmem:[%s910_s0 + $0x20] sm:$0xff]  ;;  %v671_v12 = vld [vmem:[%s910_s0 + $0x8] sm:$0xff]  ;;  %vm249_vm3 = vcmask 1043456  }
   0x7   :  { %v676_v11 = vld [vmem:[%s910_s0 + $0x30] sm:$0xff]  ;;  %v673_v13 = vld [vmem:[%s910_s0 + $0x18] sm:$0xff]  ;;  %v675_v14 = vld [vmem:[%s910_s0 + $0x28] sm:$0xff]  ;;  %vm570_vm4 = vcmask 1041409   ;;  %vm572_vm5 = vcmask 1042434   ;;  %vm574_vm6 = vcmask 1043459  }
   0x8   :  { %v134_v6 = vand.u32 %v661_v5, %v132_v4  ;;  %v677_v15 = vld [vmem:[%s910_s0 + $0x38] sm:$0xff]  ;;  %v781_v16 = vld [vmem:[#allocation2] ss:$0 sm:$0xff]  ;;  %vm576_vm7 = vcmask 1044484   ;;  %vm578_vm8 = vcmask 1045509   ;;  %vm580_vm9 = vcmask 1046534  }
   0x9   :  { %vm582_vm10 = vcmask 1047559  }
   0xa   :  { %142 = vmatpush.bf16.msra.mxu0 %v134_v6  ;;  %680 = vmatpush.bf16.msra.mxu1 %v134_v6 }
   0xb   :  { %681 = vmatpush.bf16.msra.mxu2 %v134_v6  ;;  %682 = vmatpush.bf16.msra.mxu3 %v134_v6 }
   0xe   :  { %143 = vmatpush.bf16.msra.mxu0 %v678_v7  ;;  %683 = vmatpush.bf16.msra.mxu1 %v678_v7 }
   0xf   :  { %684 = vmatpush.bf16.msra.mxu2 %v678_v7  ;;  %685 = vmatpush.bf16.msra.mxu3 %v678_v7 }
  0x11   :  { %662 = vmatmul.msk.bf16.vlgmr.msra.gmra.mxu0 %vm104_vm2, %v670_v8  ;;  %664 = vmatmul.msk.bf16.vlgmr.msra.gmra.mxu1 %vm104_vm2, %v672_v9 }
  0x12   :  { %666 = vmatmul.msk.bf16.vlgmr.msra.gmra.mxu2 %vm104_vm2, %v674_v10  ;;  %668 = vmatmul.msk.bf16.vlgmr.msra.gmra.mxu3 %vm104_vm2, %v676_v11 }
  0x21   :  { %663 = vmatmul.msk.bf16.gmra.mxu0 %vm104_vm2, %v671_v12  ;;  %665 = vmatmul.msk.bf16.gmra.mxu1 %vm104_vm2, %v673_v13 }
  0x22   :  { %667 = vmatmul.msk.bf16.gmra.mxu2 %vm104_vm2, %v675_v14  ;;  %669 = vmatmul.msk.bf16.gmra.mxu3 %vm104_vm2, %v677_v15 }
  0x8e   :  { %v145_v17 = vpop.f32.mrf.mxu0  ;;  %v155_v18 = vpop.f32.mrf.mxu1 }
  0x8f   :  { %v146_v19 = vadd.f32 %v781_v16, %v145_v17  ;;  %v156_v20 = vadd.f32 %v781_v16, %v155_v18 }
  0x91   :  { %v185_v21 = vmax.f32 %v146_v19, 0.0  ;;  %v189_v22 = vmax.f32 %v156_v20, 0.0 }
  0x93   :  { %v217_v23 = vrot.slane %v185_v21, 4  ;;  %v250_v24 = vsel %vm249_vm3, %v185_v21, -inf  ;;  %v221_v25 = vrot.slane %v189_v22, 4  ;;  %v306_v26 = vsel %vm249_vm3, %v189_v22, -inf }
  0x94   :  { %v251_v27 = vrot.slane %v250_v24, 4  ;;  %v307_v28 = vrot.slane %v306_v26, 4 }
  0x95   :  { %v257_v29 = vsel %vm249_vm3, %v217_v23, -inf  ;;  %v313_v30 = vsel %vm249_vm3, %v221_v25, -inf  ;;  %v165_v31 = vpop.f32.mrf.mxu2  ;;  %v175_v32 = vpop.f32.mrf.mxu3 }
  0x96   :  { %v252_v33 = vmax.f32 %v250_v24, %v251_v27  ;;  %v258_v34 = vrot.slane %v257_v29, 4  ;;  %v308_v35 = vmax.f32 %v306_v26, %v307_v28  ;;  %v314_v36 = vrot.slane %v313_v30, 4  ;;  %v147_v37 = vpop.f32.mrf.mxu0  ;;  %v157_v11 = vpop.f32.mrf.mxu1 }
  0x97   :  { %v166_v38 = vadd.f32 %v781_v16, %v165_v31  ;;  %v176_v39 = vadd.f32 %v781_v16, %v175_v32  ;;  %v148_v46 = vadd.f32 %v781_v16, %v147_v37  ;;  %v158_v20 = vadd.f32 %v781_v16, %v157_v11 }
  0x98   :  { %v253_v40 = vrot.slane %v252_v33, 2  ;;  %v259_v41 = vmax.f32 %v257_v29, %v258_v34  ;;  %v309_v42 = vrot.slane %v308_v35, 2  ;;  %v315_v43 = vmax.f32 %v313_v30, %v314_v36 }
  0x99   :  { %v193_v44 = vmax.f32 %v166_v38, 0.0  ;;  %v197_v45 = vmax.f32 %v176_v39, 0.0  ;;  %v186_v6 = vmax.f32 %v148_v46, 0.0  ;;  %v190_v34 = vmax.f32 %v158_v20, 0.0 }
  0x9a   :  { %v254_v47 = vmax.f32 %v252_v33, %v253_v40  ;;  %v260_v48 = vrot.slane %v259_v41, 2  ;;  %v310_v49 = vmax.f32 %v308_v35, %v309_v42  ;;  %v316_v50 = vrot.slane %v315_v43, 2 }
  0x9b   :  { %v225_v51 = vrot.slane %v193_v44, 4  ;;  %v362_v52 = vsel %vm249_vm3, %v193_v44, -inf  ;;  %v229_v53 = vrot.slane %v197_v45, 4  ;;  %v418_v54 = vsel %vm249_vm3, %v197_v45, -inf }
  0x9c   :  { %v255_v55 = vrot.slane %v254_v47, 1  ;;  %v261_v56 = vmax.f32 %v259_v41, %v260_v48  ;;  %v311_v57 = vrot.slane %v310_v49, 1  ;;  %v317_v58 = vmax.f32 %v315_v43, %v316_v50 }
  0x9d   :  { %v363_v59 = vrot.slane %v362_v52, 4  ;;  %v369_v60 = vsel %vm249_vm3, %v225_v51, -inf  ;;  %v419_v61 = vrot.slane %v418_v54, 4  ;;  %v425_v62 = vsel %vm249_vm3, %v229_v53, -inf  ;;  %v167_v26 = vpop.f32.mrf.mxu2 }
  0x9e   :  { %v262_v63 = vrot.slane %v261_v56, 1  ;;  %v318_v0 = vrot.slane %v317_v58, 1  ;;  %v370_v2 = vrot.slane %v369_v60, 4  ;;  %v426_v4 = vrot.slane %v425_v62, 4 }
  0x9f   :  { %v364_v1 = vmax.f32 %v362_v52, %v363_v59  ;;  %v420_v3 = vmax.f32 %v418_v54, %v419_v61  ;;  %v256_v5 = vmax.f32 %v254_v47, %v255_v55  ;;  %v312_v8 = vmax.f32 %v310_v49, %v311_v57  ;;  %v177_v47 = vpop.f32.mrf.mxu3 }
  0xa0   :  { %v263_v7 = vmax.f32 %v261_v56, %v262_v63  ;;  %v371_v9 = vmax.f32 %v369_v60, %v370_v2  ;;  %v427_v10 = vmax.f32 %v425_v62, %v426_v4  ;;  %v319_v12 = vmax.f32 %v317_v58, %v318_v0 }
  0xa1   :  { %v365_v13 = vrot.slane %v364_v1, 2  ;;  %v421_v15 = vrot.slane %v420_v3, 2  ;;  %v474_v17 = vpack.c.bf16 %v256_v5, %v256_v5  ;;  %v218_v18 = vrot.slane %v186_v6, 4 }
  0xa2   :  { %v372_v14 = vrot.slane %v371_v9, 2  ;;  %v264_v19 = vsel %vm249_vm3, %v186_v6, -inf  ;;  %v475_v21 = vpack.c.bf16 %v263_v7, %v263_v7  ;;  %v482_v22 = vpack.c.bf16 %v312_v8, %v312_v8 }
  0xa3   :  { %v428_v23 = vrot.slane %v427_v10, 2  ;;  %v265_v24 = vrot.slane %v264_v19, 4  ;;  %v271_v25 = vsel %vm249_vm3, %v218_v18, -inf  ;;  %v483_v27 = vpack.c.bf16 %v319_v12, %v319_v12 }
  0xa4   :  { %v366_v28 = vmax.f32 %v364_v1, %v365_v13  ;;  %v373_v29 = vmax.f32 %v371_v9, %v372_v14  ;;  %v422_v30 = vmax.f32 %v420_v3, %v421_v15  ;;  %v538_v31 = vunpack.c.l.b16 %v474_v17 }
  0xa5   :  { %v266_v32 = vmax.f32 %v264_v19, %v265_v24  ;;  %v272_v33 = vrot.slane %v271_v25, 4  ;;  %v539_v35 = vunpack.c.l.b16 %v475_v21  ;;  %v799_v36 = vunpack.c.l.b16 %v482_v22 }
  0xa6   :  { %v429_v37 = vmax.f32 %v427_v10, %v428_v23  ;;  %v168_v38 = vadd.f32 %v781_v16, %v167_v26  ;;  %v222_v41 = vrot.slane %v190_v34, 4  ;;  %v320_v42 = vsel %vm249_vm3, %v190_v34, -inf }
  0xa7   :  { %v267_v39 = vrot.slane %v266_v32, 2  ;;  %v273_v40 = vmax.f32 %v271_v25, %v272_v33  ;;  %v803_v43 = vunpack.c.l.b16 %v483_v27  ;;  %v367_v44 = vrot.slane %v366_v28, 1  ;;  %v150_v25 = vpop.f32.mrf.mxu0 }
  0xa8   :  { %v374_v45 = vrot.slane %v373_v29, 1  ;;  %v423_v46 = vrot.slane %v422_v30, 1  ;;  %v321_v50 = vrot.slane %v320_v42, 4  ;;  %v327_v51 = vsel %vm249_vm3, %v222_v41, -inf }
  0xa9   :  { %v268_v48 = vmax.f32 %v266_v32, %v267_v39  ;;  %v274_v49 = vrot.slane %v273_v40, 2  ;;  %v807_v52 = vsel %vm570_vm4, %v539_v35, %v538_v31  ;;  %v430_v53 = vrot.slane %v429_v37, 1 }
  0xaa   :  { %v328_v54 = vrot.slane %v327_v51, 4  ;;  %v194_v55 = vmax.f32 %v168_v38, 0.0  ;;  %v322_v58 = vmax.f32 %v320_v42, %v321_v50  ;;  %v178_v59 = vadd.f32 %v781_v16, %v177_v47 }
  0xab   :  { %v269_v56 = vrot.slane %v268_v48, 1  ;;  %v275_v57 = vmax.f32 %v273_v40, %v274_v49  ;;  %v368_v60 = vmax.f32 %v366_v28, %v367_v44  ;;  %v424_v61 = vmax.f32 %v422_v30, %v423_v46 }
  0xac   :  { %v329_v62 = vmax.f32 %v327_v51, %v328_v54  ;;  %v226_v63 = vrot.slane %v194_v55, 4  ;;  %v375_v0 = vmax.f32 %v373_v29, %v374_v45  ;;  %v323_v2 = vrot.slane %v322_v58, 2 }
  0xad   :  { %v276_v1 = vrot.slane %v275_v57, 1  ;;  %v376_v3 = vsel %vm249_vm3, %v194_v55, -inf  ;;  %v198_v7 = vmax.f32 %v178_v59, 0.0  ;;  %v431_v8 = vmax.f32 %v429_v37, %v430_v53 }
  0xae   :  { %v330_v4 = vrot.slane %v329_v62, 2  ;;  %v377_v5 = vrot.slane %v376_v3, 4  ;;  %v383_v6 = vsel %vm249_vm3, %v226_v63, -inf  ;;  %v270_v9 = vmax.f32 %v268_v48, %v269_v56 }
  0xaf   :  { %v324_v10 = vmax.f32 %v322_v58, %v323_v2  ;;  %v384_v11 = vrot.slane %v383_v6, 4  ;;  %v230_v14 = vrot.slane %v198_v7, 4  ;;  %v432_v15 = vsel %vm249_vm3, %v198_v7, -inf }
  0xb0   :  { %v331_v12 = vmax.f32 %v329_v62, %v330_v4  ;;  %v378_v13 = vmax.f32 %v376_v3, %v377_v5  ;;  %v491_v17 = vpack.c.bf16 %v375_v0, %v375_v0  ;;  %v277_v18 = vmax.f32 %v275_v57, %v276_v1 }
  0xb1   :  { %v325_v19 = vrot.slane %v324_v10, 1  ;;  %v385_v20 = vmax.f32 %v383_v6, %v384_v11  ;;  %v433_v23 = vrot.slane %v432_v15, 4  ;;  %v439_v24 = vsel %vm249_vm3, %v230_v14, -inf }
  0xb2   :  { %v332_v21 = vrot.slane %v331_v12, 1  ;;  %v379_v22 = vrot.slane %v378_v13, 2  ;;  %v490_v26 = vpack.c.bf16 %v368_v60, %v368_v60  ;;  %v476_v27 = vpack.c.bf16 %v270_v9, %v270_v9  ;;  %v180_v9 = vpop.f32.mrf.mxu3 }
  0xb3   :  { %v326_v28 = vmax.f32 %v324_v10, %v325_v19  ;;  %v386_v29 = vrot.slane %v385_v20, 2  ;;  %v434_v32 = vmax.f32 %v432_v15, %v433_v23  ;;  %v440_v33 = vrot.slane %v439_v24, 4 }
  0xb4   :  { %v333_v30 = vmax.f32 %v331_v12, %v332_v21  ;;  %v380_v31 = vmax.f32 %v378_v13, %v379_v22  ;;  %v498_v34 = vpack.c.bf16 %v424_v61, %v424_v61  ;;  %v499_v35 = vpack.c.bf16 %v431_v8, %v431_v8  ;;  %v160_v61 = vpop.f32.mrf.mxu1 }
  0xb5   :  { %v484_v37 = vpack.c.bf16 %v326_v28, %v326_v28  ;;  %v151_v38 = vadd.f32 %v781_v16, %v150_v25  ;;  %v555_v39 = vunpack.c.l.b16 %v491_v17  ;;  %v477_v40 = vpack.c.bf16 %v277_v18, %v277_v18 }
  0xb6   :  { %v387_v41 = vmax.f32 %v385_v20, %v386_v29  ;;  %v441_v42 = vmax.f32 %v439_v24, %v440_v33  ;;  %v584_v44 = vsel %vm570_vm4, %v803_v43, %v799_v36  ;;  %v540_v45 = vunpack.c.l.b16 %v476_v27  ;;  %v170_v36 = vpop.f32.mrf.mxu2 }
  0xb7   :  { %v485_v46 = vpack.c.bf16 %v333_v30, %v333_v30  ;;  %v187_v47 = vmax.f32 %v151_v38, 0.0  ;;  %v554_v48 = vunpack.c.l.b16 %v490_v26  ;;  %v548_v49 = vunpack.c.l.b16 %v484_v37 }
  0xb8   :  { %v381_v50 = vrot.slane %v380_v31, 1  ;;  %v435_v51 = vrot.slane %v434_v32, 2  ;;  %v562_v53 = vunpack.c.l.b16 %v498_v34  ;;  %v563_v54 = vunpack.c.l.b16 %v499_v35 }
  0xb9   :  { %v219_v55 = vrot.slane %v187_v47, 4  ;;  %v278_v56 = vsel %vm249_vm3, %v187_v47, -inf  ;;  %v820_v57 = vsel %vm570_vm4, %v555_v39, %v554_v48  ;;  %v541_v58 = vunpack.c.l.b16 %v477_v40  ;;  %v152_v48 = vpop.f32.mrf.mxu0 }
  0xba   :  { %v388_v59 = vrot.slane %v387_v41, 1  ;;  %v442_v60 = vrot.slane %v441_v42, 2  ;;  %v573_v43 = vsel %vm572_vm5, %v540_v45, %v807_v52  ;;  %v549_v62 = vunpack.c.l.b16 %v485_v46 }
  0xbb   :  { %v279_v63 = vrot.slane %v278_v56, 4  ;;  %v285_v0 = vsel %vm249_vm3, %v219_v55, -inf  ;;  %v585_v1 = vsel %vm572_vm5, %v548_v49, %v584_v44  ;;  %v382_v2 = vmax.f32 %v380_v31, %v381_v50 }
  0xbc   :  { %v436_v3 = vmax.f32 %v434_v32, %v435_v51  ;;  %v286_v4 = vrot.slane %v285_v0, 4  ;;  %v827_v5 = vsel %vm570_vm4, %v563_v54, %v562_v53  ;;  %v161_v7 = vadd.f32 %v781_v16, %v160_v61 }
  0xbd   :  { %v280_v6 = vmax.f32 %v278_v56, %v279_v63  ;;  %v171_v8 = vadd.f32 %v781_v16, %v170_v36  ;;  %v832_v52 = vsel %vm574_vm6, %v541_v58, %v573_v43  ;;  %v389_v10 = vmax.f32 %v387_v41, %v388_v59 }
  0xbe   :  { %v443_v11 = vmax.f32 %v441_v42, %v442_v60  ;;  %v287_v12 = vmax.f32 %v285_v0, %v286_v4  ;;  %v835_v13 = vsel %vm574_vm6, %v549_v62, %v585_v1  ;;  %v191_v15 = vmax.f32 %v161_v7, 0.0 }
  0xbf   :  { %v281_v14 = vrot.slane %v280_v6, 2  ;;  %v195_v17 = vmax.f32 %v171_v8, 0.0  ;;  %v492_v18 = vpack.c.bf16 %v382_v2, %v382_v2  ;;  %v437_v19 = vrot.slane %v436_v3, 1 }
  0xc0   :  { %v288_v20 = vrot.slane %v287_v12, 2  ;;  %v181_v21 = vadd.f32 %v781_v16, %v180_v9  ;;  %v223_v23 = vrot.slane %v191_v15, 4  ;;  %v334_v24 = vsel %vm249_vm3, %v191_v15, -inf }
  0xc1   :  { %v282_v22 = vmax.f32 %v280_v6, %v281_v14  ;;  %v227_v25 = vrot.slane %v195_v17, 4  ;;  %v493_v26 = vpack.c.bf16 %v389_v10, %v389_v10  ;;  %v444_v27 = vrot.slane %v443_v11, 1 }
  0xc2   :  { %v289_v28 = vmax.f32 %v287_v12, %v288_v20  ;;  %v335_v29 = vrot.slane %v334_v24, 4  ;;  %v341_v31 = vsel %vm249_vm3, %v223_v23, -inf  ;;  %v390_v32 = vsel %vm249_vm3, %v195_v17, -inf }
  0xc3   :  { %v283_v30 = vrot.slane %v282_v22, 1  ;;  %v397_v33 = vsel %vm249_vm3, %v227_v25, -inf  ;;  %v556_v34 = vunpack.c.l.b16 %v492_v18  ;;  %v342_v38 = vrot.slane %v341_v31, 4 }
  0xc4   :  { %v290_v35 = vrot.slane %v289_v28, 1  ;;  %v336_v37 = vmax.f32 %v334_v24, %v335_v29  ;;  %v438_v39 = vmax.f32 %v436_v3, %v437_v19  ;;  %v391_v40 = vrot.slane %v390_v32, 4 }
  0xc5   :  { %v398_v41 = vrot.slane %v397_v33, 4  ;;  %v199_v42 = vmax.f32 %v181_v21, 0.0  ;;  %v557_v44 = vunpack.c.l.b16 %v493_v26  ;;  %v284_v45 = vmax.f32 %v282_v22, %v283_v30 }
  0xc6   :  { %v337_v46 = vrot.slane %v336_v37, 2  ;;  %v343_v47 = vmax.f32 %v341_v31, %v342_v38  ;;  %v445_v49 = vmax.f32 %v443_v11, %v444_v27  ;;  %v392_v50 = vmax.f32 %v390_v32, %v391_v40  ;;  %v172_v40 = vpop.f32.mrf.mxu2 }
  0xc7   :  { %v399_v51 = vmax.f32 %v397_v33, %v398_v41  ;;  %v231_v53 = vrot.slane %v199_v42, 4  ;;  %v291_v54 = vmax.f32 %v289_v28, %v290_v35  ;;  %v446_v58 = vsel %vm249_vm3, %v199_v42, -inf }
  0xc8   :  { %v338_v55 = vmax.f32 %v336_v37, %v337_v46  ;;  %v344_v56 = vrot.slane %v343_v47, 2  ;;  %v393_v59 = vrot.slane %v392_v50, 2  ;;  %v447_v61 = vrot.slane %v446_v58, 4  ;;  %v182_v46 = vpop.f32.mrf.mxu3 }
  0xc9   :  { %v400_v60 = vrot.slane %v399_v51, 2  ;;  %v153_v36 = vadd.f32 %v781_v16, %v152_v48  ;;  %v478_v43 = vpack.c.bf16 %v284_v45, %v284_v45  ;;  %v453_v0 = vsel %vm249_vm3, %v231_v53, -inf }
  0xca   :  { %v339_v62 = vrot.slane %v338_v55, 1  ;;  %v345_v63 = vmax.f32 %v343_v47, %v344_v56  ;;  %v500_v1 = vpack.c.bf16 %v438_v39, %v438_v39  ;;  %v394_v2 = vmax.f32 %v392_v50, %v393_v59 }
  0xcb   :  { %v401_v3 = vmax.f32 %v399_v51, %v400_v60  ;;  %v448_v4 = vmax.f32 %v446_v58, %v447_v61  ;;  %v479_v6 = vpack.c.bf16 %v291_v54, %v291_v54  ;;  %v454_v9 = vrot.slane %v453_v0, 4 }
  0xcc   :  { %v340_v7 = vmax.f32 %v338_v55, %v339_v62  ;;  %v346_v8 = vrot.slane %v345_v63, 1  ;;  %v395_v10 = vrot.slane %v394_v2, 1  ;;  %v188_v14 = vmax.f32 %v153_v36, 0.0 }
  0xcd   :  { %v402_v11 = vrot.slane %v401_v3, 1  ;;  %v449_v12 = vrot.slane %v448_v4, 2  ;;  %v542_v15 = vunpack.c.l.b16 %v478_v43  ;;  %v455_v19 = vmax.f32 %v453_v0, %v454_v9 }
  0xce   :  { %v347_v17 = vmax.f32 %v345_v63, %v346_v8  ;;  %v486_v18 = vpack.c.bf16 %v340_v7, %v340_v7  ;;  %v592_v20 = vsel %vm572_vm5, %v556_v34, %v820_v57  ;;  %v501_v21 = vpack.c.bf16 %v445_v49, %v445_v49  ;;  %v162_v57 = vpop.f32.mrf.mxu1 }
  0xcf   :  { %v396_v22 = vmax.f32 %v394_v2, %v395_v10  ;;  %v220_v23 = vrot.slane %v188_v14, 4  ;;  %v564_v24 = vunpack.c.l.b16 %v500_v1  ;;  %v403_v25 = vmax.f32 %v401_v3, %v402_v11 }
  0xd0   :  { %v450_v26 = vmax.f32 %v448_v4, %v449_v12  ;;  %v292_v27 = vsel %vm249_vm3, %v188_v14, -inf  ;;  %v543_v28 = vunpack.c.l.b16 %v479_v6  ;;  %v456_v29 = vrot.slane %v455_v19, 2 }
  0xd1   :  { %v293_v30 = vrot.slane %v292_v27, 4  ;;  %v577_v31 = vsel %vm576_vm7, %v542_v15, %v832_v52  ;;  %v487_v32 = vpack.c.bf16 %v347_v17, %v347_v17  ;;  %v550_v33 = vunpack.c.l.b16 %v486_v18 }
  0xd2   :  { %v299_v35 = vsel %vm249_vm3, %v220_v23, -inf  ;;  %v852_v34 = vsel %vm574_vm6, %v557_v44, %v592_v20  ;;  %v854_v37 = vunpack.c.l.b16 %v501_v21  ;;  %v494_v38 = vpack.c.bf16 %v396_v22, %v396_v22 }
  0xd3   :  { %v294_v39 = vmax.f32 %v292_v27, %v293_v30  ;;  %v858_v41 = vsel %vm572_vm5, %v564_v24, %v827_v5  ;;  %v495_v42 = vpack.c.bf16 %v403_v25, %v403_v25  ;;  %v451_v45 = vrot.slane %v450_v26, 1 }
  0xd4   :  { %v300_v52 = vrot.slane %v299_v35, 4  ;;  %v579_v47 = vsel %vm578_vm8, %v543_v28, %v577_v31  ;;  %v457_v48 = vmax.f32 %v455_v19, %v456_v29  ;;  %v163_v44 = vadd.f32 %v781_v16, %v162_v57 }
  0xd5   :  { %v295_v49 = vrot.slane %v294_v39, 2  ;;  %v862_v50 = vunpack.c.l.b16 %v487_v32  ;;  %v866_v51 = vsel %vm576_vm7, %v550_v33, %v835_v13  ;;  %v173_v5 = vadd.f32 %v781_v16, %v172_v40 }
  0xd6   :  { %v301_v53 = vmax.f32 %v299_v35, %v300_v52  ;;  %v558_v54 = vunpack.c.l.b16 %v494_v38  ;;  %v192_v56 = vmax.f32 %v163_v44, 0.0  ;;  %v183_v58 = vadd.f32 %v781_v16, %v182_v46 }
  0xd7   :  { %v296_v55 = vmax.f32 %v294_v39, %v295_v49  ;;  %v870_v59 = vunpack.c.l.b16 %v495_v42  ;;  %v452_v60 = vmax.f32 %v450_v26, %v451_v45  ;;  %v196_v36 = vmax.f32 %v173_v5, 0.0 }
  0xd8   :  { %v302_v61 = vrot.slane %v301_v53, 2  ;;  %v458_v43 = vrot.slane %v457_v48, 1  ;;  %v224_v63 = vrot.slane %v192_v56, 4  ;;  %v348_v13 = vsel %vm249_vm3, %v192_v56, -inf }
  0xd9   :  { %v297_v62 = vrot.slane %v296_v55, 1  ;;  %v349_v1 = vrot.slane %v348_v13, 4  ;;  %v228_v2 = vrot.slane %v196_v36, 4  ;;  %v404_v6 = vsel %vm249_vm3, %v196_v36, -inf }
  0xda   :  { %v303_v0 = vmax.f32 %v301_v53, %v302_v61  ;;  %v355_v4 = vsel %vm249_vm3, %v224_v63, -inf  ;;  %v200_v16 = vmax.f32 %v183_v58, 0.0  ;;  %v502_v7 = vpack.c.bf16 %v452_v60, %v452_v60 }
  0xdb   :  { %v298_v3 = vmax.f32 %v296_v55, %v297_v62  ;;  %v350_v9 = vmax.f32 %v348_v13, %v349_v1  ;;  %v356_v10 = vrot.slane %v355_v4, 4  ;;  %v405_v12 = vrot.slane %v404_v6, 4 }
  0xdc   :  { %v304_v8 = vrot.slane %v303_v0, 1  ;;  %v411_v14 = vsel %vm249_vm3, %v228_v2, -inf  ;;  %v232_v15 = vrot.slane %v200_v16, 4  ;;  %v460_v23 = vsel %vm249_vm3, %v200_v16, -inf }
  0xdd   :  { %v480_v11 = vpack.c.bf16 %v298_v3, %v298_v3  ;;  %v351_v18 = vrot.slane %v350_v9, 2  ;;  %v357_v19 = vmax.f32 %v355_v4, %v356_v10  ;;  %v412_v20 = vrot.slane %v411_v14, 4 }
  0xde   :  { %v305_v17 = vmax.f32 %v303_v0, %v304_v8  ;;  %v406_v22 = vmax.f32 %v404_v6, %v405_v12  ;;  %v467_v24 = vsel %vm249_vm3, %v232_v15, -inf  ;;  %v461_v31 = vrot.slane %v460_v23, 4 }
  0xdf   :  { %v544_v21 = vunpack.c.l.b16 %v480_v11  ;;  %v352_v26 = vmax.f32 %v350_v9, %v351_v18  ;;  %v358_v27 = vrot.slane %v357_v19, 2  ;;  %v413_v28 = vmax.f32 %v411_v14, %v412_v20 }
  0xe0   :  { %v481_v25 = vpack.c.bf16 %v305_v17, %v305_v17  ;;  %v407_v30 = vrot.slane %v406_v22, 2  ;;  %v468_v32 = vrot.slane %v467_v24, 4  ;;  %v459_v39 = vmax.f32 %v457_v48, %v458_v43 }
  0xe1   :  { %v581_v29 = vsel %vm580_vm9, %v544_v21, %v579_v47  ;;  %v353_v35 = vrot.slane %v352_v26, 1  ;;  %v359_v57 = vmax.f32 %v357_v19, %v358_v27  ;;  %v414_v38 = vrot.slane %v413_v28, 2 }
  0xe2   :  { %v545_v33 = vunpack.c.l.b16 %v481_v25  ;;  %v408_v40 = vmax.f32 %v406_v22, %v407_v30  ;;  %v462_v42 = vmax.f32 %v460_v23, %v461_v31  ;;  %v469_v45 = vmax.f32 %v467_v24, %v468_v32 }
  0xe3   :  { %v354_v46 = vmax.f32 %v352_v26, %v353_v35  ;;  %v360_v49 = vrot.slane %v359_v57, 1  ;;  %v415_v44 = vmax.f32 %v413_v28, %v414_v38  ;;  %v594_v56 = vsel %vm576_vm7, %v558_v54, %v852_v34 }
  0xe4   :  { %v583_v52 = vsel %vm582_vm10, %v545_v33, %v581_v29  ;;  %v409_v5 = vrot.slane %v408_v40, 1  ;;  %v463_v55 = vrot.slane %v462_v42, 2  ;;  %v470_v47 = vrot.slane %v469_v45, 2 }
  0xe5   :  { %v605_v53 = vpack.c.b16 %v583_v52, %v583_v52  ;;  %v361_v58 = vmax.f32 %v359_v57, %v360_v49  ;;  %v488_v60 = vpack.c.bf16 %v354_v46, %v354_v46  ;;  %v416_v61 = vrot.slane %v415_v44, 1 }
  0xe6   :  { %v566_v36 = vunpack.c.l.b16 %v502_v7  ;;  %v410_v48 = vmax.f32 %v408_v40, %v409_v5  ;;  %v464_v43 = vmax.f32 %v462_v42, %v463_v55  ;;  %v471_v62 = vmax.f32 %v469_v45, %v470_v47 }
  0xe7   :  { %613 = vst [vmem:[%s913_s3] sm:$0xf] %v605_v53  ;;  %v503_v63 = vpack.c.bf16 %v459_v39, %v459_v39  ;;  %v489_v13 = vpack.c.bf16 %v361_v58, %v361_v58  ;;  %v552_v0 = vunpack.c.l.b16 %v488_v60  ;;  %v417_v1 = vmax.f32 %v415_v44, %v416_v61 }
  0xe8   :  { %v588_v2 = vsel %vm578_vm8, %v862_v50, %v866_v51  ;;  %v496_v34 = vpack.c.bf16 %v410_v48, %v410_v48  ;;  %v465_v54 = vrot.slane %v464_v43, 1  ;;  %v472_v3 = vrot.slane %v471_v62, 1 }
  0xe9   :  { %v600_v4 = vsel %vm574_vm6, %v854_v37, %v858_v41  ;;  %v553_v6 = vunpack.c.l.b16 %v489_v13  ;;  %v589_v16 = vsel %vm580_vm9, %v552_v0, %v588_v2  ;;  %v497_v7 = vpack.c.bf16 %v417_v1, %v417_v1 }
  0xea   :  { %v595_v8 = vsel %vm578_vm8, %v870_v59, %v594_v56  ;;  %v560_v9 = vunpack.c.l.b16 %v496_v34  ;;  %v466_v10 = vmax.f32 %v464_v43, %v465_v54  ;;  %v473_v11 = vmax.f32 %v471_v62, %v472_v3 }
  0xeb   :  { %v567_v12 = vunpack.c.l.b16 %v503_v63  ;;  %v601_v50 = vsel %vm576_vm7, %v566_v36, %v600_v4  ;;  %v590_v51 = vsel %vm582_vm10, %v553_v6, %v589_v16  ;;  %v561_v14 = vunpack.c.l.b16 %v497_v7 }
  0xec   :  { %v606_v15 = vpack.c.b16 %v590_v51, %v590_v51  ;;  %v596_v17 = vsel %vm580_vm9, %v560_v9, %v595_v8  ;;  %v504_v37 = vpack.c.bf16 %v466_v10, %v466_v10  ;;  %v505_v41 = vpack.c.bf16 %v473_v11, %v473_v11 }
  0xed   :  { %v597_v18 = vsel %vm582_vm10, %v561_v14, %v596_v17  ;;  %v602_v21 = vsel %vm578_vm8, %v567_v12, %v601_v50 }
  0xee   :  { %614 = vst [vmem:[%s913_s3 + $0x4] sm:$0xf] %v606_v15  ;;  %v607_v59 = vpack.c.b16 %v597_v18, %v597_v18  ;;  %v568_v19 = vunpack.c.l.b16 %v504_v37  ;;  %v569_v20 = vunpack.c.l.b16 %v505_v41 }
  0xf0   :  { %615 = vst [vmem:[%s913_s3 + $0x8] sm:$0xf] %v607_v59  ;;  %v603_v22 = vsel %vm580_vm9, %v568_v19, %v602_v21 }
  0xf1   :  { %v604_v23 = vsel %vm582_vm10, %v569_v20, %v603_v22 }
  0xf2   :  { %v608_v24 = vpack.c.b16 %v604_v23, %v604_v23 }
  0xf4   :  { %616 = vst [vmem:[%s913_s3 + $0xc] sm:$0xf] %v608_v24 }
  0xf5   :  { %621 = vsyncpa [#allocation3], 1 }

// kernel: spinal_vgg_forward.7
= control target key start
LH: loop header
LB: loop body
LE: loop exit
PB: predicated region body
PF: predicated region fallthrough
CT: control target
= control target key end

     0   :  { %8 = vsyncpa [#allocation5], 0  ;;  %s1356_s0 = inlined_call_operand.vmem [shape: bf16[32,1152], index: 0, kind: input, shape index: {}]   ;;  %s1357_s1 = inlined_call_operand.hbm [shape: bf16[1152,128], index: 1, kind: input, shape index: {}]   ;;  %s1358_s2 = inlined_call_operand.vmem [shape: f32[1,128], index: 2, kind: input, shape index: {}]   ;;  %s1359_s3 = inlined_call_operand.vmem [shape: bf16[8,128], index: 3, kind: output, shape index: {}]  }
   0x1   :  { %10 = vsyncpa [#allocation5 + $0x1], 0  ;;  %s1209_s12 = smov 0   ;;  %s1211_s13 = smov 0  }
   0x2   :  { %s1213_s14 = smov 0   ;;  %s1215_s15 = smov 0  }
   0x3   :  { %s1217_s16 = smov 0   ;;  %s1219_s17 = smov 0  }
   0x4 LB: > { %s868_s18 = sadd.s32 4294967295, %s1184_s17   ;;  %s28_s19 = sadd.s32 1, %s1180_s16  ;;  %s1184_s17 = sphi %s1219_s17, %s16_s17   ;;  %s1180_s16 = sphi %s1217_s16, %s1366_s16   ;;  %s1176_s15 = sphi %s1215_s15, %s1365_s15   ;;  %s1172_s14 = sphi %s1213_s14, %s1364_s14   ;;  %s1168_s13 = sphi %s1211_s13, %s1363_s13   ;;  %s1164_s12 = sphi %s1209_s12, %s1362_s12  }
   0x5   : > { %p29_p0 = scmp.ge.s32.totalorder %s28_s19, 3  ;;  %s44_s20 = sadd.s32 1, %s1172_s14 }
   0x6   : > { %p51_p1 = scmp.ne.s32.totalorder %s1172_s14, %s1168_s13  ;;  %p52_p2 = scmp.eq.s32.totalorder %s1184_s17, 0 }
   0x7   : > { %s1368_s19 = smov (%p29_p0, %s28_s19), 0  ;;  %p85_p4 = scmp.ne.s32.totalorder %s1168_s13, %s1164_s12 }
   0x8   : > { %p1245_p3 = por %p52_p2, %p51_p1  ;;  %s40_s22 = ssub.s32 %s1180_s16, %s1368_s19 }
   0x9   : > { %p86_p5 = scmp.eq.s32.totalorder %s868_s18, 0  ;;  %p42_p6 = scmp.eq.s32.totalorder %s40_s22, 0 }
   0xa   : > { %p871_p8 = scmp.ge.s32.totalorder %s1184_s17, 3 }
   0xb   : > { %p1252_p7 = por %p86_p5, %p85_p4 }
   0xc   : > { %s1257_s24 = scalar_select %p42_p6, %s1172_s14, %s44_s20  }
   0xd   : > { %165 = sbr.rel (%p871_p8) target bundleno = 37 (0x25), region = 20 }
  0x12   : > { %168 = sbr.rel (!%p1245_p3) target bundleno = 31 (0x1f), region = 24  ;;  %s170_s25 = sand.u32 (%p1245_p3), 1, %s1172_s14  }
  0x13   : > { %s1008_s26 = smul.u32 (%p1245_p3), 12, %s1180_s16 }
  0x14   : > { %s1048_s27 = smul.u32 (%p1245_p3), 48, %s170_s25 }
  0x15   : > { %s178_s30 = scalar_lea.vmem (%p1245_p3), %s1356_s0, %s1008_s26 }
  0x16   : > { %v193_v0 = vld [vmem:[%s178_s30] sm:$0xff] (%p1245_p3)  ;;  %v197_v2 = vld [vmem:[%s178_s30 + $0x48] sm:$0xff] (%p1245_p3)  ;;  %s172_s4 = scalar_lea.vmem (%p1245_p3), [#allocation3], %s1048_s27  ;;  %v877_v6 = vld [vmem:[%s178_s30 + $0x50] sm:$0xf] (%p1245_p3) }
  0x17   : > { %v195_v1 = vld [vmem:[%s178_s30 + $0x24] sm:$0xff]  ;;  %194 = vst [vmem:[%s172_s4] sm:$0xff] %v193_v0  ;;  %v199_v3 = vld [vmem:[%s178_s30 + $0x6c] sm:$0xff]  ;;  %v879_v7 = vld [vmem:[%s178_s30 + $0x74] sm:$0xf] }
  0x18   : > { %196 = vst [vmem:[%s172_s4 + $0xc] sm:$0xff] %v195_v1  ;;  %v873_v4 = vld [vmem:[%s178_s30 + $0x8] sm:$0xf]  ;;  %v875_v5 = vld [vmem:[%s178_s30 + $0x2c] sm:$0xf] }
  0x19   : > { %198 = vst [vmem:[%s172_s4 + $0x18] sm:$0xff] %v197_v2 }
  0x1a   : > { %200 = vst [vmem:[%s172_s4 + $0x24] sm:$0xff] %v199_v3 }
  0x1b   : > { %874 = vst [vmem:[%s172_s4 + $0x8] sm:$0xf] %v873_v4 }
  0x1c   : > { %876 = vst [vmem:[%s172_s4 + $0x14] sm:$0xf] %v875_v5 }
  0x1d   : > { %878 = vst [vmem:[%s172_s4 + $0x20] sm:$0xf] %v877_v6 }
  0x1e   : > { %880 = vst [vmem:[%s172_s4 + $0x2c] sm:$0xf] %v879_v7 }
  0x1f PF: > { %s223_s5 = sand.u32 1, %s1172_s14   ;;  %s1009_s6 = smul.u32 192, %s1180_s16 }
  0x20   : > { %s1049_s7 = smul.u32 192, %s223_s5  ;;  %s224_s20 = scalar_lea.sflag [#allocation5], %s223_s5 }
  0x21   : > { %s233_s10 = scalar_lea.hbm %s1357_s1, %s1009_s6  ;;  %s1186_s22 = smov 64  }
  0x22   : > { %s234_s11 = sshll.u32 %s233_s10, 4  ;;  %s227_s12 = scalar_lea.vmem [#allocation4], %s1049_s7  ;;  %s235_s11 = int_to_ptr.hbm [resolvable:$true] %s234_s11 }
  0x23   : > { %s236_s18 = sshll.u32 %s227_s12, 4  ;;  %s1187_s25 = smov 4   ;;  %s237_s18 = int_to_ptr.vmem [resolvable:$true] %s236_s18 }
  0x24   : > { %1052 = dma.hbm_to_vmem [thread:$0]  (%p1245_p3), %s235_s11, 3072, %s237_s18, %s224_s20, %s1186_s22, %s1186_s22, %s1187_s25  }
  0x25 PF: > { %p882_p9 = scmp.ge.s32.totalorder %s1184_s17, 1  ;;  %p244_p10 = scmp.lt.s32.totalorder %s1184_s17, 4 }
  0x27   : > { %p245_p11 = pnand %p882_p9, %p244_p10 }
  0x28   : > { %s251_s26 = sand.u32 (!%p245_p11), 1, %s1168_s13  }
  0x29   : > { %248 = sbr.rel (%p245_p11) target bundleno = 289 (0x121), region = 54  ;;  %s258_s30 = scalar_lea.sflag (!%p245_p11), [#allocation5], %s251_s26 }
  0x2a   : > { %s1050_s27 = smul.u32 (!%p245_p11), 48, %s251_s26 }
  0x2b   : > { %s1051_s28 = smul.u32 (!%p245_p11), 192, %s251_s26 }
  0x2c   : > { %s1277_s29 = scalar_lea.vmem (!%p245_p11), [#allocation3], %s1050_s27 }
  0x2d   : > { %s1279_s4 = scalar_lea.vmem (!%p245_p11), [#allocation4], %s1051_s28 }
  0x2e   : > { %1159 = dma.done.wait (%p1252_p7), %s258_s30, 3072  }
  0x2f   : > { %1161 = vsyncadd (%p1252_p7), %s258_s30, 4294964224  ;;  %p883_p12 = scmp.ne.s32.totalorder %s1176_s15, 0 }
  0x31   : > { %310 = sbr.rel (%p883_p12) target bundleno = 59 (0x3b), region = 66 }
  0x36   : > { %v1188_v8 = vmov 0.0  }
  0x37   : > { %311 = vst [vmem:[#allocation2 + $0x10] sm:$0xff] %v1188_v8 }
  0x38   : > { %312 = vst [vmem:[#allocation2] sm:$0xff] %v1188_v8 }
  0x39   : > { %313 = vst [vmem:[#allocation2 + $0x18] sm:$0xff] %v1188_v8 }
  0x3a   : > { %314 = vst [vmem:[#allocation2 + $0x8] sm:$0xff] %v1188_v8 }
  0x3b PF: > { %v1023_v9 = vld [vmem:[%s1279_s4 + $0x38] sm:$0xff]  ;;  %v1022_v12 = vld [vmem:[%s1279_s4 + $0x30] sm:$0xff]  ;;  %v1021_v15 = vld [vmem:[%s1279_s4 + $0x28] sm:$0xff]  ;;  %p1004_p13 = scmp.ne.s32.totalorder %s1176_s15, 2 }
  0x3c   : > { %v1031_v10 = vld [vmem:[%s1279_s4 + $0x78] sm:$0xff]  ;;  %551 = vmatpush.bf16.msra.mxu0 %v1023_v9  ;;  %v1030_v13 = vld [vmem:[%s1279_s4 + $0x70] sm:$0xff]  ;;  %1040 = vmatpush.bf16.msra.mxu3 %v1023_v9  ;;  %v1029_v16 = vld [vmem:[%s1279_s4 + $0x68] sm:$0xff] }
  0x3d   : > { %v1039_v11 = vld [vmem:[%s1279_s4 + $0xb8] sm:$0xff]  ;;  %570 = vmatpush.bf16.msra.mxu1 %v1031_v10  ;;  %v1038_v14 = vld [vmem:[%s1279_s4 + $0xb0] sm:$0xff]  ;;  %v1037_v17 = vld [vmem:[%s1279_s4 + $0xa8] sm:$0xff] }
  0x3e   : > { %589 = vmatpush.bf16.msra.mxu2 %v1039_v11  ;;  %v1020_v18 = vld [vmem:[%s1279_s4 + $0x20] sm:$0xff]  ;;  %v1019_v21 = vld [vmem:[%s1279_s4 + $0x18] sm:$0xff]  ;;  %v1018_v24 = vld [vmem:[%s1279_s4 + $0x10] sm:$0xff] }
  0x3f   : > { %v1028_v19 = vld [vmem:[%s1279_s4 + $0x60] sm:$0xff]  ;;  %v1027_v22 = vld [vmem:[%s1279_s4 + $0x58] sm:$0xff]  ;;  %v1026_v25 = vld [vmem:[%s1279_s4 + $0x50] sm:$0xff] }
  0x40   : > { %552 = vmatpush.bf16.msra.mxu0 %v1022_v12  ;;  %1041 = vmatpush.bf16.msra.mxu3 %v1022_v12  ;;  %v1036_v20 = vld [vmem:[%s1279_s4 + $0xa0] sm:$0xff]  ;;  %v1035_v23 = vld [vmem:[%s1279_s4 + $0x98] sm:$0xff]  ;;  %v1034_v26 = vld [vmem:[%s1279_s4 + $0x90] sm:$0xff] }
  0x41   : > { %571 = vmatpush.bf16.msra.mxu1 %v1030_v13  ;;  %v1017_v27 = vld [vmem:[%s1279_s4 + $0x8] sm:$0xff]  ;;  %v1016_v30 = vld [vmem:[%s1279_s4] sm:$0xff]  ;;  %v315_v54 = vld [vmem:[#allocation2 + $0x10] sm:$0xff] }
  0x42   : > { %590 = vmatpush.bf16.msra.mxu2 %v1038_v14  ;;  %v1025_v28 = vld [vmem:[%s1279_s4 + $0x48] sm:$0xff]  ;;  %v1024_v31 = vld [vmem:[%s1279_s4 + $0x40] sm:$0xff]  ;;  %v317_v4 = vld [vmem:[#allocation2 + $0x18] sm:$0xff] }
  0x43   : > { %v1033_v29 = vld [vmem:[%s1279_s4 + $0x88] sm:$0xff]  ;;  %v1032_v32 = vld [vmem:[%s1279_s4 + $0x80] sm:$0xff] }
  0x44   : > { %553 = vmatpush.bf16.msra.mxu0 %v1021_v15  ;;  %1042 = vmatpush.bf16.msra.mxu3 %v1021_v15  ;;  %v886_v33 = vld [vmem:[%s1277_s29] sm:$0xf]  ;;  %v1011_v34 = vld [vmem:[%s1277_s29 + $0x8] sm:$0xf0]  ;;  %v1010_v35 = vld [vmem:[%s1277_s29 + $0x4] sm:$0xf] }
  0x45   : > { %572 = vmatpush.bf16.msra.mxu1 %v1029_v16  ;;  %v888_v36 = vld [vmem:[%s1277_s29 + $0xc] sm:$0xf0]  ;;  %v894_v37 = vld [vmem:[%s1277_s29 + $0x8] sm:$0xf]  ;;  %v1012_v38 = vld [vmem:[%s1277_s29 + $0x10] sm:$0xf0]  ;;  %v887_v41 = vor.u32 %v1011_v34, %v886_v33 }
  0x46   : > { %591 = vmatpush.bf16.msra.mxu2 %v1037_v17  ;;  %v898_v39 = vld [vmem:[%s1277_s29 + $0x18] sm:$0xf]  ;;  %v1014_v40 = vld [vmem:[%s1277_s29 + $0x20] sm:$0xf0]  ;;  %v891_v42 = vor.u32 %v1010_v35, %v888_v36  ;;  %v895_v43 = vor.u32 %v1012_v38, %v894_v37  ;;  %v1013_v45 = vld [vmem:[%s1277_s29 + $0x1c] sm:$0xf] }
  0x47   : > { %v899_v44 = vor.u32 %v1014_v40, %v898_v39  ;;  %v900_v46 = vld [vmem:[%s1277_s29 + $0x24] sm:$0xf0]  ;;  %v906_v47 = vld [vmem:[%s1277_s29 + $0x20] sm:$0xf]  ;;  %v1015_v48 = vld [vmem:[%s1277_s29 + $0x28] sm:$0xf0] }
  0x48   : > { %554 = vmatpush.bf16.msra.mxu0 %v1020_v18  ;;  %1043 = vmatpush.bf16.msra.mxu3 %v1020_v18  ;;  %v903_v49 = vor.u32 %v1013_v45, %v900_v46  ;;  %v907_v50 = vor.u32 %v1015_v48, %v906_v47  ;;  %v316_v61 = vld [vmem:[#allocation2] sm:$0xff]  ;;  %v318_v11 = vld [vmem:[#allocation2 + $0x8] sm:$0xff] }
  0x49   : > { %573 = vmatpush.bf16.msra.mxu1 %v1028_v19 }
  0x4a   : > { %592 = vmatpush.bf16.msra.mxu2 %v1036_v20 }
  0x4c   : > { %555 = vmatpush.bf16.msra.mxu0 %v1019_v21  ;;  %1044 = vmatpush.bf16.msra.mxu3 %v1019_v21 }
  0x4d   : > { %574 = vmatpush.bf16.msra.mxu1 %v1027_v22 }
  0x4e   : > { %593 = vmatpush.bf16.msra.mxu2 %v1035_v23 }
  0x50   : > { %556 = vmatpush.bf16.msra.mxu0 %v1018_v24  ;;  %1045 = vmatpush.bf16.msra.mxu3 %v1018_v24 }
  0x51   : > { %575 = vmatpush.bf16.msra.mxu1 %v1026_v25 }
  0x52   : > { %594 = vmatpush.bf16.msra.mxu2 %v1034_v26 }
  0x54   : > { %557 = vmatpush.bf16.msra.mxu0 %v1017_v27  ;;  %1046 = vmatpush.bf16.msra.mxu3 %v1017_v27 }
  0x55   : > { %576 = vmatpush.bf16.msra.mxu1 %v1025_v28 }
  0x56   : > { %595 = vmatpush.bf16.msra.mxu2 %v1033_v29 }
  0x58   : > { %558 = vmatpush.bf16.msra.mxu0 %v1016_v30  ;;  %1047 = vmatpush.bf16.msra.mxu3 %v1016_v30 }
  0x59   : > { %577 = vmatpush.bf16.msra.mxu1 %v1024_v31 }
  0x5a   : > { %596 = vmatpush.bf16.msra.mxu2 %v1032_v32 }
  0x5b   : > { %559 = vmatmul.bf16.vlgmr.msra.gmra.mxu0 %v887_v41  ;;  %564 = vmatmul.bf16.vlgmr.msra.gmra.mxu3 %v899_v44 }
  0x5c   : > { %578 = vmatmul.bf16.vlgmr.msra.gmra.mxu1 %v891_v42 }
  0x5d   : > { %597 = vmatmul.bf16.vlgmr.msra.gmra.mxu2 %v895_v43 }
  0x6c   : > { %583 = vmatmul.bf16.gmra.mxu1 %v903_v49 }
  0x6d   : > { %602 = vmatmul.bf16.gmra.mxu2 %v907_v50 }
  0xd8   : > { %v560_v52 = vpop.f32.mrf.mxu0 }
  0xd9   : > { %v579_v51 = vpop.f32.mrf.mxu1 }
  0xda   : > { %v580_v53 = vadd.f32 %v579_v51, %v560_v52 }
  0xde   : > { %v565_v2 = vpop.f32.mrf.mxu3 }
  0xe0   : > { %v598_v55 = vpop.f32.mrf.mxu2  ;;  %v562_v59 = vpop.f32.mrf.mxu0 }
  0xe1   : > { %v599_v56 = vadd.f32 %v598_v55, %v580_v53  ;;  %v581_v57 = vpop.f32.mrf.mxu1 }
  0xe2   : > { %v582_v60 = vadd.f32 %v581_v57, %v562_v59 }
  0xe3   : > { %v608_v58 = vadd.f32 %v599_v56, %v315_v54 }
  0xe5   : > { %612 = vst [vmem:[#allocation2 + $0x10] sm:$0xff] %v608_v58 }
  0xe6   : > { %v567_v9 = vpop.f32.mrf.mxu3 }
  0xe8   : > { %v600_v62 = vpop.f32.mrf.mxu2 }
  0xe9   : > { %v601_v63 = vadd.f32 %v600_v62, %v582_v60  ;;  %v584_v0 = vpop.f32.mrf.mxu1 }
  0xea   : > { %v585_v3 = vadd.f32 %v584_v0, %v565_v2 }
  0xeb   : > { %v609_v1 = vadd.f32 %v601_v63, %v316_v61 }
  0xed   : > { %613 = vst [vmem:[#allocation2] sm:$0xff] %v609_v1 }
  0xf0   : > { %v603_v5 = vpop.f32.mrf.mxu2 }
  0xf1   : > { %v604_v6 = vadd.f32 %v603_v5, %v585_v3  ;;  %v586_v8 = vpop.f32.mrf.mxu1 }
  0xf2   : > { %v587_v10 = vadd.f32 %v586_v8, %v567_v9 }
  0xf3   : > { %v610_v7 = vadd.f32 %v604_v6, %v317_v4 }
  0xf5   : > { %614 = vst [vmem:[#allocation2 + $0x18] sm:$0xff] %v610_v7 }
  0xf8   : > { %v605_v12 = vpop.f32.mrf.mxu2 }
  0xf9   : > { %v606_v13 = vadd.f32 %v605_v12, %v587_v10  ;;  %619 = sbr.rel (%p1004_p13) target bundleno = 289 (0x121), region = 70 }
  0xfb   : > { %v611_v14 = vadd.f32 %v606_v13, %v318_v11 }
  0xfd   : > { %615 = vst [vmem:[#allocation2 + $0x8] sm:$0xff] %v611_v14 }
  0xfe   : > { %v620_v15 = vld [vmem:[#allocation2 + $0x10] sm:$0xff]  ;;  %v621_v16 = vld [vmem:[#allocation2] sm:$0xff]  ;;  %v622_v17 = vld [vmem:[#allocation2 + $0x18] sm:$0xff]  ;;  %vm648_vm0 = vcmask 1043456   ;;  %vm729_vm1 = vcmask 1041409   ;;  %vm731_vm2 = vcmask 1042434  }
  0xff   : > { %v1105_v19 = vld [vmem:[%s1358_s2] ss:$0 sm:$0xff]  ;;  %vm733_vm3 = vcmask 1043459   ;;  %vm735_vm4 = vcmask 1044484   ;;  %vm737_vm5 = vcmask 1045509   ;;  %vm739_vm6 = vcmask 1046534  }
 0x100   : > { %v628_v20 = vadd.f32 %v1105_v19, %v620_v15  ;;  %v629_v21 = vadd.f32 %v1105_v19, %v621_v16  ;;  %v630_v22 = vadd.f32 %v1105_v19, %v622_v17  ;;  %vm741_vm7 = vcmask 1047559  }
 0x102   : > { %v632_v24 = vmax.f32 %v628_v20, 0.0  ;;  %v633_v25 = vmax.f32 %v629_v21, 0.0  ;;  %v634_v26 = vmax.f32 %v630_v22, 0.0 }
 0x104   : > { %v623_v18 = vld [vmem:[#allocation2 + $0x8] sm:$0xff]  ;;  %v640_v28 = vrot.slane %v632_v24, 4  ;;  %v641_v29 = vrot.slane %v633_v25, 4  ;;  %v642_v30 = vrot.slane %v634_v26, 4  ;;  %v649_v32 = vsel %vm648_vm0, %v632_v24, -inf }
 0x105   : > { %v631_v23 = vadd.f32 %v1105_v19, %v623_v18  ;;  %v663_v33 = vsel %vm648_vm0, %v633_v25, -inf  ;;  %v677_v34 = vsel %vm648_vm0, %v634_v26, -inf  ;;  %v650_v36 = vrot.slane %v649_v32, 4 }
 0x106   : > { %v656_v37 = vsel %vm648_vm0, %v640_v28, -inf  ;;  %v664_v38 = vrot.slane %v663_v33, 4  ;;  %v670_v39 = vsel %vm648_vm0, %v641_v29, -inf  ;;  %v678_v42 = vrot.slane %v677_v34, 4 }
 0x107   : > { %v635_v27 = vmax.f32 %v631_v23, 0.0  ;;  %v657_v40 = vrot.slane %v656_v37, 4  ;;  %v671_v41 = vrot.slane %v670_v39, 4  ;;  %v684_v43 = vsel %vm648_vm0, %v642_v30, -inf }
 0x108   : > { %v651_v44 = vmax.f32 %v649_v32, %v650_v36  ;;  %v665_v45 = vmax.f32 %v663_v33, %v664_v38  ;;  %v685_v46 = vrot.slane %v684_v43, 4  ;;  %v679_v50 = vmax.f32 %v677_v34, %v678_v42 }
 0x109   : > { %v643_v31 = vrot.slane %v635_v27, 4  ;;  %v691_v35 = vsel %vm648_vm0, %v635_v27, -inf  ;;  %v658_v48 = vmax.f32 %v656_v37, %v657_v40  ;;  %v672_v49 = vmax.f32 %v670_v39, %v671_v41 }
 0x10a   : > { %v692_v47 = vrot.slane %v691_v35, 4  ;;  %v652_v52 = vrot.slane %v651_v44, 2  ;;  %v666_v53 = vrot.slane %v665_v45, 2  ;;  %v686_v54 = vmax.f32 %v684_v43, %v685_v46 }
 0x10b   : > { %v698_v51 = vsel %vm648_vm0, %v643_v31, -inf  ;;  %v659_v56 = vrot.slane %v658_v48, 2  ;;  %v673_v57 = vrot.slane %v672_v49, 2  ;;  %v680_v58 = vrot.slane %v679_v50, 2 }
 0x10c   : > { %v693_v55 = vmax.f32 %v691_v35, %v692_v47  ;;  %v699_v59 = vrot.slane %v698_v51, 4  ;;  %v653_v60 = vmax.f32 %v651_v44, %v652_v52  ;;  %v667_v61 = vmax.f32 %v665_v45, %v666_v53 }
 0x10d   : > { %v687_v62 = vrot.slane %v686_v54, 2  ;;  %v660_v0 = vmax.f32 %v658_v48, %v659_v56  ;;  %v674_v1 = vmax.f32 %v672_v49, %v673_v57  ;;  %v681_v2 = vmax.f32 %v679_v50, %v680_v58 }
 0x10e   : > { %v694_v63 = vrot.slane %v693_v55, 2  ;;  %v700_v3 = vmax.f32 %v698_v51, %v699_v59  ;;  %v654_v4 = vrot.slane %v653_v60, 1  ;;  %v668_v5 = vrot.slane %v667_v61, 1 }
 0x10f   : > { %v688_v6 = vmax.f32 %v686_v54, %v687_v62  ;;  %v661_v8 = vrot.slane %v660_v0, 1  ;;  %v675_v9 = vrot.slane %v674_v1, 1  ;;  %v682_v10 = vrot.slane %v681_v2, 1 }
 0x110   : > { %v695_v7 = vmax.f32 %v693_v55, %v694_v63  ;;  %v701_v11 = vrot.slane %v700_v3, 2  ;;  %v655_v12 = vmax.f32 %v653_v60, %v654_v4  ;;  %v669_v13 = vmax.f32 %v667_v61, %v668_v5 }
 0x111   : > { %v689_v14 = vrot.slane %v688_v6, 1  ;;  %v662_v16 = vmax.f32 %v660_v0, %v661_v8  ;;  %v676_v17 = vmax.f32 %v674_v1, %v675_v9  ;;  %v683_v18 = vmax.f32 %v681_v2, %v682_v10 }
 0x112   : > { %v696_v15 = vrot.slane %v695_v7, 1  ;;  %v702_v19 = vmax.f32 %v700_v3, %v701_v11  ;;  %v705_v22 = vpack.c.bf16 %v655_v12, %v655_v12  ;;  %v707_v23 = vpack.c.bf16 %v669_v13, %v669_v13 }
 0x113   : > { %v690_v20 = vmax.f32 %v688_v6, %v689_v14  ;;  %v706_v25 = vpack.c.bf16 %v662_v16, %v662_v16  ;;  %v708_v26 = vpack.c.bf16 %v676_v17, %v676_v17  ;;  %v709_v27 = vpack.c.bf16 %v683_v18, %v683_v18 }
 0x114   : > { %v697_v21 = vmax.f32 %v695_v7, %v696_v15  ;;  %v703_v24 = vrot.slane %v702_v19, 1  ;;  %v721_v30 = vunpack.c.l.b16 %v705_v22  ;;  %v723_v31 = vunpack.c.l.b16 %v707_v23 }
 0x115   : > { %v710_v28 = vpack.c.bf16 %v690_v20, %v690_v20  ;;  %v722_v33 = vunpack.c.l.b16 %v706_v25  ;;  %v724_v34 = vunpack.c.l.b16 %v708_v26  ;;  %v725_v35 = vunpack.c.l.b16 %v709_v27 }
 0x116   : > { %v711_v29 = vpack.c.bf16 %v697_v21, %v697_v21  ;;  %v704_v32 = vmax.f32 %v702_v19, %v703_v24 }
 0x117   : > { %v726_v37 = vunpack.c.l.b16 %v710_v28  ;;  %v730_v38 = vsel %vm729_vm1, %v722_v33, %v721_v30 }
 0x118   : > { %v712_v36 = vpack.c.bf16 %v704_v32, %v704_v32  ;;  %v727_v39 = vunpack.c.l.b16 %v711_v29  ;;  %v732_v40 = vsel %vm731_vm2, %v723_v31, %v730_v38 }
 0x119   : > { %v734_v42 = vsel %vm733_vm3, %v724_v34, %v732_v40 }
 0x11a   : > { %v728_v41 = vunpack.c.l.b16 %v712_v36  ;;  %v736_v43 = vsel %vm735_vm4, %v725_v35, %v734_v42 }
 0x11b   : > { %v738_v44 = vsel %vm737_vm5, %v726_v37, %v736_v43 }
 0x11c   : > { %v740_v45 = vsel %vm739_vm6, %v727_v39, %v738_v44 }
 0x11d   : > { %v742_v46 = vsel %vm741_vm7, %v728_v41, %v740_v45 }
 0x11e   : > { %v743_v47 = vpack.c.b16 %v742_v46, %v742_v46 }
 0x120   : > { %745 = vst [vmem:[%s1359_s3] sm:$0xf] %v743_v47 }
 0x121 PF: > { %s16_s17 = sadd.s32 1, %s1184_s17   ;;  %s1362_s12 = smov %s1168_s13 }
 0x122   : > { %p13_p0 = scmp.ge.s32.totalorder %s16_s17, 5   ;;  %s1363_s13 = smov %s1172_s14 }
 0x123   : > { %s1364_s14 = smov %s1257_s24  ;;  %s1365_s15 = smov %s1180_s16 }
 0x124   : > { %s1366_s16 = smov %s1368_s19  ;;  %15 = sbr.rel (!%p13_p0) target bundleno = 4 (0x4), region = 123 }
 0x129   :  { %771 = vsyncpa [#allocation5], 1 }
 0x12a   :  { %773 = vsyncpa [#allocation5 + $0x1], 1 }

// kernel: spinal_vgg_forward.10
= control target key start
LH: loop header
LB: loop body
LE: loop exit
PB: predicated region body
PF: predicated region fallthrough
CT: control target
= control target key end

     0   :  { %s1208_s15 = smov 0   ;;  %s1210_s16 = smov 0   ;;  %s1371_s0 = inlined_call_operand.vmem [shape: bf16[2,1,1,9,256], index: 0, kind: input, shape index: {}, may-alias: {0,4}]   ;;  %s1372_s1 = inlined_call_operand.vmem [shape: bf16[8,1152], index: 1, kind: input, shape index: {}]   ;;  %s1373_s2 = inlined_call_operand.vmem [shape: bf16[1152,256], index: 2, kind: input, shape index: {}]   ;;  %s1374_s3 = inlined_call_operand.vmem [shape: f32[1,256], index: 3, kind: input, shape index: {}]   ;;  %s1375_s4 = inlined_call_operand.vmem [shape: bf16[2,1,1,9,256], index: 4, kind: output, shape index: {}, may-alias: {0,4}]  }
   0x1   :  { %s1212_s17 = smov 0  }
   0x2 LB: > { %s878_s0 = sadd.s32 4294967295, %s1180_s17   ;;  %s27_s18 = sadd.s32 1, %s1176_s16  ;;  %s1180_s17 = sphi %s1212_s17, %s15_s17   ;;  %s1176_s16 = sphi %s1210_s16, %s1377_s16   ;;  %s1172_s15 = sphi %s1208_s15, %s1376_s15  }
   0x3   : > { %p28_p0 = scmp.ge.s32.totalorder %s27_s18, 3  ;;  %p882_p1 = scmp.ge.s32.totalorder %s1180_s17, 1 }
   0x4   : > { %p196_p2 = scmp.lt.s32.totalorder %s1180_s17, 4 }
   0x5   : > { %s1379_s18 = smov (%p28_p0, %s27_s18), 0 }
   0x6   : > { %p197_p3 = pnand %p882_p1, %p196_p2 }
   0x7   : > { %s233_s19 = smul.u32 (!%p197_p3), 3, %s1172_s15  ;;  %p886_p6 = scmp.ne.s32.totalorder (!%p197_p3), %s1172_s15, 0 }
   0x8   : > { %200 = sbr.rel (%p197_p3) target bundleno = 293 (0x125), region = 32 }
   0x9   : > { %s243_s20 = smul.u32 (!%p197_p3), 48, %s1172_s15  ;;  %p236_p4 = scmp.lt.s32.totalorder (!%p197_p3), %s233_s19, 8 }
   0xb   : > { %p245_p5 = scmp.lt.s32.totalorder (!%p197_p3), %s243_s20, 143 }
   0xd   : > { %s1381_s19 = smov (!%p236_p4, %s233_s19), 8  ;;  %s1383_s20 = smov (!%p245_p5, %s243_s20), 143 }
   0xe   : > { %s883_s21 = sshll.u32 %s1381_s19, 2  ;;  %s1084_s25 = sshll.u32 %s1383_s20, 3 }
   0xf   : > { %s1234_s24 = scalar_lea.vmem %s1372_s1, %s883_s21  ;;  %s1239_s28 = scalar_lea.vmem %s1373_s2, %s1084_s25 }
  0x10   : > { %264 = sbr.rel (%p886_p6) target bundleno = 24 (0x18), region = 36 }
  0x15   : > { %v1182_v0 = vmov 0.0  }
  0x16   : > { %265 = vst [vmem:[#allocation2] sm:$0xff] %v1182_v0 }
  0x17   : > { %266 = vst [vmem:[#allocation2 + $0x8] sm:$0xff] %v1182_v0 }
  0x18 PF: > { %v945_v1 = vld [vmem:[%s1239_s28 + $0x70] sm:$0xf]  ;;  %v1100_v2 = vld [vmem:[%s1239_s28 + $0x74] sm:$0xf0]  ;;  %v937_v6 = vld [vmem:[%s1239_s28 + $0x60] sm:$0xf] }
  0x19   : > { %v1009_v3 = vld [vmem:[%s1239_s28 + $0xf0] sm:$0xf]  ;;  %v946_v4 = vor.u32 %v1100_v2, %v945_v1  ;;  %v1116_v5 = vld [vmem:[%s1239_s28 + $0xf4] sm:$0xf0]  ;;  %v1098_v7 = vld [vmem:[%s1239_s28 + $0x64] sm:$0xf0] }
  0x1a   : > { %v1010_v8 = vor.u32 %v1116_v5, %v1009_v3  ;;  %v1001_v9 = vld [vmem:[%s1239_s28 + $0xe0] sm:$0xf]  ;;  %v1114_v10 = vld [vmem:[%s1239_s28 + $0xe4] sm:$0xf0]  ;;  %v938_v11 = vor.u32 %v1098_v7, %v937_v6  ;;  %v929_v12 = vld [vmem:[%s1239_s28 + $0x50] sm:$0xf] }
  0x1b   : > { %570 = vmatpush.bf16.msra.mxu0 %v946_v4  ;;  %v1002_v13 = vor.u32 %v1114_v10, %v1001_v9  ;;  %v1096_v14 = vld [vmem:[%s1239_s28 + $0x54] sm:$0xf0]  ;;  %v1073_v15 = vld [vmem:[%s1239_s28 + $0x170] sm:$0xf]  ;;  %v1065_v20 = vld [vmem:[%s1239_s28 + $0x160] sm:$0xf] }
  0x1c   : > { %583 = vmatpush.bf16.msra.mxu1 %v1010_v8  ;;  %v1132_v16 = vld [vmem:[%s1239_s28 + $0x174] sm:$0xf0]  ;;  %v993_v17 = vld [vmem:[%s1239_s28 + $0xd0] sm:$0xf]  ;;  %v1130_v21 = vld [vmem:[%s1239_s28 + $0x164] sm:$0xf0]  ;;  %v930_v23 = vor.u32 %v1096_v14, %v929_v12 }
  0x1d   : > { %v1112_v18 = vld [vmem:[%s1239_s28 + $0xd4] sm:$0xf0]  ;;  %v1074_v19 = vor.u32 %v1132_v16, %v1073_v15  ;;  %v1099_v22 = vld [vmem:[%s1239_s28 + $0x74] sm:$0xf]  ;;  %v921_v24 = vld [vmem:[%s1239_s28 + $0x40] sm:$0xf]  ;;  %v1066_v26 = vor.u32 %v1130_v21, %v1065_v20 }
  0x1e   : > { %v1094_v25 = vld [vmem:[%s1239_s28 + $0x44] sm:$0xf0]  ;;  %v947_v27 = vld [vmem:[%s1239_s28 + $0x78] sm:$0xf0]  ;;  %v994_v28 = vor.u32 %v1112_v18, %v993_v17  ;;  %v985_v29 = vld [vmem:[%s1239_s28 + $0xc0] sm:$0xf] }
  0x1f   : > { %571 = vmatpush.bf16.msra.mxu0 %v938_v11  ;;  %596 = vmatpush.bf16.msra.mxu2 %v1074_v19  ;;  %v1110_v30 = vld [vmem:[%s1239_s28 + $0xc4] sm:$0xf0]  ;;  %v950_v31 = vor.u32 %v1099_v22, %v947_v27  ;;  %v1057_v32 = vld [vmem:[%s1239_s28 + $0x150] sm:$0xf]  ;;  %v1128_v33 = vld [vmem:[%s1239_s28 + $0x154] sm:$0xf0]  ;;  %v922_v37 = vor.u32 %v1094_v25, %v921_v24 }
  0x20   : > { %584 = vmatpush.bf16.msra.mxu1 %v1002_v13  ;;  %v1097_v34 = vld [vmem:[%s1239_s28 + $0x64] sm:$0xf]  ;;  %v939_v35 = vld [vmem:[%s1239_s28 + $0x68] sm:$0xf0]  ;;  %v913_v38 = vld [vmem:[%s1239_s28 + $0x30] sm:$0xf]  ;;  %v1058_v40 = vor.u32 %v1128_v33, %v1057_v32  ;;  %v986_v42 = vor.u32 %v1110_v30, %v985_v29 }
  0x21   : > { %609 = vmatpush.bf16.msra.mxu3 %v950_v31  ;;  %v942_v36 = vor.u32 %v1097_v34, %v939_v35  ;;  %v1092_v39 = vld [vmem:[%s1239_s28 + $0x34] sm:$0xf0]  ;;  %v1049_v41 = vld [vmem:[%s1239_s28 + $0x140] sm:$0xf]  ;;  %v1126_v43 = vld [vmem:[%s1239_s28 + $0x144] sm:$0xf0] }
  0x22   : > { %v1095_v44 = vld [vmem:[%s1239_s28 + $0x54] sm:$0xf]  ;;  %v931_v45 = vld [vmem:[%s1239_s28 + $0x58] sm:$0xf0]  ;;  %v977_v46 = vld [vmem:[%s1239_s28 + $0xb0] sm:$0xf]  ;;  %v914_v49 = vor.u32 %v1092_v39, %v913_v38  ;;  %v1050_v51 = vor.u32 %v1126_v43, %v1049_v41 }
  0x23   : > { %572 = vmatpush.bf16.msra.mxu0 %v930_v23  ;;  %597 = vmatpush.bf16.msra.mxu2 %v1066_v26  ;;  %v1108_v47 = vld [vmem:[%s1239_s28 + $0xb4] sm:$0xf0]  ;;  %v934_v48 = vor.u32 %v1095_v44, %v931_v45  ;;  %v905_v50 = vld [vmem:[%s1239_s28 + $0x20] sm:$0xf]  ;;  %v1093_v52 = vld [vmem:[%s1239_s28 + $0x44] sm:$0xf] }
  0x24   : > { %585 = vmatpush.bf16.msra.mxu1 %v994_v28  ;;  %v923_v53 = vld [vmem:[%s1239_s28 + $0x48] sm:$0xf0]  ;;  %v978_v54 = vor.u32 %v1108_v47, %v977_v46  ;;  %v1090_v55 = vld [vmem:[%s1239_s28 + $0x24] sm:$0xf0]  ;;  %v1041_v56 = vld [vmem:[%s1239_s28 + $0x130] sm:$0xf] }
  0x25   : > { %610 = vmatpush.bf16.msra.mxu3 %v942_v36  ;;  %v1124_v57 = vld [vmem:[%s1239_s28 + $0x134] sm:$0xf0]  ;;  %v969_v58 = vld [vmem:[%s1239_s28 + $0xa0] sm:$0xf]  ;;  %v1106_v59 = vld [vmem:[%s1239_s28 + $0xa4] sm:$0xf0]  ;;  %v926_v60 = vor.u32 %v1093_v52, %v923_v53  ;;  %v906_v61 = vor.u32 %v1090_v55, %v905_v50 }
  0x26   : > { %v897_v62 = vld [vmem:[%s1239_s28 + $0x10] sm:$0xf]  ;;  %v1042_v63 = vor.u32 %v1124_v57, %v1041_v56  ;;  %v1091_v0 = vld [vmem:[%s1239_s28 + $0x34] sm:$0xf]  ;;  %v915_v1 = vld [vmem:[%s1239_s28 + $0x38] sm:$0xf0]  ;;  %v970_v2 = vor.u32 %v1106_v59, %v969_v58 }
  0x27   : > { %573 = vmatpush.bf16.msra.mxu0 %v922_v37  ;;  %598 = vmatpush.bf16.msra.mxu2 %v1058_v40  ;;  %v1088_v3 = vld [vmem:[%s1239_s28 + $0x14] sm:$0xf0]  ;;  %v1033_v4 = vld [vmem:[%s1239_s28 + $0x120] sm:$0xf]  ;;  %v1122_v5 = vld [vmem:[%s1239_s28 + $0x124] sm:$0xf0]  ;;  %v918_v10 = vor.u32 %v1091_v0, %v915_v1 }
  0x28   : > { %586 = vmatpush.bf16.msra.mxu1 %v986_v42  ;;  %v961_v6 = vld [vmem:[%s1239_s28 + $0x90] sm:$0xf]  ;;  %v1104_v7 = vld [vmem:[%s1239_s28 + $0x94] sm:$0xf0]  ;;  %v889_v8 = vld [vmem:[%s1239_s28] sm:$0xf]  ;;  %v898_v11 = vor.u32 %v1088_v3, %v897_v62  ;;  %v1034_v12 = vor.u32 %v1122_v5, %v1033_v4 }
  0x29   : > { %611 = vmatpush.bf16.msra.mxu3 %v934_v48  ;;  %v1086_v9 = vld [vmem:[%s1239_s28 + $0x4] sm:$0xf0]  ;;  %v1089_v13 = vld [vmem:[%s1239_s28 + $0x24] sm:$0xf]  ;;  %v907_v14 = vld [vmem:[%s1239_s28 + $0x28] sm:$0xf0]  ;;  %v962_v16 = vor.u32 %v1104_v7, %v961_v6 }
  0x2a   : > { %v269_v15 = vld [vmem:[%s1234_s24] sm:$0xff]  ;;  %v1025_v18 = vld [vmem:[%s1239_s28 + $0x110] sm:$0xf]  ;;  %v1120_v19 = vld [vmem:[%s1239_s28 + $0x114] sm:$0xf0]  ;;  %v910_v25 = vor.u32 %v1089_v13, %v907_v14  ;;  %v890_v27 = vor.u32 %v1086_v9, %v889_v8  ;;  %p1079_p7 = scmp.ne.s32.totalorder %s1172_s15, 2 }
  0x2b   : > { %574 = vmatpush.bf16.msra.mxu0 %v914_v49  ;;  %599 = vmatpush.bf16.msra.mxu2 %v1050_v51  ;;  %v953_v17 = vld [vmem:[%s1239_s28 + $0x80] sm:$0xf]  ;;  %v1102_v20 = vld [vmem:[%s1239_s28 + $0x84] sm:$0xf0]  ;;  %v1115_v21 = vld [vmem:[%s1239_s28 + $0xf4] sm:$0xf]  ;;  %v321_v26 = vunpack.c.l.b16 %v269_v15  ;;  %v1026_v28 = vor.u32 %v1120_v19, %v1025_v18  ;;  %v322_v29 = vunpack.c.h.b16 %v269_v15 }
  0x2c   : > { %587 = vmatpush.bf16.msra.mxu1 %v978_v54  ;;  %v1011_v22 = vld [vmem:[%s1239_s28 + $0xf8] sm:$0xf0]  ;;  %v1131_v23 = vld [vmem:[%s1239_s28 + $0x174] sm:$0xf]  ;;  %v270_v32 = vld [vmem:[%s1234_s24 + $0x8] sm:$0xf]  ;;  %v954_v33 = vor.u32 %v1102_v20, %v953_v17 }
  0x2d   : > { %612 = vmatpush.bf16.msra.mxu3 %v926_v60  ;;  %v1075_v24 = vld [vmem:[%s1239_s28 + $0x178] sm:$0xf0]  ;;  %v1087_v30 = vld [vmem:[%s1239_s28 + $0x14] sm:$0xf]  ;;  %v1014_v34 = vor.u32 %v1115_v21, %v1011_v22  ;;  %v1017_v35 = vld [vmem:[%s1239_s28 + $0x100] sm:$0xf]  ;;  %v324_v42 = vpack.c.b16 %v321_v26, %v321_v26  ;;  %v323_v44 = vunpack.c.l.b16 %v270_v32  ;;  %v1314_v45 = vpack.c.b16 %v322_v29, %v322_v29 }
  0x2e   : > { %v899_v31 = vld [vmem:[%s1239_s28 + $0x18] sm:$0xf0]  ;;  %v1118_v36 = vld [vmem:[%s1239_s28 + $0x104] sm:$0xf0]  ;;  %v1078_v37 = vor.u32 %v1131_v23, %v1075_v24  ;;  %v1113_v38 = vld [vmem:[%s1239_s28 + $0xe4] sm:$0xf] }
  0x2f   : > { %575 = vmatpush.bf16.msra.mxu0 %v906_v61  ;;  %600 = vmatpush.bf16.msra.mxu2 %v1042_v63  ;;  %v1003_v39 = vld [vmem:[%s1239_s28 + $0xe8] sm:$0xf0]  ;;  %v1129_v40 = vld [vmem:[%s1239_s28 + $0x164] sm:$0xf]  ;;  %v902_v43 = vor.u32 %v1087_v30, %v899_v31  ;;  %v1018_v46 = vor.u32 %v1118_v36, %v1017_v35  ;;  %v1111_v51 = vld [vmem:[%s1239_s28 + $0xd4] sm:$0xf]  ;;  %v326_v55 = vpack.c.b16 %v323_v44, %v323_v44 }
  0x30   : > { %588 = vmatpush.bf16.msra.mxu1 %v970_v2  ;;  %v1067_v41 = vld [vmem:[%s1239_s28 + $0x168] sm:$0xf0]  ;;  %v1085_v47 = vld [vmem:[%s1239_s28 + $0x4] sm:$0xf]  ;;  %v1006_v49 = vor.u32 %v1113_v38, %v1003_v39  ;;  %v995_v52 = vld [vmem:[%s1239_s28 + $0xd8] sm:$0xf0] }
  0x31   : > { %613 = vmatpush.bf16.msra.mxu3 %v918_v10  ;;  %v891_v48 = vld [vmem:[%s1239_s28 + $0x8] sm:$0xf0]  ;;  %v1070_v50 = vor.u32 %v1129_v40, %v1067_v41  ;;  %v1127_v53 = vld [vmem:[%s1239_s28 + $0x154] sm:$0xf]  ;;  %v1059_v54 = vld [vmem:[%s1239_s28 + $0x158] sm:$0xf0]  ;;  %v998_v57 = vor.u32 %v1111_v51, %v995_v52 }
  0x32   : > { %v894_v56 = vor.u32 %v1085_v47, %v891_v48  ;;  %v1062_v58 = vor.u32 %v1127_v53, %v1059_v54  ;;  %v1109_v59 = vld [vmem:[%s1239_s28 + $0xc4] sm:$0xf]  ;;  %v987_v60 = vld [vmem:[%s1239_s28 + $0xc8] sm:$0xf0]  ;;  %v1107_v1 = vld [vmem:[%s1239_s28 + $0xb4] sm:$0xf] }
  0x33   : > { %576 = vmatpush.bf16.msra.mxu0 %v898_v11  ;;  %601 = vmatpush.bf16.msra.mxu2 %v1034_v12  ;;  %v1125_v61 = vld [vmem:[%s1239_s28 + $0x144] sm:$0xf]  ;;  %v1051_v62 = vld [vmem:[%s1239_s28 + $0x148] sm:$0xf0]  ;;  %v990_v63 = vor.u32 %v1109_v59, %v987_v60  ;;  %v979_v2 = vld [vmem:[%s1239_s28 + $0xb8] sm:$0xf0] }
  0x34   : > { %589 = vmatpush.bf16.msra.mxu1 %v962_v16  ;;  %v1054_v0 = vor.u32 %v1125_v61, %v1051_v62  ;;  %v1123_v3 = vld [vmem:[%s1239_s28 + $0x134] sm:$0xf]  ;;  %v1043_v4 = vld [vmem:[%s1239_s28 + $0x138] sm:$0xf0]  ;;  %v982_v5 = vor.u32 %v1107_v1, %v979_v2  ;;  %v1105_v7 = vld [vmem:[%s1239_s28 + $0xa4] sm:$0xf] }
  0x35   : > { %614 = vmatpush.bf16.msra.mxu3 %v910_v25  ;;  %v1046_v6 = vor.u32 %v1123_v3, %v1043_v4  ;;  %v971_v8 = vld [vmem:[%s1239_s28 + $0xa8] sm:$0xf0]  ;;  %v1121_v9 = vld [vmem:[%s1239_s28 + $0x124] sm:$0xf]  ;;  %v1103_v13 = vld [vmem:[%s1239_s28 + $0x94] sm:$0xf] }
  0x36   : > { %v1035_v10 = vld [vmem:[%s1239_s28 + $0x128] sm:$0xf0]  ;;  %v974_v11 = vor.u32 %v1105_v7, %v971_v8  ;;  %v963_v14 = vld [vmem:[%s1239_s28 + $0x98] sm:$0xf0]  ;;  %v1119_v15 = vld [vmem:[%s1239_s28 + $0x114] sm:$0xf] }
  0x37   : > { %577 = vmatpush.bf16.msra.mxu0 %v890_v27  ;;  %602 = vmatpush.bf16.msra.mxu2 %v1026_v28  ;;  %v1038_v12 = vor.u32 %v1121_v9, %v1035_v10  ;;  %v1027_v16 = vld [vmem:[%s1239_s28 + $0x118] sm:$0xf0]  ;;  %v966_v17 = vor.u32 %v1103_v13, %v963_v14  ;;  %v1101_v19 = vld [vmem:[%s1239_s28 + $0x84] sm:$0xf]  ;;  %v955_v20 = vld [vmem:[%s1239_s28 + $0x88] sm:$0xf0] }
  0x38   : > { %590 = vmatpush.bf16.msra.mxu1 %v954_v33  ;;  %v1030_v18 = vor.u32 %v1119_v15, %v1027_v16  ;;  %v1117_v21 = vld [vmem:[%s1239_s28 + $0x104] sm:$0xf]  ;;  %v1019_v22 = vld [vmem:[%s1239_s28 + $0x108] sm:$0xf0]  ;;  %v958_v23 = vor.u32 %v1101_v19, %v955_v20  ;;  %v268_v40 = vld [vmem:[#allocation2 + $0x8] sm:$0xff] }
  0x39   : > { %615 = vmatpush.bf16.msra.mxu3 %v902_v43  ;;  %v1022_v24 = vor.u32 %v1117_v21, %v1019_v22  ;;  %v267_v30 = vld [vmem:[#allocation2] sm:$0xff] }
  0x3a   : > { %578 = vmatmul.bf16.vlgmr.msra.gmra.mxu0 %v324_v42 }
  0x3b   : > { %622 = vmatpush.bf16.msrb.mxu0 %v1014_v34  ;;  %591 = vmatmul.bf16.vlgmr.msra.gmra.mxu1 %v1314_v45 }
  0x3c   : > { %635 = vmatpush.bf16.msrb.mxu1 %v1078_v37  ;;  %603 = vmatpush.bf16.msra.mxu2 %v1018_v46 }
  0x3d   : > { %616 = vmatpush.bf16.msra.mxu3 %v894_v56 }
  0x3f   : > { %623 = vmatpush.bf16.msrb.mxu0 %v1006_v49  ;;  %604 = vmatmul.bf16.vlgmr.msra.gmra.mxu2 %v326_v55 }
  0x40   : > { %636 = vmatpush.bf16.msrb.mxu1 %v1070_v50  ;;  %617 = vmatmul.bf16.vlgmr.msra.gmra.mxu3 %v324_v42 }
  0x43   : > { %624 = vmatpush.bf16.msrb.mxu0 %v998_v57 }
  0x44   : > { %637 = vmatpush.bf16.msrb.mxu1 %v1062_v58 }
  0x47   : > { %625 = vmatpush.bf16.msrb.mxu0 %v990_v63 }
  0x48   : > { %638 = vmatpush.bf16.msrb.mxu1 %v1054_v0 }
  0x4b   : > { %626 = vmatpush.bf16.msrb.mxu0 %v982_v5 }
  0x4c   : > { %639 = vmatpush.bf16.msrb.mxu1 %v1046_v6 }
  0x4f   : > { %627 = vmatpush.bf16.msrb.mxu0 %v974_v11 }
  0x50   : > { %640 = vmatpush.bf16.msrb.mxu1 %v1038_v12 }
  0x53   : > { %628 = vmatpush.bf16.msrb.mxu0 %v966_v17 }
  0x54   : > { %641 = vmatpush.bf16.msrb.mxu1 %v1030_v18 }
  0x57   : > { %629 = vmatpush.bf16.msrb.mxu0 %v958_v23 }
  0x58   : > { %642 = vmatpush.bf16.msrb.mxu1 %v1022_v24 }
  0x5a   : > { %630 = vmatmul.bf16.vlgmr.msrb.gmra.mxu0 %v1314_v45 }
  0x5b   : > { %643 = vmatmul.bf16.vlgmr.msrb.gmra.mxu1 %v326_v55 }
  0xb7   : > { %v579_v25 = vpop.f32.mrf.mxu0 }
  0xb8   : > { %v592_v26 = vpop.f32.mrf.mxu1 }
  0xb9   : > { %v593_v27 = vadd.f32 %v592_v26, %v579_v25 }
  0xbf   : > { %v581_v28 = vpop.f32.mrf.mxu0 }
  0xc0   : > { %v594_v29 = vpop.f32.mrf.mxu1 }
  0xc2   : > { %v605_v31 = vpop.f32.mrf.mxu2 }
  0xc3   : > { %v606_v32 = vadd.f32 %v605_v31, %v593_v27  ;;  %v618_v34 = vpop.f32.mrf.mxu3 }
  0xc5   : > { %v648_v33 = vadd.f32 %v606_v32, %v267_v30 }
  0xc7   : > { %650 = vst [vmem:[#allocation2] sm:$0xff] %v648_v33 }
  0xca   : > { %v607_v35 = vpop.f32.mrf.mxu2 }
  0xcb   : > { %v620_v36 = vpop.f32.mrf.mxu3 }
  0xd7   : > { %v631_v37 = vpop.f32.mrf.mxu0 }
  0xd8   : > { %v632_v38 = vadd.f32 %v631_v37, %v618_v34  ;;  %v644_v39 = vpop.f32.mrf.mxu1 }
  0xda   : > { %v645_v41 = vadd.f32 %v644_v39, %v632_v38 }
  0xdc   : > { %v649_v42 = vadd.f32 %v645_v41, %v268_v40  ;;  %655 = sbr.rel (%p1079_p7) target bundleno = 284 (0x11c), region = 40 }
  0xde   : > { %651 = vst [vmem:[#allocation2 + $0x8] sm:$0xff] %v649_v42 }
  0xdf   : > { %v633_v43 = vpop.f32.mrf.mxu0 }
  0xe0   : > { %v646_v44 = vpop.f32.mrf.mxu1 }
  0xe1   : > { %v656_v45 = vld [vmem:[#allocation2] sm:$0xff]  ;;  %v658_v47 = vld [vmem:[%s1374_s3] sm:$0x3]  ;;  %vm671_vm0 = vcmask 1043456   ;;  %vm720_vm1 = vcmask 1040384   ;;  %vm739_vm2 = vcmask 1041409  }
  0xe2   : > { %v660_v48 = vperm.slane %v658_v47, 0  ;;  %v661_v49 = vperm.slane %v658_v47, 1 }
  0xe4   : > { %v664_v50 = vadd.f32 %v660_v48, %v656_v45 }
  0xe5   : > { %v657_v46 = vld [vmem:[#allocation2 + $0x8] sm:$0xff] }
  0xe6   : > { %v665_v51 = vadd.f32 %v661_v49, %v657_v46  ;;  %v666_v52 = vmax.f32 %v664_v50, 0.0 }
  0xe8   : > { %v667_v53 = vmax.f32 %v665_v51, 0.0 }
  0xea   : > { %v670_v54 = vrot.slane %v667_v53, 4 }
  0xec   : > { %v672_v55 = vsel %vm671_vm0, %v666_v52, %v670_v54  ;;  %v673_v56 = vsel %vm671_vm0, %v670_v54, %v666_v52 }
  0xed   : > { %v674_v57 = vrot.slane %v673_v56, 4  ;;  %675 = vst [vmem:[#allocation1] ss:$2 sm:$0xff] %v672_v55 }
  0xef   : > { %679 = vst [vmem:[#allocation1 + $0x10] ss:$2 sm:$0xff] %v674_v57 }
  0xf4   : > { %v676_v58 = vld.sshfl [vmem:[#allocation1] sm:$0xff pattern:$0x75316420]  ;;  %v677_v59 = vld.sshfl [vmem:[#allocation1 + $0x8] sm:$0xff pattern:$0x75316420] }
  0xf5   : > { %v686_v60 = vsel %vm671_vm0, %v676_v58, -inf  ;;  %v693_v61 = vsel %vm671_vm0, %v677_v59, -inf }
  0xf6   : > { %v680_v62 = vld.sshfl [vmem:[#allocation1 + $0x10] sm:$0xff pattern:$0x75316420]  ;;  %v681_v63 = vld.sshfl [vmem:[#allocation1 + $0x18] sm:$0xff pattern:$0x75316420] }
  0xf7   : > { %v687_v0 = vrot.slane %v686_v60, 4  ;;  %v694_v1 = vrot.slane %v693_v61, 4  ;;  %v700_v2 = vsel %vm671_vm0, %v680_v62, -inf  ;;  %v707_v3 = vsel %vm671_vm0, %v681_v63, -inf }
  0xf8   : > { %v701_v4 = vrot.slane %v700_v2, 4  ;;  %v708_v5 = vrot.slane %v707_v3, 4 }
  0xf9   : > { %v688_v6 = vmax.f32 %v686_v60, %v687_v0  ;;  %v695_v7 = vmax.f32 %v693_v61, %v694_v1 }
  0xfa   : > { %v702_v8 = vmax.f32 %v700_v2, %v701_v4  ;;  %v709_v9 = vmax.f32 %v707_v3, %v708_v5 }
  0xfb   : > { %v689_v10 = vrot.slane %v688_v6, 2  ;;  %v696_v11 = vrot.slane %v695_v7, 2 }
  0xfc   : > { %v703_v12 = vrot.slane %v702_v8, 2  ;;  %v710_v13 = vrot.slane %v709_v9, 2 }
  0xfd   : > { %v690_v14 = vmax.f32 %v688_v6, %v689_v10  ;;  %v697_v15 = vmax.f32 %v695_v7, %v696_v11 }
  0xfe   : > { %v704_v16 = vmax.f32 %v702_v8, %v703_v12  ;;  %v711_v17 = vmax.f32 %v709_v9, %v710_v13 }
  0xff   : > { %v691_v18 = vrot.slane %v690_v14, 1  ;;  %v698_v19 = vrot.slane %v697_v15, 1 }
 0x100   : > { %v705_v20 = vrot.slane %v704_v16, 1  ;;  %v712_v21 = vrot.slane %v711_v17, 1 }
 0x101   : > { %v692_v22 = vmax.f32 %v690_v14, %v691_v18  ;;  %v699_v23 = vmax.f32 %v697_v15, %v698_v19 }
 0x102   : > { %v706_v24 = vmax.f32 %v704_v16, %v705_v20  ;;  %v713_v25 = vmax.f32 %v711_v17, %v712_v21 }
 0x103   : > { %v714_v26 = vpack.c.bf16 %v699_v23, %v692_v22 }
 0x104   : > { %v715_v27 = vpack.c.bf16 %v713_v25, %v706_v24 }
 0x105   : > { %v718_v28 = vrot.slane %v714_v26, 3 }
 0x106   : > { %v719_v29 = vrot.slane %v715_v27, 3 }
 0x107   : > { %v723_v30 = vsel %vm720_vm1, %v714_v26, %v718_v28 }
 0x108   : > { %v726_v31 = vsel %vm720_vm1, %v715_v27, %v719_v29  ;;  %727 = vst [vmem:[#allocation1] ss:$4 sm:$0xff] %v723_v30 }
 0x109   : > { %731 = vst [vmem:[#allocation1 + $0x20] ss:$4 sm:$0xff] %v726_v31 }
 0x10f   : > { %v728_v32 = vld [vmem:[#allocation1] sm:$0xff] }
 0x110   : > { %v732_v33 = vld [vmem:[#allocation1 + $0x20] sm:$0xff]  ;;  %v734_v34 = vunpack.c.l.b16 %v728_v32  ;;  %v735_v35 = vunpack.c.h.b16 %v728_v32 }
 0x111   : > { %v736_v36 = vunpack.c.l.b16 %v732_v33  ;;  %v737_v37 = vunpack.c.h.b16 %v732_v33 }
 0x113   : > { %v738_v38 = vrot.slane %v736_v36, 7  ;;  %v741_v39 = vrot.slane %v737_v37, 7 }
 0x115   : > { %v740_v40 = vsel %vm739_vm2, %v738_v38, %v734_v34  ;;  %v742_v41 = vsel %vm739_vm2, %v741_v39, %v735_v35 }
 0x116   : > { %v743_v42 = vpack.c.b16 %v742_v41, %v740_v40 }
 0x118   : > { %v744_v43 = vrot.slane %v743_v42, 3 }
 0x11a   : > { %v747_v44 = vsel %vm720_vm1, %v743_v42, %v744_v43 }
 0x11b   : > { %749 = vst [vmem:[#allocation3] sm:$0x3] %v747_v44 }
 0x11c PF: > { %p1080_p8 = scmp.ne.s32.totalorder %s878_s0, 2 }
 0x11e   : > { %752 = sbr.rel (%p1080_p8) target bundleno = 293 (0x125), region = 44 }
 0x123   : > { %v773_v45 = vld [vmem:[#allocation3] sm:$0x3] }
 0x124   : > { %1081 = vst [vmem:[%s1375_s4 + $0x8] sm:$0x3] %v773_v45 }
 0x125 PF: > { %s15_s17 = sadd.s32 1, %s1180_s17   ;;  %s1376_s15 = smov %s1176_s16 }
 0x126   : > { %p12_p9 = scmp.ge.s32.totalorder %s15_s17, 5   ;;  %s1377_s16 = smov %s1379_s18 }
 0x128   :  { %14 = sbr.rel (!%p12_p9) target bundleno = 2 (0x2), region = 110 }

// kernel: spinal_vgg_forward.8
= control target key start
LH: loop header
LB: loop body
LE: loop exit
PB: predicated region body
PF: predicated region fallthrough
CT: control target
= control target key end

     0   :  { %s2209_s12 = smov 0   ;;  %s2211_s13 = smov 0   ;;  %s2744_s0 = inlined_call_operand.vmem [shape: bf16[2,2304], index: 0, kind: input, shape index: {}]   ;;  %s2745_s1 = inlined_call_operand.vmem [shape: bf16[2304,512], index: 1, kind: input, shape index: {}]   ;;  %s2746_s2 = inlined_call_operand.vmem [shape: f32[1,512], index: 2, kind: input, shape index: {}]   ;;  %s2747_s3 = inlined_call_operand.vmem [shape: bf16[2,512], index: 3, kind: output, shape index: {}]  }
   0x1   :  { %s2213_s14 = smov 0   ;;  %s2215_s15 = smov 0  }
   0x2   :  { %s2217_s16 = smov 0   ;;  %s2219_s17 = smov 0  }
   0x3   :  { %s2221_s18 = smov 0  }
   0x4 LB: > { %s25_s19 = sadd.s32 1, %s2178_s16  ;;  %s28_s20 = sadd.s32 1, %s2182_s17  ;;  %s2186_s18 = sphi %s2221_s18, %s13_s18   ;;  %s2182_s17 = sphi %s2219_s17, %s2753_s17   ;;  %s2178_s16 = sphi %s2217_s16, %s2752_s16   ;;  %s2174_s15 = sphi %s2215_s15, %s2751_s15   ;;  %s2170_s14 = sphi %s2213_s14, %s2750_s14   ;;  %s2166_s13 = sphi %s2211_s13, %s2749_s13   ;;  %s2162_s12 = sphi %s2209_s12, %s2748_s12  }
   0x5   : > { %p26_p0 = scmp.ge.s32.totalorder %s25_s19, 3  ;;  %p76_p1 = scmp.ne.s32.totalorder %s2166_s13, %s2162_s12 }
   0x6   : > { %p77_p2 = scmp.eq.s32.totalorder %s2186_s18, 0  ;;  %s69_s24 = sadd.s32 1, %s2166_s13 }
   0x7   : > { %s2755_s19 = smov (%p26_p0, %s25_s19), 0  ;;  %s2757_s20 = smov (!%p26_p0, %s28_s20), %s2182_s17 }
   0x8   : > { %p78_p3 = por %p77_p2, %p76_p1  ;;  %p30_p4 = scmp.ge.s32.totalorder %s2757_s20, 2 }
   0x9   : > { %s64_s21 = ssub.s32 %s2178_s16, %s2755_s19  ;;  %p1581_p6 = scmp.ge.s32.totalorder %s2186_s18, 6 }
   0xa   : > { %s2759_s20 = smov (%p30_p4, %s2757_s20), 0 }
   0xb   : > { %s65_s22 = ssub.s32 %s2182_s17, %s2759_s20  ;;  %156 = sbr.rel (%p1581_p6) target bundleno = 120 (0x78), region = 16 }
   0xc   : > { %s66_s23 = sor.u32 %s65_s22, %s64_s21 }
   0xd   : > { %p67_p5 = scmp.eq.s32.totalorder %s66_s23, 0 }
   0xf   : > { %s2260_s25 = scalar_select %p67_p5, %s2166_s13, %s69_s24  }
  0x10   : > { %171 = sbr.rel (!%p78_p3) target bundleno = 120 (0x78), region = 24  ;;  %s173_s26 = sand.u32 (%p78_p3), 1, %s2166_s13  }
  0x11   : > { %s2073_s27 = smul.u32 (%p78_p3), 768, %s173_s26  ;;  %s1582_s28 = sshll.u32 (%p78_p3), %s2182_s17, 1 }
  0x12   : > { %s1976_s29 = smul.u32 (%p78_p3), 384, %s2178_s16 }
  0x13   : > { %s2274_s8 = scalar_lea.vmem (%p78_p3), [#allocation3], %s2073_s27 }
  0x14   : > { %s179_s30 = sadd.s32 (%p78_p3), %s1976_s29, %s1582_s28 }
  0x15   : > { %s1584_s4 = sshll.u32 %s179_s30, 2 }
  0x16   : > { %s2269_s7 = scalar_lea.vmem %s2745_s1, %s1584_s4 }
  0x17   : > { %v400_v0 = vld [vmem:[%s2269_s7] sm:$0xff]  ;;  %v402_v1 = vld [vmem:[%s2269_s7 + $0x10] sm:$0xff] }
  0x18   : > { %v404_v2 = vld [vmem:[%s2269_s7 + $0x20] sm:$0xff]  ;;  %401 = vst [vmem:[%s2274_s8] sm:$0xff] %v400_v0  ;;  %v406_v3 = vld [vmem:[%s2269_s7 + $0x30] sm:$0xff] }
  0x19   : > { %403 = vst [vmem:[%s2274_s8 + $0x8] sm:$0xff] %v402_v1  ;;  %v408_v4 = vld [vmem:[%s2269_s7 + $0x40] sm:$0xff]  ;;  %v410_v5 = vld [vmem:[%s2269_s7 + $0x50] sm:$0xff] }
  0x1a   : > { %405 = vst [vmem:[%s2274_s8 + $0x10] sm:$0xff] %v404_v2  ;;  %v412_v6 = vld [vmem:[%s2269_s7 + $0x60] sm:$0xff]  ;;  %v414_v7 = vld [vmem:[%s2269_s7 + $0x70] sm:$0xff] }
  0x1b   : > { %407 = vst [vmem:[%s2274_s8 + $0x18] sm:$0xff] %v406_v3  ;;  %v416_v8 = vld [vmem:[%s2269_s7 + $0x80] sm:$0xff]  ;;  %v418_v9 = vld [vmem:[%s2269_s7 + $0x90] sm:$0xff] }
  0x1c   : > { %409 = vst [vmem:[%s2274_s8 + $0x20] sm:$0xff] %v408_v4  ;;  %v420_v10 = vld [vmem:[%s2269_s7 + $0xa0] sm:$0xff]  ;;  %v422_v11 = vld [vmem:[%s2269_s7 + $0xb0] sm:$0xff] }
  0x1d   : > { %411 = vst [vmem:[%s2274_s8 + $0x28] sm:$0xff] %v410_v5  ;;  %v424_v12 = vld [vmem:[%s2269_s7 + $0xc0] sm:$0xff]  ;;  %v426_v13 = vld [vmem:[%s2269_s7 + $0xd0] sm:$0xff] }
  0x1e   : > { %413 = vst [vmem:[%s2274_s8 + $0x30] sm:$0xff] %v412_v6  ;;  %v428_v14 = vld [vmem:[%s2269_s7 + $0xe0] sm:$0xff]  ;;  %v430_v15 = vld [vmem:[%s2269_s7 + $0xf0] sm:$0xff] }
  0x1f   : > { %415 = vst [vmem:[%s2274_s8 + $0x38] sm:$0xff] %v414_v7  ;;  %v432_v16 = vld [vmem:[%s2269_s7 + $0x100] sm:$0xff]  ;;  %v434_v17 = vld [vmem:[%s2269_s7 + $0x110] sm:$0xff] }
  0x20   : > { %417 = vst [vmem:[%s2274_s8 + $0x40] sm:$0xff] %v416_v8  ;;  %v436_v18 = vld [vmem:[%s2269_s7 + $0x120] sm:$0xff]  ;;  %v438_v19 = vld [vmem:[%s2269_s7 + $0x130] sm:$0xff] }
  0x21   : > { %419 = vst [vmem:[%s2274_s8 + $0x48] sm:$0xff] %v418_v9  ;;  %v440_v20 = vld [vmem:[%s2269_s7 + $0x140] sm:$0xff]  ;;  %v442_v21 = vld [vmem:[%s2269_s7 + $0x150] sm:$0xff] }
  0x22   : > { %421 = vst [vmem:[%s2274_s8 + $0x50] sm:$0xff] %v420_v10  ;;  %v444_v22 = vld [vmem:[%s2269_s7 + $0x160] sm:$0xff]  ;;  %v446_v23 = vld [vmem:[%s2269_s7 + $0x170] sm:$0xff] }
  0x23   : > { %423 = vst [vmem:[%s2274_s8 + $0x58] sm:$0xff] %v422_v11  ;;  %v448_v24 = vld [vmem:[%s2269_s7 + $0x180] sm:$0xff]  ;;  %v450_v25 = vld [vmem:[%s2269_s7 + $0x190] sm:$0xff] }
  0x24   : > { %425 = vst [vmem:[%s2274_s8 + $0x60] sm:$0xff] %v424_v12  ;;  %v452_v26 = vld [vmem:[%s2269_s7 + $0x1a0] sm:$0xff]  ;;  %v454_v27 = vld [vmem:[%s2269_s7 + $0x1b0] sm:$0xff] }
  0x25   : > { %427 = vst [vmem:[%s2274_s8 + $0x68] sm:$0xff] %v426_v13  ;;  %v456_v28 = vld [vmem:[%s2269_s7 + $0x1c0] sm:$0xff]  ;;  %v458_v29 = vld [vmem:[%s2269_s7 + $0x1d0] sm:$0xff] }
  0x26   : > { %429 = vst [vmem:[%s2274_s8 + $0x70] sm:$0xff] %v428_v14  ;;  %v460_v30 = vld [vmem:[%s2269_s7 + $0x1e0] sm:$0xff]  ;;  %v462_v31 = vld [vmem:[%s2269_s7 + $0x1f0] sm:$0xff] }
  0x27   : > { %431 = vst [vmem:[%s2274_s8 + $0x78] sm:$0xff] %v430_v15  ;;  %v464_v32 = vld [vmem:[%s2269_s7 + $0x200] sm:$0xff]  ;;  %v466_v33 = vld [vmem:[%s2269_s7 + $0x210] sm:$0xff] }
  0x28   : > { %433 = vst [vmem:[%s2274_s8 + $0x80] sm:$0xff] %v432_v16  ;;  %v468_v34 = vld [vmem:[%s2269_s7 + $0x220] sm:$0xff]  ;;  %v470_v35 = vld [vmem:[%s2269_s7 + $0x230] sm:$0xff] }
  0x29   : > { %435 = vst [vmem:[%s2274_s8 + $0x88] sm:$0xff] %v434_v17  ;;  %v472_v36 = vld [vmem:[%s2269_s7 + $0x240] sm:$0xff]  ;;  %v474_v37 = vld [vmem:[%s2269_s7 + $0x250] sm:$0xff] }
  0x2a   : > { %437 = vst [vmem:[%s2274_s8 + $0x90] sm:$0xff] %v436_v18  ;;  %v476_v38 = vld [vmem:[%s2269_s7 + $0x260] sm:$0xff]  ;;  %v478_v39 = vld [vmem:[%s2269_s7 + $0x270] sm:$0xff] }
  0x2b   : > { %439 = vst [vmem:[%s2274_s8 + $0x98] sm:$0xff] %v438_v19  ;;  %v480_v40 = vld [vmem:[%s2269_s7 + $0x280] sm:$0xff]  ;;  %v482_v41 = vld [vmem:[%s2269_s7 + $0x290] sm:$0xff] }
  0x2c   : > { %441 = vst [vmem:[%s2274_s8 + $0xa0] sm:$0xff] %v440_v20  ;;  %v484_v42 = vld [vmem:[%s2269_s7 + $0x2a0] sm:$0xff]  ;;  %v486_v43 = vld [vmem:[%s2269_s7 + $0x2b0] sm:$0xff] }
  0x2d   : > { %443 = vst [vmem:[%s2274_s8 + $0xa8] sm:$0xff] %v442_v21  ;;  %v488_v44 = vld [vmem:[%s2269_s7 + $0x2c0] sm:$0xff]  ;;  %v490_v45 = vld [vmem:[%s2269_s7 + $0x2d0] sm:$0xff] }
  0x2e   : > { %445 = vst [vmem:[%s2274_s8 + $0xb0] sm:$0xff] %v444_v22  ;;  %v492_v46 = vld [vmem:[%s2269_s7 + $0x2e0] sm:$0xff]  ;;  %v494_v47 = vld [vmem:[%s2269_s7 + $0x2f0] sm:$0xff] }
  0x2f   : > { %447 = vst [vmem:[%s2274_s8 + $0xb8] sm:$0xff] %v446_v23  ;;  %v496_v48 = vld [vmem:[%s2269_s7 + $0x300] sm:$0xff]  ;;  %v498_v49 = vld [vmem:[%s2269_s7 + $0x310] sm:$0xff] }
  0x30   : > { %449 = vst [vmem:[%s2274_s8 + $0xc0] sm:$0xff] %v448_v24  ;;  %v500_v50 = vld [vmem:[%s2269_s7 + $0x320] sm:$0xff]  ;;  %v502_v51 = vld [vmem:[%s2269_s7 + $0x330] sm:$0xff] }
  0x31   : > { %451 = vst [vmem:[%s2274_s8 + $0xc8] sm:$0xff] %v450_v25  ;;  %v504_v52 = vld [vmem:[%s2269_s7 + $0x340] sm:$0xff]  ;;  %v506_v53 = vld [vmem:[%s2269_s7 + $0x350] sm:$0xff] }
  0x32   : > { %453 = vst [vmem:[%s2274_s8 + $0xd0] sm:$0xff] %v452_v26  ;;  %v508_v54 = vld [vmem:[%s2269_s7 + $0x360] sm:$0xff]  ;;  %v510_v55 = vld [vmem:[%s2269_s7 + $0x370] sm:$0xff] }
  0x33   : > { %455 = vst [vmem:[%s2274_s8 + $0xd8] sm:$0xff] %v454_v27  ;;  %v512_v56 = vld [vmem:[%s2269_s7 + $0x380] sm:$0xff]  ;;  %v514_v57 = vld [vmem:[%s2269_s7 + $0x390] sm:$0xff] }
  0x34   : > { %457 = vst [vmem:[%s2274_s8 + $0xe0] sm:$0xff] %v456_v28  ;;  %v516_v58 = vld [vmem:[%s2269_s7 + $0x3a0] sm:$0xff]  ;;  %v518_v59 = vld [vmem:[%s2269_s7 + $0x3b0] sm:$0xff] }
  0x35   : > { %459 = vst [vmem:[%s2274_s8 + $0xe8] sm:$0xff] %v458_v29  ;;  %v520_v60 = vld [vmem:[%s2269_s7 + $0x3c0] sm:$0xff]  ;;  %v522_v61 = vld [vmem:[%s2269_s7 + $0x3d0] sm:$0xff] }
  0x36   : > { %461 = vst [vmem:[%s2274_s8 + $0xf0] sm:$0xff] %v460_v30  ;;  %v524_v62 = vld [vmem:[%s2269_s7 + $0x3e0] sm:$0xff]  ;;  %v526_v63 = vld [vmem:[%s2269_s7 + $0x3f0] sm:$0xff] }
  0x37   : > { %463 = vst [vmem:[%s2274_s8 + $0xf8] sm:$0xff] %v462_v31  ;;  %v528_v0 = vld [vmem:[%s2269_s7 + $0x400] sm:$0xff]  ;;  %v530_v1 = vld [vmem:[%s2269_s7 + $0x410] sm:$0xff] }
  0x38   : > { %465 = vst [vmem:[%s2274_s8 + $0x100] sm:$0xff] %v464_v32  ;;  %v532_v2 = vld [vmem:[%s2269_s7 + $0x420] sm:$0xff]  ;;  %v534_v3 = vld [vmem:[%s2269_s7 + $0x430] sm:$0xff] }
  0x39   : > { %467 = vst [vmem:[%s2274_s8 + $0x108] sm:$0xff] %v466_v33  ;;  %v536_v4 = vld [vmem:[%s2269_s7 + $0x440] sm:$0xff]  ;;  %v538_v5 = vld [vmem:[%s2269_s7 + $0x450] sm:$0xff] }
  0x3a   : > { %469 = vst [vmem:[%s2274_s8 + $0x110] sm:$0xff] %v468_v34  ;;  %v540_v6 = vld [vmem:[%s2269_s7 + $0x460] sm:$0xff]  ;;  %v542_v7 = vld [vmem:[%s2269_s7 + $0x470] sm:$0xff] }
  0x3b   : > { %471 = vst [vmem:[%s2274_s8 + $0x118] sm:$0xff] %v470_v35  ;;  %v544_v8 = vld [vmem:[%s2269_s7 + $0x480] sm:$0xff]  ;;  %v546_v9 = vld [vmem:[%s2269_s7 + $0x490] sm:$0xff] }
  0x3c   : > { %473 = vst [vmem:[%s2274_s8 + $0x120] sm:$0xff] %v472_v36  ;;  %v548_v10 = vld [vmem:[%s2269_s7 + $0x4a0] sm:$0xff]  ;;  %v550_v11 = vld [vmem:[%s2269_s7 + $0x4b0] sm:$0xff] }
  0x3d   : > { %475 = vst [vmem:[%s2274_s8 + $0x128] sm:$0xff] %v474_v37  ;;  %v552_v12 = vld [vmem:[%s2269_s7 + $0x4c0] sm:$0xff]  ;;  %v554_v13 = vld [vmem:[%s2269_s7 + $0x4d0] sm:$0xff] }
  0x3e   : > { %477 = vst [vmem:[%s2274_s8 + $0x130] sm:$0xff] %v476_v38  ;;  %v556_v14 = vld [vmem:[%s2269_s7 + $0x4e0] sm:$0xff]  ;;  %v558_v15 = vld [vmem:[%s2269_s7 + $0x4f0] sm:$0xff] }
  0x3f   : > { %479 = vst [vmem:[%s2274_s8 + $0x138] sm:$0xff] %v478_v39  ;;  %v560_v16 = vld [vmem:[%s2269_s7 + $0x500] sm:$0xff]  ;;  %v562_v17 = vld [vmem:[%s2269_s7 + $0x510] sm:$0xff] }
  0x40   : > { %481 = vst [vmem:[%s2274_s8 + $0x140] sm:$0xff] %v480_v40  ;;  %v564_v18 = vld [vmem:[%s2269_s7 + $0x520] sm:$0xff]  ;;  %v566_v19 = vld [vmem:[%s2269_s7 + $0x530] sm:$0xff] }
  0x41   : > { %483 = vst [vmem:[%s2274_s8 + $0x148] sm:$0xff] %v482_v41  ;;  %v568_v20 = vld [vmem:[%s2269_s7 + $0x540] sm:$0xff]  ;;  %v570_v21 = vld [vmem:[%s2269_s7 + $0x550] sm:$0xff] }
  0x42   : > { %485 = vst [vmem:[%s2274_s8 + $0x150] sm:$0xff] %v484_v42  ;;  %v572_v22 = vld [vmem:[%s2269_s7 + $0x560] sm:$0xff]  ;;  %v574_v23 = vld [vmem:[%s2269_s7 + $0x570] sm:$0xff] }
  0x43   : > { %487 = vst [vmem:[%s2274_s8 + $0x158] sm:$0xff] %v486_v43  ;;  %v576_v24 = vld [vmem:[%s2269_s7 + $0x580] sm:$0xff]  ;;  %v578_v25 = vld [vmem:[%s2269_s7 + $0x590] sm:$0xff] }
  0x44   : > { %489 = vst [vmem:[%s2274_s8 + $0x160] sm:$0xff] %v488_v44  ;;  %v580_v26 = vld [vmem:[%s2269_s7 + $0x5a0] sm:$0xff]  ;;  %v582_v27 = vld [vmem:[%s2269_s7 + $0x5b0] sm:$0xff] }
  0x45   : > { %491 = vst [vmem:[%s2274_s8 + $0x168] sm:$0xff] %v490_v45  ;;  %v584_v28 = vld [vmem:[%s2269_s7 + $0x5c0] sm:$0xff]  ;;  %v586_v29 = vld [vmem:[%s2269_s7 + $0x5d0] sm:$0xff] }
  0x46   : > { %493 = vst [vmem:[%s2274_s8 + $0x170] sm:$0xff] %v492_v46  ;;  %v588_v30 = vld [vmem:[%s2269_s7 + $0x5e0] sm:$0xff]  ;;  %v590_v31 = vld [vmem:[%s2269_s7 + $0x5f0] sm:$0xff] }
  0x47   : > { %495 = vst [vmem:[%s2274_s8 + $0x178] sm:$0xff] %v494_v47 }
  0x48   : > { %497 = vst [vmem:[%s2274_s8 + $0x180] sm:$0xff] %v496_v48 }
  0x49   : > { %499 = vst [vmem:[%s2274_s8 + $0x188] sm:$0xff] %v498_v49 }
  0x4a   : > { %501 = vst [vmem:[%s2274_s8 + $0x190] sm:$0xff] %v500_v50 }
  0x4b   : > { %503 = vst [vmem:[%s2274_s8 + $0x198] sm:$0xff] %v502_v51 }
  0x4c   : > { %505 = vst [vmem:[%s2274_s8 + $0x1a0] sm:$0xff] %v504_v52 }
  0x4d   : > { %507 = vst [vmem:[%s2274_s8 + $0x1a8] sm:$0xff] %v506_v53 }
  0x4e   : > { %509 = vst [vmem:[%s2274_s8 + $0x1b0] sm:$0xff] %v508_v54 }
  0x4f   : > { %511 = vst [vmem:[%s2274_s8 + $0x1b8] sm:$0xff] %v510_v55 }
  0x50   : > { %513 = vst [vmem:[%s2274_s8 + $0x1c0] sm:$0xff] %v512_v56 }
  0x51   : > { %515 = vst [vmem:[%s2274_s8 + $0x1c8] sm:$0xff] %v514_v57 }
  0x52   : > { %517 = vst [vmem:[%s2274_s8 + $0x1d0] sm:$0xff] %v516_v58 }
  0x53   : > { %519 = vst [vmem:[%s2274_s8 + $0x1d8] sm:$0xff] %v518_v59 }
  0x54   : > { %521 = vst [vmem:[%s2274_s8 + $0x1e0] sm:$0xff] %v520_v60 }
  0x55   : > { %523 = vst [vmem:[%s2274_s8 + $0x1e8] sm:$0xff] %v522_v61 }
  0x56   : > { %525 = vst [vmem:[%s2274_s8 + $0x1f0] sm:$0xff] %v524_v62 }
  0x57   : > { %527 = vst [vmem:[%s2274_s8 + $0x1f8] sm:$0xff] %v526_v63 }
  0x58   : > { %529 = vst [vmem:[%s2274_s8 + $0x200] sm:$0xff] %v528_v0 }
  0x59   : > { %531 = vst [vmem:[%s2274_s8 + $0x208] sm:$0xff] %v530_v1 }
  0x5a   : > { %533 = vst [vmem:[%s2274_s8 + $0x210] sm:$0xff] %v532_v2 }
  0x5b   : > { %535 = vst [vmem:[%s2274_s8 + $0x218] sm:$0xff] %v534_v3 }
  0x5c   : > { %537 = vst [vmem:[%s2274_s8 + $0x220] sm:$0xff] %v536_v4 }
  0x5d   : > { %539 = vst [vmem:[%s2274_s8 + $0x228] sm:$0xff] %v538_v5 }
  0x5e   : > { %541 = vst [vmem:[%s2274_s8 + $0x230] sm:$0xff] %v540_v6 }
  0x5f   : > { %543 = vst [vmem:[%s2274_s8 + $0x238] sm:$0xff] %v542_v7 }
  0x60   : > { %545 = vst [vmem:[%s2274_s8 + $0x240] sm:$0xff] %v544_v8 }
  0x61   : > { %547 = vst [vmem:[%s2274_s8 + $0x248] sm:$0xff] %v546_v9 }
  0x62   : > { %549 = vst [vmem:[%s2274_s8 + $0x250] sm:$0xff] %v548_v10 }
  0x63   : > { %551 = vst [vmem:[%s2274_s8 + $0x258] sm:$0xff] %v550_v11 }
  0x64   : > { %553 = vst [vmem:[%s2274_s8 + $0x260] sm:$0xff] %v552_v12 }
  0x65   : > { %555 = vst [vmem:[%s2274_s8 + $0x268] sm:$0xff] %v554_v13 }
  0x66   : > { %557 = vst [vmem:[%s2274_s8 + $0x270] sm:$0xff] %v556_v14 }
  0x67   : > { %559 = vst [vmem:[%s2274_s8 + $0x278] sm:$0xff] %v558_v15 }
  0x68   : > { %561 = vst [vmem:[%s2274_s8 + $0x280] sm:$0xff] %v560_v16 }
  0x69   : > { %563 = vst [vmem:[%s2274_s8 + $0x288] sm:$0xff] %v562_v17 }
  0x6a   : > { %565 = vst [vmem:[%s2274_s8 + $0x290] sm:$0xff] %v564_v18 }
  0x6b   : > { %567 = vst [vmem:[%s2274_s8 + $0x298] sm:$0xff] %v566_v19 }
  0x6c   : > { %569 = vst [vmem:[%s2274_s8 + $0x2a0] sm:$0xff] %v568_v20 }
  0x6d   : > { %571 = vst [vmem:[%s2274_s8 + $0x2a8] sm:$0xff] %v570_v21 }
  0x6e   : > { %573 = vst [vmem:[%s2274_s8 + $0x2b0] sm:$0xff] %v572_v22 }
  0x6f   : > { %575 = vst [vmem:[%s2274_s8 + $0x2b8] sm:$0xff] %v574_v23 }
  0x70   : > { %577 = vst [vmem:[%s2274_s8 + $0x2c0] sm:$0xff] %v576_v24 }
  0x71   : > { %579 = vst [vmem:[%s2274_s8 + $0x2c8] sm:$0xff] %v578_v25 }
  0x72   : > { %581 = vst [vmem:[%s2274_s8 + $0x2d0] sm:$0xff] %v580_v26 }
  0x73   : > { %583 = vst [vmem:[%s2274_s8 + $0x2d8] sm:$0xff] %v582_v27 }
  0x74   : > { %585 = vst [vmem:[%s2274_s8 + $0x2e0] sm:$0xff] %v584_v28 }
  0x75   : > { %587 = vst [vmem:[%s2274_s8 + $0x2e8] sm:$0xff] %v586_v29 }
  0x76   : > { %589 = vst [vmem:[%s2274_s8 + $0x2f0] sm:$0xff] %v588_v30 }
  0x77   : > { %591 = vst [vmem:[%s2274_s8 + $0x2f8] sm:$0xff] %v590_v31 }
  0x78 PF: > { %p1585_p7 = scmp.ge.s32.totalorder %s2186_s18, 1  ;;  %p604_p8 = scmp.lt.s32.totalorder %s2186_s18, 7 }
  0x7a   : > { %p605_p9 = pnand %p1585_p7, %p604_p8 }
  0x7b   : > { %s611_s9 = sand.u32 (!%p605_p9), 1, %s2162_s12   ;;  %s649_s10 = smul.u32 (!%p605_p9), 6, %s2170_s14 }
  0x7c   : > { %608 = sbr.rel (%p605_p9) target bundleno = 405 (0x195), region = 66  ;;  %s1586_s21 = sshll.u32 (!%p605_p9), %s2174_s15, 1 }
  0x7d   : > { %s2074_s11 = smul.u32 (!%p605_p9), 768, %s611_s9  ;;  %p652_p10 = scmp.lt.s32.totalorder (!%p605_p9), %s649_s10, 17 }
  0x7e   : > { %p661_p11 = scmp.lt.s32.totalorder (!%p605_p9), %s1586_s21, 3  ;;  %p1588_p12 = scmp.ne.s32.totalorder (!%p605_p9), %s2170_s14, 0 }
  0x7f   : > { %s2486_s30 = scalar_lea.vmem (!%p605_p9), [#allocation3], %s2074_s11 }
  0x81   : > { %s2761_s10 = smov (!%p652_p10, %s649_s10), 17  ;;  %s2763_s21 = smov (!%p661_p11, %s1586_s21), 3 }
  0x82   : > { %s656_s24 = scalar_lea.vmem %s2744_s0, %s2761_s10  ;;  %s663_s12 = scalar_lea.vmem %s2746_s2, %s2763_s21 }
  0x83   : > { %s672_s15 = scalar_lea.vmem %s2747_s3, %s2763_s21  ;;  %677 = sbr.rel (%p1588_p12) target bundleno = 138 (0x8a), region = 74 }
  0x88   : > { %v2188_v32 = vmov 0.0  }
  0x89   : > { %678 = vst [vmem:[#allocation2] sm:$0xf] %v2188_v32 }
  0x8a PF: > { %v1647_v33 = vld [vmem:[%s2486_s30 + $0x70] sm:$0xf]  ;;  %v1992_v34 = vld [vmem:[%s2486_s30 + $0x74] sm:$0xf0]  ;;  %v1639_v44 = vld [vmem:[%s2486_s30 + $0x60] sm:$0xf] }
  0x8b   : > { %v1711_v35 = vld [vmem:[%s2486_s30 + $0xf0] sm:$0xf]  ;;  %v1648_v36 = vor.u32 %v1992_v34, %v1647_v33  ;;  %v2008_v37 = vld [vmem:[%s2486_s30 + $0xf4] sm:$0xf0]  ;;  %v1990_v46 = vld [vmem:[%s2486_s30 + $0x64] sm:$0xf0] }
  0x8c   : > { %v1775_v38 = vld [vmem:[%s2486_s30 + $0x170] sm:$0xf]  ;;  %v2024_v39 = vld [vmem:[%s2486_s30 + $0x174] sm:$0xf0]  ;;  %v1712_v40 = vor.u32 %v2008_v37, %v1711_v35  ;;  %v1703_v47 = vld [vmem:[%s2486_s30 + $0xe0] sm:$0xf]  ;;  %v1640_v49 = vor.u32 %v1990_v46, %v1639_v44 }
  0x8d   : > { %v1776_v41 = vor.u32 %v2024_v39, %v1775_v38  ;;  %v1839_v42 = vld [vmem:[%s2486_s30 + $0x1f0] sm:$0xf]  ;;  %v2040_v43 = vld [vmem:[%s2486_s30 + $0x1f4] sm:$0xf0]  ;;  %1271 = vmatpush.bf16.msra.mxu0 %v1648_v36  ;;  %v2006_v48 = vld [vmem:[%s2486_s30 + $0xe4] sm:$0xf0] }
  0x8e   : > { %v1840_v45 = vor.u32 %v2040_v43, %v1839_v42  ;;  %1284 = vmatpush.bf16.msra.mxu1 %v1712_v40  ;;  %v1704_v50 = vor.u32 %v2006_v48, %v1703_v47  ;;  %v1767_v51 = vld [vmem:[%s2486_s30 + $0x160] sm:$0xf]  ;;  %v2022_v52 = vld [vmem:[%s2486_s30 + $0x164] sm:$0xf0]  ;;  %v1631_v56 = vld [vmem:[%s2486_s30 + $0x50] sm:$0xf] }
  0x8f   : > { %1297 = vmatpush.bf16.msra.mxu2 %v1776_v41  ;;  %v1831_v53 = vld [vmem:[%s2486_s30 + $0x1e0] sm:$0xf]  ;;  %v1768_v54 = vor.u32 %v2022_v52, %v1767_v51  ;;  %v2038_v55 = vld [vmem:[%s2486_s30 + $0x1e4] sm:$0xf0]  ;;  %v1988_v57 = vld [vmem:[%s2486_s30 + $0x54] sm:$0xf0] }
  0x90   : > { %1310 = vmatpush.bf16.msra.mxu3 %v1840_v45  ;;  %v1832_v58 = vor.u32 %v2038_v55, %v1831_v53  ;;  %v1695_v59 = vld [vmem:[%s2486_s30 + $0xd0] sm:$0xf]  ;;  %v2004_v60 = vld [vmem:[%s2486_s30 + $0xd4] sm:$0xf0]  ;;  %v1632_v62 = vor.u32 %v1988_v57, %v1631_v56  ;;  %v1623_v4 = vld [vmem:[%s2486_s30 + $0x40] sm:$0xf] }
  0x91   : > { %v1759_v61 = vld [vmem:[%s2486_s30 + $0x150] sm:$0xf]  ;;  %1272 = vmatpush.bf16.msra.mxu0 %v1640_v49  ;;  %v2020_v63 = vld [vmem:[%s2486_s30 + $0x154] sm:$0xf0]  ;;  %v1696_v2 = vor.u32 %v2004_v60, %v1695_v59  ;;  %v1986_v5 = vld [vmem:[%s2486_s30 + $0x44] sm:$0xf0] }
  0x92   : > { %v1823_v0 = vld [vmem:[%s2486_s30 + $0x1d0] sm:$0xf]  ;;  %v2036_v1 = vld [vmem:[%s2486_s30 + $0x1d4] sm:$0xf0]  ;;  %1285 = vmatpush.bf16.msra.mxu1 %v1704_v50  ;;  %v1760_v3 = vor.u32 %v2020_v63, %v1759_v61  ;;  %v1687_v6 = vld [vmem:[%s2486_s30 + $0xc0] sm:$0xf]  ;;  %v1624_v13 = vor.u32 %v1986_v5, %v1623_v4 }
  0x93   : > { %1298 = vmatpush.bf16.msra.mxu2 %v1768_v54  ;;  %v1824_v7 = vor.u32 %v2036_v1, %v1823_v0  ;;  %v2002_v8 = vld [vmem:[%s2486_s30 + $0xc4] sm:$0xf0]  ;;  %v1751_v9 = vld [vmem:[%s2486_s30 + $0x140] sm:$0xf]  ;;  %v1615_v16 = vld [vmem:[%s2486_s30 + $0x30] sm:$0xf] }
  0x94   : > { %1311 = vmatpush.bf16.msra.mxu3 %v1832_v58  ;;  %v2018_v10 = vld [vmem:[%s2486_s30 + $0x144] sm:$0xf0]  ;;  %v1815_v11 = vld [vmem:[%s2486_s30 + $0x1c0] sm:$0xf]  ;;  %v1688_v14 = vor.u32 %v2002_v8, %v1687_v6  ;;  %v1984_v17 = vld [vmem:[%s2486_s30 + $0x34] sm:$0xf0] }
  0x95   : > { %v2034_v12 = vld [vmem:[%s2486_s30 + $0x1c4] sm:$0xf0]  ;;  %1273 = vmatpush.bf16.msra.mxu0 %v1632_v62  ;;  %v1752_v15 = vor.u32 %v2018_v10, %v1751_v9  ;;  %v1679_v18 = vld [vmem:[%s2486_s30 + $0xb0] sm:$0xf]  ;;  %v2000_v20 = vld [vmem:[%s2486_s30 + $0xb4] sm:$0xf0]  ;;  %v1616_v25 = vor.u32 %v1984_v17, %v1615_v16 }
  0x96   : > { %1286 = vmatpush.bf16.msra.mxu1 %v1696_v2  ;;  %v1816_v19 = vor.u32 %v2034_v12, %v1815_v11  ;;  %v1743_v21 = vld [vmem:[%s2486_s30 + $0x130] sm:$0xf]  ;;  %v2016_v22 = vld [vmem:[%s2486_s30 + $0x134] sm:$0xf0]  ;;  %v1680_v26 = vor.u32 %v2000_v20, %v1679_v18  ;;  %v1607_v28 = vld [vmem:[%s2486_s30 + $0x20] sm:$0xf] }
  0x97   : > { %1299 = vmatpush.bf16.msra.mxu2 %v1760_v3  ;;  %v1807_v23 = vld [vmem:[%s2486_s30 + $0x1b0] sm:$0xf]  ;;  %v2032_v24 = vld [vmem:[%s2486_s30 + $0x1b4] sm:$0xf0]  ;;  %v1744_v27 = vor.u32 %v2016_v22, %v1743_v21  ;;  %v1982_v29 = vld [vmem:[%s2486_s30 + $0x24] sm:$0xf0] }
  0x98   : > { %1312 = vmatpush.bf16.msra.mxu3 %v1824_v7  ;;  %v1671_v30 = vld [vmem:[%s2486_s30 + $0xa0] sm:$0xf]  ;;  %v1808_v31 = vor.u32 %v2032_v24, %v1807_v23  ;;  %v1998_v32 = vld [vmem:[%s2486_s30 + $0xa4] sm:$0xf0]  ;;  %v1608_v37 = vor.u32 %v1982_v29, %v1607_v28  ;;  %v1599_v40 = vld [vmem:[%s2486_s30 + $0x10] sm:$0xf] }
  0x99   : > { %1274 = vmatpush.bf16.msra.mxu0 %v1624_v13  ;;  %v1735_v33 = vld [vmem:[%s2486_s30 + $0x120] sm:$0xf]  ;;  %v2014_v34 = vld [vmem:[%s2486_s30 + $0x124] sm:$0xf0]  ;;  %v1672_v38 = vor.u32 %v1998_v32, %v1671_v30  ;;  %v1980_v41 = vld [vmem:[%s2486_s30 + $0x14] sm:$0xf0] }
  0x9a   : > { %1287 = vmatpush.bf16.msra.mxu1 %v1688_v14  ;;  %v1799_v35 = vld [vmem:[%s2486_s30 + $0x1a0] sm:$0xf]  ;;  %v2030_v36 = vld [vmem:[%s2486_s30 + $0x1a4] sm:$0xf0]  ;;  %v1736_v39 = vor.u32 %v2014_v34, %v1735_v33  ;;  %v1663_v42 = vld [vmem:[%s2486_s30 + $0x90] sm:$0xf]  ;;  %v1600_v49 = vor.u32 %v1980_v41, %v1599_v40 }
  0x9b   : > { %1300 = vmatpush.bf16.msra.mxu2 %v1752_v15  ;;  %v1800_v43 = vor.u32 %v2030_v36, %v1799_v35  ;;  %v1996_v44 = vld [vmem:[%s2486_s30 + $0x94] sm:$0xf0]  ;;  %v1727_v45 = vld [vmem:[%s2486_s30 + $0x110] sm:$0xf]  ;;  %v1591_v50 = vld [vmem:[%s2486_s30] sm:$0xf] }
  0x9c   : > { %1313 = vmatpush.bf16.msra.mxu3 %v1816_v19  ;;  %v2012_v46 = vld [vmem:[%s2486_s30 + $0x114] sm:$0xf0]  ;;  %v1791_v47 = vld [vmem:[%s2486_s30 + $0x190] sm:$0xf]  ;;  %v1978_v51 = vld [vmem:[%s2486_s30 + $0x4] sm:$0xf0]  ;;  %v1664_v52 = vor.u32 %v1996_v44, %v1663_v42 }
  0x9d   : > { %1275 = vmatpush.bf16.msra.mxu0 %v1616_v25  ;;  %v2028_v48 = vld [vmem:[%s2486_s30 + $0x194] sm:$0xf0]  ;;  %v1728_v53 = vor.u32 %v2012_v46, %v1727_v45  ;;  %v1655_v54 = vld [vmem:[%s2486_s30 + $0x80] sm:$0xf]  ;;  %v1994_v55 = vld [vmem:[%s2486_s30 + $0x84] sm:$0xf0]  ;;  %v1592_v0 = vor.u32 %v1978_v51, %v1591_v50 }
  0x9e   : > { %1288 = vmatpush.bf16.msra.mxu1 %v1680_v26  ;;  %v1719_v56 = vld [vmem:[%s2486_s30 + $0x100] sm:$0xf]  ;;  %v1792_v57 = vor.u32 %v2028_v48, %v1791_v47  ;;  %v2010_v58 = vld [vmem:[%s2486_s30 + $0x104] sm:$0xf0]  ;;  %v1903_v61 = vld [vmem:[%s2486_s30 + $0x270] sm:$0xf]  ;;  %v1656_v4 = vor.u32 %v1994_v55, %v1655_v54 }
  0x9f   : > { %1301 = vmatpush.bf16.msra.mxu2 %v1744_v27  ;;  %v1783_v59 = vld [vmem:[%s2486_s30 + $0x180] sm:$0xf]  ;;  %v2026_v60 = vld [vmem:[%s2486_s30 + $0x184] sm:$0xf0]  ;;  %v2056_v62 = vld [vmem:[%s2486_s30 + $0x274] sm:$0xf0]  ;;  %v1720_v5 = vor.u32 %v2010_v58, %v1719_v56 }
  0xa0   : > { %1314 = vmatpush.bf16.msra.mxu3 %v1808_v31  ;;  %v1967_v63 = vld [vmem:[%s2486_s30 + $0x2f0] sm:$0xf]  ;;  %v2072_v1 = vld [vmem:[%s2486_s30 + $0x2f4] sm:$0xf0]  ;;  %v1991_v2 = vld [vmem:[%s2486_s30 + $0x74] sm:$0xf]  ;;  %v1784_v8 = vor.u32 %v2026_v60, %v1783_v59  ;;  %v1904_v9 = vor.u32 %v2056_v62, %v1903_v61 }
  0xa1   : > { %1276 = vmatpush.bf16.msra.mxu0 %v1608_v37  ;;  %v1649_v3 = vld [vmem:[%s2486_s30 + $0x78] sm:$0xf0]  ;;  %v2007_v6 = vld [vmem:[%s2486_s30 + $0xf4] sm:$0xf]  ;;  %v1968_v10 = vor.u32 %v2072_v1, %v1967_v63  ;;  %v1895_v12 = vld [vmem:[%s2486_s30 + $0x260] sm:$0xf] }
  0xa2   : > { %1289 = vmatpush.bf16.msra.mxu1 %v1672_v38  ;;  %v1713_v7 = vld [vmem:[%s2486_s30 + $0xf8] sm:$0xf0]  ;;  %v1652_v11 = vor.u32 %v1991_v2, %v1649_v3  ;;  %v2054_v13 = vld [vmem:[%s2486_s30 + $0x264] sm:$0xf0]  ;;  %v1959_v14 = vld [vmem:[%s2486_s30 + $0x2e0] sm:$0xf] }
  0xa3   : > { %1302 = vmatpush.bf16.msra.mxu2 %v1736_v39  ;;  %v1716_v15 = vor.u32 %v2007_v6, %v1713_v7  ;;  %v2070_v16 = vld [vmem:[%s2486_s30 + $0x2e4] sm:$0xf0]  ;;  %v1989_v17 = vld [vmem:[%s2486_s30 + $0x64] sm:$0xf]  ;;  %v1641_v18 = vld [vmem:[%s2486_s30 + $0x68] sm:$0xf0]  ;;  %v1896_v21 = vor.u32 %v2054_v13, %v1895_v12 }
  0xa4   : > { %1315 = vmatpush.bf16.msra.mxu3 %v1800_v43  ;;  %v2005_v19 = vld [vmem:[%s2486_s30 + $0xe4] sm:$0xf]  ;;  %v1705_v20 = vld [vmem:[%s2486_s30 + $0xe8] sm:$0xf0]  ;;  %v1887_v22 = vld [vmem:[%s2486_s30 + $0x250] sm:$0xf]  ;;  %v1960_v24 = vor.u32 %v2070_v16, %v1959_v14  ;;  %v1644_v25 = vor.u32 %v1989_v17, %v1641_v18 }
  0xa5   : > { %1277 = vmatpush.bf16.msra.mxu0 %v1600_v49  ;;  %v2052_v23 = vld [vmem:[%s2486_s30 + $0x254] sm:$0xf0]  ;;  %v1951_v26 = vld [vmem:[%s2486_s30 + $0x2d0] sm:$0xf]  ;;  %v1708_v29 = vor.u32 %v2005_v19, %v1705_v20  ;;  %v1987_v30 = vld [vmem:[%s2486_s30 + $0x54] sm:$0xf] }
  0xa6   : > { %1290 = vmatpush.bf16.msra.mxu1 %v1664_v52  ;;  %v2068_v27 = vld [vmem:[%s2486_s30 + $0x2d4] sm:$0xf0]  ;;  %v1633_v31 = vld [vmem:[%s2486_s30 + $0x58] sm:$0xf0]  ;;  %v2003_v32 = vld [vmem:[%s2486_s30 + $0xd4] sm:$0xf]  ;;  %v1888_v34 = vor.u32 %v2052_v23, %v1887_v22 }
  0xa7   : > { %1303 = vmatpush.bf16.msra.mxu2 %v1728_v53  ;;  %v680_v28 = vld [vmem:[%s656_s24] sm:$0x3f]  ;;  %v1697_v33 = vld [vmem:[%s2486_s30 + $0xd8] sm:$0xf0]  ;;  %v1952_v35 = vor.u32 %v2068_v27, %v1951_v26  ;;  %v1636_v36 = vor.u32 %v1987_v30, %v1633_v31  ;;  %v1879_v37 = vld [vmem:[%s2486_s30 + $0x240] sm:$0xf] }
  0xa8   : > { %1316 = vmatpush.bf16.msra.mxu3 %v1792_v57  ;;  %778 = vst [vmem:[#allocation1] ss:$9 sm:$0xff] %v680_v28  ;;  %v2050_v38 = vld [vmem:[%s2486_s30 + $0x244] sm:$0xf0]  ;;  %v1943_v39 = vld [vmem:[%s2486_s30 + $0x2c0] sm:$0xf]  ;;  %v1700_v40 = vor.u32 %v2003_v32, %v1697_v33 }
  0xa9   : > { %1278 = vmatpush.bf16.msra.mxu0 %v1592_v0  ;;  %v2066_v41 = vld [vmem:[%s2486_s30 + $0x2c4] sm:$0xf0]  ;;  %v1985_v42 = vld [vmem:[%s2486_s30 + $0x44] sm:$0xf]  ;;  %v1625_v43 = vld [vmem:[%s2486_s30 + $0x48] sm:$0xf0]  ;;  %v1880_v47 = vor.u32 %v2050_v38, %v1879_v37 }
  0xaa   : > { %1291 = vmatpush.bf16.msra.mxu1 %v1656_v4  ;;  %v2001_v44 = vld [vmem:[%s2486_s30 + $0xc4] sm:$0xf]  ;;  %v1689_v45 = vld [vmem:[%s2486_s30 + $0xc8] sm:$0xf0]  ;;  %v1871_v46 = vld [vmem:[%s2486_s30 + $0x230] sm:$0xf]  ;;  %v1944_v51 = vor.u32 %v2066_v41, %v1943_v39  ;;  %v1628_v52 = vor.u32 %v1985_v42, %v1625_v43 }
  0xab   : > { %1304 = vmatpush.bf16.msra.mxu2 %v1720_v5  ;;  %v2048_v48 = vld [vmem:[%s2486_s30 + $0x234] sm:$0xf0]  ;;  %v1935_v49 = vld [vmem:[%s2486_s30 + $0x2b0] sm:$0xf]  ;;  %v1692_v56 = vor.u32 %v2001_v44, %v1689_v45  ;;  %v1983_v57 = vld [vmem:[%s2486_s30 + $0x34] sm:$0xf] }
  0xac   : > { %1317 = vmatpush.bf16.msra.mxu3 %v1784_v8  ;;  %v2064_v50 = vld [vmem:[%s2486_s30 + $0x2b4] sm:$0xf0]  ;;  %v1617_v58 = vld [vmem:[%s2486_s30 + $0x38] sm:$0xf0]  ;;  %v1999_v60 = vld [vmem:[%s2486_s30 + $0xb4] sm:$0xf]  ;;  %v1872_v62 = vor.u32 %v2048_v48, %v1871_v46 }
  0xad   : > { %1323 = vmatpush.bf16.msrb.mxu0 %v1904_v9  ;;  %v1681_v61 = vld [vmem:[%s2486_s30 + $0xb8] sm:$0xf0]  ;;  %v1936_v63 = vor.u32 %v2064_v50, %v1935_v49  ;;  %v1620_v0 = vor.u32 %v1983_v57, %v1617_v58  ;;  %v1863_v1 = vld [vmem:[%s2486_s30 + $0x220] sm:$0xf]  ;;  %v2046_v2 = vld [vmem:[%s2486_s30 + $0x224] sm:$0xf0] }
  0xae   : > { %1336 = vmatpush.bf16.msrb.mxu1 %v1968_v10  ;;  %v1927_v3 = vld [vmem:[%s2486_s30 + $0x2a0] sm:$0xf]  ;;  %v1684_v4 = vor.u32 %v1999_v60, %v1681_v61  ;;  %v2062_v5 = vld [vmem:[%s2486_s30 + $0x2a4] sm:$0xf0]  ;;  %v1981_v6 = vld [vmem:[%s2486_s30 + $0x24] sm:$0xf]  ;;  %v1864_v10 = vor.u32 %v2046_v2, %v1863_v1 }
  0xaf   : > { %1349 = vmatpush.bf16.msrb.mxu2 %v1652_v11  ;;  %v2594_v53 = vld [vmem:[#allocation1] sm:$0xff]  ;;  %v2596_v54 = vld [vmem:[#allocation1 + $0x12] sm:$0xff]  ;;  %v2598_v55 = vld [vmem:[#allocation1 + $0x9] sm:$0xff]  ;;  %v1928_v11 = vor.u32 %v2062_v5, %v1927_v3  ;;  %vm1430_vm0 = vcmask 1041408   ;;  %p1973_p13 = scmp.ne.s32.totalorder %s2170_s14, 2 }
  0xb0   : > { %1362 = vmatpush.bf16.msrb.mxu3 %v1716_v15  ;;  %1279 = vmatmul.bf16.vlgmr.msra.gmra.mxu0 %v2594_v53  ;;  %v2603_v59 = vld [vmem:[#allocation1 + $0x1b] sm:$0xff]  ;;  %v1997_v8 = vld [vmem:[%s2486_s30 + $0xa4] sm:$0xf]  ;;  %v2044_v14 = vld [vmem:[%s2486_s30 + $0x214] sm:$0xf0] }
  0xb1   : > { %1324 = vmatpush.bf16.msrb.mxu0 %v1896_v21  ;;  %1305 = vmatmul.bf16.vlgmr.msra.gmra.mxu2 %v2596_v54  ;;  %v1609_v7 = vld [vmem:[%s2486_s30 + $0x28] sm:$0xf0]  ;;  %v1855_v13 = vld [vmem:[%s2486_s30 + $0x210] sm:$0xf]  ;;  %v2060_v17 = vld [vmem:[%s2486_s30 + $0x294] sm:$0xf0] }
  0xb2   : > { %1337 = vmatpush.bf16.msrb.mxu1 %v1960_v24  ;;  %1318 = vmatmul.bf16.vlgmr.msra.gmra.mxu3 %v2603_v59  ;;  %v1673_v9 = vld [vmem:[%s2486_s30 + $0xa8] sm:$0xf0]  ;;  %v1612_v12 = vor.u32 %v1981_v6, %v1609_v7  ;;  %v1919_v15 = vld [vmem:[%s2486_s30 + $0x290] sm:$0xf]  ;;  %v1979_v18 = vld [vmem:[%s2486_s30 + $0x14] sm:$0xf]  ;;  %v1856_v22 = vor.u32 %v2044_v14, %v1855_v13 }
  0xb3   : > { %1350 = vmatpush.bf16.msrb.mxu2 %v1644_v25  ;;  %1292 = vmatmul.bf16.vlgmr.msra.gmra.mxu1 %v2598_v55  ;;  %v1676_v16 = vor.u32 %v1997_v8, %v1673_v9  ;;  %v1601_v19 = vld [vmem:[%s2486_s30 + $0x18] sm:$0xf0]  ;;  %v1995_v20 = vld [vmem:[%s2486_s30 + $0x94] sm:$0xf]  ;;  %v1847_v23 = vld [vmem:[%s2486_s30 + $0x200] sm:$0xf]  ;;  %v1920_v25 = vor.u32 %v2060_v17, %v1919_v15 }
  0xb4   : > { %1363 = vmatpush.bf16.msrb.mxu3 %v1708_v29  ;;  %v1665_v21 = vld [vmem:[%s2486_s30 + $0x98] sm:$0xf0]  ;;  %v2042_v24 = vld [vmem:[%s2486_s30 + $0x204] sm:$0xf0]  ;;  %v1604_v26 = vor.u32 %v1979_v18, %v1601_v19  ;;  %v1911_v27 = vld [vmem:[%s2486_s30 + $0x280] sm:$0xf] }
  0xb5   : > { %1325 = vmatpush.bf16.msrb.mxu0 %v1888_v34  ;;  %v2058_v28 = vld [vmem:[%s2486_s30 + $0x284] sm:$0xf0]  ;;  %v1977_v29 = vld [vmem:[%s2486_s30 + $0x4] sm:$0xf]  ;;  %v1668_v30 = vor.u32 %v1995_v20, %v1665_v21  ;;  %v1593_v31 = vld [vmem:[%s2486_s30 + $0x8] sm:$0xf0]  ;;  %v1848_v37 = vor.u32 %v2042_v24, %v1847_v23 }
  0xb6   : > { %1338 = vmatpush.bf16.msrb.mxu1 %v1952_v35  ;;  %v1993_v32 = vld [vmem:[%s2486_s30 + $0x84] sm:$0xf]  ;;  %v1657_v33 = vld [vmem:[%s2486_s30 + $0x88] sm:$0xf0]  ;;  %v2023_v34 = vld [vmem:[%s2486_s30 + $0x174] sm:$0xf]  ;;  %v1912_v41 = vor.u32 %v2058_v28, %v1911_v27  ;;  %v1596_v42 = vor.u32 %v1977_v29, %v1593_v31 }
  0xb7   : > { %1351 = vmatpush.bf16.msrb.mxu2 %v1636_v36  ;;  %v1777_v35 = vld [vmem:[%s2486_s30 + $0x178] sm:$0xf0]  ;;  %v2039_v36 = vld [vmem:[%s2486_s30 + $0x1f4] sm:$0xf]  ;;  %v1660_v45 = vor.u32 %v1993_v32, %v1657_v33  ;;  %v2021_v49 = vld [vmem:[%s2486_s30 + $0x164] sm:$0xf] }
  0xb8   : > { %1364 = vmatpush.bf16.msrb.mxu3 %v1700_v40  ;;  %v1841_v38 = vld [vmem:[%s2486_s30 + $0x1f8] sm:$0xf0]  ;;  %v2055_v39 = vld [vmem:[%s2486_s30 + $0x274] sm:$0xf]  ;;  %v1780_v46 = vor.u32 %v2023_v34, %v1777_v35  ;;  %v1769_v50 = vld [vmem:[%s2486_s30 + $0x168] sm:$0xf0] }
  0xb9   : > { %1326 = vmatpush.bf16.msrb.mxu0 %v1880_v47  ;;  %v1905_v40 = vld [vmem:[%s2486_s30 + $0x278] sm:$0xf0]  ;;  %v2071_v43 = vld [vmem:[%s2486_s30 + $0x2f4] sm:$0xf]  ;;  %v1844_v47 = vor.u32 %v2039_v36, %v1841_v38  ;;  %v2053_v57 = vld [vmem:[%s2486_s30 + $0x264] sm:$0xf] }
  0xba   : > { %1339 = vmatpush.bf16.msrb.mxu1 %v1944_v51  ;;  %v1969_v44 = vld [vmem:[%s2486_s30 + $0x2f8] sm:$0xf0]  ;;  %v1908_v48 = vor.u32 %v2055_v39, %v1905_v40  ;;  %v2037_v51 = vld [vmem:[%s2486_s30 + $0x1e4] sm:$0xf]  ;;  %v1897_v58 = vld [vmem:[%s2486_s30 + $0x268] sm:$0xf0] }
  0xbb   : > { %1352 = vmatpush.bf16.msrb.mxu2 %v1628_v52  ;;  %v1972_v52 = vor.u32 %v2071_v43, %v1969_v44  ;;  %v2069_v60 = vld [vmem:[%s2486_s30 + $0x2e4] sm:$0xf]  ;;  %v1961_v61 = vld [vmem:[%s2486_s30 + $0x2e8] sm:$0xf0]  ;;  %v1900_v2 = vor.u32 %v2053_v57, %v1897_v58  ;;  %v2019_v3 = vld [vmem:[%s2486_s30 + $0x154] sm:$0xf] }
  0xbc   : > { %1365 = vmatpush.bf16.msrb.mxu3 %v1692_v56  ;;  %v1833_v56 = vld [vmem:[%s2486_s30 + $0x1e8] sm:$0xf0]  ;;  %v2035_v5 = vld [vmem:[%s2486_s30 + $0x1d4] sm:$0xf]  ;;  %v1964_v6 = vor.u32 %v2069_v60, %v1961_v61  ;;  %v1825_v7 = vld [vmem:[%s2486_s30 + $0x1d8] sm:$0xf0] }
  0xbd   : > { %1327 = vmatpush.bf16.msrb.mxu0 %v1872_v62  ;;  %v2650_v62 = vld [vmem:[#allocation1 + $0x24] sm:$0xff]  ;;  %v1836_v1 = vor.u32 %v2037_v51, %v1833_v56  ;;  %v2051_v8 = vld [vmem:[%s2486_s30 + $0x254] sm:$0xf]  ;;  %v1828_v13 = vor.u32 %v2035_v5, %v1825_v7  ;;  %v2017_v15 = vld [vmem:[%s2486_s30 + $0x144] sm:$0xf] }
  0xbe   : > { %1340 = vmatpush.bf16.msrb.mxu1 %v1936_v63  ;;  %v1772_v63 = vor.u32 %v2021_v49, %v1769_v50  ;;  %v1889_v9 = vld [vmem:[%s2486_s30 + $0x258] sm:$0xf0]  ;;  %v1817_v18 = vld [vmem:[%s2486_s30 + $0x1c8] sm:$0xf0]  ;;  %v2049_v19 = vld [vmem:[%s2486_s30 + $0x244] sm:$0xf] }
  0xbf   : > { %1353 = vmatpush.bf16.msrb.mxu2 %v1620_v0  ;;  %v2652_v0 = vld [vmem:[#allocation1 + $0x2d] sm:$0xff]  ;;  %v1892_v14 = vor.u32 %v2051_v8, %v1889_v9  ;;  %v1881_v20 = vld [vmem:[%s2486_s30 + $0x248] sm:$0xf0]  ;;  %v2031_v27 = vld [vmem:[%s2486_s30 + $0x1b4] sm:$0xf] }
  0xc0   : > { %1366 = vmatpush.bf16.msrb.mxu3 %v1684_v4  ;;  %v1761_v4 = vld [vmem:[%s2486_s30 + $0x158] sm:$0xf0]  ;;  %v2065_v21 = vld [vmem:[%s2486_s30 + $0x2c4] sm:$0xf]  ;;  %v1884_v24 = vor.u32 %v2049_v19, %v1881_v20  ;;  %v2063_v32 = vld [vmem:[%s2486_s30 + $0x2b4] sm:$0xf] }
  0xc1   : > { %1328 = vmatpush.bf16.msrb.mxu0 %v1864_v10  ;;  %v2067_v10 = vld [vmem:[%s2486_s30 + $0x2d4] sm:$0xf]  ;;  %v1809_v29 = vld [vmem:[%s2486_s30 + $0x1b8] sm:$0xf0]  ;;  %v1737_v38 = vld [vmem:[%s2486_s30 + $0x128] sm:$0xf0] }
  0xc2   : > { %1341 = vmatpush.bf16.msrb.mxu1 %v1928_v11  ;;  %v1953_v11 = vld [vmem:[%s2486_s30 + $0x2d8] sm:$0xf0]  ;;  %v1812_v35 = vor.u32 %v2031_v27, %v1809_v29  ;;  %v2029_v39 = vld [vmem:[%s2486_s30 + $0x1a4] sm:$0xf]  ;;  %v1865_v43 = vld [vmem:[%s2486_s30 + $0x228] sm:$0xf0] }
  0xc3   : > { %1354 = vmatpush.bf16.msrb.mxu2 %v1612_v12  ;;  %v1764_v12 = vor.u32 %v2019_v3, %v1761_v4  ;;  %v1956_v17 = vor.u32 %v2067_v10, %v1953_v11  ;;  %v1873_v31 = vld [vmem:[%s2486_s30 + $0x238] sm:$0xf0]  ;;  %v2061_v44 = vld [vmem:[%s2486_s30 + $0x2a4] sm:$0xf]  ;;  %v2011_v49 = vld [vmem:[%s2486_s30 + $0x114] sm:$0xf] }
  0xc4   : > { %1367 = vmatpush.bf16.msrb.mxu3 %v1676_v16  ;;  %v2033_v16 = vld [vmem:[%s2486_s30 + $0x1c4] sm:$0xf]  ;;  %v1937_v33 = vld [vmem:[%s2486_s30 + $0x2b8] sm:$0xf0]  ;;  %v2027_v51 = vld [vmem:[%s2486_s30 + $0x194] sm:$0xf] }
  0xc5   : > { %1329 = vmatpush.bf16.msrb.mxu0 %v1856_v22  ;;  %v1820_v23 = vor.u32 %v2033_v16, %v1817_v18  ;;  %v1940_v40 = vor.u32 %v2063_v32, %v1937_v33  ;;  %v1729_v50 = vld [vmem:[%s2486_s30 + $0x118] sm:$0xf0]  ;;  %v2043_v57 = vld [vmem:[%s2486_s30 + $0x214] sm:$0xf]  ;;  %v2009_v3 = vld [vmem:[%s2486_s30 + $0x104] sm:$0xf] }
  0xc6   : > { %1342 = vmatpush.bf16.msrb.mxu1 %v1920_v25  ;;  %v2015_v25 = vld [vmem:[%s2486_s30 + $0x134] sm:$0xf]  ;;  %v1793_v56 = vld [vmem:[%s2486_s30 + $0x198] sm:$0xf0]  ;;  %v1721_v4 = vld [vmem:[%s2486_s30 + $0x108] sm:$0xf0] }
  0xc7   : > { %1355 = vmatpush.bf16.msrb.mxu2 %v1604_v26  ;;  %v1745_v26 = vld [vmem:[%s2486_s30 + $0x138] sm:$0xf0]  ;;  %v2059_v60 = vld [vmem:[%s2486_s30 + $0x294] sm:$0xf]  ;;  %v2025_v5 = vld [vmem:[%s2486_s30 + $0x184] sm:$0xf] }
  0xc8   : > { %1368 = vmatpush.bf16.msrb.mxu3 %v1668_v30  ;;  %v2047_v30 = vld [vmem:[%s2486_s30 + $0x234] sm:$0xf]  ;;  %v1748_v34 = vor.u32 %v2015_v25, %v1745_v26  ;;  %v1857_v58 = vld [vmem:[%s2486_s30 + $0x218] sm:$0xf0]  ;;  %v1785_v7 = vld [vmem:[%s2486_s30 + $0x188] sm:$0xf0] }
  0xc9   : > { %1330 = vmatpush.bf16.msrb.mxu0 %v1848_v37  ;;  %v1876_v36 = vor.u32 %v2047_v30, %v1873_v31  ;;  %v2013_v37 = vld [vmem:[%s2486_s30 + $0x124] sm:$0xf]  ;;  %v1921_v61 = vld [vmem:[%s2486_s30 + $0x298] sm:$0xf0]  ;;  %v1849_v9 = vld [vmem:[%s2486_s30 + $0x208] sm:$0xf0] }
  0xca   : > { %1343 = vmatpush.bf16.msrb.mxu1 %v1912_v41  ;;  %v1801_v41 = vld [vmem:[%s2486_s30 + $0x1a8] sm:$0xf0]  ;;  %v2041_v8 = vld [vmem:[%s2486_s30 + $0x204] sm:$0xf] }
  0xcb   : > { %1356 = vmatpush.bf16.msrb.mxu2 %v1596_v42  ;;  %v2045_v42 = vld [vmem:[%s2486_s30 + $0x224] sm:$0xf]  ;;  %v1913_v11 = vld [vmem:[%s2486_s30 + $0x288] sm:$0xf0] }
  0xcc   : > { %1369 = vmatpush.bf16.msrb.mxu3 %v1660_v45  ;;  %1331 = vmatmul.bf16.vlgmr.msrb.gmra.mxu0 %v2650_v62  ;;  %v1929_v45 = vld [vmem:[%s2486_s30 + $0x2a8] sm:$0xf0]  ;;  %v2057_v10 = vld [vmem:[%s2486_s30 + $0x284] sm:$0xf] }
  0xcd   : > { %1375 = vmatpush.bf16.msra.mxu0 %v1780_v46  ;;  %1344 = vmatmul.bf16.vlgmr.msrb.gmra.mxu1 %v2652_v0  ;;  %v1740_v46 = vor.u32 %v2013_v37, %v1737_v38 }
  0xce   : > { %1388 = vmatpush.bf16.msra.mxu1 %v1844_v47  ;;  %1357 = vmatmul.bf16.vlgmr.msrb.gmra.mxu2 %v2594_v53  ;;  %v1753_v53 = vld [vmem:[%s2486_s30 + $0x148] sm:$0xf0]  ;;  %v1804_v47 = vor.u32 %v2029_v39, %v1801_v41 }
  0xcf   : > { %1401 = vmatpush.bf16.msra.mxu2 %v1908_v48  ;;  %1370 = vmatmul.bf16.vlgmr.msrb.gmra.mxu3 %v2598_v55  ;;  %v1945_v55 = vld [vmem:[%s2486_s30 + $0x2c8] sm:$0xf0]  ;;  %v1756_v22 = vor.u32 %v2017_v15, %v1753_v53  ;;  %v1868_v48 = vor.u32 %v2045_v42, %v1865_v43  ;;  %v1916_v15 = vor.u32 %v2057_v10, %v1913_v11  ;;  %v679_v42 = vld [vmem:[#allocation2] sm:$0xf] }
  0xd0   : > { %1414 = vmatpush.bf16.msra.mxu3 %v1972_v52  ;;  %v1948_v28 = vor.u32 %v2065_v21, %v1945_v55  ;;  %v1932_v52 = vor.u32 %v2061_v44, %v1929_v45 }
  0xd1   : > { %1376 = vmatpush.bf16.msra.mxu0 %v1772_v63  ;;  %v1732_v63 = vor.u32 %v2011_v49, %v1729_v50 }
  0xd2   : > { %1389 = vmatpush.bf16.msra.mxu1 %v1836_v1  ;;  %v1796_v1 = vor.u32 %v2027_v51, %v1793_v56 }
  0xd3   : > { %1402 = vmatpush.bf16.msra.mxu2 %v1900_v2  ;;  %v1860_v2 = vor.u32 %v2043_v57, %v1857_v58 }
  0xd4   : > { %1415 = vmatpush.bf16.msra.mxu3 %v1964_v6  ;;  %v1924_v6 = vor.u32 %v2059_v60, %v1921_v61 }
  0xd5   : > { %1377 = vmatpush.bf16.msra.mxu0 %v1764_v12  ;;  %v1724_v12 = vor.u32 %v2009_v3, %v1721_v4 }
  0xd6   : > { %1390 = vmatpush.bf16.msra.mxu1 %v1828_v13  ;;  %v1788_v13 = vor.u32 %v2025_v5, %v1785_v7 }
  0xd7   : > { %1403 = vmatpush.bf16.msra.mxu2 %v1892_v14  ;;  %v1852_v14 = vor.u32 %v2041_v8, %v1849_v9 }
  0xd8   : > { %1416 = vmatpush.bf16.msra.mxu3 %v1956_v17 }
  0xd9   : > { %1378 = vmatpush.bf16.msra.mxu0 %v1756_v22 }
  0xda   : > { %1391 = vmatpush.bf16.msra.mxu1 %v1820_v23 }
  0xdb   : > { %1404 = vmatpush.bf16.msra.mxu2 %v1884_v24 }
  0xdc   : > { %1417 = vmatpush.bf16.msra.mxu3 %v1948_v28 }
  0xdd   : > { %1379 = vmatpush.bf16.msra.mxu0 %v1748_v34 }
  0xde   : > { %1392 = vmatpush.bf16.msra.mxu1 %v1812_v35 }
  0xdf   : > { %1405 = vmatpush.bf16.msra.mxu2 %v1876_v36 }
  0xe0   : > { %1418 = vmatpush.bf16.msra.mxu3 %v1940_v40 }
  0xe1   : > { %1380 = vmatpush.bf16.msra.mxu0 %v1740_v46 }
  0xe2   : > { %1393 = vmatpush.bf16.msra.mxu1 %v1804_v47 }
  0xe3   : > { %1406 = vmatpush.bf16.msra.mxu2 %v1868_v48 }
  0xe4   : > { %1419 = vmatpush.bf16.msra.mxu3 %v1932_v52 }
  0xe5   : > { %1381 = vmatpush.bf16.msra.mxu0 %v1732_v63 }
  0xe6   : > { %1394 = vmatpush.bf16.msra.mxu1 %v1796_v1 }
  0xe7   : > { %1407 = vmatpush.bf16.msra.mxu2 %v1860_v2 }
  0xe8   : > { %1420 = vmatpush.bf16.msra.mxu3 %v1924_v6 }
  0xe9   : > { %1382 = vmatpush.bf16.msra.mxu0 %v1724_v12 }
  0xea   : > { %1395 = vmatpush.bf16.msra.mxu1 %v1788_v13 }
  0xeb   : > { %1408 = vmatpush.bf16.msra.mxu2 %v1852_v14 }
  0xec   : > { %1421 = vmatpush.bf16.msra.mxu3 %v1916_v15  ;;  %1383 = vmatmul.bf16.vlgmr.msra.gmra.mxu0 %v2596_v54 }
  0xed   : > { %1396 = vmatmul.bf16.vlgmr.msra.gmra.mxu1 %v2603_v59 }
  0xee   : > { %1409 = vmatmul.bf16.vlgmr.msra.gmra.mxu2 %v2650_v62 }
  0xef   : > { %1422 = vmatmul.bf16.vlgmr.msra.gmra.mxu3 %v2652_v0 }
 0x12d   : > { %v1280_v53 = vpop.f32.mrf.mxu0 }
 0x130   : > { %v1293_v16 = vpop.f32.mrf.mxu1 }
 0x131   : > { %v1294_v28 = vadd.f32 %v1293_v16, %v1280_v53 }
 0x134   : > { %v1306_v17 = vpop.f32.mrf.mxu2 }
 0x135   : > { %v1282_v18 = vpop.f32.mrf.mxu0  ;;  %v1319_v19 = vpop.f32.mrf.mxu3  ;;  %v1307_v62 = vadd.f32 %v1306_v17, %v1294_v28 }
 0x137   : > { %v1320_v32 = vadd.f32 %v1319_v19, %v1307_v62 }
 0x138   : > { %v1295_v20 = vpop.f32.mrf.mxu1 }
 0x13c   : > { %v1308_v21 = vpop.f32.mrf.mxu2 }
 0x13d   : > { %v1321_v55 = vpop.f32.mrf.mxu3 }
 0x149   : > { %v1332_v22 = vpop.f32.mrf.mxu0 }
 0x14a   : > { %v1345_v23 = vpop.f32.mrf.mxu1  ;;  %v1333_v35 = vadd.f32 %v1332_v22, %v1320_v32 }
 0x14c   : > { %v1346_v41 = vadd.f32 %v1345_v23, %v1333_v35 }
 0x151   : > { %v1358_v24 = vpop.f32.mrf.mxu2  ;;  %v1334_v26 = vpop.f32.mrf.mxu0 }
 0x152   : > { %v1371_v25 = vpop.f32.mrf.mxu3  ;;  %v1347_v54 = vpop.f32.mrf.mxu1 }
 0x153   : > { %v1372_v29 = vadd.f32 %v1371_v25, %v1358_v24 }
 0x159   : > { %v1360_v27 = vpop.f32.mrf.mxu2 }
 0x15a   : > { %v1373_v59 = vpop.f32.mrf.mxu3 }
 0x169   : > { %v1384_v0 = vpop.f32.mrf.mxu0 }
 0x16a   : > { %v1397_v30 = vpop.f32.mrf.mxu1  ;;  %v1385_v31 = vadd.f32 %v1384_v0, %v1372_v29 }
 0x16c   : > { %v1398_v33 = vadd.f32 %v1397_v30, %v1385_v31 }
 0x171   : > { %v1410_v34 = vpop.f32.mrf.mxu2  ;;  %v1386_v38 = vpop.f32.mrf.mxu0 }
 0x172   : > { %v1411_v36 = vadd.f32 %v1410_v34, %v1398_v33  ;;  %v1423_v37 = vpop.f32.mrf.mxu3  ;;  %v1399_v39 = vpop.f32.mrf.mxu1 }
 0x174   : > { %v1424_v40 = vadd.f32 %v1423_v37, %v1411_v36 }
 0x176   : > { %v1429_v43 = vrot.slane %v1424_v40, 6 }
 0x177   : > { %1438 = sbr.rel (%p1973_p13) target bundleno = 405 (0x195), region = 78 }
 0x178   : > { %v1431_v44 = vsel %vm1430_vm0, %v1346_v41, %v1429_v43 }
 0x179   : > { %v1433_v45 = vadd.f32 %v1431_v44, %v679_v42  ;;  %v1412_v46 = vpop.f32.mrf.mxu2 }
 0x17a   : > { %v1425_v47 = vpop.f32.mrf.mxu3 }
 0x17b   : > { %1434 = vst [vmem:[#allocation2] sm:$0xf] %v1433_v45 }
 0x17c   : > { %v1440_v48 = vld [vmem:[%s663_s12] sm:$0x3]  ;;  %vm1458_vm1 = vcmask 1040384  }
 0x17d   : > { %v1442_v49 = vperm.slane %v1440_v48, 0  ;;  %v1443_v50 = vperm.slane %v1440_v48, 1 }
 0x17f   : > { %v1444_v52 = vrot.slane %v1443_v50, 6 }
 0x181   : > { %v1445_v56 = vsel %vm1430_vm0, %v1442_v49, %v1444_v52 }
 0x182   : > { %v1439_v51 = vld [vmem:[#allocation2] sm:$0xf] }
 0x183   : > { %v1447_v57 = vadd.f32 %v1445_v56, %v1439_v51 }
 0x185   : > { %v1448_v58 = vmax.f32 %v1447_v57, 0.0 }
 0x187   : > { %1450 = vst [vmem:[#allocation1] ss:$4 sm:$0xff] %v1448_v58 }
 0x18e   : > { %v1451_v60 = vld.sshfl [vmem:[#allocation1] sm:$0xff pattern:$0x73625140]  ;;  %v1452_v61 = vld.sshfl [vmem:[#allocation1 + $0x8] sm:$0xff pattern:$0x73625140] }
 0x18f   : > { %v1455_v63 = vpack.c.bf16 %v1452_v61, %v1451_v60 }
 0x191   : > { %v1457_v1 = vrot.slane %v1455_v63, 3 }
 0x193   : > { %v1461_v2 = vsel %vm1458_vm1, %v1455_v63, %v1457_v1 }
 0x194   : > { %1463 = vst [vmem:[%s672_s15] sm:$0x3] %v1461_v2 }
 0x195 PF: > { %s13_s18 = sadd.s32 1, %s2186_s18   ;;  %s2748_s12 = smov %s2166_s13 }
 0x196   : > { %p10_p0 = scmp.ge.s32.totalorder %s13_s18, 8   ;;  %s2749_s13 = smov %s2260_s25 }
 0x197   : > { %s2750_s14 = smov %s2178_s16  ;;  %s2751_s15 = smov %s2182_s17 }
 0x198   : > { %s2752_s16 = smov %s2755_s19  ;;  %s2753_s17 = smov %s2759_s20 }
 0x199   :  { %12 = sbr.rel (!%p10_p0) target bundleno = 4 (0x4), region = 119 }

// kernel: spinal_vgg_forward.9
= control target key start
LH: loop header
LB: loop body
LE: loop exit
PB: predicated region body
PF: predicated region fallthrough
CT: control target
= control target key end

     0   :  { %16 = vsyncpa [#allocation3], 0  ;;  %s10786_s0 = inlined_call_operand.vmem [shape: bf16[2,512], index: 0, kind: input, shape index: {}]   ;;  %s10787_s1 = inlined_call_operand.hbm [shape: bf16[256,512], index: 1, kind: input, shape index: {}]   ;;  %s10788_s2 = inlined_call_operand.vmem [shape: f32[1,512], index: 2, kind: input, shape index: {}]   ;;  %s10789_s3 = inlined_call_operand.hbm [shape: bf16[768,512], index: 3, kind: input, shape index: {}]   ;;  %s10790_s4 = inlined_call_operand.vmem [shape: f32[1,512], index: 4, kind: input, shape index: {}]   ;;  %s10791_s5 = inlined_call_operand.hbm [shape: bf16[768,512], index: 5, kind: input, shape index: {}]   ;;  %s10792_s6 = inlined_call_operand.vmem [shape: f32[1,512], index: 6, kind: input, shape index: {}]   ;;  %s10793_s7 = inlined_call_operand.hbm [shape: bf16[768,512], index: 7, kind: input, shape index: {}]   ;;  %s10794_s8 = inlined_call_operand.vmem [shape: f32[1,512], index: 8, kind: input, shape index: {}]   ;;  %s10795_s9 = inlined_call_operand.hbm [shape: bf16[2048,128], index: 9, kind: input, shape index: {}]   ;;  %s10796_s10 = inlined_call_operand.vmem [shape: f32[1,128], index: 10, kind: input, shape index: {}]   ;;  %s10797_s11 = inlined_call_operand.hbm [shape: f32[2,128], index: 11, kind: output, shape index: {}]  }
   0x1   :  { %17 = vsyncpa [#allocation6], 0 }
   0x2   :  { %18 = vsyncpa [#allocation9], 0 }
   0x3   :  { %19 = vsyncpa [#allocation4], 0  ;;  %s41_s19 = sshll.u32 %s10789_s3, 4  ;;  %s10384_s20 = smov [#allocation5]   ;;  %s42_s19 = int_to_ptr.hbm [resolvable:$true] %s41_s19 }
   0x4   :  { %s43_s21 = sshll.u32 %s10384_s20, 4  ;;  %s71_s24 = sshll.u32 %s10793_s7, 4  ;;  %s44_s21 = int_to_ptr.vmem [resolvable:$true] %s43_s21  ;;  %s72_s24 = int_to_ptr.hbm [resolvable:$true] %s71_s24 }
   0x5   :  { %s10385_s25 = smov 256   ;;  %s10386_s26 = smov 16  }
   0x6   :  { %49 = dma.hbm_to_vmem [thread:$0]  %s42_s19, 24576, %s44_s21, [#allocation6], %s10385_s25, %s10385_s25, %s10386_s26  }
   0x7   :  { %s10387_s27 = smov [#allocation8]   ;;  %s26_s12 = sshll.u32 %s10787_s1, 4  ;;  %s27_s12 = int_to_ptr.hbm [resolvable:$true] %s26_s12 }
   0x8   :  { %s73_s28 = sshll.u32 %s10387_s27, 4  ;;  %s56_s14 = sshll.u32 %s10791_s5, 4  ;;  %s74_s28 = int_to_ptr.vmem [resolvable:$true] %s73_s28  ;;  %s57_s14 = int_to_ptr.hbm [resolvable:$true] %s56_s14 }
   0x9   :  { %79 = dma.hbm_to_vmem [thread:$0]  %s72_s24, 24576, %s74_s28, [#allocation9], %s10385_s25, %s10385_s25, %s10386_s26  }
   0xa   :  { %s10388_s15 = smov [#allocation2]   ;;  %s10389_s7 = smov [#allocation7]  }
   0xb   :  { %s28_s16 = sshll.u32 %s10388_s15, 4  ;;  %s58_s17 = sshll.u32 %s10389_s7, 4  ;;  %s29_s16 = int_to_ptr.vmem [resolvable:$true] %s28_s16  ;;  %s59_s17 = int_to_ptr.vmem [resolvable:$true] %s58_s17 }
   0xc   :  { %34 = dma.hbm_to_vmem [thread:$0]  %s27_s12, 8192, %s29_s16, [#allocation3], %s10385_s25, %s10385_s25, %s10386_s26  }
   0xd   :  { %s86_s20 = sshll.u32 %s10795_s9, 4  ;;  %s10390_s1 = smov [#allocation10]   ;;  %s87_s20 = int_to_ptr.hbm [resolvable:$true] %s86_s20 }
   0xe   :  { %64 = dma.hbm_to_vmem [thread:$0]  %s57_s14, 24576, %s59_s17, [#allocation6], %s10385_s25, %s10385_s25, %s10386_s26  }
   0xf   :  { %s88_s21 = sshll.u32 %s10390_s1, 4  ;;  %s10391_s22 = smov 64   ;;  %s89_s21 = int_to_ptr.vmem [resolvable:$true] %s88_s21 }
  0x10   :  { %s10392_s23 = smov 4  }
  0x11   :  { %94 = dma.hbm_to_vmem [thread:$0]  %s87_s20, 16384, %s89_s21, [#allocation9], %s10391_s22, %s10391_s22, %s10392_s23  }
  0x12   :  { %10376 = dma.done.wait [#allocation3], 8192  }
  0x13   :  { %10377 = vsyncadd [#allocation3], 4294959104 }
  0x14   :  { %10378 = dma.done.wait [#allocation6], 49152  }
  0x15   :  { %10379 = vsyncadd [#allocation6], 4294918144 }
  0x16   :  { %10380 = dma.done.wait [#allocation9], 40960  }
  0x17   :  { %10381 = vsyncadd [#allocation9], 4294926336  ;;  %v6495_v0 = vld [vmem:[#allocation2 + $0xe0] sm:$0xf]  ;;  %v9483_v1 = vld [vmem:[#allocation2 + $0xec] sm:$0xf0] }
  0x18   :  { %v6623_v2 = vld [vmem:[#allocation2 + $0x1e0] sm:$0xf]  ;;  %v6496_v3 = vor.u32 %v9483_v1, %v6495_v0  ;;  %v9515_v4 = vld [vmem:[#allocation2 + $0x1ec] sm:$0xf0]  ;;  %v9481_v5 = vld [vmem:[#allocation2 + $0xe4] sm:$0xf] }
  0x19   :  { %v6497_v6 = vld [vmem:[#allocation2 + $0xf0] sm:$0xf0]  ;;  %v6624_v7 = vor.u32 %v9515_v4, %v6623_v2  ;;  %v9513_v9 = vld [vmem:[#allocation2 + $0x1e4] sm:$0xf]  ;;  %v6479_v11 = vld [vmem:[#allocation2 + $0xc0] sm:$0xf] }
  0x1a   :  { %v6500_v8 = vor.u32 %v9481_v5, %v6497_v6  ;;  %v6625_v10 = vld [vmem:[#allocation2 + $0x1f0] sm:$0xf0]  ;;  %510 = vmatpush.bf16.msra.mxu0 %v6496_v3  ;;  %v9479_v13 = vld [vmem:[#allocation2 + $0xcc] sm:$0xf0]  ;;  %v6607_v14 = vld [vmem:[#allocation2 + $0x1c0] sm:$0xf] }
  0x1b   :  { %v6628_v12 = vor.u32 %v9513_v9, %v6625_v10  ;;  %v9511_v15 = vld [vmem:[#allocation2 + $0x1cc] sm:$0xf0]  ;;  %523 = vmatpush.bf16.msra.mxu1 %v6624_v7  ;;  %v6480_v16 = vor.u32 %v9479_v13, %v6479_v11  ;;  %v9477_v18 = vld [vmem:[#allocation2 + $0xc4] sm:$0xf]  ;;  %v6481_v19 = vld [vmem:[#allocation2 + $0xd0] sm:$0xf0] }
  0x1c   :  { %536 = vmatpush.bf16.msra.mxu2 %v6500_v8  ;;  %v6608_v17 = vor.u32 %v9511_v15, %v6607_v14  ;;  %v9509_v20 = vld [vmem:[#allocation2 + $0x1c4] sm:$0xf]  ;;  %v6484_v21 = vor.u32 %v9477_v18, %v6481_v19  ;;  %v6609_v22 = vld [vmem:[#allocation2 + $0x1d0] sm:$0xf0]  ;;  %v6463_v23 = vld [vmem:[#allocation2 + $0xa0] sm:$0xf] }
  0x1d   :  { %549 = vmatpush.bf16.msra.mxu3 %v6628_v12  ;;  %v9475_v24 = vld [vmem:[#allocation2 + $0xac] sm:$0xf0]  ;;  %v6612_v25 = vor.u32 %v9509_v20, %v6609_v22  ;;  %v6591_v26 = vld [vmem:[#allocation2 + $0x1a0] sm:$0xf]  ;;  %v9473_v28 = vld [vmem:[#allocation2 + $0xa4] sm:$0xf] }
  0x1e   :  { %v9507_v27 = vld [vmem:[#allocation2 + $0x1ac] sm:$0xf0]  ;;  %511 = vmatpush.bf16.msra.mxu0 %v6480_v16  ;;  %v6464_v29 = vor.u32 %v9475_v24, %v6463_v23  ;;  %v6465_v30 = vld [vmem:[#allocation2 + $0xb0] sm:$0xf0]  ;;  %v9505_v31 = vld [vmem:[#allocation2 + $0x1a4] sm:$0xf] }
  0x1f   :  { %v6593_v32 = vld [vmem:[#allocation2 + $0x1b0] sm:$0xf0]  ;;  %524 = vmatpush.bf16.msra.mxu1 %v6608_v17  ;;  %v6592_v33 = vor.u32 %v9507_v27, %v6591_v26  ;;  %v6468_v34 = vor.u32 %v9473_v28, %v6465_v30  ;;  %v6447_v35 = vld [vmem:[#allocation2 + $0x80] sm:$0xf]  ;;  %v9471_v36 = vld [vmem:[#allocation2 + $0x8c] sm:$0xf0] }
  0x20   :  { %537 = vmatpush.bf16.msra.mxu2 %v6484_v21  ;;  %v6575_v37 = vld [vmem:[#allocation2 + $0x180] sm:$0xf]  ;;  %v6596_v38 = vor.u32 %v9505_v31, %v6593_v32  ;;  %v9503_v39 = vld [vmem:[#allocation2 + $0x18c] sm:$0xf0]  ;;  %v9469_v40 = vld [vmem:[#allocation2 + $0x84] sm:$0xf]  ;;  %v6448_v44 = vor.u32 %v9471_v36, %v6447_v35 }
  0x21   :  { %550 = vmatpush.bf16.msra.mxu3 %v6612_v25  ;;  %v6449_v41 = vld [vmem:[#allocation2 + $0x90] sm:$0xf0]  ;;  %v9501_v42 = vld [vmem:[#allocation2 + $0x184] sm:$0xf]  ;;  %v6576_v45 = vor.u32 %v9503_v39, %v6575_v37  ;;  %v6431_v47 = vld [vmem:[#allocation2 + $0x60] sm:$0xf] }
  0x22   :  { %v6577_v43 = vld [vmem:[#allocation2 + $0x190] sm:$0xf0]  ;;  %512 = vmatpush.bf16.msra.mxu0 %v6464_v29  ;;  %v6452_v46 = vor.u32 %v9469_v40, %v6449_v41  ;;  %v9467_v48 = vld [vmem:[#allocation2 + $0x6c] sm:$0xf0]  ;;  %v6559_v49 = vld [vmem:[#allocation2 + $0x160] sm:$0xf] }
  0x23   :  { %525 = vmatpush.bf16.msra.mxu1 %v6592_v33  ;;  %v6580_v50 = vor.u32 %v9501_v42, %v6577_v43  ;;  %v9499_v51 = vld [vmem:[#allocation2 + $0x16c] sm:$0xf0]  ;;  %v9465_v52 = vld [vmem:[#allocation2 + $0x64] sm:$0xf]  ;;  %v6433_v53 = vld [vmem:[#allocation2 + $0x70] sm:$0xf0]  ;;  %v6432_v56 = vor.u32 %v9467_v48, %v6431_v47 }
  0x24   :  { %538 = vmatpush.bf16.msra.mxu2 %v6468_v34  ;;  %v9497_v54 = vld [vmem:[#allocation2 + $0x164] sm:$0xf]  ;;  %v6561_v55 = vld [vmem:[#allocation2 + $0x170] sm:$0xf0]  ;;  %v6560_v57 = vor.u32 %v9499_v51, %v6559_v49  ;;  %v6436_v58 = vor.u32 %v9465_v52, %v6433_v53  ;;  %v6415_v59 = vld [vmem:[#allocation2 + $0x40] sm:$0xf] }
  0x25   :  { %551 = vmatpush.bf16.msra.mxu3 %v6596_v38  ;;  %v9463_v60 = vld [vmem:[#allocation2 + $0x4c] sm:$0xf0]  ;;  %v6543_v61 = vld [vmem:[#allocation2 + $0x140] sm:$0xf]  ;;  %v6564_v62 = vor.u32 %v9497_v54, %v6561_v55  ;;  %v9461_v0 = vld [vmem:[#allocation2 + $0x44] sm:$0xf] }
  0x26   :  { %513 = vmatpush.bf16.msra.mxu0 %v6448_v44  ;;  %v9495_v63 = vld [vmem:[#allocation2 + $0x14c] sm:$0xf0]  ;;  %v6417_v1 = vld [vmem:[#allocation2 + $0x50] sm:$0xf0]  ;;  %v9493_v2 = vld [vmem:[#allocation2 + $0x144] sm:$0xf]  ;;  %v6416_v4 = vor.u32 %v9463_v60, %v6415_v59 }
  0x27   :  { %526 = vmatpush.bf16.msra.mxu1 %v6576_v45  ;;  %v6545_v3 = vld [vmem:[#allocation2 + $0x150] sm:$0xf0]  ;;  %v6544_v5 = vor.u32 %v9495_v63, %v6543_v61  ;;  %v6420_v6 = vor.u32 %v9461_v0, %v6417_v1  ;;  %v6399_v7 = vld [vmem:[#allocation2 + $0x20] sm:$0xf]  ;;  %v9459_v8 = vld [vmem:[#allocation2 + $0x2c] sm:$0xf0] }
  0x28   :  { %539 = vmatpush.bf16.msra.mxu2 %v6452_v46  ;;  %v6527_v9 = vld [vmem:[#allocation2 + $0x120] sm:$0xf]  ;;  %v6548_v10 = vor.u32 %v9493_v2, %v6545_v3  ;;  %v9491_v11 = vld [vmem:[#allocation2 + $0x12c] sm:$0xf0]  ;;  %v9457_v12 = vld [vmem:[#allocation2 + $0x24] sm:$0xf]  ;;  %v6400_v17 = vor.u32 %v9459_v8, %v6399_v7 }
  0x29   :  { %552 = vmatpush.bf16.msra.mxu3 %v6580_v50  ;;  %v6401_v13 = vld [vmem:[#allocation2 + $0x30] sm:$0xf0]  ;;  %v9489_v14 = vld [vmem:[#allocation2 + $0x124] sm:$0xf]  ;;  %v6383_v16 = vld [vmem:[#allocation2] sm:$0xf]  ;;  %v6528_v21 = vor.u32 %v9491_v11, %v6527_v9 }
  0x2a   :  { %514 = vmatpush.bf16.msra.mxu0 %v6432_v56  ;;  %v6529_v15 = vld [vmem:[#allocation2 + $0x130] sm:$0xf0]  ;;  %v9455_v18 = vld [vmem:[#allocation2 + $0xc] sm:$0xf0]  ;;  %v6511_v19 = vld [vmem:[#allocation2 + $0x100] sm:$0xf]  ;;  %v6404_v22 = vor.u32 %v9457_v12, %v6401_v13 }
  0x2b   :  { %527 = vmatpush.bf16.msra.mxu1 %v6560_v57  ;;  %v9487_v20 = vld [vmem:[#allocation2 + $0x10c] sm:$0xf0]  ;;  %v9453_v23 = vld [vmem:[#allocation2 + $0x4] sm:$0xf]  ;;  %v6385_v24 = vld [vmem:[#allocation2 + $0x10] sm:$0xf0]  ;;  %v6532_v26 = vor.u32 %v9489_v14, %v6529_v15  ;;  %v6384_v32 = vor.u32 %v9455_v18, %v6383_v16 }
  0x2c   :  { %540 = vmatpush.bf16.msra.mxu2 %v6436_v58  ;;  %v10472_v25 = vld [vmem:[%s10786_s0] sm:$0x3]  ;;  %v9485_v27 = vld [vmem:[#allocation2 + $0x104] sm:$0xf]  ;;  %v6513_v28 = vld [vmem:[#allocation2 + $0x110] sm:$0xf0]  ;;  %v6512_v36 = vor.u32 %v9487_v20, %v6511_v19  ;;  %v6388_v37 = vor.u32 %v9453_v23, %v6385_v24 }
  0x2d   :  { %553 = vmatpush.bf16.msra.mxu3 %v6564_v62  ;;  %185 = vst [vmem:[#allocation1] ss:$9 sm:$0xff] %v10472_v25  ;;  %v6503_v29 = vld [vmem:[#allocation2 + $0xe8] sm:$0xf]  ;;  %v9484_v30 = vld [vmem:[#allocation2 + $0xf4] sm:$0xf0]  ;;  %v6516_v40 = vor.u32 %v9485_v27, %v6513_v28 }
  0x2e   :  { %515 = vmatpush.bf16.msra.mxu0 %v6416_v4  ;;  %v6631_v31 = vld [vmem:[#allocation2 + $0x1e8] sm:$0xf]  ;;  %v9516_v33 = vld [vmem:[#allocation2 + $0x1f4] sm:$0xf0]  ;;  %v9482_v34 = vld [vmem:[#allocation2 + $0xec] sm:$0xf]  ;;  %v6504_v41 = vor.u32 %v9484_v30, %v6503_v29 }
  0x2f   :  { %528 = vmatpush.bf16.msra.mxu1 %v6544_v5  ;;  %v6505_v35 = vld [vmem:[#allocation2 + $0xf8] sm:$0xf0]  ;;  %v9514_v38 = vld [vmem:[#allocation2 + $0x1ec] sm:$0xf]  ;;  %v10478_v42 = vld [vmem:[%s10786_s0 + $0x2] sm:$0x3]  ;;  %v6632_v44 = vor.u32 %v9516_v33, %v6631_v31 }
  0x30   :  { %541 = vmatpush.bf16.msra.mxu2 %v6420_v6  ;;  %v6633_v39 = vld [vmem:[#allocation2 + $0x1f8] sm:$0xf0]  ;;  %v6487_v43 = vld [vmem:[#allocation2 + $0xc8] sm:$0xf]  ;;  %v6508_v45 = vor.u32 %v9482_v34, %v6505_v35  ;;  %v9480_v46 = vld [vmem:[#allocation2 + $0xd4] sm:$0xf0] }
  0x31   :  { %554 = vmatpush.bf16.msra.mxu3 %v6548_v10  ;;  %v6615_v47 = vld [vmem:[#allocation2 + $0x1c8] sm:$0xf]  ;;  %v9512_v48 = vld [vmem:[#allocation2 + $0x1d4] sm:$0xf0]  ;;  %v6636_v49 = vor.u32 %v9514_v38, %v6633_v39  ;;  %v9478_v50 = vld [vmem:[#allocation2 + $0xcc] sm:$0xf]  ;;  %v6488_v56 = vor.u32 %v9480_v46, %v6487_v43 }
  0x32   :  { %516 = vmatpush.bf16.msra.mxu0 %v6400_v17  ;;  %v6489_v51 = vld [vmem:[#allocation2 + $0xd8] sm:$0xf0]  ;;  %v9510_v52 = vld [vmem:[#allocation2 + $0x1cc] sm:$0xf]  ;;  %v6616_v57 = vor.u32 %v9512_v48, %v6615_v47  ;;  %v6471_v59 = vld [vmem:[#allocation2 + $0xa8] sm:$0xf] }
  0x33   :  { %529 = vmatpush.bf16.msra.mxu1 %v6528_v21  ;;  %v6617_v55 = vld [vmem:[#allocation2 + $0x1d8] sm:$0xf0]  ;;  %v6492_v58 = vor.u32 %v9478_v50, %v6489_v51  ;;  %v9476_v60 = vld [vmem:[#allocation2 + $0xb4] sm:$0xf0]  ;;  %v6599_v61 = vld [vmem:[#allocation2 + $0x1a8] sm:$0xf] }
  0x34   :  { %542 = vmatpush.bf16.msra.mxu2 %v6404_v22  ;;  %v10480_v53 = vld [vmem:[#allocation1] sm:$0xff]  ;;  %v10482_v54 = vld [vmem:[#allocation1 + $0x9] sm:$0xff]  ;;  %v6620_v62 = vor.u32 %v9510_v52, %v6617_v55  ;;  %v9474_v0 = vld [vmem:[#allocation2 + $0xac] sm:$0xf]  ;;  %v6472_v4 = vor.u32 %v9476_v60, %v6471_v59  ;;  %s6369_s14 = sshll.u32 %s10797_s11, 4  ;;  %s6370_s14 = int_to_ptr.hbm [resolvable:$true] %s6369_s14 }
  0x35   :  { %555 = vmatpush.bf16.msra.mxu3 %v6532_v26  ;;  %701 = vst [vmem:[#allocation1] ss:$9 sm:$0xff] %v10478_v42  ;;  %v9508_v63 = vld [vmem:[#allocation2 + $0x1b4] sm:$0xf0]  ;;  %v6473_v1 = vld [vmem:[#allocation2 + $0xb8] sm:$0xf0] }
  0x36   :  { %517 = vmatpush.bf16.msra.mxu0 %v6384_v32  ;;  %v9506_v2 = vld [vmem:[#allocation2 + $0x1ac] sm:$0xf]  ;;  %v6601_v3 = vld [vmem:[#allocation2 + $0x1b8] sm:$0xf0]  ;;  %v6600_v5 = vor.u32 %v9508_v63, %v6599_v61  ;;  %v6476_v6 = vor.u32 %v9474_v0, %v6473_v1  ;;  %v6455_v7 = vld [vmem:[#allocation2 + $0x88] sm:$0xf] }
  0x37   :  { %530 = vmatpush.bf16.msra.mxu1 %v6512_v36  ;;  %v9472_v8 = vld [vmem:[#allocation2 + $0x94] sm:$0xf0]  ;;  %v6583_v9 = vld [vmem:[#allocation2 + $0x188] sm:$0xf]  ;;  %v6604_v10 = vor.u32 %v9506_v2, %v6601_v3  ;;  %v9470_v12 = vld [vmem:[#allocation2 + $0x8c] sm:$0xf] }
  0x38   :  { %543 = vmatpush.bf16.msra.mxu2 %v6388_v37  ;;  %v9504_v11 = vld [vmem:[#allocation2 + $0x194] sm:$0xf0]  ;;  %v6457_v13 = vld [vmem:[#allocation2 + $0x98] sm:$0xf0]  ;;  %v9502_v14 = vld [vmem:[#allocation2 + $0x18c] sm:$0xf]  ;;  %v6456_v16 = vor.u32 %v9472_v8, %v6455_v7 }
  0x39   :  { %556 = vmatpush.bf16.msra.mxu3 %v6516_v40  ;;  %518 = vmatmul.bf16.vlgmr.msra.gmra.mxu0 %v10480_v53  ;;  %v6585_v15 = vld [vmem:[#allocation2 + $0x198] sm:$0xf0]  ;;  %v6584_v17 = vor.u32 %v9504_v11, %v6583_v9  ;;  %v6460_v18 = vor.u32 %v9470_v12, %v6457_v13  ;;  %v6439_v19 = vld [vmem:[#allocation2 + $0x68] sm:$0xf]  ;;  %v9468_v20 = vld [vmem:[#allocation2 + $0x74] sm:$0xf0] }
  0x3a   :  { %562 = vmatpush.bf16.msrb.mxu0 %v6504_v41  ;;  %531 = vmatmul.bf16.vlgmr.msra.gmra.mxu1 %v10482_v54  ;;  %v6567_v21 = vld [vmem:[#allocation2 + $0x168] sm:$0xf]  ;;  %v6588_v22 = vor.u32 %v9502_v14, %v6585_v15  ;;  %v9500_v23 = vld [vmem:[#allocation2 + $0x174] sm:$0xf0]  ;;  %v9466_v24 = vld [vmem:[#allocation2 + $0x6c] sm:$0xf]  ;;  %v6440_v29 = vor.u32 %v9468_v20, %v6439_v19 }
  0x3b   :  { %575 = vmatpush.bf16.msrb.mxu1 %v6632_v44  ;;  %544 = vmatmul.bf16.vlgmr.msra.gmra.mxu2 %v10480_v53  ;;  %v6441_v26 = vld [vmem:[#allocation2 + $0x78] sm:$0xf0]  ;;  %v9498_v27 = vld [vmem:[#allocation2 + $0x16c] sm:$0xf]  ;;  %v6568_v30 = vor.u32 %v9500_v23, %v6567_v21  ;;  %v6423_v32 = vld [vmem:[#allocation2 + $0x48] sm:$0xf] }
  0x3c   :  { %588 = vmatpush.bf16.msrb.mxu2 %v6508_v45  ;;  %557 = vmatmul.bf16.vlgmr.msra.gmra.mxu3 %v10482_v54  ;;  %v6569_v28 = vld [vmem:[#allocation2 + $0x178] sm:$0xf0]  ;;  %v6444_v31 = vor.u32 %v9466_v24, %v6441_v26  ;;  %v9464_v33 = vld [vmem:[#allocation2 + $0x54] sm:$0xf0]  ;;  %v6551_v34 = vld [vmem:[#allocation2 + $0x148] sm:$0xf] }
  0x3d   :  { %601 = vmatpush.bf16.msrb.mxu3 %v6636_v49  ;;  %v6572_v35 = vor.u32 %v9498_v27, %v6569_v28  ;;  %v9496_v36 = vld [vmem:[#allocation2 + $0x154] sm:$0xf0]  ;;  %v9462_v37 = vld [vmem:[#allocation2 + $0x4c] sm:$0xf]  ;;  %v6425_v38 = vld [vmem:[#allocation2 + $0x58] sm:$0xf0]  ;;  %v6424_v41 = vor.u32 %v9464_v33, %v6423_v32 }
  0x3e   :  { %563 = vmatpush.bf16.msrb.mxu0 %v6488_v56  ;;  %v9494_v39 = vld [vmem:[#allocation2 + $0x14c] sm:$0xf]  ;;  %v6553_v40 = vld [vmem:[#allocation2 + $0x158] sm:$0xf0]  ;;  %v6552_v43 = vor.u32 %v9496_v36, %v6551_v34  ;;  %v6428_v44 = vor.u32 %v9462_v37, %v6425_v38  ;;  %v6407_v45 = vld [vmem:[#allocation2 + $0x28] sm:$0xf] }
  0x3f   :  { %576 = vmatpush.bf16.msrb.mxu1 %v6616_v57  ;;  %v9460_v46 = vld [vmem:[#allocation2 + $0x34] sm:$0xf0]  ;;  %v6535_v47 = vld [vmem:[#allocation2 + $0x128] sm:$0xf]  ;;  %v6556_v48 = vor.u32 %v9494_v39, %v6553_v40  ;;  %v9458_v50 = vld [vmem:[#allocation2 + $0x2c] sm:$0xf] }
  0x40   :  { %589 = vmatpush.bf16.msrb.mxu2 %v6492_v58  ;;  %v9492_v49 = vld [vmem:[#allocation2 + $0x134] sm:$0xf0]  ;;  %v6409_v51 = vld [vmem:[#allocation2 + $0x38] sm:$0xf0]  ;;  %v9490_v52 = vld [vmem:[#allocation2 + $0x12c] sm:$0xf]  ;;  %v6408_v56 = vor.u32 %v9460_v46, %v6407_v45 }
  0x41   :  { %602 = vmatpush.bf16.msrb.mxu3 %v6620_v62  ;;  %v6537_v55 = vld [vmem:[#allocation2 + $0x138] sm:$0xf0]  ;;  %v6391_v57 = vld [vmem:[#allocation2 + $0x8] sm:$0xf]  ;;  %v9456_v58 = vld [vmem:[#allocation2 + $0x14] sm:$0xf0]  ;;  %v6536_v59 = vor.u32 %v9492_v49, %v6535_v47  ;;  %v6412_v60 = vor.u32 %v9458_v50, %v6409_v51 }
  0x42   :  { %564 = vmatpush.bf16.msrb.mxu0 %v6472_v4  ;;  %v6519_v61 = vld [vmem:[#allocation2 + $0x108] sm:$0xf]  ;;  %v9488_v62 = vld [vmem:[#allocation2 + $0x114] sm:$0xf0]  ;;  %v9454_v63 = vld [vmem:[#allocation2 + $0xc] sm:$0xf]  ;;  %v6540_v0 = vor.u32 %v9490_v52, %v6537_v55 }
  0x43   :  { %577 = vmatpush.bf16.msrb.mxu1 %v6600_v5  ;;  %v6393_v1 = vld [vmem:[#allocation2 + $0x18] sm:$0xf0]  ;;  %v9486_v2 = vld [vmem:[#allocation2 + $0x10c] sm:$0xf]  ;;  %v6751_v4 = vld [vmem:[#allocation5 + $0xe0] sm:$0xf]  ;;  %v6520_v9 = vor.u32 %v9488_v62, %v6519_v61 }
  0x44   :  { %590 = vmatpush.bf16.msrb.mxu2 %v6476_v6  ;;  %v6521_v3 = vld [vmem:[#allocation2 + $0x118] sm:$0xf0]  ;;  %v9547_v5 = vld [vmem:[#allocation5 + $0xec] sm:$0xf0]  ;;  %v6392_v6 = vor.u32 %v9456_v58, %v6391_v57  ;;  %v6879_v7 = vld [vmem:[#allocation5 + $0x1e0] sm:$0xf] }
  0x45   :  { %603 = vmatpush.bf16.msrb.mxu3 %v6604_v10  ;;  %v9579_v8 = vld [vmem:[#allocation5 + $0x1ec] sm:$0xf0]  ;;  %v6396_v10 = vor.u32 %v9454_v63, %v6393_v1  ;;  %v6524_v11 = vor.u32 %v9486_v2, %v6521_v3  ;;  %v6752_v12 = vor.u32 %v9547_v5, %v6751_v4  ;;  %v6735_v13 = vld [vmem:[#allocation5 + $0xc0] sm:$0xf]  ;;  %v9545_v14 = vld [vmem:[#allocation5 + $0xe4] sm:$0xf] }
  0x46   :  { %565 = vmatpush.bf16.msrb.mxu0 %v6456_v16  ;;  %v6753_v15 = vld [vmem:[#allocation5 + $0xf0] sm:$0xf0]  ;;  %v6880_v16 = vor.u32 %v9579_v8, %v6879_v7  ;;  %v6863_v20 = vld [vmem:[#allocation5 + $0x1c0] sm:$0xf]  ;;  %v9575_v21 = vld [vmem:[#allocation5 + $0x1cc] sm:$0xf0] }
  0x47   :  { %578 = vmatpush.bf16.msrb.mxu1 %v6584_v17  ;;  %v9543_v17 = vld [vmem:[#allocation5 + $0xcc] sm:$0xf0]  ;;  %v6881_v19 = vld [vmem:[#allocation5 + $0x1f0] sm:$0xf0]  ;;  %v6719_v24 = vld [vmem:[#allocation5 + $0xa0] sm:$0xf] }
  0x48   :  { %591 = vmatpush.bf16.msrb.mxu2 %v6460_v18  ;;  %v9577_v18 = vld [vmem:[#allocation5 + $0x1e4] sm:$0xf]  ;;  %v6736_v23 = vor.u32 %v9543_v17, %v6735_v13  ;;  %v6737_v27 = vld [vmem:[#allocation5 + $0xd0] sm:$0xf0]  ;;  %v6847_v33 = vld [vmem:[#allocation5 + $0x1a0] sm:$0xf] }
  0x49   :  { %604 = vmatpush.bf16.msrb.mxu3 %v6588_v22  ;;  %v6756_v22 = vor.u32 %v9545_v14, %v6753_v15  ;;  %v9541_v26 = vld [vmem:[#allocation5 + $0xc4] sm:$0xf]  ;;  %v6884_v28 = vor.u32 %v9577_v18, %v6881_v19  ;;  %v6865_v32 = vld [vmem:[#allocation5 + $0x1d0] sm:$0xf0]  ;;  %v9571_v34 = vld [vmem:[#allocation5 + $0x1ac] sm:$0xf0] }
  0x4a   :  { %566 = vmatpush.bf16.msrb.mxu0 %v6440_v29  ;;  %v6864_v29 = vor.u32 %v9575_v21, %v6863_v20  ;;  %v6703_v37 = vld [vmem:[#allocation5 + $0x80] sm:$0xf]  ;;  %v9537_v38 = vld [vmem:[#allocation5 + $0xa4] sm:$0xf]  ;;  %v6721_v39 = vld [vmem:[#allocation5 + $0xb0] sm:$0xf0] }
  0x4b   :  { %579 = vmatpush.bf16.msrb.mxu1 %v6568_v30  ;;  %v9539_v30 = vld [vmem:[#allocation5 + $0xac] sm:$0xf0]  ;;  %v6849_v45 = vld [vmem:[#allocation5 + $0x1b0] sm:$0xf0]  ;;  %v6831_v46 = vld [vmem:[#allocation5 + $0x180] sm:$0xf]  ;;  %v6724_v47 = vor.u32 %v9537_v38, %v6721_v39 }
  0x4c   :  { %592 = vmatpush.bf16.msrb.mxu2 %v6444_v31  ;;  %v9573_v31 = vld [vmem:[#allocation5 + $0x1c4] sm:$0xf]  ;;  %v6720_v36 = vor.u32 %v9539_v30, %v6719_v24  ;;  %v6705_v50 = vld [vmem:[#allocation5 + $0x90] sm:$0xf0]  ;;  %v9531_v55 = vld [vmem:[#allocation5 + $0x6c] sm:$0xf0] }
  0x4d   :  { %605 = vmatpush.bf16.msrb.mxu3 %v6572_v35  ;;  %v6740_v35 = vor.u32 %v9541_v26, %v6737_v27  ;;  %v6868_v40 = vor.u32 %v9573_v31, %v6865_v32  ;;  %v9533_v49 = vld [vmem:[#allocation5 + $0x84] sm:$0xf]  ;;  %v6833_v57 = vld [vmem:[#allocation5 + $0x190] sm:$0xf0]  ;;  %v6815_v58 = vld [vmem:[#allocation5 + $0x160] sm:$0xf] }
  0x4e   :  { %567 = vmatpush.bf16.msrb.mxu0 %v6424_v41  ;;  %v6848_v41 = vor.u32 %v9571_v34, %v6847_v33  ;;  %v6671_v62 = vld [vmem:[#allocation5 + $0x40] sm:$0xf]  ;;  %v9529_v63 = vld [vmem:[#allocation5 + $0x64] sm:$0xf]  ;;  %v9527_v3 = vld [vmem:[#allocation5 + $0x4c] sm:$0xf0] }
  0x4f   :  { %580 = vmatpush.bf16.msrb.mxu1 %v6552_v43  ;;  %v9535_v43 = vld [vmem:[#allocation5 + $0x8c] sm:$0xf0]  ;;  %v9561_v4 = vld [vmem:[#allocation5 + $0x164] sm:$0xf]  ;;  %v6817_v5 = vld [vmem:[#allocation5 + $0x170] sm:$0xf0] }
  0x50   :  { %593 = vmatpush.bf16.msrb.mxu2 %v6428_v44  ;;  %v9569_v44 = vld [vmem:[#allocation5 + $0x1a4] sm:$0xf]  ;;  %v9559_v7 = vld [vmem:[#allocation5 + $0x14c] sm:$0xf0]  ;;  %v6820_v13 = vor.u32 %v9561_v4, %v6817_v5  ;;  %v6801_v17 = vld [vmem:[#allocation5 + $0x150] sm:$0xf0] }
  0x51   :  { %606 = vmatpush.bf16.msrb.mxu3 %v6556_v48  ;;  %v6687_v48 = vld [vmem:[#allocation5 + $0x60] sm:$0xf]  ;;  %v6852_v51 = vor.u32 %v9569_v44, %v6849_v45  ;;  %v9523_v15 = vld [vmem:[#allocation5 + $0x2c] sm:$0xf0]  ;;  %v9521_v24 = vld [vmem:[#allocation5 + $0x24] sm:$0xf] }
  0x52   :  { %568 = vmatpush.bf16.msrb.mxu0 %v6408_v56  ;;  %v9565_v56 = vld [vmem:[#allocation5 + $0x184] sm:$0xf]  ;;  %v6688_v61 = vor.u32 %v9531_v55, %v6687_v48  ;;  %v6783_v18 = vld [vmem:[#allocation5 + $0x120] sm:$0xf]  ;;  %v9555_v19 = vld [vmem:[#allocation5 + $0x12c] sm:$0xf0] }
  0x53   :  { %581 = vmatpush.bf16.msrb.mxu1 %v6536_v59  ;;  %v9563_v59 = vld [vmem:[#allocation5 + $0x16c] sm:$0xf0]  ;;  %v6836_v1 = vor.u32 %v9565_v56, %v6833_v57  ;;  %v6639_v20 = vld [vmem:[#allocation5] sm:$0xf]  ;;  %v6657_v26 = vld [vmem:[#allocation5 + $0x30] sm:$0xf0] }
  0x54   :  { %594 = vmatpush.bf16.msrb.mxu2 %v6412_v60  ;;  %v6708_v60 = vor.u32 %v9533_v49, %v6705_v50  ;;  %v6816_v2 = vor.u32 %v9563_v59, %v6815_v58  ;;  %v9553_v30 = vld [vmem:[#allocation5 + $0x124] sm:$0xf]  ;;  %v6785_v31 = vld [vmem:[#allocation5 + $0x130] sm:$0xf0]  ;;  %v9551_v32 = vld [vmem:[#allocation5 + $0x10c] sm:$0xf0] }
  0x55   :  { %607 = vmatpush.bf16.msrb.mxu3 %v6540_v0  ;;  %v6689_v0 = vld [vmem:[#allocation5 + $0x70] sm:$0xf0]  ;;  %v6759_v33 = vld [vmem:[#allocation5 + $0xe8] sm:$0xf]  ;;  %v9548_v34 = vld [vmem:[#allocation5 + $0xf4] sm:$0xf0] }
  0x56   :  { %569 = vmatpush.bf16.msrb.mxu0 %v6392_v6  ;;  %v6799_v6 = vld [vmem:[#allocation5 + $0x140] sm:$0xf]  ;;  %v6692_v8 = vor.u32 %v9529_v63, %v6689_v0  ;;  %v9517_v38 = vld [vmem:[#allocation5 + $0x4] sm:$0xf]  ;;  %v9546_v44 = vld [vmem:[#allocation5 + $0xec] sm:$0xf] }
  0x57   :  { %582 = vmatpush.bf16.msrb.mxu1 %v6520_v9  ;;  %v6672_v9 = vor.u32 %v9527_v3, %v6671_v62  ;;  %v6800_v14 = vor.u32 %v9559_v7, %v6799_v6  ;;  %v6761_v45 = vld [vmem:[#allocation5 + $0xf8] sm:$0xf0]  ;;  %v6769_v48 = vld [vmem:[#allocation5 + $0x110] sm:$0xf0]  ;;  %v9578_v49 = vld [vmem:[#allocation5 + $0x1ec] sm:$0xf] }
  0x58   :  { %595 = vmatpush.bf16.msrb.mxu2 %v6396_v10  ;;  %v6655_v10 = vld [vmem:[#allocation5 + $0x20] sm:$0xf]  ;;  %v6871_v56 = vld [vmem:[#allocation5 + $0x1c8] sm:$0xf]  ;;  %v9576_v57 = vld [vmem:[#allocation5 + $0x1d4] sm:$0xf0]  ;;  %v6764_v59 = vor.u32 %v9546_v44, %v6761_v45 }
  0x59   :  { %608 = vmatpush.bf16.msrb.mxu3 %v6524_v11  ;;  %570 = vmatmul.bf16.vlgmr.msrb.gmra.mxu0 %v10480_v53  ;;  %v9525_v11 = vld [vmem:[#allocation5 + $0x44] sm:$0xf]  ;;  %v6727_v62 = vld [vmem:[#allocation5 + $0xa8] sm:$0xf]  ;;  %v9542_v63 = vld [vmem:[#allocation5 + $0xcc] sm:$0xf] }
  0x5a   :  { %1026 = vmatpush.bf16.msra.mxu0 %v6752_v12  ;;  %583 = vmatmul.bf16.vlgmr.msrb.gmra.mxu1 %v10482_v54  ;;  %v6673_v12 = vld [vmem:[#allocation5 + $0x50] sm:$0xf0]  ;;  %v10495_v55 = vld [vmem:[#allocation1 + $0x9] sm:$0xff]  ;;  %v6745_v0 = vld [vmem:[#allocation5 + $0xd8] sm:$0xf0] }
  0x5b   :  { %1039 = vmatpush.bf16.msra.mxu1 %v6880_v16  ;;  %596 = vmatmul.bf16.vlgmr.msrb.gmra.mxu2 %v10480_v53  ;;  %v9567_v53 = vld [vmem:[#allocation5 + $0x18c] sm:$0xf0]  ;;  %v9557_v16 = vld [vmem:[#allocation5 + $0x144] sm:$0xf]  ;;  %v6676_v21 = vor.u32 %v9525_v11, %v6673_v12  ;;  %v9540_v3 = vld [vmem:[#allocation5 + $0xb4] sm:$0xf0] }
  0x5c   :  { %609 = vmatmul.bf16.vlgmr.msrb.gmra.mxu3 %v10482_v54  ;;  %1052 = vmatpush.bf16.msra.mxu2 %v6756_v22  ;;  %v6704_v54 = vor.u32 %v9535_v43, %v6703_v37  ;;  %v6832_v52 = vor.u32 %v9567_v53, %v6831_v46  ;;  %v6656_v22 = vor.u32 %v9523_v15, %v6655_v10  ;;  %v6641_v43 = vld [vmem:[#allocation5 + $0x10] sm:$0xf0]  ;;  %v9574_v4 = vld [vmem:[#allocation5 + $0x1cc] sm:$0xf]  ;;  %v6873_v5 = vld [vmem:[#allocation5 + $0x1d8] sm:$0xf0] }
  0x5d   :  { %1065 = vmatpush.bf16.msra.mxu3 %v6884_v28  ;;  %v6804_v27 = vor.u32 %v9557_v16, %v6801_v17  ;;  %v6784_v28 = vor.u32 %v9555_v19, %v6783_v18  ;;  %v6660_v37 = vor.u32 %v9521_v24, %v6657_v26  ;;  %v6788_v46 = vor.u32 %v9553_v30, %v6785_v31  ;;  %v6855_v6 = vld [vmem:[#allocation5 + $0x1a8] sm:$0xf]  ;;  %v9572_v7 = vld [vmem:[#allocation5 + $0x1b4] sm:$0xf0]  ;;  %v9538_v10 = vld [vmem:[#allocation5 + $0xac] sm:$0xf] }
  0x5e   :  { %1027 = vmatpush.bf16.msra.mxu0 %v6736_v23  ;;  %v9519_v23 = vld [vmem:[#allocation5 + $0xc] sm:$0xf0]  ;;  %v6644_v58 = vor.u32 %v9517_v38, %v6641_v43  ;;  %v6729_v11 = vld [vmem:[#allocation5 + $0xb8] sm:$0xf0]  ;;  %v6876_v12 = vor.u32 %v9574_v4, %v6873_v5  ;;  %v9570_v15 = vld [vmem:[#allocation5 + $0x1ac] sm:$0xf] }
  0x5f   :  { %1040 = vmatpush.bf16.msra.mxu1 %v6864_v29  ;;  %v6767_v29 = vld [vmem:[#allocation5 + $0x100] sm:$0xf]  ;;  %v6640_v39 = vor.u32 %v9519_v23, %v6639_v20  ;;  %v6857_v16 = vld [vmem:[#allocation5 + $0x1b8] sm:$0xf0]  ;;  %v6839_v17 = vld [vmem:[#allocation5 + $0x188] sm:$0xf]  ;;  %v6732_v19 = vor.u32 %v9538_v10, %v6729_v11 }
  0x60   :  { %1053 = vmatpush.bf16.msra.mxu2 %v6740_v35  ;;  %v6887_v35 = vld [vmem:[#allocation5 + $0x1e8] sm:$0xf]  ;;  %v6768_v53 = vor.u32 %v9551_v32, %v6767_v29  ;;  %v9568_v18 = vld [vmem:[#allocation5 + $0x194] sm:$0xf0]  ;;  %v6713_v23 = vld [vmem:[#allocation5 + $0x98] sm:$0xf0]  ;;  %v6860_v24 = vor.u32 %v9570_v15, %v6857_v16 }
  0x61   :  { %1066 = vmatpush.bf16.msra.mxu3 %v6868_v40  ;;  %v6743_v40 = vld [vmem:[#allocation5 + $0xc8] sm:$0xf]  ;;  %v6840_v26 = vor.u32 %v9568_v18, %v6839_v17  ;;  %v6841_v29 = vld [vmem:[#allocation5 + $0x198] sm:$0xf0]  ;;  %v9564_v31 = vld [vmem:[#allocation5 + $0x174] sm:$0xf0] }
  0x62   :  { %1028 = vmatpush.bf16.msra.mxu0 %v6720_v36  ;;  %v9580_v36 = vld [vmem:[#allocation5 + $0x1f4] sm:$0xf0]  ;;  %v6823_v30 = vld [vmem:[#allocation5 + $0x168] sm:$0xf]  ;;  %v9554_v4 = vld [vmem:[#allocation5 + $0x12c] sm:$0xf] }
  0x63   :  { %1041 = vmatpush.bf16.msra.mxu1 %v6848_v41  ;;  %v9544_v41 = vld [vmem:[#allocation5 + $0xd4] sm:$0xf0]  ;;  %v6888_v50 = vor.u32 %v9580_v36, %v6887_v35  ;;  %v9530_v35 = vld [vmem:[#allocation5 + $0x6c] sm:$0xf]  ;;  %v6697_v36 = vld [vmem:[#allocation5 + $0x78] sm:$0xf0]  ;;  %v6824_v38 = vor.u32 %v9564_v31, %v6823_v30 }
  0x64   :  { %1054 = vmatpush.bf16.msra.mxu2 %v6724_v47  ;;  %v6760_v47 = vor.u32 %v9548_v34, %v6759_v33  ;;  %v6679_v34 = vld [vmem:[#allocation5 + $0x48] sm:$0xf]  ;;  %v9560_v44 = vld [vmem:[#allocation5 + $0x154] sm:$0xf0]  ;;  %v6700_v45 = vor.u32 %v9530_v35, %v6697_v36  ;;  %v6793_v5 = vld [vmem:[#allocation5 + $0x138] sm:$0xf0] }
  0x65   :  { %1067 = vmatpush.bf16.msra.mxu3 %v6852_v51  ;;  %v6889_v51 = vld [vmem:[#allocation5 + $0x1f8] sm:$0xf0]  ;;  %v6807_v43 = vld [vmem:[#allocation5 + $0x148] sm:$0xf]  ;;  %v7263_v15 = vld [vmem:[#allocation5 + $0x4e0] sm:$0xf]  ;;  %v6796_v16 = vor.u32 %v9554_v4, %v6793_v5 }
  0x66   :  { %1029 = vmatpush.bf16.msra.mxu0 %v6704_v54  ;;  %v9549_v54 = vld [vmem:[#allocation5 + $0x104] sm:$0xf]  ;;  %v9671_v35 = vld [vmem:[#allocation5 + $0x4cc] sm:$0xf0] }
  0x67   :  { %1042 = vmatpush.bf16.msra.mxu1 %v6832_v52  ;;  %v10493_v52 = vld [vmem:[#allocation1] sm:$0xff]  ;;  %v9627_v4 = vld [vmem:[#allocation5 + $0x36c] sm:$0xf0] }
  0x68   :  { %1055 = vmatpush.bf16.msra.mxu2 %v6708_v60  ;;  %2196 = vst [vmem:[#allocation1] ss:$9 sm:$0xff] %v10472_v25  ;;  %v6772_v60 = vor.u32 %v9549_v54, %v6769_v48  ;;  %v6748_v25 = vor.u32 %v9542_v63, %v6745_v0  ;;  %v6681_v54 = vld [vmem:[#allocation5 + $0x58] sm:$0xf0]  ;;  %v9522_v63 = vld [vmem:[#allocation5 + $0x2c] sm:$0xf] }
  0x69   :  { %1068 = vmatpush.bf16.msra.mxu3 %v6836_v1  ;;  %v6892_v1 = vor.u32 %v9578_v49, %v6889_v51  ;;  %v6808_v49 = vor.u32 %v9560_v44, %v6807_v43  ;;  %v9558_v51 = vld [vmem:[#allocation5 + $0x14c] sm:$0xf]  ;;  %v6665_v0 = vld [vmem:[#allocation5 + $0x38] sm:$0xf0]  ;;  %v9635_v43 = vld [vmem:[#allocation5 + $0x3ac] sm:$0xf0] }
  0x6a   :  { %1030 = vmatpush.bf16.msra.mxu0 %v6688_v61  ;;  %v6744_v61 = vor.u32 %v9544_v41, %v6743_v40  ;;  %v9562_v40 = vld [vmem:[#allocation5 + $0x16c] sm:$0xf]  ;;  %v6825_v41 = vld [vmem:[#allocation5 + $0x178] sm:$0xf0]  ;;  %v6668_v10 = vor.u32 %v9522_v63, %v6665_v0 }
  0x6b   :  { %1043 = vmatpush.bf16.msra.mxu1 %v6816_v2  ;;  %v6872_v2 = vor.u32 %v9576_v57, %v6871_v56  ;;  %v6828_v48 = vor.u32 %v9562_v40, %v6825_v41  ;;  %v6809_v56 = vld [vmem:[#allocation5 + $0x158] sm:$0xf0]  ;;  %v6791_v57 = vld [vmem:[#allocation5 + $0x128] sm:$0xf]  ;;  %v9703_v40 = vld [vmem:[#allocation5 + $0x5cc] sm:$0xf0] }
  0x6c   :  { %1056 = vmatpush.bf16.msra.mxu2 %v6692_v8  ;;  %v6728_v8 = vor.u32 %v9540_v3, %v6727_v62  ;;  %v9520_v62 = vld [vmem:[#allocation5 + $0x14] sm:$0xf0]  ;;  %v6775_v3 = vld [vmem:[#allocation5 + $0x108] sm:$0xf]  ;;  %v7103_v41 = vld [vmem:[#allocation5 + $0x3a0] sm:$0xf] }
  0x6d   :  { %1069 = vmatpush.bf16.msra.mxu3 %v6820_v13  ;;  %v6856_v13 = vor.u32 %v9572_v7, %v6855_v6  ;;  %v9552_v6 = vld [vmem:[#allocation5 + $0x114] sm:$0xf0]  ;;  %v7007_v7 = vld [vmem:[#allocation5 + $0x2e0] sm:$0xf] }
  0x6e   :  { %1031 = vmatpush.bf16.msra.mxu0 %v6672_v9  ;;  %v6711_v9 = vld [vmem:[#allocation5 + $0x88] sm:$0xf]  ;;  %v6776_v17 = vor.u32 %v9552_v6, %v6775_v3  ;;  %v7071_v3 = vld [vmem:[#allocation5 + $0x360] sm:$0xf] }
  0x6f   :  { %1044 = vmatpush.bf16.msra.mxu1 %v6800_v14  ;;  %v9536_v14 = vld [vmem:[#allocation5 + $0x94] sm:$0xf0]  ;;  %v6927_v6 = vld [vmem:[#allocation5 + $0x240] sm:$0xf] }
  0x70   :  { %1057 = vmatpush.bf16.msra.mxu2 %v6676_v21  ;;  %v6712_v20 = vor.u32 %v9536_v14, %v6711_v9  ;;  %v6695_v21 = vld [vmem:[#allocation5 + $0x68] sm:$0xf]  ;;  %v9643_v9 = vld [vmem:[#allocation5 + $0x3ec] sm:$0xf0]  ;;  %v6649_v14 = vld [vmem:[#allocation5 + $0x18] sm:$0xf0] }
  0x71   :  { %1070 = vmatpush.bf16.msra.mxu3 %v6804_v27  ;;  %v9532_v27 = vld [vmem:[#allocation5 + $0x74] sm:$0xf0] }
  0x72   :  { %1032 = vmatpush.bf16.msra.mxu0 %v6656_v22  ;;  %v9534_v22 = vld [vmem:[#allocation5 + $0x8c] sm:$0xf]  ;;  %v6696_v33 = vor.u32 %v9532_v27, %v6695_v21  ;;  %v6777_v21 = vld [vmem:[#allocation5 + $0x118] sm:$0xf0]  ;;  %v7119_v27 = vld [vmem:[#allocation5 + $0x3c0] sm:$0xf] }
  0x73   :  { %1045 = vmatpush.bf16.msra.mxu1 %v6784_v28  ;;  %v9566_v28 = vld [vmem:[#allocation5 + $0x18c] sm:$0xf]  ;;  %v6716_v32 = vor.u32 %v9534_v22, %v6713_v23  ;;  %v9607_v23 = vld [vmem:[#allocation5 + $0x2cc] sm:$0xf0] }
  0x74   :  { %1058 = vmatpush.bf16.msra.mxu2 %v6660_v37  ;;  %v6844_v37 = vor.u32 %v9566_v28, %v6841_v29  ;;  %v9639_v28 = vld [vmem:[#allocation5 + $0x3cc] sm:$0xf0] }
  0x75   :  { %1071 = vmatpush.bf16.msra.mxu3 %v6788_v46 }
  0x76   :  { %1033 = vmatpush.bf16.msra.mxu0 %v6640_v39  ;;  %v9528_v39 = vld [vmem:[#allocation5 + $0x54] sm:$0xf0] }
  0x77   :  { %1046 = vmatpush.bf16.msra.mxu1 %v6768_v53  ;;  %v6680_v46 = vor.u32 %v9528_v39, %v6679_v34  ;;  %v6663_v53 = vld [vmem:[#allocation5 + $0x28] sm:$0xf]  ;;  %v7247_v34 = vld [vmem:[#allocation5 + $0x4c0] sm:$0xf] }
  0x78   :  { %1059 = vmatpush.bf16.msra.mxu2 %v6644_v58  ;;  %v9556_v58 = vld [vmem:[#allocation5 + $0x134] sm:$0xf0]  ;;  %v7375_v39 = vld [vmem:[#allocation5 + $0x5c0] sm:$0xf]  ;;  %v7248_v44 = vor.u32 %v9671_v35, %v7247_v34 }
  0x79   :  { %1034 = vmatmul.bf16.vlgmr.msra.gmra.mxu0 %v10493_v52  ;;  %1072 = vmatpush.bf16.msra.mxu3 %v6772_v60 }
  0x7a   :  { %1078 = vmatpush.bf16.msrb.mxu0 %v6760_v47  ;;  %1047 = vmatmul.bf16.vlgmr.msra.gmra.mxu1 %v10495_v55  ;;  %v9526_v47 = vld [vmem:[#allocation5 + $0x4c] sm:$0xf] }
  0x7b   :  { %1091 = vmatpush.bf16.msrb.mxu1 %v6888_v50  ;;  %1060 = vmatmul.bf16.vlgmr.msra.gmra.mxu2 %v10493_v52  ;;  %v9524_v50 = vld [vmem:[#allocation5 + $0x34] sm:$0xf0]  ;;  %v6684_v60 = vor.u32 %v9526_v47, %v6681_v54  ;;  %v9667_v47 = vld [vmem:[#allocation5 + $0x4ac] sm:$0xf0]  ;;  %v7376_v54 = vor.u32 %v9703_v40, %v7375_v39  ;;  %v9609_v40 = vld [vmem:[#allocation5 + $0x2e4] sm:$0xf] }
  0x7c   :  { %1104 = vmatpush.bf16.msrb.mxu2 %v6764_v59  ;;  %1073 = vmatmul.bf16.vlgmr.msra.gmra.mxu3 %v10495_v55  ;;  %v6647_v59 = vld [vmem:[#allocation5 + $0x8] sm:$0xf]  ;;  %v9615_v39 = vld [vmem:[#allocation5 + $0x30c] sm:$0xf0] }
  0x7d   :  { %1117 = vmatpush.bf16.msrb.mxu3 %v6892_v1  ;;  %v6812_v1 = vor.u32 %v9558_v51, %v6809_v56  ;;  %v6648_v11 = vor.u32 %v9520_v62, %v6647_v59  ;;  %v9699_v51 = vld [vmem:[#allocation5 + $0x5ac] sm:$0xf0]  ;;  %v7087_v56 = vld [vmem:[#allocation5 + $0x380] sm:$0xf] }
  0x7e   :  { %1079 = vmatpush.bf16.msrb.mxu0 %v6744_v61  ;;  %v6664_v61 = vor.u32 %v9524_v50, %v6663_v53  ;;  %v7231_v53 = vld [vmem:[#allocation5 + $0x4a0] sm:$0xf]  ;;  %v9663_v62 = vld [vmem:[#allocation5 + $0x48c] sm:$0xf0] }
  0x7f   :  { %1092 = vmatpush.bf16.msrb.mxu1 %v6872_v2  ;;  %v6792_v2 = vor.u32 %v9556_v58, %v6791_v57  ;;  %v7359_v50 = vld [vmem:[#allocation5 + $0x5a0] sm:$0xf]  ;;  %v9631_v57 = vld [vmem:[#allocation5 + $0x38c] sm:$0xf0]  ;;  %v7232_v58 = vor.u32 %v9667_v47, %v7231_v53  ;;  %v9605_v53 = vld [vmem:[#allocation5 + $0x2c4] sm:$0xf] }
  0x80   :  { %1105 = vmatpush.bf16.msrb.mxu2 %v6748_v25  ;;  %v9611_v25 = vld [vmem:[#allocation5 + $0x2ec] sm:$0xf0]  ;;  %v7360_v63 = vor.u32 %v9699_v51, %v7359_v50  ;;  %v7088_v0 = vor.u32 %v9631_v57, %v7087_v56  ;;  %v7151_v47 = vld [vmem:[#allocation5 + $0x400] sm:$0xf]  ;;  %v7265_v56 = vld [vmem:[#allocation5 + $0x4f0] sm:$0xf0] }
  0x81   :  { %1118 = vmatpush.bf16.msrb.mxu3 %v6876_v12  ;;  %v6991_v12 = vld [vmem:[#allocation5 + $0x2c0] sm:$0xf]  ;;  %v7008_v18 = vor.u32 %v9611_v25, %v7007_v7  ;;  %v9659_v25 = vld [vmem:[#allocation5 + $0x46c] sm:$0xf0] }
  0x82   :  { %1080 = vmatpush.bf16.msrb.mxu0 %v6728_v8  ;;  %v7135_v8 = vld [vmem:[#allocation5 + $0x3e0] sm:$0xf] }
  0x83   :  { %1093 = vmatpush.bf16.msrb.mxu1 %v6856_v13  ;;  %v9518_v13 = vld [vmem:[#allocation5 + $0xc] sm:$0xf]  ;;  %v7136_v22 = vor.u32 %v9643_v9, %v7135_v8  ;;  %v7199_v7 = vld [vmem:[#allocation5 + $0x460] sm:$0xf]  ;;  %v7072_v9 = vor.u32 %v9627_v4, %v7071_v3  ;;  %v9601_v4 = vld [vmem:[#allocation5 + $0x2a4] sm:$0xf] }
  0x84   :  { %1106 = vmatpush.bf16.msrb.mxu2 %v6732_v19  ;;  %v9675_v19 = vld [vmem:[#allocation5 + $0x4ec] sm:$0xf0]  ;;  %v6652_v29 = vor.u32 %v9518_v13, %v6649_v14  ;;  %v7055_v13 = vld [vmem:[#allocation5 + $0x340] sm:$0xf] }
  0x85   :  { %1119 = vmatpush.bf16.msrb.mxu3 %v6860_v24  ;;  %v7391_v24 = vld [vmem:[#allocation5 + $0x5e0] sm:$0xf]  ;;  %v7264_v30 = vor.u32 %v9675_v19, %v7263_v15  ;;  %v9623_v14 = vld [vmem:[#allocation5 + $0x34c] sm:$0xf0]  ;;  %v7200_v15 = vor.u32 %v9659_v25, %v7199_v7  ;;  %v6977_v25 = vld [vmem:[#allocation5 + $0x2b0] sm:$0xf0] }
  0x86   :  { %1081 = vmatpush.bf16.msrb.mxu0 %v6712_v20  ;;  %v9550_v20 = vld [vmem:[#allocation5 + $0x10c] sm:$0xf]  ;;  %v9655_v19 = vld [vmem:[#allocation5 + $0x44c] sm:$0xf0]  ;;  %v7279_v57 = vld [vmem:[#allocation5 + $0x500] sm:$0xf] }
  0x87   :  { %1094 = vmatpush.bf16.msrb.mxu1 %v6840_v26  ;;  %v9707_v26 = vld [vmem:[#allocation5 + $0x5ec] sm:$0xf0]  ;;  %v6780_v31 = vor.u32 %v9550_v20, %v6777_v21  ;;  %v7056_v21 = vor.u32 %v9623_v14, %v7055_v13  ;;  %v6980_v13 = vor.u32 %v9601_v4, %v6977_v25  ;;  %v9597_v14 = vld [vmem:[#allocation5 + $0x284] sm:$0xf]  ;;  %v7313_v4 = vld [vmem:[#allocation5 + $0x550] sm:$0xf0] }
  0x88   :  { %1107 = vmatpush.bf16.msrb.mxu2 %v6716_v32  ;;  %v6992_v32 = vor.u32 %v9607_v23, %v6991_v12  ;;  %v7392_v36 = vor.u32 %v9707_v26, %v7391_v24  ;;  %v9691_v12 = vld [vmem:[#allocation5 + $0x56c] sm:$0xf0]  ;;  %v7311_v23 = vld [vmem:[#allocation5 + $0x540] sm:$0xf]  ;;  %v7041_v25 = vld [vmem:[#allocation5 + $0x330] sm:$0xf0] }
  0x89   :  { %1120 = vmatpush.bf16.msrb.mxu3 %v6844_v37  ;;  %v7120_v37 = vor.u32 %v9639_v28, %v7119_v27  ;;  %v9687_v24 = vld [vmem:[#allocation5 + $0x54c] sm:$0xf0]  ;;  %v7039_v26 = vld [vmem:[#allocation5 + $0x320] sm:$0xf] }
  0x8a   :  { %1082 = vmatpush.bf16.msrb.mxu0 %v6696_v33  ;;  %v6975_v33 = vld [vmem:[#allocation5 + $0x2a0] sm:$0xf]  ;;  %v9619_v27 = vld [vmem:[#allocation5 + $0x32c] sm:$0xf0]  ;;  %v7312_v34 = vor.u32 %v9687_v24, %v7311_v23  ;;  %v7089_v23 = vld [vmem:[#allocation5 + $0x390] sm:$0xf0] }
  0x8b   :  { %1095 = vmatpush.bf16.msrb.mxu1 %v6824_v38  ;;  %v9603_v38 = vld [vmem:[#allocation5 + $0x2ac] sm:$0xf0]  ;;  %v6895_v28 = vld [vmem:[#allocation5 + $0x200] sm:$0xf]  ;;  %v7040_v35 = vor.u32 %v9619_v27, %v7039_v26  ;;  %v10509_v24 = vld [vmem:[%s10788_s2] sm:$0xf] }
  0x8c   :  { %1108 = vmatpush.bf16.msrb.mxu2 %v6700_v45  ;;  %v6976_v45 = vor.u32 %v9603_v38, %v6975_v33  ;;  %v9651_v33 = vld [vmem:[#allocation5 + $0x42c] sm:$0xf0] }
  0x8d   :  { %1121 = vmatpush.bf16.msrb.mxu3 %v6828_v48  ;;  %v7104_v48 = vor.u32 %v9635_v43, %v7103_v41  ;;  %v9683_v38 = vld [vmem:[#allocation5 + $0x52c] sm:$0xf0]  ;;  %v7009_v41 = vld [vmem:[#allocation5 + $0x2f0] sm:$0xf0]  ;;  %v9641_v43 = vld [vmem:[#allocation5 + $0x3e4] sm:$0xf] }
  0x8e   :  { %1083 = vmatpush.bf16.msrb.mxu0 %v6680_v46  ;;  %v6959_v46 = vld [vmem:[#allocation5 + $0x280] sm:$0xf]  ;;  %v7012_v51 = vor.u32 %v9609_v40, %v7009_v41 }
  0x8f   :  { %1096 = vmatpush.bf16.msrb.mxu1 %v6808_v49  ;;  %v9599_v49 = vld [vmem:[#allocation5 + $0x28c] sm:$0xf0] }
  0x90   :  { %1109 = vmatpush.bf16.msrb.mxu2 %v6684_v60  ;;  %v6960_v59 = vor.u32 %v9599_v49, %v6959_v46  ;;  %v6943_v60 = vld [vmem:[#allocation5 + $0x260] sm:$0xf] }
  0x91   :  { %1122 = vmatpush.bf16.msrb.mxu3 %v6812_v1  ;;  %v9595_v1 = vld [vmem:[#allocation5 + $0x26c] sm:$0xf0] }
  0x92   :  { %1084 = vmatpush.bf16.msrb.mxu0 %v6664_v61  ;;  %v7215_v61 = vld [vmem:[#allocation5 + $0x480] sm:$0xf] }
  0x93   :  { %1097 = vmatpush.bf16.msrb.mxu1 %v6792_v2  ;;  %v7343_v2 = vld [vmem:[#allocation5 + $0x580] sm:$0xf]  ;;  %v7216_v5 = vor.u32 %v9663_v62, %v7215_v61  ;;  %v9705_v61 = vld [vmem:[#allocation5 + $0x5e4] sm:$0xf]  ;;  %v7393_v62 = vld [vmem:[#allocation5 + $0x5f0] sm:$0xf0] }
  0x94   :  { %1110 = vmatpush.bf16.msrb.mxu2 %v6668_v10  ;;  %v9591_v10 = vld [vmem:[#allocation5 + $0x24c] sm:$0xf0] }
  0x95   :  { %1123 = vmatpush.bf16.msrb.mxu3 %v6796_v16  ;;  %v6928_v16 = vor.u32 %v9591_v10, %v6927_v6  ;;  %v7396_v6 = vor.u32 %v9705_v61, %v7393_v62  ;;  %v9633_v10 = vld [vmem:[#allocation5 + $0x3a4] sm:$0xf]  ;;  %v7185_v62 = vld [vmem:[#allocation5 + $0x450] sm:$0xf0] }
  0x96   :  { %1085 = vmatpush.bf16.msrb.mxu0 %v6648_v11  ;;  %v7327_v11 = vld [vmem:[#allocation5 + $0x560] sm:$0xf]  ;;  %v9653_v61 = vld [vmem:[#allocation5 + $0x444] sm:$0xf] }
  0x97   :  { %1098 = vmatpush.bf16.msrb.mxu1 %v6776_v17  ;;  %v6911_v17 = vld [vmem:[#allocation5 + $0x220] sm:$0xf]  ;;  %v7328_v20 = vor.u32 %v9691_v12, %v7327_v11  ;;  %v7105_v11 = vld [vmem:[#allocation5 + $0x3b0] sm:$0xf0] }
  0x98   :  { %1111 = vmatpush.bf16.msrb.mxu2 %v6652_v29 }
  0x99   :  { %1086 = vmatmul.bf16.vlgmr.msrb.gmra.mxu0 %v10493_v52  ;;  %1124 = vmatpush.bf16.msrb.mxu3 %v6780_v31  ;;  %v9583_v31 = vld [vmem:[#allocation5 + $0x20c] sm:$0xf0] }
  0x9a   :  { %1911 = vmatpush.bf16.msra.mxu0 %v7008_v18  ;;  %1099 = vmatmul.bf16.vlgmr.msrb.gmra.mxu1 %v10495_v55  ;;  %v7183_v18 = vld [vmem:[#allocation5 + $0x440] sm:$0xf]  ;;  %v6896_v46 = vor.u32 %v9583_v31, %v6895_v28  ;;  %v9593_v28 = vld [vmem:[#allocation5 + $0x264] sm:$0xf] }
  0x9b   :  { %1924 = vmatpush.bf16.msra.mxu1 %v7136_v22  ;;  %1112 = vmatmul.bf16.vlgmr.msrb.gmra.mxu2 %v10493_v52  ;;  %v9695_v52 = vld [vmem:[#allocation5 + $0x58c] sm:$0xf0]  ;;  %v7184_v29 = vor.u32 %v9655_v19, %v7183_v18  ;;  %v7108_v18 = vor.u32 %v9633_v10, %v7105_v11  ;;  %v6961_v19 = vld [vmem:[#allocation5 + $0x290] sm:$0xf0]  ;;  %v7188_v11 = vor.u32 %v9653_v61, %v7185_v62  ;;  %v6967_v61 = vld [vmem:[#allocation5 + $0x288] sm:$0xf] }
  0x9c   :  { %1937 = vmatpush.bf16.msra.mxu2 %v7264_v30  ;;  %1125 = vmatmul.bf16.vlgmr.msrb.gmra.mxu3 %v10495_v55  ;;  %v6944_v55 = vor.u32 %v9595_v1, %v6943_v60  ;;  %v7344_v8 = vor.u32 %v9695_v52, %v7343_v2  ;;  %v9587_v22 = vld [vmem:[#allocation5 + $0x22c] sm:$0xf0]  ;;  %v6993_v60 = vld [vmem:[#allocation5 + $0x2d0] sm:$0xf0]  ;;  %v6964_v27 = vor.u32 %v9597_v14, %v6961_v19  ;;  %v9649_v14 = vld [vmem:[#allocation5 + $0x424] sm:$0xf] }
  0x9d   :  { %1950 = vmatpush.bf16.msra.mxu3 %v7392_v36  ;;  %v6912_v30 = vor.u32 %v9587_v22, %v6911_v17  ;;  %v7023_v36 = vld [vmem:[#allocation5 + $0x300] sm:$0xf]  ;;  %v6996_v3 = vor.u32 %v9605_v53, %v6993_v60  ;;  %v9629_v22 = vld [vmem:[#allocation5 + $0x384] sm:$0xf]  ;;  %v616_v60 = vperm.slane %v10509_v24, 1 }
  0x9e   :  { %1912 = vmatpush.bf16.msra.mxu0 %v6992_v32  ;;  %v7167_v32 = vld [vmem:[#allocation5 + $0x420] sm:$0xf]  ;;  %v7024_v50 = vor.u32 %v9615_v39, %v7023_v36  ;;  %v7073_v39 = vld [vmem:[#allocation5 + $0x370] sm:$0xf0]  ;;  %v9600_v62 = vld [vmem:[#allocation5 + $0x294] sm:$0xf0] }
  0x9f   :  { %1925 = vmatpush.bf16.msra.mxu1 %v7120_v37  ;;  %v7295_v37 = vld [vmem:[#allocation5 + $0x520] sm:$0xf] }
  0xa0   :  { %1938 = vmatpush.bf16.msra.mxu2 %v7248_v44  ;;  %v7137_v44 = vld [vmem:[#allocation5 + $0x3f0] sm:$0xf0]  ;;  %v7296_v49 = vor.u32 %v9683_v38, %v7295_v37  ;;  %v615_v37 = vperm.slane %v10509_v24, 0  ;;  %v9625_v38 = vld [vmem:[#allocation5 + $0x364] sm:$0xf] }
  0xa1   :  { %1951 = vmatpush.bf16.msra.mxu3 %v7376_v54  ;;  %v9647_v54 = vld [vmem:[#allocation5 + $0x40c] sm:$0xf0] }
  0xa2   :  { %1913 = vmatpush.bf16.msra.mxu0 %v6976_v45  ;;  %v7168_v45 = vor.u32 %v9651_v33, %v7167_v32  ;;  %v7152_v1 = vor.u32 %v9647_v54, %v7151_v47  ;;  %v7092_v32 = vor.u32 %v9629_v22, %v7089_v23  ;;  %v6945_v33 = vld [vmem:[#allocation5 + $0x270] sm:$0xf0]  ;;  %v7076_v47 = vor.u32 %v9625_v38, %v7073_v39  ;;  %v9589_v54 = vld [vmem:[#allocation5 + $0x244] sm:$0xf] }
  0xa3   :  { %1926 = vmatpush.bf16.msra.mxu1 %v7104_v48  ;;  %v9673_v48 = vld [vmem:[#allocation5 + $0x4e4] sm:$0xf]  ;;  %v7297_v22 = vld [vmem:[#allocation5 + $0x530] sm:$0xf0] }
  0xa4   :  { %1939 = vmatpush.bf16.msra.mxu2 %v7232_v58  ;;  %v9679_v58 = vld [vmem:[#allocation5 + $0x50c] sm:$0xf0]  ;;  %v7268_v2 = vor.u32 %v9673_v48, %v7265_v56  ;;  %v9689_v48 = vld [vmem:[#allocation5 + $0x564] sm:$0xf]  ;;  %v7025_v23 = vld [vmem:[#allocation5 + $0x310] sm:$0xf0] }
  0xa5   :  { %1952 = vmatpush.bf16.msra.mxu3 %v7360_v63  ;;  %v9637_v63 = vld [vmem:[#allocation5 + $0x3c4] sm:$0xf]  ;;  %v7280_v52 = vor.u32 %v9679_v58, %v7279_v57  ;;  %v7057_v57 = vld [vmem:[#allocation5 + $0x350] sm:$0xf0] }
  0xa6   :  { %1914 = vmatpush.bf16.msra.mxu0 %v6960_v59  ;;  %v7140_v59 = vor.u32 %v9641_v43, %v7137_v44  ;;  %v6948_v44 = vor.u32 %v9593_v28, %v6945_v33  ;;  %v9621_v56 = vld [vmem:[#allocation5 + $0x344] sm:$0xf]  ;;  %v7153_v33 = vld [vmem:[#allocation5 + $0x410] sm:$0xf0] }
  0xa7   :  { %1927 = vmatpush.bf16.msra.mxu1 %v7088_v0  ;;  %v7121_v0 = vld [vmem:[#allocation5 + $0x3d0] sm:$0xf0]  ;;  %v9677_v39 = vld [vmem:[#allocation5 + $0x504] sm:$0xf] }
  0xa8   :  { %1940 = vmatpush.bf16.msra.mxu2 %v7216_v5  ;;  %v9669_v5 = vld [vmem:[#allocation5 + $0x4c4] sm:$0xf]  ;;  %v7124_v7 = vor.u32 %v9637_v63, %v7121_v0 }
  0xa9   :  { %1953 = vmatpush.bf16.msra.mxu3 %v7344_v8  ;;  %v9701_v8 = vld [vmem:[#allocation5 + $0x5c4] sm:$0xf] }
  0xaa   :  { %1915 = vmatpush.bf16.msra.mxu0 %v6944_v55  ;;  %v7249_v55 = vld [vmem:[#allocation5 + $0x4d0] sm:$0xf0] }
  0xab   :  { %1928 = vmatpush.bf16.msra.mxu1 %v7072_v9  ;;  %v7377_v9 = vld [vmem:[#allocation5 + $0x5d0] sm:$0xf0]  ;;  %v7252_v12 = vor.u32 %v9669_v5, %v7249_v55 }
  0xac   :  { %1941 = vmatpush.bf16.msra.mxu2 %v7200_v15  ;;  %v9665_v15 = vld [vmem:[#allocation5 + $0x4a4] sm:$0xf]  ;;  %v7380_v17 = vor.u32 %v9701_v8, %v7377_v9 }
  0xad   :  { %1954 = vmatpush.bf16.msra.mxu3 %v7328_v20  ;;  %v9697_v20 = vld [vmem:[#allocation5 + $0x5a4] sm:$0xf] }
  0xae   :  { %1916 = vmatpush.bf16.msra.mxu0 %v6928_v16  ;;  %v7233_v16 = vld [vmem:[#allocation5 + $0x4b0] sm:$0xf0] }
  0xaf   :  { %1929 = vmatpush.bf16.msra.mxu1 %v7056_v21  ;;  %v7361_v21 = vld [vmem:[#allocation5 + $0x5b0] sm:$0xf0]  ;;  %v7236_v26 = vor.u32 %v9665_v15, %v7233_v16 }
  0xb0   :  { %1942 = vmatpush.bf16.msra.mxu2 %v7184_v29  ;;  %v9661_v29 = vld [vmem:[#allocation5 + $0x484] sm:$0xf]  ;;  %v7364_v31 = vor.u32 %v9697_v20, %v7361_v21  ;;  %v7169_v15 = vld [vmem:[#allocation5 + $0x430] sm:$0xf0] }
  0xb1   :  { %1955 = vmatpush.bf16.msra.mxu3 %v7312_v34  ;;  %v9693_v34 = vld [vmem:[#allocation5 + $0x584] sm:$0xf] }
  0xb2   :  { %1917 = vmatpush.bf16.msra.mxu0 %v6912_v30  ;;  %v7217_v30 = vld [vmem:[#allocation5 + $0x490] sm:$0xf0]  ;;  %v9613_v20 = vld [vmem:[#allocation5 + $0x304] sm:$0xf] }
  0xb3   :  { %1930 = vmatpush.bf16.msra.mxu1 %v7040_v35  ;;  %v7345_v35 = vld [vmem:[#allocation5 + $0x590] sm:$0xf0]  ;;  %v7220_v41 = vor.u32 %v9661_v29, %v7217_v30  ;;  %v9681_v21 = vld [vmem:[#allocation5 + $0x524] sm:$0xf]  ;;  %v7143_v29 = vld [vmem:[#allocation5 + $0x3e8] sm:$0xf] }
  0xb4   :  { %1943 = vmatpush.bf16.msra.mxu2 %v7168_v45  ;;  %v9657_v45 = vld [vmem:[#allocation5 + $0x464] sm:$0xf]  ;;  %v7348_v53 = vor.u32 %v9693_v34, %v7345_v35  ;;  %v9644_v30 = vld [vmem:[#allocation5 + $0x3f4] sm:$0xf0]  ;;  %v7300_v34 = vor.u32 %v9681_v21, %v7297_v22 }
  0xb5   :  { %1956 = vmatpush.bf16.msra.mxu3 %v7296_v49  ;;  %v7329_v49 = vld [vmem:[#allocation5 + $0x570] sm:$0xf0] }
  0xb6   :  { %1918 = vmatpush.bf16.msra.mxu0 %v6896_v46  ;;  %v519_v36 = vpop.f32.mrf.mxu0  ;;  %v7201_v46 = vld [vmem:[#allocation5 + $0x470] sm:$0xf0]  ;;  %v7332_v63 = vor.u32 %v9689_v48, %v7329_v49 }
  0xb7   :  { %1931 = vmatpush.bf16.msra.mxu1 %v7024_v50  ;;  %v532_v40 = vpop.f32.mrf.mxu1  ;;  %v7204_v58 = vor.u32 %v9657_v45, %v7201_v46  ;;  %v6999_v45 = vld [vmem:[#allocation5 + $0x2c8] sm:$0xf]  ;;  %v9608_v46 = vld [vmem:[#allocation5 + $0x2d4] sm:$0xf0] }
  0xb8   :  { %1944 = vmatpush.bf16.msra.mxu2 %v7152_v1  ;;  %v533_v43 = vadd.f32 %v532_v40, %v519_v36  ;;  %v7281_v40 = vld [vmem:[#allocation5 + $0x510] sm:$0xf0]  ;;  %v7000_v49 = vor.u32 %v9608_v46, %v6999_v45  ;;  %v7031_v45 = vld [vmem:[#allocation5 + $0x308] sm:$0xf] }
  0xb9   :  { %1957 = vmatpush.bf16.msra.mxu3 %v7280_v52  ;;  %v9585_v52 = vld [vmem:[#allocation5 + $0x224] sm:$0xf]  ;;  %v7284_v48 = vor.u32 %v9677_v39, %v7281_v40  ;;  %v9708_v39 = vld [vmem:[#allocation5 + $0x5f4] sm:$0xf0] }
  0xba   :  { %1963 = vmatpush.bf16.msrb.mxu0 %v7012_v51  ;;  %v623_v50 = vadd.f32 %v615_v37, %v533_v43  ;;  %v6929_v51 = vld [vmem:[#allocation5 + $0x250] sm:$0xf0]  ;;  %v7028_v37 = vor.u32 %v9613_v20, %v7025_v23  ;;  %v7144_v43 = vor.u32 %v9644_v30, %v7143_v29  ;;  %v618_v20 = vperm.slane %v10509_v24, 3  ;;  %v6919_v23 = vld [vmem:[#allocation5 + $0x228] sm:$0xf] }
  0xbb   :  { %1976 = vmatpush.bf16.msrb.mxu1 %v7140_v59  ;;  %v6932_v1 = vor.u32 %v9589_v54, %v6929_v51  ;;  %v6983_v51 = vld [vmem:[#allocation5 + $0x2a8] sm:$0xf]  ;;  %v9588_v30 = vld [vmem:[#allocation5 + $0x234] sm:$0xf0] }
  0xbc   :  { %1989 = vmatpush.bf16.msrb.mxu2 %v7268_v2  ;;  %v627_v59 = vmax.f32 %v623_v50, 0.0  ;;  %v7060_v2 = vor.u32 %v9621_v56, %v7057_v57  ;;  %v9604_v56 = vld [vmem:[#allocation5 + $0x2b4] sm:$0xf0]  ;;  %v7111_v57 = vld [vmem:[#allocation5 + $0x3a8] sm:$0xf]  ;;  %v6920_v40 = vor.u32 %v9588_v30, %v6919_v23 }
  0xbd   :  { %2002 = vmatpush.bf16.msrb.mxu3 %v7396_v6  ;;  %v6913_v6 = vld [vmem:[#allocation5 + $0x230] sm:$0xf0]  ;;  %v9656_v30 = vld [vmem:[#allocation5 + $0x454] sm:$0xf0] }
  0xbe   :  { %1964 = vmatpush.bf16.msrb.mxu0 %v6996_v3  ;;  %v545_v0 = vpop.f32.mrf.mxu2  ;;  %v9685_v3 = vld [vmem:[#allocation5 + $0x544] sm:$0xf]  ;;  %v10513_v5 = vpack.c.bf16 %v627_v59, %v627_v59  ;;  %v521_v8 = vpop.f32.mrf.mxu0  ;;  %v6984_v59 = vor.u32 %v9604_v56, %v6983_v51  ;;  %v9642_v56 = vld [vmem:[#allocation5 + $0x3ec] sm:$0xf] }
  0xbf   :  { %1977 = vmatpush.bf16.msrb.mxu1 %v7124_v7  ;;  %v558_v55 = vpop.f32.mrf.mxu3  ;;  %v9617_v7 = vld [vmem:[#allocation5 + $0x324] sm:$0xf]  ;;  %v534_v10 = vpop.f32.mrf.mxu1  ;;  %v7316_v16 = vor.u32 %v9685_v3, %v7313_v4  ;;  %v6951_v3 = vld [vmem:[#allocation5 + $0x268] sm:$0xf] }
  0xc0   :  { %1990 = vmatpush.bf16.msrb.mxu2 %v7252_v12  ;;  %v559_v9 = vadd.f32 %v558_v55, %v545_v0  ;;  %1919 = vmatmul.bf16.vlgmr.msra.gmra.mxu0 %v10513_v5  ;;  %v9581_v12 = vld [vmem:[#allocation5 + $0x204] sm:$0xf]  ;;  %v7044_v19 = vor.u32 %v9617_v7, %v7041_v25  ;;  %v9632_v0 = vld [vmem:[#allocation5 + $0x394] sm:$0xf0] }
  0xc1   :  { %2003 = vmatpush.bf16.msrb.mxu3 %v7380_v17  ;;  %v9596_v55 = vld [vmem:[#allocation5 + $0x274] sm:$0xf0] }
  0xc2   :  { %1965 = vmatpush.bf16.msrb.mxu0 %v6980_v13  ;;  %v6897_v13 = vld [vmem:[#allocation5 + $0x210] sm:$0xf0]  ;;  %v624_v17 = vadd.f32 %v616_v60, %v559_v9  ;;  %v9628_v7 = vld [vmem:[#allocation5 + $0x374] sm:$0xf0]  ;;  %v6952_v9 = vor.u32 %v9596_v55, %v6951_v3  ;;  %v9606_v55 = vld [vmem:[#allocation5 + $0x2cc] sm:$0xf] }
  0xc3   :  { %1978 = vmatpush.bf16.msrb.mxu1 %v7108_v18  ;;  %v6916_v18 = vor.u32 %v9585_v52, %v6913_v6  ;;  %v6900_v36 = vor.u32 %v9581_v12, %v6897_v13  ;;  %v7079_v6 = vld [vmem:[#allocation5 + $0x368] sm:$0xf]  ;;  %v9592_v13 = vld [vmem:[#allocation5 + $0x254] sm:$0xf0] }
  0xc4   :  { %1991 = vmatpush.bf16.msrb.mxu2 %v7236_v26  ;;  %v7015_v26 = vld [vmem:[#allocation5 + $0x2e8] sm:$0xf]  ;;  %v628_v28 = vmax.f32 %v624_v17, 0.0  ;;  %v7080_v10 = vor.u32 %v9628_v7, %v7079_v6  ;;  %v9676_v17 = vld [vmem:[#allocation5 + $0x4f4] sm:$0xf0] }
  0xc5   :  { %2004 = vmatpush.bf16.msrb.mxu3 %v7364_v31  ;;  %v7172_v31 = vor.u32 %v9649_v14, %v7169_v15  ;;  %v7063_v14 = vld [vmem:[#allocation5 + $0x348] sm:$0xf]  ;;  %v9624_v15 = vld [vmem:[#allocation5 + $0x354] sm:$0xf0]  ;;  %v7001_v6 = vld [vmem:[#allocation5 + $0x2d8] sm:$0xf0] }
  0xc6   :  { %1966 = vmatpush.bf16.msrb.mxu0 %v6964_v27  ;;  %v9612_v27 = vld [vmem:[#allocation5 + $0x2f4] sm:$0xf0]  ;;  %v10516_v35 = vpack.c.bf16 %v628_v28, %v628_v28  ;;  %v547_v38 = vpop.f32.mrf.mxu2  ;;  %v7064_v22 = vor.u32 %v9624_v15, %v7063_v14 }
  0xc7   :  { %1979 = vmatpush.bf16.msrb.mxu1 %v7092_v32  ;;  %v9645_v32 = vld [vmem:[#allocation5 + $0x404] sm:$0xf]  ;;  %v7399_v38 = vld [vmem:[#allocation5 + $0x5e8] sm:$0xf]  ;;  %v9660_v15 = vld [vmem:[#allocation5 + $0x474] sm:$0xf0] }
  0xc8   :  { %1992 = vmatpush.bf16.msrb.mxu2 %v7220_v41  ;;  %v7016_v41 = vor.u32 %v9612_v27, %v7015_v26  ;;  %1932 = vmatmul.bf16.vlgmr.msra.gmra.mxu1 %v10516_v35  ;;  %v7156_v54 = vor.u32 %v9645_v32, %v7153_v33  ;;  %v9620_v32 = vld [vmem:[#allocation5 + $0x334] sm:$0xf0]  ;;  %v7400_v51 = vor.u32 %v9708_v39, %v7399_v38 }
  0xc9   :  { %2005 = vmatpush.bf16.msrb.mxu3 %v7348_v53  ;;  %v7127_v53 = vld [vmem:[#allocation5 + $0x3c8] sm:$0xf]  ;;  %v9692_v38 = vld [vmem:[#allocation5 + $0x574] sm:$0xf0] }
  0xca   :  { %1967 = vmatpush.bf16.msrb.mxu0 %v6948_v44  ;;  %v560_v44 = vpop.f32.mrf.mxu3 }
  0xcb   :  { %1980 = vmatpush.bf16.msrb.mxu1 %v7076_v47  ;;  %v9640_v47 = vld [vmem:[#allocation5 + $0x3d4] sm:$0xf0] }
  0xcc   :  { %1993 = vmatpush.bf16.msrb.mxu2 %v7204_v58  ;;  %v7128_v50 = vor.u32 %v9640_v47, %v7127_v53  ;;  %v9636_v58 = vld [vmem:[#allocation5 + $0x3b4] sm:$0xf0]  ;;  %v7239_v47 = vld [vmem:[#allocation5 + $0x4a8] sm:$0xf] }
  0xcd   :  { %2006 = vmatpush.bf16.msrb.mxu3 %v7332_v63  ;;  %v7112_v60 = vor.u32 %v9636_v58, %v7111_v57  ;;  %v7095_v63 = vld [vmem:[#allocation5 + $0x388] sm:$0xf]  ;;  %v9584_v44 = vld [vmem:[#allocation5 + $0x214] sm:$0xf0]  ;;  %v7145_v57 = vld [vmem:[#allocation5 + $0x3f8] sm:$0xf0] }
  0xce   :  { %1968 = vmatpush.bf16.msrb.mxu0 %v6932_v1  ;;  %v617_v1 = vperm.slane %v10509_v24, 2  ;;  %v7096_v52 = vor.u32 %v9632_v0, %v7095_v63  ;;  %v9616_v53 = vld [vmem:[#allocation5 + $0x314] sm:$0xf0]  ;;  %v7148_v3 = vor.u32 %v9642_v56, %v7145_v57 }
  0xcf   :  { %1981 = vmatpush.bf16.msrb.mxu1 %v7060_v2  ;;  %v6968_v2 = vor.u32 %v9600_v62, %v6967_v61  ;;  %v7032_v61 = vor.u32 %v9616_v53, %v7031_v45  ;;  %v7383_v62 = vld [vmem:[#allocation5 + $0x5c8] sm:$0xf]  ;;  %v9704_v63 = vld [vmem:[#allocation5 + $0x5d4] sm:$0xf0]  ;;  %v6953_v45 = vld [vmem:[#allocation5 + $0x278] sm:$0xf0] }
  0xd0   :  { %1994 = vmatpush.bf16.msrb.mxu2 %v7188_v11  ;;  %v6935_v11 = vld [vmem:[#allocation5 + $0x248] sm:$0xf]  ;;  %v7384_v7 = vor.u32 %v9704_v63, %v7383_v62  ;;  %v9626_v53 = vld [vmem:[#allocation5 + $0x36c] sm:$0xf]  ;;  %v9648_v56 = vld [vmem:[#allocation5 + $0x414] sm:$0xf0] }
  0xd1   :  { %2007 = vmatpush.bf16.msrb.mxu3 %v7316_v16  ;;  %v7271_v16 = vld [vmem:[#allocation5 + $0x4e8] sm:$0xf]  ;;  %v6936_v21 = vor.u32 %v9592_v13, %v6935_v11  ;;  %v7065_v63 = vld [vmem:[#allocation5 + $0x358] sm:$0xf0] }
  0xd2   :  { %1969 = vmatpush.bf16.msrb.mxu0 %v6916_v18  ;;  %v7272_v29 = vor.u32 %v9676_v17, %v7271_v16  ;;  %v7207_v13 = vld [vmem:[#allocation5 + $0x468] sm:$0xf]  ;;  %v9602_v16 = vld [vmem:[#allocation5 + $0x2ac] sm:$0xf]  ;;  %v6985_v17 = vld [vmem:[#allocation5 + $0x2b8] sm:$0xf0] }
  0xd3   :  { %1982 = vmatpush.bf16.msrb.mxu1 %v7044_v19  ;;  %v7208_v23 = vor.u32 %v9660_v15, %v7207_v13  ;;  %v7287_v13 = vld [vmem:[#allocation5 + $0x508] sm:$0xf] }
  0xd4   :  { %1995 = vmatpush.bf16.msrb.mxu2 %v7172_v31  ;;  %v7047_v31 = vld [vmem:[#allocation5 + $0x328] sm:$0xf] }
  0xd5   :  { %2008 = vmatpush.bf16.msrb.mxu3 %v7300_v34 }
  0xd6   :  { %1970 = vmatpush.bf16.msrb.mxu0 %v6900_v36  ;;  %v571_v4 = vpop.f32.mrf.mxu0  ;;  %v7255_v36 = vld [vmem:[#allocation5 + $0x4c8] sm:$0xf] }
  0xd7   :  { %1983 = vmatpush.bf16.msrb.mxu1 %v7028_v37  ;;  %v584_v25 = vpop.f32.mrf.mxu1  ;;  %v9672_v37 = vld [vmem:[#allocation5 + $0x4d4] sm:$0xf0] }
  0xd8   :  { %1996 = vmatpush.bf16.msrb.mxu2 %v7156_v54  ;;  %v585_v8 = vadd.f32 %v584_v25, %v571_v4  ;;  %v7256_v46 = vor.u32 %v9672_v37, %v7255_v36  ;;  %v9668_v54 = vld [vmem:[#allocation5 + $0x4b4] sm:$0xf0]  ;;  %v9638_v25 = vld [vmem:[#allocation5 + $0x3cc] sm:$0xf]  ;;  %v7097_v36 = vld [vmem:[#allocation5 + $0x398] sm:$0xf0] }
  0xd9   :  { %2009 = vmatpush.bf16.msrb.mxu3 %v7284_v48  ;;  %1971 = vmatmul.bf16.vlgmr.msrb.gmra.mxu0 %v10513_v5  ;;  %v9664_v4 = vld [vmem:[#allocation5 + $0x494] sm:$0xf0]  ;;  %v7335_v37 = vld [vmem:[#allocation5 + $0x568] sm:$0xf] }
  0xda   :  { %2015 = vmatpush.bf16.msra.mxu0 %v7016_v41  ;;  %v625_v12 = vadd.f32 %v617_v1, %v585_v8  ;;  %1984 = vmatmul.bf16.vlgmr.msrb.gmra.mxu1 %v10516_v35  ;;  %v7048_v41 = vor.u32 %v9620_v32, %v7047_v31  ;;  %v7240_v1 = vor.u32 %v9668_v54, %v7239_v47  ;;  %v7129_v8 = vld [vmem:[#allocation5 + $0x3d8] sm:$0xf0]  ;;  %v9598_v31 = vld [vmem:[#allocation5 + $0x28c] sm:$0xf]  ;;  %v7319_v54 = vld [vmem:[#allocation5 + $0x548] sm:$0xf] }
  0xdb   :  { %2028 = vmatpush.bf16.msra.mxu1 %v7144_v43  ;;  %v6903_v43 = vld [vmem:[#allocation5 + $0x208] sm:$0xf]  ;;  %v7132_v14 = vor.u32 %v9638_v25, %v7129_v8  ;;  %v6969_v32 = vld [vmem:[#allocation5 + $0x298] sm:$0xf0]  ;;  %v9618_v8 = vld [vmem:[#allocation5 + $0x32c] sm:$0xf] }
  0xdc   :  { %v629_v18 = vmax.f32 %v625_v12, 0.0  ;;  %v7004_v12 = vor.u32 %v9606_v55, %v7001_v6  ;;  %v7081_v47 = vld [vmem:[#allocation5 + $0x378] sm:$0xf0] }
  0xdd   :  { %v7084_v57 = vor.u32 %v9626_v53, %v7081_v47  ;;  %v6921_v25 = vld [vmem:[#allocation5 + $0x238] sm:$0xf0]  ;;  %v7503_v53 = vld [vmem:[#allocation7 + $0xc0] sm:$0xf]  ;;  %v9735_v47 = vld [vmem:[#allocation7 + $0xcc] sm:$0xf0] }
  0xde   :  { %2016 = vmatpush.bf16.msra.mxu0 %v7000_v49  ;;  %v597_v19 = vpop.f32.mrf.mxu2  ;;  %v10523_v26 = vpack.c.bf16 %v629_v18, %v629_v18  ;;  %v573_v28 = vpop.f32.mrf.mxu0  ;;  %v9610_v49 = vld [vmem:[#allocation5 + $0x2ec] sm:$0xf] }
  0xdf   :  { %2029 = vmatpush.bf16.msra.mxu1 %v7128_v50  ;;  %v610_v27 = vpop.f32.mrf.mxu3  ;;  %v586_v34 = vpop.f32.mrf.mxu1  ;;  %v7017_v50 = vld [vmem:[#allocation5 + $0x2f8] sm:$0xf0]  ;;  %v7191_v28 = vld [vmem:[#allocation5 + $0x448] sm:$0xf] }
  0xe0   :  { %v611_v33 = vadd.f32 %v610_v27, %v597_v19  ;;  %1945 = vmatmul.bf16.vlgmr.msra.gmra.mxu2 %v10523_v26  ;;  %v9634_v19 = vld [vmem:[#allocation5 + $0x3ac] sm:$0xf]  ;;  %v6988_v27 = vor.u32 %v9602_v16, %v6985_v17  ;;  %v7192_v39 = vor.u32 %v9656_v30, %v7191_v28  ;;  %v7401_v17 = vld [vmem:[#allocation5 + $0x5f8] sm:$0xf0] }
  0xe1   :  { %2041 = vmatpush.bf16.msra.mxu2 %v7272_v29  ;;  %v9630_v34 = vld [vmem:[#allocation5 + $0x38c] sm:$0xf] }
  0xe2   :  { %2017 = vmatpush.bf16.msra.mxu0 %v6984_v59  ;;  %v626_v24 = vadd.f32 %v618_v20, %v611_v33  ;;  %v7113_v20 = vld [vmem:[#allocation5 + $0x3b8] sm:$0xf0]  ;;  %v9706_v16 = vld [vmem:[#allocation5 + $0x5ec] sm:$0xf] }
  0xe3   :  { %2030 = vmatpush.bf16.msra.mxu1 %v7112_v60  ;;  %v6904_v60 = vor.u32 %v9584_v44, %v6903_v43  ;;  %v7116_v29 = vor.u32 %v9634_v19, %v7113_v20  ;;  %v9652_v43 = vld [vmem:[#allocation5 + $0x434] sm:$0xf0]  ;;  %v9594_v44 = vld [vmem:[#allocation5 + $0x26c] sm:$0xf]  ;;  %v7404_v30 = vor.u32 %v9706_v16, %v7401_v17 }
  0xe4   :  { %v630_v48 = vmax.f32 %v626_v24, 0.0  ;;  %v6972_v24 = vor.u32 %v9598_v31, %v6969_v32  ;;  %v9582_v20 = vld [vmem:[#allocation5 + $0x20c] sm:$0xf]  ;;  %v7519_v31 = vld [vmem:[#allocation7 + $0xe0] sm:$0xf] }
  0xe5   :  { %2042 = vmatpush.bf16.msra.mxu2 %v7256_v46  ;;  %v7336_v46 = vor.u32 %v9692_v38, %v7335_v37  ;;  %v9666_v28 = vld [vmem:[#allocation5 + $0x4ac] sm:$0xf]  ;;  %v9739_v32 = vld [vmem:[#allocation7 + $0xec] sm:$0xf0]  ;;  %v7385_v37 = vld [vmem:[#allocation5 + $0x5d8] sm:$0xf0] }
  0xe6   :  { %2018 = vmatpush.bf16.msra.mxu0 %v6968_v2  ;;  %v10526_v58 = vpack.c.bf16 %v630_v48, %v630_v48  ;;  %v599_v59 = vpop.f32.mrf.mxu2  ;;  %v7020_v2 = vor.u32 %v9610_v49, %v7017_v50  ;;  %v9688_v48 = vld [vmem:[#allocation5 + $0x554] sm:$0xf0]  ;;  %v6956_v50 = vor.u32 %v9594_v44, %v6953_v45  ;;  %v9771_v44 = vld [vmem:[#allocation7 + $0x1ec] sm:$0xf0] }
  0xe7   :  { %2031 = vmatpush.bf16.msra.mxu1 %v7096_v52  ;;  %v612_v0 = vpop.f32.mrf.mxu3  ;;  %v7223_v52 = vld [vmem:[#allocation5 + $0x488] sm:$0xf]  ;;  %v9590_v59 = vld [vmem:[#allocation5 + $0x24c] sm:$0xf]  ;;  %v7320_v62 = vor.u32 %v9688_v48, %v7319_v54 }
  0xe8   :  { %1958 = vmatmul.bf16.vlgmr.msra.gmra.mxu3 %v10526_v58  ;;  %v7224_v11 = vor.u32 %v9664_v4, %v7223_v52  ;;  %v9674_v0 = vld [vmem:[#allocation5 + $0x4ec] sm:$0xf]  ;;  %v9684_v52 = vld [vmem:[#allocation5 + $0x534] sm:$0xf0] }
  0xe9   :  { %2054 = vmatpush.bf16.msra.mxu3 %v7400_v51  ;;  %2043 = vmatpush.bf16.msra.mxu2 %v7240_v1  ;;  %v7159_v51 = vld [vmem:[#allocation5 + $0x408] sm:$0xf]  ;;  %v7273_v1 = vld [vmem:[#allocation5 + $0x4f8] sm:$0xf0] }
  0xea   :  { %2019 = vmatpush.bf16.msra.mxu0 %v6952_v9  ;;  %v7367_v9 = vld [vmem:[#allocation5 + $0x5a8] sm:$0xf]  ;;  %v7276_v6 = vor.u32 %v9674_v0, %v7273_v1  ;;  %v9767_v0 = vld [vmem:[#allocation7 + $0x1cc] sm:$0xf0] }
  0xeb   :  { %2032 = vmatpush.bf16.msra.mxu1 %v7080_v10  ;;  %v9700_v10 = vld [vmem:[#allocation5 + $0x5b4] sm:$0xf0] }
  0xec   :  { %v7368_v18 = vor.u32 %v9700_v10, %v7367_v9  ;;  %v7049_v10 = vld [vmem:[#allocation5 + $0x338] sm:$0xf0] }
  0xed   :  { %2055 = vmatpush.bf16.msra.mxu3 %v7384_v7  ;;  %2044 = vmatpush.bf16.msra.mxu2 %v7224_v11  ;;  %v9586_v7 = vld [vmem:[#allocation5 + $0x22c] sm:$0xf] }
  0xee   :  { %2020 = vmatpush.bf16.msra.mxu0 %v6936_v21  ;;  %v7351_v21 = vld [vmem:[#allocation5 + $0x588] sm:$0xf]  ;;  %v9670_v11 = vld [vmem:[#allocation5 + $0x4cc] sm:$0xf]  ;;  %v6924_v15 = vor.u32 %v9586_v7, %v6921_v25 }
  0xef   :  { %2033 = vmatpush.bf16.msra.mxu1 %v7064_v22  ;;  %v9696_v22 = vld [vmem:[#allocation5 + $0x594] sm:$0xf0]  ;;  %v9654_v7 = vld [vmem:[#allocation5 + $0x44c] sm:$0xf] }
  0xf0   :  { %1997 = vmatmul.bf16.vlgmr.msrb.gmra.mxu2 %v10523_v26  ;;  %v7352_v33 = vor.u32 %v9696_v22, %v7351_v21  ;;  %v6905_v21 = vld [vmem:[#allocation5 + $0x218] sm:$0xf0]  ;;  %v9614_v22 = vld [vmem:[#allocation5 + $0x30c] sm:$0xf] }
  0xf1   :  { %2056 = vmatpush.bf16.msra.mxu3 %v7368_v18  ;;  %2045 = vmatpush.bf16.msra.mxu2 %v7208_v23  ;;  %v7052_v18 = vor.u32 %v9618_v8, %v7049_v10  ;;  %v7615_v10 = vld [vmem:[#allocation7 + $0x1a0] sm:$0xf] }
  0xf2   :  { %2021 = vmatpush.bf16.msra.mxu0 %v6920_v40  ;;  %v7175_v40 = vld [vmem:[#allocation5 + $0x428] sm:$0xf] }
  0xf3   :  { %2034 = vmatpush.bf16.msra.mxu1 %v7048_v41  ;;  %v7100_v41 = vor.u32 %v9630_v34, %v7097_v36  ;;  %v7176_v49 = vor.u32 %v9652_v43, %v7175_v40  ;;  %v6908_v34 = vor.u32 %v9582_v20, %v6905_v21  ;;  %v9702_v36 = vld [vmem:[#allocation5 + $0x5cc] sm:$0xf]  ;;  %v7520_v40 = vor.u32 %v9739_v32, %v7519_v31  ;;  %v7647_v43 = vld [vmem:[#allocation7 + $0x1e0] sm:$0xf]  ;;  %v9723_v32 = vld [vmem:[#allocation7 + $0x6c] sm:$0xf0] }
  0xf4   :  { %v9650_v21 = vld [vmem:[#allocation5 + $0x42c] sm:$0xf]  ;;  %v7455_v31 = vld [vmem:[#allocation7 + $0x60] sm:$0xf] }
  0xf5   :  { %2057 = vmatpush.bf16.msra.mxu3 %v7352_v33  ;;  %2046 = vmatpush.bf16.msra.mxu2 %v7192_v39 }
  0xf6   :  { %2022 = vmatpush.bf16.msra.mxu0 %v6904_v60  ;;  %v6937_v60 = vld [vmem:[#allocation5 + $0x258] sm:$0xf0]  ;;  %v1035_v33 = vpop.f32.mrf.mxu0 }
  0xf7   :  { %2035 = vmatpush.bf16.msra.mxu1 %v7032_v61  ;;  %v9622_v61 = vld [vmem:[#allocation5 + $0x34c] sm:$0xf]  ;;  %v6940_v4 = vor.u32 %v9590_v59, %v6937_v60  ;;  %v1048_v45 = vpop.f32.mrf.mxu1  ;;  %v7648_v60 = vor.u32 %v9771_v44, %v7647_v43  ;;  %v7583_v43 = vld [vmem:[#allocation7 + $0x160] sm:$0xf]  ;;  %v9755_v44 = vld [vmem:[#allocation7 + $0x16c] sm:$0xf0] }
  0xf8   :  { %2010 = vmatmul.bf16.vlgmr.msrb.gmra.mxu3 %v10526_v58  ;;  %v7068_v55 = vor.u32 %v9622_v61, %v7065_v63  ;;  %v10534_v54 = vadd.f32 %v1048_v45, %v1035_v33  ;;  %v9658_v59 = vld [vmem:[#allocation5 + $0x46c] sm:$0xf]  ;;  %v7504_v61 = vor.u32 %v9735_v47, %v7503_v53  ;;  %v7631_v63 = vld [vmem:[#allocation7 + $0x1c0] sm:$0xf]  ;;  %v9737_v53 = vld [vmem:[#allocation7 + $0xe4] sm:$0xf] }
  0xf9   :  { %2023 = vmatmul.bf16.vlgmr.msra.gmra.mxu0 %v10513_v5  ;;  %2058 = vmatpush.bf16.msra.mxu3 %v7336_v46  ;;  %v7388_v46 = vor.u32 %v9702_v36, %v7385_v37  ;;  %v7632_v25 = vor.u32 %v9767_v0, %v7631_v63  ;;  %v7321_v36 = vld [vmem:[#allocation5 + $0x558] sm:$0xf0]  ;;  %v7521_v47 = vld [vmem:[#allocation7 + $0xf0] sm:$0xf0]  ;;  %v7567_v63 = vld [vmem:[#allocation7 + $0x140] sm:$0xf] }
  0xfa   :  { %2067 = vmatpush.bf16.msrb.mxu0 %v7020_v2  ;;  %2036 = vmatmul.bf16.vlgmr.msra.gmra.mxu1 %v10516_v35  ;;  %v7303_v2 = vld [vmem:[#allocation5 + $0x528] sm:$0xf]  ;;  %v9751_v0 = vld [vmem:[#allocation7 + $0x14c] sm:$0xf0] }
  0xfb   :  { %2080 = vmatpush.bf16.msrb.mxu1 %v7148_v3  ;;  %2047 = vmatpush.bf16.msra.mxu2 %v7176_v49  ;;  %v7160_v3 = vor.u32 %v9648_v56, %v7159_v51  ;;  %v7304_v9 = vor.u32 %v9684_v52, %v7303_v2  ;;  %v7369_v51 = vld [vmem:[#allocation5 + $0x5b8] sm:$0xf0]  ;;  %v7487_v2 = vld [vmem:[#allocation7 + $0xa0] sm:$0xf]  ;;  %v9731_v52 = vld [vmem:[#allocation7 + $0xac] sm:$0xf0] }
  0xfc   :  { %v7488_v8 = vor.u32 %v9731_v52, %v7487_v2  ;;  %v9715_v2 = vld [vmem:[#allocation7 + $0x2c] sm:$0xf0]  ;;  %v9733_v52 = vld [vmem:[#allocation7 + $0xc4] sm:$0xf] }
  0xfd   :  { %2059 = vmatpush.bf16.msra.mxu3 %v7320_v62  ;;  %v7209_v62 = vld [vmem:[#allocation5 + $0x478] sm:$0xf0] }
  0xfe   :  { %2068 = vmatpush.bf16.msrb.mxu0 %v7004_v12  ;;  %v7257_v12 = vld [vmem:[#allocation5 + $0x4d8] sm:$0xf0]  ;;  %v1061_v48 = vpop.f32.mrf.mxu2 }
  0xff   :  { %2081 = vmatpush.bf16.msrb.mxu1 %v7132_v14  ;;  %v9680_v14 = vld [vmem:[#allocation5 + $0x514] sm:$0xf0]  ;;  %2048 = vmatpush.bf16.msra.mxu2 %v7160_v3  ;;  %v7260_v19 = vor.u32 %v9670_v11, %v7257_v12  ;;  %v1074_v49 = vpop.f32.mrf.mxu3  ;;  %v1037_v3 = vpop.f32.mrf.mxu0  ;;  %v9763_v11 = vld [vmem:[#allocation7 + $0x1ac] sm:$0xf0] }
 0x100   :  { %v7288_v23 = vor.u32 %v9680_v14, %v7287_v13  ;;  %v10536_v56 = vadd.f32 %v1074_v49, %v1061_v48  ;;  %v1050_v12 = vpop.f32.mrf.mxu1  ;;  %v7471_v14 = vld [vmem:[#allocation7 + $0x80] sm:$0xf]  ;;  %v9682_v49 = vld [vmem:[#allocation5 + $0x52c] sm:$0xf]  ;;  %v7505_v3 = vld [vmem:[#allocation7 + $0xd0] sm:$0xf0] }
 0x101   :  { %2060 = vmatpush.bf16.msra.mxu3 %v7304_v9  ;;  %v7193_v9 = vld [vmem:[#allocation5 + $0x458] sm:$0xf0]  ;;  %v9747_v12 = vld [vmem:[#allocation7 + $0x12c] sm:$0xf0] }
 0x102   :  { %2069 = vmatpush.bf16.msrb.mxu0 %v6988_v27  ;;  %v7033_v27 = vld [vmem:[#allocation5 + $0x318] sm:$0xf0]  ;;  %2049 = vmatmul.bf16.vlgmr.msra.gmra.mxu2 %v10523_v26  ;;  %v7196_v20 = vor.u32 %v9654_v7, %v7193_v9  ;;  %v7568_v7 = vor.u32 %v9751_v0, %v7567_v63  ;;  %v9757_v0 = vld [vmem:[#allocation7 + $0x184] sm:$0xf] }
 0x103   :  { %2082 = vmatpush.bf16.msrb.mxu1 %v7116_v29  ;;  %2093 = vmatpush.bf16.msrb.mxu2 %v7276_v6  ;;  %v7241_v29 = vld [vmem:[#allocation5 + $0x4b8] sm:$0xf0]  ;;  %v7036_v38 = vor.u32 %v9614_v22, %v7033_v27  ;;  %v7212_v6 = vor.u32 %v9658_v59, %v7209_v62  ;;  %v7616_v22 = vor.u32 %v9763_v11, %v7615_v10  ;;  %v7551_v11 = vld [vmem:[#allocation7 + $0x120] sm:$0xf] }
 0x104   :  { %v7244_v39 = vor.u32 %v9666_v28, %v7241_v29  ;;  %v7177_v27 = vld [vmem:[#allocation5 + $0x438] sm:$0xf0]  ;;  %v7599_v28 = vld [vmem:[#allocation7 + $0x180] sm:$0xf]  ;;  %v9759_v29 = vld [vmem:[#allocation7 + $0x18c] sm:$0xf0]  ;;  %v7584_v59 = vor.u32 %v9755_v44, %v7583_v43  ;;  %v7524_v62 = vor.u32 %v9737_v53, %v7521_v47  ;;  %v7508_v10 = vor.u32 %v9733_v52, %v7505_v3 }
 0x105   :  { %2061 = vmatpush.bf16.msra.mxu3 %v7288_v23  ;;  %v7180_v37 = vor.u32 %v9650_v21, %v7177_v27  ;;  %v7633_v27 = vld [vmem:[#allocation7 + $0x1d0] sm:$0xf0]  ;;  %v9761_v44 = vld [vmem:[#allocation7 + $0x1a4] sm:$0xf]  ;;  %v10547_v47 = vld [vmem:[#allocation1] sm:$0xff] }
 0x106   :  { %2070 = vmatpush.bf16.msrb.mxu0 %v6972_v24  ;;  %v9662_v24 = vld [vmem:[#allocation5 + $0x48c] sm:$0xf]  ;;  %v1063_v16 = vpop.f32.mrf.mxu2  ;;  %v10550_v3 = vld [vmem:[#allocation1 + $0x9] sm:$0xff] }
 0x107   :  { %2083 = vmatpush.bf16.msrb.mxu1 %v7100_v41  ;;  %2094 = vmatpush.bf16.msrb.mxu2 %v7260_v19  ;;  %v7225_v41 = vld [vmem:[#allocation5 + $0x498] sm:$0xf0]  ;;  %v1076_v17 = vpop.f32.mrf.mxu3  ;;  %v7527_v16 = vld [vmem:[#allocation7 + $0xe8] sm:$0xf]  ;;  %3691 = vst [vmem:[#allocation1] ss:$9 sm:$0xff] %v10478_v42 }
 0x108   :  { %2062 = vmatmul.bf16.vlgmr.msra.gmra.mxu3 %v10526_v58  ;;  %v7337_v19 = vld [vmem:[#allocation5 + $0x578] sm:$0xf0]  ;;  %v9760_v42 = vld [vmem:[#allocation7 + $0x194] sm:$0xf0] }
 0x109   :  { %2106 = vmatpush.bf16.msrb.mxu3 %v7404_v30 }
 0x10a   :  { %2071 = vmatpush.bf16.msrb.mxu0 %v6956_v50  ;;  %v9698_v50 = vld [vmem:[#allocation5 + $0x5ac] sm:$0xf] }
 0x10b   :  { %2084 = vmatpush.bf16.msrb.mxu1 %v7084_v57  ;;  %2095 = vmatpush.bf16.msrb.mxu2 %v7244_v39  ;;  %v7228_v57 = vor.u32 %v9662_v24, %v7225_v41  ;;  %v7372_v1 = vor.u32 %v9698_v50, %v7369_v51  ;;  %v7161_v39 = vld [vmem:[#allocation5 + $0x418] sm:$0xf0]  ;;  %v7600_v24 = vor.u32 %v9759_v29, %v7599_v28  ;;  %v7439_v41 = vld [vmem:[#allocation7 + $0x40] sm:$0xf] }
 0x10c   :  { %v7305_v50 = vld [vmem:[#allocation5 + $0x538] sm:$0xf0]  ;;  %v7535_v29 = vld [vmem:[#allocation7 + $0x100] sm:$0xf] }
 0x10d   :  { %2107 = vmatpush.bf16.msrb.mxu3 %v7388_v46  ;;  %v9719_v46 = vld [vmem:[#allocation7 + $0x4c] sm:$0xf0] }
 0x10e   :  { %2072 = vmatpush.bf16.msrb.mxu0 %v6940_v4  ;;  %v9694_v4 = vld [vmem:[#allocation5 + $0x58c] sm:$0xf] }
 0x10f   :  { %2085 = vmatpush.bf16.msrb.mxu1 %v7068_v55  ;;  %v7353_v55 = vld [vmem:[#allocation5 + $0x598] sm:$0xf0]  ;;  %2096 = vmatpush.bf16.msrb.mxu2 %v7228_v57 }
 0x110   :  { %v7356_v13 = vor.u32 %v9694_v4, %v7353_v55  ;;  %v9678_v55 = vld [vmem:[#allocation5 + $0x50c] sm:$0xf] }
 0x111   :  { %2108 = vmatpush.bf16.msrb.mxu3 %v7372_v1  ;;  %v7308_v1 = vor.u32 %v9682_v49, %v7305_v50  ;;  %v7495_v50 = vld [vmem:[#allocation7 + $0xa8] sm:$0xf] }
 0x112   :  { %2073 = vmatpush.bf16.msrb.mxu0 %v6924_v15  ;;  %v9727_v15 = vld [vmem:[#allocation7 + $0x8c] sm:$0xf0] }
 0x113   :  { %2086 = vmatpush.bf16.msrb.mxu1 %v7052_v18  ;;  %v9690_v18 = vld [vmem:[#allocation5 + $0x56c] sm:$0xf]  ;;  %2097 = vmatpush.bf16.msrb.mxu2 %v7212_v6  ;;  %v7472_v23 = vor.u32 %v9727_v15, %v7471_v14  ;;  %v7289_v6 = vld [vmem:[#allocation5 + $0x518] sm:$0xf0]  ;;  %v7407_v14 = vld [vmem:[#allocation7] sm:$0xf] }
 0x114   :  { %v7340_v30 = vor.u32 %v9690_v18, %v7337_v19  ;;  %v9711_v15 = vld [vmem:[#allocation7 + $0xc] sm:$0xf0]  ;;  %v9740_v18 = vld [vmem:[#allocation7 + $0xf4] sm:$0xf0]  ;;  %v9729_v19 = vld [vmem:[#allocation7 + $0xa4] sm:$0xf] }
 0x115   :  { %2109 = vmatpush.bf16.msrb.mxu3 %v7356_v13  ;;  %v7292_v13 = vor.u32 %v9678_v55, %v7289_v6  ;;  %v7408_v28 = vor.u32 %v9711_v15, %v7407_v14  ;;  %v7623_v6 = vld [vmem:[#allocation7 + $0x1a8] sm:$0xf]  ;;  %v7585_v14 = vld [vmem:[#allocation7 + $0x170] sm:$0xf0] }
 0x116   :  { %2074 = vmatpush.bf16.msrb.mxu0 %v6908_v34  ;;  %v1087_v33 = vpop.f32.mrf.mxu0  ;;  %v9686_v34 = vld [vmem:[#allocation5 + $0x54c] sm:$0xf] }
 0x117   :  { %2087 = vmatpush.bf16.msrb.mxu1 %v7036_v38  ;;  %2098 = vmatpush.bf16.msrb.mxu2 %v7196_v20  ;;  %v9646_v38 = vld [vmem:[#allocation5 + $0x40c] sm:$0xf]  ;;  %v7324_v45 = vor.u32 %v9686_v34, %v7321_v36  ;;  %v1100_v48 = vpop.f32.mrf.mxu1  ;;  %v7489_v20 = vld [vmem:[#allocation7 + $0xb0] sm:$0xf0]  ;;  %v7655_v34 = vld [vmem:[#allocation7 + $0x1e8] sm:$0xf] }
 0x118   :  { %v10541_v51 = vadd.f32 %v1100_v48, %v1087_v33  ;;  %v7164_v57 = vor.u32 %v9646_v38, %v7161_v39  ;;  %v7511_v33 = vld [vmem:[#allocation7 + $0xc8] sm:$0xf]  ;;  %v9772_v36 = vld [vmem:[#allocation7 + $0x1f4] sm:$0xf0]  ;;  %v9725_v38 = vld [vmem:[#allocation7 + $0x84] sm:$0xf] }
 0x119   :  { %2075 = vmatmul.bf16.vlgmr.msrb.gmra.mxu0 %v10513_v5  ;;  %2110 = vmatpush.bf16.msrb.mxu3 %v7340_v30  ;;  %v9743_v30 = vld [vmem:[#allocation7 + $0x10c] sm:$0xf0]  ;;  %v7473_v39 = vld [vmem:[#allocation7 + $0x90] sm:$0xf0]  ;;  %v7656_v53 = vor.u32 %v9772_v36, %v7655_v34  ;;  %v7591_v34 = vld [vmem:[#allocation7 + $0x168] sm:$0xf] }
 0x11a   :  { %2521 = vmatpush.bf16.msra.mxu0 %v7520_v40  ;;  %2088 = vmatmul.bf16.vlgmr.msrb.gmra.mxu1 %v10516_v35  ;;  %v7456_v40 = vor.u32 %v9723_v32, %v7455_v31  ;;  %v7528_v31 = vor.u32 %v9740_v18, %v7527_v16  ;;  %v7492_v32 = vor.u32 %v9729_v19, %v7489_v20  ;;  %v7463_v18 = vld [vmem:[#allocation7 + $0x68] sm:$0xf]  ;;  %v9724_v20 = vld [vmem:[#allocation7 + $0x74] sm:$0xf0] }
 0x11b   :  { %2534 = vmatpush.bf16.msra.mxu1 %v7648_v60  ;;  %2099 = vmatpush.bf16.msrb.mxu2 %v7180_v37  ;;  %v7440_v60 = vor.u32 %v9719_v46, %v7439_v41  ;;  %v9736_v37 = vld [vmem:[#allocation7 + $0xd4] sm:$0xf0]  ;;  %v7536_v43 = vor.u32 %v9743_v30, %v7535_v29  ;;  %v7476_v49 = vor.u32 %v9725_v38, %v7473_v39  ;;  %v7607_v19 = vld [vmem:[#allocation7 + $0x188] sm:$0xf]  ;;  %v7409_v38 = vld [vmem:[#allocation7 + $0x10] sm:$0xf0] }
 0x11c   :  { %v7512_v48 = vor.u32 %v9736_v37, %v7511_v33  ;;  %v7447_v29 = vld [vmem:[#allocation7 + $0x48] sm:$0xf]  ;;  %v7608_v30 = vor.u32 %v9760_v42, %v7607_v19  ;;  %v9720_v33 = vld [vmem:[#allocation7 + $0x54] sm:$0xf0]  ;;  %v9709_v37 = vld [vmem:[#allocation7 + $0x4] sm:$0xf] }
 0x11d   :  { %2111 = vmatpush.bf16.msrb.mxu3 %v7324_v45  ;;  %v7617_v45 = vld [vmem:[#allocation7 + $0x1b0] sm:$0xf0]  ;;  %v9756_v36 = vld [vmem:[#allocation7 + $0x174] sm:$0xf0]  ;;  %v9738_v39 = vld [vmem:[#allocation7 + $0xec] sm:$0xf] }
 0x11e   :  { %2522 = vmatpush.bf16.msra.mxu0 %v7504_v61  ;;  %v7423_v61 = vld [vmem:[#allocation7 + $0x20] sm:$0xf]  ;;  %v1089_v4 = vpop.f32.mrf.mxu0  ;;  %v7620_v63 = vor.u32 %v9761_v44, %v7617_v45  ;;  %v7592_v44 = vor.u32 %v9756_v36, %v7591_v34  ;;  %v7448_v45 = vor.u32 %v9720_v33, %v7447_v29  ;;  %v7543_v19 = vld [vmem:[#allocation7 + $0x108] sm:$0xf]  ;;  %v9744_v42 = vld [vmem:[#allocation7 + $0x114] sm:$0xf0] }
 0x11f   :  { %2535 = vmatpush.bf16.msra.mxu1 %v7632_v25  ;;  %2100 = vmatpush.bf16.msrb.mxu2 %v7164_v57  ;;  %v9769_v25 = vld [vmem:[#allocation7 + $0x1e4] sm:$0xf]  ;;  %v7424_v9 = vor.u32 %v9715_v2, %v7423_v61  ;;  %v1102_v17 = vpop.f32.mrf.mxu1  ;;  %v1126_v41 = vpop.f32.mrf.mxu3  ;;  %v7639_v57 = vld [vmem:[#allocation7 + $0x1c8] sm:$0xf]  ;;  %v9726_v29 = vld [vmem:[#allocation7 + $0x8c] sm:$0xf]  ;;  %v7544_v33 = vor.u32 %v9744_v42, %v7543_v19 }
 0x120   :  { %v9721_v61 = vld [vmem:[#allocation7 + $0x64] sm:$0xf]  ;;  %v7479_v2 = vld [vmem:[#allocation7 + $0x88] sm:$0xf]  ;;  %v9762_v34 = vld [vmem:[#allocation7 + $0x1ac] sm:$0xf] }
 0x121   :  { %2112 = vmatpush.bf16.msrb.mxu3 %v7308_v1  ;;  %v7601_v1 = vld [vmem:[#allocation7 + $0x190] sm:$0xf0]  ;;  %v7625_v36 = vld [vmem:[#allocation7 + $0x1b8] sm:$0xf0] }
 0x122   :  { %2523 = vmatpush.bf16.msra.mxu0 %v7488_v8  ;;  %v7649_v8 = vld [vmem:[#allocation7 + $0x1f0] sm:$0xf0]  ;;  %2101 = vmatmul.bf16.vlgmr.msrb.gmra.mxu2 %v10523_v26 }
 0x123   :  { %2536 = vmatpush.bf16.msra.mxu1 %v7616_v22  ;;  %2547 = vmatpush.bf16.msra.mxu2 %v7524_v62  ;;  %v7652_v21 = vor.u32 %v9769_v25, %v7649_v8  ;;  %v7552_v22 = vor.u32 %v9747_v12, %v7551_v11  ;;  %v7457_v62 = vld [vmem:[#allocation7 + $0x70] sm:$0xf0]  ;;  %v9728_v25 = vld [vmem:[#allocation7 + $0x94] sm:$0xf0]  ;;  %v9717_v8 = vld [vmem:[#allocation7 + $0x44] sm:$0xf] }
 0x124   :  { %v7460_v55 = vor.u32 %v9721_v61, %v7457_v62  ;;  %v7480_v16 = vor.u32 %v9728_v25, %v7479_v2  ;;  %v7513_v62 = vld [vmem:[#allocation7 + $0xd8] sm:$0xf0]  ;;  %v9770_v2 = vld [vmem:[#allocation7 + $0x1ec] sm:$0xf]  ;;  %v9712_v25 = vld [vmem:[#allocation7 + $0x14] sm:$0xf0] }
 0x125   :  { %2113 = vmatpush.bf16.msrb.mxu3 %v7292_v13  ;;  %v9753_v13 = vld [vmem:[#allocation7 + $0x164] sm:$0xf] }
 0x126   :  { %2524 = vmatpush.bf16.msra.mxu0 %v7472_v23  ;;  %v9765_v23 = vld [vmem:[#allocation7 + $0x1c4] sm:$0xf] }
 0x127   :  { %2537 = vmatpush.bf16.msra.mxu1 %v7600_v24  ;;  %2548 = vmatpush.bf16.msra.mxu2 %v7508_v10  ;;  %v7636_v24 = vor.u32 %v9765_v23, %v7633_v27  ;;  %v7604_v10 = vor.u32 %v9757_v0, %v7601_v1  ;;  %v1128_v12 = vpop.f32.mrf.mxu3  ;;  %v7588_v23 = vor.u32 %v9753_v13, %v7585_v14  ;;  %v9749_v27 = vld [vmem:[#allocation7 + $0x144] sm:$0xf]  ;;  %v7537_v0 = vld [vmem:[#allocation7 + $0x110] sm:$0xf0]  ;;  %v7497_v13 = vld [vmem:[#allocation7 + $0xb8] sm:$0xf0] }
 0x128   :  { %2114 = vmatmul.bf16.vlgmr.msrb.gmra.mxu3 %v10526_v58  ;;  %v9730_v12 = vld [vmem:[#allocation7 + $0xac] sm:$0xf] }
 0x129   :  { %2560 = vmatpush.bf16.msra.mxu3 %v7652_v21  ;;  %v9713_v21 = vld [vmem:[#allocation7 + $0x24] sm:$0xf] }
 0x12a   :  { %2525 = vmatpush.bf16.msra.mxu0 %v7456_v40  ;;  %v1113_v40 = vpop.f32.mrf.mxu2 }
 0x12b   :  { %2538 = vmatpush.bf16.msra.mxu1 %v7584_v59  ;;  %v10544_v46 = vadd.f32 %v1126_v41, %v1113_v40  ;;  %2549 = vmatpush.bf16.msra.mxu2 %v7492_v32  ;;  %v9768_v59 = vld [vmem:[#allocation7 + $0x1d4] sm:$0xf0]  ;;  %v7529_v40 = vld [vmem:[#allocation7 + $0xf8] sm:$0xf0]  ;;  %v9745_v41 = vld [vmem:[#allocation7 + $0x124] sm:$0xf] }
 0x12c   :  { %v7640_v52 = vor.u32 %v9768_v59, %v7639_v57  ;;  %v9716_v57 = vld [vmem:[#allocation7 + $0x34] sm:$0xf0]  ;;  %v7532_v59 = vor.u32 %v9738_v39, %v7529_v40  ;;  %v7887_v40 = vld [vmem:[#allocation7 + $0x3c0] sm:$0xf] }
 0x12d   :  { %2561 = vmatpush.bf16.msra.mxu3 %v7636_v24 }
 0x12e   :  { %2526 = vmatpush.bf16.msra.mxu0 %v7440_v60  ;;  %v9732_v60 = vld [vmem:[#allocation7 + $0xb4] sm:$0xf0] }
 0x12f   :  { %2539 = vmatpush.bf16.msra.mxu1 %v7568_v7  ;;  %2550 = vmatpush.bf16.msra.mxu2 %v7476_v49  ;;  %v7496_v4 = vor.u32 %v9732_v60, %v7495_v50  ;;  %v9764_v7 = vld [vmem:[#allocation7 + $0x1b4] sm:$0xf0]  ;;  %v7431_v50 = vld [vmem:[#allocation7 + $0x28] sm:$0xf]  ;;  %v9734_v60 = vld [vmem:[#allocation7 + $0xcc] sm:$0xf] }
 0x130   :  { %v7624_v15 = vor.u32 %v9764_v7, %v7623_v6  ;;  %v9752_v49 = vld [vmem:[#allocation7 + $0x154] sm:$0xf0]  ;;  %v7415_v7 = vld [vmem:[#allocation7 + $0x8] sm:$0xf] }
 0x131   :  { %2562 = vmatpush.bf16.msra.mxu3 %v7620_v63  ;;  %v9741_v63 = vld [vmem:[#allocation7 + $0x104] sm:$0xf]  ;;  %v9748_v6 = vld [vmem:[#allocation7 + $0x134] sm:$0xf0] }
 0x132   :  { %2527 = vmatpush.bf16.msra.mxu0 %v7424_v9  ;;  %v7441_v9 = vld [vmem:[#allocation7 + $0x50] sm:$0xf0]  ;;  %v1115_v11 = vpop.f32.mrf.mxu2 }
 0x133   :  { %2540 = vmatpush.bf16.msra.mxu1 %v7552_v22  ;;  %2551 = vmatpush.bf16.msra.mxu2 %v7460_v55  ;;  %v7444_v17 = vor.u32 %v9717_v8, %v7441_v9  ;;  %v7425_v22 = vld [vmem:[#allocation7 + $0x30] sm:$0xf0]  ;;  %v7559_v55 = vld [vmem:[#allocation7 + $0x128] sm:$0xf]  ;;  %v7516_v8 = vor.u32 %v9734_v60, %v7513_v62  ;;  %v7775_v9 = vld [vmem:[#allocation7 + $0x2e0] sm:$0xf] }
 0x134   :  { %v7428_v32 = vor.u32 %v9713_v21, %v7425_v22  ;;  %v9803_v11 = vld [vmem:[#allocation7 + $0x2ec] sm:$0xf0]  ;;  %v7500_v21 = vor.u32 %v9730_v12, %v7497_v13  ;;  %v7759_v22 = vld [vmem:[#allocation7 + $0x2c0] sm:$0xf]  ;;  %v9714_v13 = vld [vmem:[#allocation7 + $0x2c] sm:$0xf] }
 0x135   :  { %2563 = vmatpush.bf16.msra.mxu3 %v7604_v10  ;;  %v7540_v10 = vor.u32 %v9741_v63, %v7537_v0  ;;  %v7727_v60 = vld [vmem:[#allocation7 + $0x280] sm:$0xf]  ;;  %v9827_v62 = vld [vmem:[#allocation7 + $0x3ac] sm:$0xf0] }
 0x136   :  { %2528 = vmatpush.bf16.msra.mxu0 %v7408_v28  ;;  %v7569_v28 = vld [vmem:[#allocation7 + $0x150] sm:$0xf0]  ;;  %v9791_v0 = vld [vmem:[#allocation7 + $0x28c] sm:$0xf0] }
 0x137   :  { %2541 = vmatpush.bf16.msra.mxu1 %v7536_v43  ;;  %2552 = vmatpush.bf16.msra.mxu2 %v7444_v17  ;;  %v7572_v24 = vor.u32 %v9749_v27, %v7569_v28  ;;  %v7553_v43 = vld [vmem:[#allocation7 + $0x130] sm:$0xf0]  ;;  %v7641_v17 = vld [vmem:[#allocation7 + $0x1d8] sm:$0xf0]  ;;  %v9835_v27 = vld [vmem:[#allocation7 + $0x3ec] sm:$0xf0] }
 0x138   :  { %v7556_v61 = vor.u32 %v9745_v41, %v7553_v43  ;;  %v9799_v28 = vld [vmem:[#allocation7 + $0x2cc] sm:$0xf0] }
 0x139   :  { %2529 = vmatmul.bf16.vlgmr.msra.gmra.mxu0 %v10547_v47  ;;  %2564 = vmatpush.bf16.msra.mxu3 %v7588_v23  ;;  %v7903_v23 = vld [vmem:[#allocation7 + $0x3e0] sm:$0xf]  ;;  %v9831_v41 = vld [vmem:[#allocation7 + $0x3cc] sm:$0xf0] }
 0x13a   :  { %2573 = vmatpush.bf16.msrb.mxu0 %v7528_v31  ;;  %2542 = vmatmul.bf16.vlgmr.msra.gmra.mxu1 %v10550_v3  ;;  %v7464_v31 = vor.u32 %v9724_v20, %v7463_v18  ;;  %v7416_v18 = vor.u32 %v9712_v25, %v7415_v7  ;;  %v7776_v20 = vor.u32 %v9803_v11, %v7775_v9  ;;  %v9795_v43 = vld [vmem:[#allocation7 + $0x2ac] sm:$0xf0]  ;;  %v7711_v9 = vld [vmem:[#allocation7 + $0x260] sm:$0xf] }
 0x13b   :  { %2586 = vmatpush.bf16.msrb.mxu1 %v7656_v53  ;;  %2553 = vmatpush.bf16.msra.mxu2 %v7428_v32  ;;  %v7412_v53 = vor.u32 %v9709_v37, %v7409_v38  ;;  %v7904_v37 = vor.u32 %v9835_v27, %v7903_v23  ;;  %v7760_v38 = vor.u32 %v9799_v28, %v7759_v22  ;;  %v9823_v11 = vld [vmem:[#allocation7 + $0x38c] sm:$0xf0]  ;;  %v7839_v22 = vld [vmem:[#allocation7 + $0x360] sm:$0xf]  ;;  %v9710_v28 = vld [vmem:[#allocation7 + $0xc] sm:$0xf] }
 0x13c   :  { %v7728_v25 = vor.u32 %v9791_v0, %v7727_v60  ;;  %v9787_v12 = vld [vmem:[#allocation7 + $0x26c] sm:$0xf0]  ;;  %v8159_v60 = vld [vmem:[#allocation7 + $0x5e0] sm:$0xf] }
 0x13d   :  { %2565 = vmatpush.bf16.msra.mxu3 %v7572_v24  ;;  %v10555_v32 = vpop.f32.mrf.mxu0  ;;  %v7743_v24 = vld [vmem:[#allocation7 + $0x2a0] sm:$0xf]  ;;  %v7712_v42 = vor.u32 %v9787_v12, %v7711_v9  ;;  %v9819_v23 = vld [vmem:[#allocation7 + $0x36c] sm:$0xf0] }
 0x13e   :  { %2574 = vmatpush.bf16.msrb.mxu0 %v7512_v48  ;;  %v7575_v48 = vld [vmem:[#allocation7 + $0x148] sm:$0xf]  ;;  %v7807_v0 = vld [vmem:[#allocation7 + $0x320] sm:$0xf] }
 0x13f   :  { %2587 = vmatpush.bf16.msrb.mxu1 %v7640_v52  ;;  %v7576_v1 = vor.u32 %v9752_v49, %v7575_v48  ;;  %v7657_v52 = vld [vmem:[#allocation7 + $0x1f8] sm:$0xf0]  ;;  %2554 = vmatpush.bf16.msra.mxu2 %v7412_v53  ;;  %v7628_v53 = vor.u32 %v9762_v34, %v7625_v36  ;;  %v9758_v48 = vld [vmem:[#allocation7 + $0x18c] sm:$0xf]  ;;  %v9867_v34 = vld [vmem:[#allocation7 + $0x4ec] sm:$0xf0] }
 0x140   :  { %v7660_v14 = vor.u32 %v9770_v2, %v7657_v52  ;;  %v7609_v49 = vld [vmem:[#allocation7 + $0x198] sm:$0xf0]  ;;  %v9746_v36 = vld [vmem:[#allocation7 + $0x12c] sm:$0xf]  ;;  %v7999_v9 = vld [vmem:[#allocation7 + $0x4a0] sm:$0xf] }
 0x141   :  { %2566 = vmatpush.bf16.msra.mxu3 %v7556_v61  ;;  %v7871_v61 = vld [vmem:[#allocation7 + $0x3a0] sm:$0xf]  ;;  %v7449_v2 = vld [vmem:[#allocation7 + $0x58] sm:$0xf0]  ;;  %v7612_v52 = vor.u32 %v9758_v48, %v7609_v49  ;;  %v9863_v49 = vld [vmem:[#allocation7 + $0x4cc] sm:$0xf0] }
 0x142   :  { %2575 = vmatpush.bf16.msrb.mxu0 %v7496_v4  ;;  %v7432_v4 = vor.u32 %v9716_v57, %v7431_v50  ;;  %2555 = vmatmul.bf16.vlgmr.msra.gmra.mxu2 %v10547_v47  ;;  %v7888_v50 = vor.u32 %v9831_v41, %v7887_v40  ;;  %v7744_v57 = vor.u32 %v9795_v43, %v7743_v24  ;;  %v7823_v40 = vld [vmem:[#allocation7 + $0x340] sm:$0xf]  ;;  %v9815_v41 = vld [vmem:[#allocation7 + $0x34c] sm:$0xf0] }
 0x143   :  { %2588 = vmatpush.bf16.msrb.mxu1 %v7624_v15  ;;  %2599 = vmatpush.bf16.msrb.mxu2 %v7532_v59  ;;  %v7560_v15 = vor.u32 %v9748_v6, %v7559_v55  ;;  %v9754_v55 = vld [vmem:[#allocation7 + $0x16c] sm:$0xf]  ;;  %v7593_v6 = vld [vmem:[#allocation7 + $0x178] sm:$0xf0]  ;;  %v7872_v7 = vor.u32 %v9827_v62, %v7871_v61  ;;  %v7679_v43 = vld [vmem:[#allocation7 + $0x220] sm:$0xf] }
 0x144   :  { %v9899_v61 = vld [vmem:[#allocation7 + $0x5ec] sm:$0xf0] }
 0x145   :  { %2567 = vmatpush.bf16.msra.mxu3 %v7540_v10  ;;  %v10559_v63 = vpop.f32.mrf.mxu1  ;;  %v7855_v10 = vld [vmem:[#allocation7 + $0x380] sm:$0xf] }
 0x146   :  { %2576 = vmatpush.bf16.msrb.mxu0 %v7480_v16  ;;  %v9766_v16 = vld [vmem:[#allocation7 + $0x1cc] sm:$0xf]  ;;  %v7856_v19 = vor.u32 %v9823_v11, %v7855_v10  ;;  %v9859_v10 = vld [vmem:[#allocation7 + $0x4ac] sm:$0xf0]  ;;  %v8160_v11 = vor.u32 %v9899_v61, %v8159_v60  ;;  %v9825_v60 = vld [vmem:[#allocation7 + $0x3a4] sm:$0xf] }
 0x147   :  { %2589 = vmatpush.bf16.msrb.mxu1 %v7608_v30  ;;  %2600 = vmatpush.bf16.msrb.mxu2 %v7516_v8  ;;  %v7481_v30 = vld [vmem:[#allocation7 + $0x98] sm:$0xf0]  ;;  %v7873_v61 = vld [vmem:[#allocation7 + $0x3b0] sm:$0xf0] }
 0x148   :  { %2568 = vmatmul.bf16.vlgmr.msra.gmra.mxu3 %v10550_v3  ;;  %v7484_v39 = vor.u32 %v9726_v29, %v7481_v30  ;;  %v7417_v29 = vld [vmem:[#allocation7 + $0x18] sm:$0xf0]  ;;  %v8031_v30 = vld [vmem:[#allocation7 + $0x4e0] sm:$0xf] }
 0x149   :  { %2612 = vmatpush.bf16.msrb.mxu3 %v7660_v14  ;;  %v7433_v14 = vld [vmem:[#allocation7 + $0x38] sm:$0xf0]  ;;  %v7420_v24 = vor.u32 %v9710_v28, %v7417_v29  ;;  %v8127_v29 = vld [vmem:[#allocation7 + $0x5a0] sm:$0xf] }
 0x14a   :  { %2577 = vmatpush.bf16.msrb.mxu0 %v7464_v31  ;;  %v7644_v31 = vor.u32 %v9766_v16, %v7641_v17  ;;  %v9750_v16 = vld [vmem:[#allocation7 + $0x14c] sm:$0xf]  ;;  %v7577_v17 = vld [vmem:[#allocation7 + $0x158] sm:$0xf0] }
 0x14b   :  { %2590 = vmatpush.bf16.msrb.mxu1 %v7592_v44  ;;  %2601 = vmatpush.bf16.msrb.mxu2 %v7500_v21  ;;  %v9722_v44 = vld [vmem:[#allocation7 + $0x6c] sm:$0xf]  ;;  %v9783_v21 = vld [vmem:[#allocation7 + $0x24c] sm:$0xf0] }
 0x14d   :  { %2613 = vmatpush.bf16.msrb.mxu3 %v7644_v31  ;;  %v1935_v27 = vpop.f32.mrf.mxu1  ;;  %v7580_v31 = vor.u32 %v9750_v16, %v7577_v17  ;;  %v7791_v16 = vld [vmem:[#allocation7 + $0x300] sm:$0xf]  ;;  %v9807_v17 = vld [vmem:[#allocation7 + $0x30c] sm:$0xf0] }
 0x14e   :  { %2578 = vmatpush.bf16.msrb.mxu0 %v7448_v45  ;;  %v7465_v45 = vld [vmem:[#allocation7 + $0x78] sm:$0xf0]  ;;  %v9855_v27 = vld [vmem:[#allocation7 + $0x48c] sm:$0xf0] }
 0x14f   :  { %2591 = vmatpush.bf16.msrb.mxu1 %v7576_v1  ;;  %2602 = vmatpush.bf16.msrb.mxu2 %v7484_v39  ;;  %v7468_v59 = vor.u32 %v9722_v44, %v7465_v45  ;;  %v9718_v1 = vld [vmem:[#allocation7 + $0x4c] sm:$0xf]  ;;  %v9779_v44 = vld [vmem:[#allocation7 + $0x22c] sm:$0xf0]  ;;  %v8032_v45 = vor.u32 %v9867_v34, %v8031_v30 }
 0x150   :  { %v7452_v8 = vor.u32 %v9718_v1, %v7449_v2  ;;  %v7680_v62 = vor.u32 %v9779_v44, %v7679_v43  ;;  %v9811_v1 = vld [vmem:[#allocation7 + $0x32c] sm:$0xf0] }
 0x151   :  { %2614 = vmatpush.bf16.msrb.mxu3 %v7628_v53  ;;  %v8015_v53 = vld [vmem:[#allocation7 + $0x4c0] sm:$0xf]  ;;  %v7808_v12 = vor.u32 %v9811_v1, %v7807_v0  ;;  %v9891_v30 = vld [vmem:[#allocation7 + $0x5ac] sm:$0xf0] }
 0x152   :  { %2579 = vmatpush.bf16.msrb.mxu0 %v7432_v4  ;;  %v1922_v4 = vpop.f32.mrf.mxu0  ;;  %v9851_v43 = vld [vmem:[#allocation7 + $0x46c] sm:$0xf0]  ;;  %v8128_v44 = vor.u32 %v9891_v30, %v8127_v29  ;;  %v7951_v0 = vld [vmem:[#allocation7 + $0x440] sm:$0xf]  ;;  %v9817_v29 = vld [vmem:[#allocation7 + $0x364] sm:$0xf] }
 0x153   :  { %2592 = vmatpush.bf16.msrb.mxu1 %v7560_v15  ;;  %2603 = vmatpush.bf16.msrb.mxu2 %v7468_v59  ;;  %v7596_v15 = vor.u32 %v9754_v55, %v7593_v6  ;;  %v7824_v59 = vor.u32 %v9815_v41, %v7823_v40  ;;  %v9775_v4 = vld [vmem:[#allocation7 + $0x20c] sm:$0xf0]  ;;  %v8016_v55 = vor.u32 %v9863_v49, %v8015_v53  ;;  %v9801_v6 = vld [vmem:[#allocation7 + $0x2e4] sm:$0xf]  ;;  %v7745_v40 = vld [vmem:[#allocation7 + $0x2b0] sm:$0xf0] }
 0x154   :  { %v7967_v41 = vld [vmem:[#allocation7 + $0x460] sm:$0xf]  ;;  %v9887_v53 = vld [vmem:[#allocation7 + $0x58c] sm:$0xf0]  ;;  %v7841_v30 = vld [vmem:[#allocation7 + $0x370] sm:$0xf0] }
 0x155   :  { %2615 = vmatpush.bf16.msrb.mxu3 %v7612_v52  ;;  %v7663_v52 = vld [vmem:[#allocation7 + $0x200] sm:$0xf]  ;;  %v9847_v1 = vld [vmem:[#allocation7 + $0x44c] sm:$0xf0] }
 0x156   :  { %2580 = vmatpush.bf16.msrb.mxu0 %v7416_v18  ;;  %v7695_v18 = vld [vmem:[#allocation7 + $0x240] sm:$0xf] }
 0x157   :  { %2593 = vmatpush.bf16.msrb.mxu1 %v7544_v33  ;;  %2604 = vmatpush.bf16.msrb.mxu2 %v7452_v8  ;;  %v7696_v39 = vor.u32 %v9783_v21, %v7695_v18  ;;  %v10564_v2 = vpop.f32.mrf.mxu1  ;;  %v7777_v8 = vld [vmem:[#allocation7 + $0x2f0] sm:$0xf0] }
 0x158   :  { %v7780_v18 = vor.u32 %v9801_v6, %v7777_v8  ;;  %v7905_v21 = vld [vmem:[#allocation7 + $0x3f0] sm:$0xf0] }
 0x159   :  { %2581 = vmatmul.bf16.vlgmr.msrb.gmra.mxu0 %v10547_v47  ;;  %2616 = vmatpush.bf16.msrb.mxu3 %v7596_v15  ;;  %v7664_v15 = vor.u32 %v9775_v4, %v7663_v52  ;;  %v8095_v4 = vld [vmem:[#allocation7 + $0x560] sm:$0xf] }
 0x15a   :  { %3406 = vmatpush.bf16.msra.mxu0 %v7776_v20  ;;  %2594 = vmatmul.bf16.vlgmr.msrb.gmra.mxu1 %v10550_v3  ;;  %v7436_v20 = vor.u32 %v9714_v13, %v7433_v14  ;;  %v10562_v33 = vpop.f32.mrf.mxu0  ;;  %v8143_v13 = vld [vmem:[#allocation7 + $0x5c0] sm:$0xf]  ;;  %v9895_v14 = vld [vmem:[#allocation7 + $0x5cc] sm:$0xf0] }
 0x15b   :  { %3419 = vmatpush.bf16.msra.mxu1 %v7904_v37  ;;  %v7561_v37 = vld [vmem:[#allocation7 + $0x138] sm:$0xf0]  ;;  %v8144_v28 = vor.u32 %v9895_v14, %v8143_v13  ;;  %v7713_v13 = vld [vmem:[#allocation7 + $0x270] sm:$0xf0]  ;;  %v7935_v14 = vld [vmem:[#allocation7 + $0x420] sm:$0xf] }
 0x15c   :  { %2605 = vmatpush.bf16.msrb.mxu2 %v7436_v20  ;;  %v7564_v48 = vor.u32 %v9746_v36, %v7561_v37  ;;  %v9833_v20 = vld [vmem:[#allocation7 + $0x3e4] sm:$0xf] }
 0x15d   :  { %2617 = vmatpush.bf16.msrb.mxu3 %v7580_v31  ;;  %v7908_v31 = vor.u32 %v9833_v20, %v7905_v21 }
 0x15e   :  { %3407 = vmatpush.bf16.msra.mxu0 %v7760_v38  ;;  %v7840_v38 = vor.u32 %v9819_v23, %v7839_v22  ;;  %v7761_v22 = vld [vmem:[#allocation7 + $0x2d0] sm:$0xf0]  ;;  %v7983_v23 = vld [vmem:[#allocation7 + $0x480] sm:$0xf] }
 0x15f   :  { %3420 = vmatpush.bf16.msra.mxu1 %v7888_v50  ;;  %v9742_v50 = vld [vmem:[#allocation7 + $0x10c] sm:$0xf]  ;;  %v1987_v34 = vpop.f32.mrf.mxu1  ;;  %v7984_v37 = vor.u32 %v9855_v27, %v7983_v23 }
 0x160   :  { %2606 = vmatpush.bf16.msrb.mxu2 %v7420_v24  ;;  %v7889_v24 = vld [vmem:[#allocation7 + $0x3d0] sm:$0xf0]  ;;  %v7919_v34 = vld [vmem:[#allocation7 + $0x400] sm:$0xf] }
 0x161   :  { %2618 = vmatpush.bf16.msrb.mxu3 %v7564_v48 }
 0x162   :  { %3408 = vmatpush.bf16.msra.mxu0 %v7744_v57  ;;  %v7545_v57 = vld [vmem:[#allocation7 + $0x118] sm:$0xf0] }
 0x163   :  { %3421 = vmatpush.bf16.msra.mxu1 %v7872_v7  ;;  %v7548_v7 = vor.u32 %v9742_v50, %v7545_v57  ;;  %2607 = vmatmul.bf16.vlgmr.msrb.gmra.mxu2 %v10547_v47  ;;  %v7792_v47 = vor.u32 %v9807_v17, %v7791_v16  ;;  %v1946_v49 = vpop.f32.mrf.mxu2  ;;  %v7968_v57 = vor.u32 %v9851_v43, %v7967_v41  ;;  %v9875_v41 = vld [vmem:[#allocation7 + $0x52c] sm:$0xf0] }
 0x164   :  { %3432 = vmatpush.bf16.msra.mxu2 %v8032_v45  ;;  %v8111_v45 = vld [vmem:[#allocation7 + $0x580] sm:$0xf] }
 0x165   :  { %2619 = vmatpush.bf16.msrb.mxu3 %v7548_v7  ;;  %v8112_v52 = vor.u32 %v9887_v53, %v8111_v45  ;;  %v7876_v7 = vor.u32 %v9825_v60, %v7873_v61  ;;  %v9813_v53 = vld [vmem:[#allocation7 + $0x344] sm:$0xf] }
 0x166   :  { %3409 = vmatpush.bf16.msra.mxu0 %v7728_v25  ;;  %v1974_v25 = vpop.f32.mrf.mxu0  ;;  %v9861_v61 = vld [vmem:[#allocation7 + $0x4c4] sm:$0xf] }
 0x167   :  { %3422 = vmatpush.bf16.msra.mxu1 %v7856_v19  ;;  %v8000_v19 = vor.u32 %v9859_v10, %v7999_v9  ;;  %v1934_v25 = vadd.f32 %v10559_v63, %v10555_v32  ;;  %v7952_v9 = vor.u32 %v9847_v1, %v7951_v0  ;;  %v9785_v10 = vld [vmem:[#allocation7 + $0x264] sm:$0xf] }
 0x168   :  { %3433 = vmatpush.bf16.msra.mxu2 %v8016_v55  ;;  %2620 = vmatmul.bf16.vlgmr.msrb.gmra.mxu3 %v10550_v3  ;;  %v10571_v3 = vld [vmem:[%s10790_s4] sm:$0xf]  ;;  %v9883_v55 = vld [vmem:[#allocation7 + $0x56c] sm:$0xf0]  ;;  %v7716_v27 = vor.u32 %v9785_v10, %v7713_v13  ;;  %v9897_v10 = vld [vmem:[#allocation7 + $0x5e4] sm:$0xf] }
 0x169   :  { %3445 = vmatpush.bf16.msra.mxu3 %v8160_v11  ;;  %v1131_v6 = vperm.slane %v10571_v3, 0  ;;  %v9821_v11 = vld [vmem:[#allocation7 + $0x384] sm:$0xf]  ;;  %v8096_v16 = vor.u32 %v9883_v55, %v8095_v4  ;;  %v1947_v17 = vadd.f32 %v1946_v49, %v1934_v25  ;;  %v7665_v13 = vld [vmem:[#allocation7 + $0x210] sm:$0xf0] }
 0x16a   :  { %3410 = vmatpush.bf16.msra.mxu0 %v7712_v42  ;;  %v9797_v42 = vld [vmem:[#allocation7 + $0x2c4] sm:$0xf] }
 0x16b   :  { %3423 = vmatpush.bf16.msra.mxu1 %v7840_v38  ;;  %v7764_v36 = vor.u32 %v9797_v42, %v7761_v22  ;;  %v9793_v38 = vld [vmem:[#allocation7 + $0x2a4] sm:$0xf]  ;;  %v9879_v42 = vld [vmem:[#allocation7 + $0x54c] sm:$0xf0]  ;;  %v1139_v20 = vadd.f32 %v1131_v6, %v10534_v54  ;;  %v1959_v63 = vpop.f32.mrf.mxu3  ;;  %v1948_v23 = vpop.f32.mrf.mxu2  ;;  %v8047_v6 = vld [vmem:[#allocation7 + $0x500] sm:$0xf] }
 0x16c   :  { %3434 = vmatpush.bf16.msra.mxu2 %v8000_v19  ;;  %v7748_v50 = vor.u32 %v9793_v38, %v7745_v40  ;;  %v8079_v19 = vld [vmem:[#allocation7 + $0x540] sm:$0xf]  ;;  %v1960_v22 = vadd.f32 %v1959_v63, %v1947_v17  ;;  %v9865_v38 = vld [vmem:[#allocation7 + $0x4e4] sm:$0xf]  ;;  %v1986_v23 = vadd.f32 %v10564_v2, %v10562_v33 }
 0x16d   :  { %3446 = vmatpush.bf16.msra.mxu3 %v8144_v28  ;;  %v8063_v40 = vld [vmem:[#allocation7 + $0x520] sm:$0xf]  ;;  %v9777_v49 = vld [vmem:[#allocation7 + $0x224] sm:$0xf] }
 0x16e   :  { %3411 = vmatpush.bf16.msra.mxu0 %v7696_v39  ;;  %v9829_v39 = vld [vmem:[#allocation7 + $0x3c4] sm:$0xf]  ;;  %v2119_v54 = vadd.f32 %v1960_v22, %v1139_v20  ;;  %v8064_v0 = vor.u32 %v9875_v41, %v8063_v40  ;;  %v1132_v20 = vperm.slane %v10571_v3, 1 }
 0x16f   :  { %3424 = vmatpush.bf16.msra.mxu1 %v7824_v59  ;;  %v7892_v48 = vor.u32 %v9829_v39, %v7889_v24  ;;  %v9789_v59 = vld [vmem:[#allocation7 + $0x284] sm:$0xf]  ;;  %v8033_v39 = vld [vmem:[#allocation7 + $0x4f0] sm:$0xf0]  ;;  %v7844_v24 = vor.u32 %v9817_v29, %v7841_v30 }
 0x170   :  { %3435 = vmatpush.bf16.msra.mxu2 %v7984_v37  ;;  %v8080_v37 = vor.u32 %v9879_v42, %v8079_v19  ;;  %v2123_v43 = vmax.f32 %v2119_v54, 0.0  ;;  %v9809_v55 = vld [vmem:[#allocation7 + $0x324] sm:$0xf]  ;;  %v8001_v19 = vld [vmem:[#allocation7 + $0x4b0] sm:$0xf0]  ;;  %v1140_v33 = vadd.f32 %v1132_v20, %v10536_v56 }
 0x171   :  { %3447 = vmatpush.bf16.msra.mxu3 %v8128_v44  ;;  %v9857_v17 = vld [vmem:[#allocation7 + $0x4a4] sm:$0xf]  ;;  %v8145_v29 = vld [vmem:[#allocation7 + $0x5d0] sm:$0xf0] }
 0x172   :  { %3412 = vmatpush.bf16.msra.mxu0 %v7680_v62  ;;  %v7729_v62 = vld [vmem:[#allocation7 + $0x290] sm:$0xf0]  ;;  %v9853_v54 = vld [vmem:[#allocation7 + $0x484] sm:$0xf] }
 0x173   :  { %3425 = vmatpush.bf16.msra.mxu1 %v7808_v12  ;;  %v7732_v8 = vor.u32 %v9789_v59, %v7729_v62  ;;  %v7857_v12 = vld [vmem:[#allocation7 + $0x390] sm:$0xf0]  ;;  %v10581_v59 = vpack.c.bf16 %v2123_v43, %v2123_v43  ;;  %v1998_v25 = vpop.f32.mrf.mxu2  ;;  %v9889_v43 = vld [vmem:[#allocation7 + $0x5a4] sm:$0xf] }
 0x174   :  { %3436 = vmatpush.bf16.msra.mxu2 %v7968_v57  ;;  %v7860_v21 = vor.u32 %v9821_v11, %v7857_v12  ;;  %v8036_v57 = vor.u32 %v9865_v38, %v8033_v39  ;;  %v8017_v62 = vld [vmem:[#allocation7 + $0x4d0] sm:$0xf0]  ;;  %v9773_v12 = vld [vmem:[#allocation7 + $0x204] sm:$0xf] }
 0x175   :  { %3448 = vmatpush.bf16.msra.mxu3 %v8112_v52  ;;  %v1961_v52 = vpop.f32.mrf.mxu3  ;;  %v8161_v11 = vld [vmem:[#allocation7 + $0x5f0] sm:$0xf0] }
 0x176   :  { %3413 = vmatpush.bf16.msra.mxu0 %v7664_v15  ;;  %v9843_v15 = vld [vmem:[#allocation7 + $0x42c] sm:$0xf0]  ;;  %v8164_v22 = vor.u32 %v9897_v10, %v8161_v11  ;;  %v7985_v38 = vld [vmem:[#allocation7 + $0x490] sm:$0xf0]  ;;  %v9792_v11 = vld [vmem:[#allocation7 + $0x294] sm:$0xf0] }
 0x177   :  { %3426 = vmatpush.bf16.msra.mxu1 %v7792_v47  ;;  %v10579_v32 = vpop.f32.mrf.mxu1  ;;  %v7936_v28 = vor.u32 %v9843_v15, %v7935_v14  ;;  %v9781_v47 = vld [vmem:[#allocation7 + $0x244] sm:$0xf]  ;;  %v8020_v14 = vor.u32 %v9861_v61, %v8017_v62  ;;  %v7783_v15 = vld [vmem:[#allocation7 + $0x2e8] sm:$0xf]  ;;  %v7969_v62 = vld [vmem:[#allocation7 + $0x470] sm:$0xf0] }
 0x178   :  { %3437 = vmatpush.bf16.msra.mxu2 %v7952_v9  ;;  %v7809_v9 = vld [vmem:[#allocation7 + $0x330] sm:$0xf0]  ;;  %v9849_v61 = vld [vmem:[#allocation7 + $0x464] sm:$0xf] }
 0x179   :  { %3449 = vmatpush.bf16.msra.mxu3 %v8096_v16  ;;  %3414 = vmatmul.bf16.vlgmr.msra.gmra.mxu0 %v10581_v59  ;;  %v9804_v16 = vld [vmem:[#allocation7 + $0x2f4] sm:$0xf0]  ;;  %v7812_v63 = vor.u32 %v9809_v55, %v7809_v9  ;;  %v8113_v52 = vld [vmem:[#allocation7 + $0x590] sm:$0xf0] }
 0x17a   :  { %3458 = vmatpush.bf16.msrb.mxu0 %v7780_v18  ;;  %v10576_v18 = vpop.f32.mrf.mxu0  ;;  %v7784_v30 = vor.u32 %v9804_v16, %v7783_v15  ;;  %v9832_v9 = vld [vmem:[#allocation7 + $0x3d4] sm:$0xf0]  ;;  %v9881_v15 = vld [vmem:[#allocation7 + $0x564] sm:$0xf]  ;;  %v8097_v16 = vld [vmem:[#allocation7 + $0x570] sm:$0xf0] }
 0x17b   :  { %3471 = vmatpush.bf16.msrb.mxu1 %v7908_v31  ;;  %v7697_v31 = vld [vmem:[#allocation7 + $0x250] sm:$0xf0]  ;;  %v2000_v41 = vpop.f32.mrf.mxu2 }
 0x17c   :  { %3438 = vmatpush.bf16.msra.mxu2 %v7936_v28  ;;  %v7700_v44 = vor.u32 %v9781_v47, %v7697_v31  ;;  %v7793_v28 = vld [vmem:[#allocation7 + $0x310] sm:$0xf0]  ;;  %v9893_v47 = vld [vmem:[#allocation7 + $0x5c4] sm:$0xf]  ;;  %v8004_v31 = vor.u32 %v9857_v17, %v8001_v19  ;;  %v9784_v41 = vld [vmem:[#allocation7 + $0x254] sm:$0xf0] }
 0x17d   :  { %3450 = vmatpush.bf16.msra.mxu3 %v8080_v37  ;;  %v9800_v37 = vld [vmem:[#allocation7 + $0x2d4] sm:$0xf0]  ;;  %v2011_v39 = vpop.f32.mrf.mxu3  ;;  %v8148_v40 = vor.u32 %v9893_v47, %v8145_v29  ;;  %v7937_v47 = vld [vmem:[#allocation7 + $0x430] sm:$0xf0]  ;;  %v8100_v29 = vor.u32 %v9881_v15, %v8097_v16  ;;  %v7831_v15 = vld [vmem:[#allocation7 + $0x348] sm:$0xf] }
 0x17e   :  { %3459 = vmatpush.bf16.msrb.mxu0 %v7764_v36  ;;  %v9839_v36 = vld [vmem:[#allocation7 + $0x40c] sm:$0xf0]  ;;  %v9816_v16 = vld [vmem:[#allocation7 + $0x354] sm:$0xf0] }
 0x17f   :  { %3472 = vmatpush.bf16.msrb.mxu1 %v7892_v48  ;;  %v7920_v45 = vor.u32 %v9839_v36, %v7919_v34  ;;  %v7825_v48 = vld [vmem:[#allocation7 + $0x350] sm:$0xf0]  ;;  %v2039_v1 = vpop.f32.mrf.mxu1  ;;  %v7767_v34 = vld [vmem:[#allocation7 + $0x2c8] sm:$0xf]  ;;  %v1999_v36 = vadd.f32 %v1998_v25, %v1986_v23 }
 0x180   :  { %v7828_v4 = vor.u32 %v9813_v53, %v7825_v48  ;;  %v7988_v53 = vor.u32 %v9853_v54, %v7985_v38  ;;  %v9885_v1 = vld [vmem:[#allocation7 + $0x584] sm:$0xf]  ;;  %v7735_v25 = vld [vmem:[#allocation7 + $0x288] sm:$0xf] }
 0x181   :  { %3439 = vmatpush.bf16.msra.mxu2 %v7920_v45  ;;  %3451 = vmatpush.bf16.msra.mxu3 %v8064_v0  ;;  %v2012_v2 = vadd.f32 %v2011_v39, %v1999_v36  ;;  %v7768_v45 = vor.u32 %v9800_v37, %v7767_v34  ;;  %v8081_v34 = vld [vmem:[#allocation7 + $0x550] sm:$0xf0]  ;;  %v1133_v36 = vperm.slane %v10571_v3, 2  ;;  %v2038_v37 = vadd.f32 %v10579_v32, %v10576_v18 }
 0x182   :  { %3460 = vmatpush.bf16.msrb.mxu0 %v7748_v50  ;;  %v7681_v50 = vld [vmem:[#allocation7 + $0x230] sm:$0xf0]  ;;  %v2026_v60 = vpop.f32.mrf.mxu0 }
 0x183   :  { %3473 = vmatpush.bf16.msrb.mxu1 %v7876_v7  ;;  %v9871_v7 = vld [vmem:[#allocation7 + $0x50c] sm:$0xf0]  ;;  %v2120_v48 = vadd.f32 %v2012_v2, %v1140_v33  ;;  %v9796_v60 = vld [vmem:[#allocation7 + $0x2b4] sm:$0xf0]  ;;  %v1141_v18 = vadd.f32 %v1133_v36, %v10541_v51  ;;  %v9869_v51 = vld [vmem:[#allocation7 + $0x504] sm:$0xf] }
 0x184   :  { %v8048_v42 = vor.u32 %v9871_v7, %v8047_v6  ;;  %v7972_v7 = vor.u32 %v9849_v61, %v7969_v62  ;;  %v9824_v33 = vld [vmem:[#allocation7 + $0x394] sm:$0xf0]  ;;  %v7687_v62 = vld [vmem:[#allocation7 + $0x228] sm:$0xf] }
 0x185   :  { %3484 = vmatpush.bf16.msrb.mxu2 %v8036_v57  ;;  %v9836_v57 = vld [vmem:[#allocation7 + $0x3f4] sm:$0xf0]  ;;  %v2124_v56 = vmax.f32 %v2120_v48, 0.0  ;;  %v2013_v10 = vpop.f32.mrf.mxu3  ;;  %v2050_v17 = vpop.f32.mrf.mxu2  ;;  %v9873_v48 = vld [vmem:[#allocation7 + $0x524] sm:$0xf] }
 0x186   :  { %3461 = vmatpush.bf16.msrb.mxu0 %v7732_v8  ;;  %v7684_v8 = vor.u32 %v9777_v49, %v7681_v50  ;;  %3452 = vmatpush.bf16.msra.mxu3 %v8048_v42  ;;  %v7751_v49 = vld [vmem:[#allocation7 + $0x2a8] sm:$0xf]  ;;  %v7736_v42 = vor.u32 %v9792_v11, %v7735_v25  ;;  %v2051_v2 = vadd.f32 %v2050_v17, %v2038_v37 }
 0x187   :  { %3474 = vmatpush.bf16.msrb.mxu1 %v7860_v21  ;;  %v9805_v21 = vld [vmem:[#allocation7 + $0x304] sm:$0xf]  ;;  %v7911_v50 = vld [vmem:[#allocation7 + $0x3e8] sm:$0xf]  ;;  %v10588_v55 = vpack.c.bf16 %v2124_v56, %v2124_v56  ;;  %v7752_v6 = vor.u32 %v9796_v60, %v7751_v49  ;;  %v8065_v49 = vld [vmem:[#allocation7 + $0x530] sm:$0xf0] }
 0x188   :  { %v9820_v56 = vld [vmem:[#allocation7 + $0x374] sm:$0xf0]  ;;  %v8068_v25 = vor.u32 %v9873_v48, %v8065_v49  ;;  %v8007_v37 = vld [vmem:[#allocation7 + $0x4a8] sm:$0xf]  ;;  %v9794_v48 = vld [vmem:[#allocation7 + $0x2ac] sm:$0xf] }
 0x189   :  { %3485 = vmatpush.bf16.msrb.mxu2 %v8020_v14  ;;  %v8116_v14 = vor.u32 %v9885_v1, %v8113_v52  ;;  %3427 = vmatmul.bf16.vlgmr.msra.gmra.mxu1 %v10588_v55  ;;  %v7753_v49 = vld [vmem:[#allocation7 + $0x2b8] sm:$0xf0] }
 0x18a   :  { %3462 = vmatpush.bf16.msrb.mxu0 %v7716_v27  ;;  %v7668_v27 = vor.u32 %v9773_v12, %v7665_v13  ;;  %3497 = vmatpush.bf16.msrb.mxu3 %v8164_v22  ;;  %v9845_v12 = vld [vmem:[#allocation7 + $0x444] sm:$0xf]  ;;  %v7953_v13 = vld [vmem:[#allocation7 + $0x450] sm:$0xf0]  ;;  %v9828_v22 = vld [vmem:[#allocation7 + $0x3b4] sm:$0xf0] }
 0x18b   :  { %3475 = vmatpush.bf16.msrb.mxu1 %v7844_v24  ;;  %v7796_v24 = vor.u32 %v9805_v21, %v7793_v28  ;;  %v7956_v20 = vor.u32 %v9845_v12, %v7953_v13  ;;  %v7879_v21 = vld [vmem:[#allocation7 + $0x3a8] sm:$0xf]  ;;  %v9841_v28 = vld [vmem:[#allocation7 + $0x424] sm:$0xf] }
 0x18c   :  { %v7880_v54 = vor.u32 %v9828_v22, %v7879_v21  ;;  %v7940_v39 = vor.u32 %v9841_v28, %v7937_v47  ;;  %v9802_v22 = vld [vmem:[#allocation7 + $0x2ec] sm:$0xf]  ;;  %v7832_v28 = vor.u32 %v9816_v16, %v7831_v15  ;;  %v7943_v16 = vld [vmem:[#allocation7 + $0x428] sm:$0xf] }
 0x18d   :  { %3486 = vmatpush.bf16.msrb.mxu2 %v8004_v31  ;;  %v9877_v31 = vld [vmem:[#allocation7 + $0x544] sm:$0xf] }
 0x18e   :  { %3463 = vmatpush.bf16.msrb.mxu0 %v7700_v44  ;;  %v8129_v44 = vld [vmem:[#allocation7 + $0x5b0] sm:$0xf0]  ;;  %3498 = vmatpush.bf16.msrb.mxu3 %v8148_v40  ;;  %v7863_v40 = vld [vmem:[#allocation7 + $0x388] sm:$0xf] }
 0x18f   :  { %3476 = vmatpush.bf16.msrb.mxu1 %v7828_v4  ;;  %v8132_v0 = vor.u32 %v9889_v43, %v8129_v44  ;;  %v7912_v4 = vor.u32 %v9836_v57, %v7911_v50  ;;  %v9837_v43 = vld [vmem:[#allocation7 + $0x404] sm:$0xf]  ;;  %v7921_v44 = vld [vmem:[#allocation7 + $0x410] sm:$0xf0]  ;;  %v2052_v50 = vpop.f32.mrf.mxu2  ;;  %v7864_v57 = vor.u32 %v9824_v33, %v7863_v40  ;;  %v7799_v33 = vld [vmem:[#allocation7 + $0x308] sm:$0xf] }
 0x190   :  { %v7924_v61 = vor.u32 %v9837_v43, %v7921_v44  ;;  %v9856_v44 = vld [vmem:[#allocation7 + $0x494] sm:$0xf0] }
 0x191   :  { %3487 = vmatpush.bf16.msrb.mxu2 %v7988_v53  ;;  %v2063_v53 = vpop.f32.mrf.mxu3 }
 0x192   :  { %3464 = vmatpush.bf16.msrb.mxu0 %v7684_v8  ;;  %v7895_v8 = vld [vmem:[#allocation7 + $0x3c8] sm:$0xf]  ;;  %3499 = vmatpush.bf16.msrb.mxu3 %v8132_v0  ;;  %v2064_v32 = vadd.f32 %v2063_v53, %v2051_v2  ;;  %v9808_v2 = vld [vmem:[#allocation7 + $0x314] sm:$0xf0]  ;;  %v7913_v53 = vld [vmem:[#allocation7 + $0x3f8] sm:$0xf0] }
 0x193   :  { %3477 = vmatpush.bf16.msrb.mxu1 %v7812_v63  ;;  %v7896_v19 = vor.u32 %v9832_v9, %v7895_v8  ;;  %v7719_v63 = vld [vmem:[#allocation7 + $0x268] sm:$0xf]  ;;  %v8049_v9 = vld [vmem:[#allocation7 + $0x510] sm:$0xf0] }
 0x194   :  { %v7847_v0 = vld [vmem:[#allocation7 + $0x368] sm:$0xf]  ;;  %v2121_v1 = vadd.f32 %v2064_v32, %v1141_v18  ;;  %v7800_v18 = vor.u32 %v9808_v2, %v7799_v33  ;;  %v7849_v33 = vld [vmem:[#allocation7 + $0x378] sm:$0xf0] }
 0x195   :  { %3488 = vmatpush.bf16.msrb.mxu2 %v7972_v7  ;;  %v9868_v7 = vld [vmem:[#allocation7 + $0x4f4] sm:$0xf0]  ;;  %v7848_v11 = vor.u32 %v9820_v56, %v7847_v0  ;;  %v7897_v0 = vld [vmem:[#allocation7 + $0x3d8] sm:$0xf0]  ;;  %v9790_v56 = vld [vmem:[#allocation7 + $0x28c] sm:$0xf] }
 0x196   :  { %3465 = vmatpush.bf16.msrb.mxu0 %v7668_v27  ;;  %v10592_v23 = vpop.f32.mrf.mxu0  ;;  %v9788_v27 = vld [vmem:[#allocation7 + $0x274] sm:$0xf0]  ;;  %3500 = vmatpush.bf16.msrb.mxu3 %v8116_v14  ;;  %v2125_v10 = vmax.f32 %v2121_v1, 0.0  ;;  %v7671_v14 = vld [vmem:[#allocation7 + $0x208] sm:$0xf] }
 0x197   :  { %3478 = vmatpush.bf16.msrb.mxu1 %v7796_v24  ;;  %v7720_v38 = vor.u32 %v9788_v27, %v7719_v63  ;;  %v7703_v24 = vld [vmem:[#allocation7 + $0x248] sm:$0xf]  ;;  %v8052_v63 = vor.u32 %v9869_v51, %v8049_v9  ;;  %v7785_v27 = vld [vmem:[#allocation7 + $0x2f8] sm:$0xf0]  ;;  %v9826_v51 = vld [vmem:[#allocation7 + $0x3ac] sm:$0xf] }
 0x198   :  { %v7704_v60 = vor.u32 %v9784_v41, %v7703_v24  ;;  %v10600_v17 = vpack.c.bf16 %v2125_v10, %v2125_v10  ;;  %v7788_v36 = vor.u32 %v9802_v22, %v7785_v27  ;;  %v7991_v41 = vld [vmem:[#allocation7 + $0x488] sm:$0xf]  ;;  %v7737_v1 = vld [vmem:[#allocation7 + $0x298] sm:$0xf0]  ;;  %v9786_v10 = vld [vmem:[#allocation7 + $0x26c] sm:$0xf] }
 0x199   :  { %3466 = vmatmul.bf16.vlgmr.msrb.gmra.mxu0 %v10581_v59  ;;  %3489 = vmatpush.bf16.msrb.mxu2 %v7956_v20  ;;  %v9864_v20 = vld [vmem:[#allocation7 + $0x4d4] sm:$0xf0]  ;;  %v2065_v21 = vpop.f32.mrf.mxu3  ;;  %v7992_v32 = vor.u32 %v9856_v44, %v7991_v41  ;;  %v7881_v9 = vld [vmem:[#allocation7 + $0x3b8] sm:$0xf0]  ;;  %v9782_v27 = vld [vmem:[#allocation7 + $0x24c] sm:$0xf] }
 0x19a   :  { %3510 = vmatpush.bf16.msra.mxu0 %v7784_v30  ;;  %v10594_v30 = vpop.f32.mrf.mxu1  ;;  %3501 = vmatpush.bf16.msrb.mxu3 %v8100_v29  ;;  %v7884_v15 = vor.u32 %v9826_v51, %v7881_v9  ;;  %v7865_v21 = vld [vmem:[#allocation7 + $0x398] sm:$0xf0]  ;;  %v9866_v41 = vld [vmem:[#allocation7 + $0x4ec] sm:$0xf] }
 0x19b   :  { %3523 = vmatpush.bf16.msra.mxu1 %v7912_v4  ;;  %v9780_v4 = vld [vmem:[#allocation7 + $0x234] sm:$0xf0]  ;;  %3440 = vmatmul.bf16.vlgmr.msra.gmra.mxu2 %v10600_v17 }
 0x19c   :  { %v7688_v12 = vor.u32 %v9780_v4, %v7687_v62  ;;  %3479 = vmatmul.bf16.vlgmr.msrb.gmra.mxu1 %v10588_v55  ;;  %v9830_v62 = vld [vmem:[#allocation7 + $0x3cc] sm:$0xf] }
 0x19d   :  { %3490 = vmatpush.bf16.msrb.mxu2 %v7940_v39  ;;  %v7769_v39 = vld [vmem:[#allocation7 + $0x2d8] sm:$0xf0] }
 0x19e   :  { %3511 = vmatpush.bf16.msra.mxu0 %v7768_v45  ;;  %v8084_v45 = vor.u32 %v9877_v31, %v8081_v34  ;;  %v2078_v52 = vpop.f32.mrf.mxu0  ;;  %v7815_v31 = vld [vmem:[#allocation7 + $0x328] sm:$0xf]  ;;  %v9812_v34 = vld [vmem:[#allocation7 + $0x334] sm:$0xf0] }
 0x19f   :  { %3524 = vmatpush.bf16.msra.mxu1 %v7896_v19  ;;  %v9776_v19 = vld [vmem:[#allocation7 + $0x214] sm:$0xf0]  ;;  %v7816_v24 = vor.u32 %v9812_v34, %v7815_v31  ;;  %v7927_v31 = vld [vmem:[#allocation7 + $0x408] sm:$0xf] }
 0x1a0   :  { %3502 = vmatpush.bf16.msrb.mxu3 %v8084_v45  ;;  %v7672_v47 = vor.u32 %v9776_v19, %v7671_v14  ;;  %v9834_v45 = vld [vmem:[#allocation7 + $0x3ec] sm:$0xf]  ;;  %v9840_v34 = vld [vmem:[#allocation7 + $0x414] sm:$0xf0] }
 0x1a1   :  { %3491 = vmatpush.bf16.msrb.mxu2 %v7924_v61  ;;  %v7916_v50 = vor.u32 %v9834_v45, %v7913_v53  ;;  %v9852_v61 = vld [vmem:[#allocation7 + $0x474] sm:$0xf0]  ;;  %v8151_v45 = vld [vmem:[#allocation7 + $0x5c8] sm:$0xf] }
 0x1a2   :  { %3512 = vmatpush.bf16.msra.mxu0 %v7752_v6  ;;  %v8039_v6 = vld [vmem:[#allocation7 + $0x4e8] sm:$0xf]  ;;  %v2091_v8 = vpop.f32.mrf.mxu1 }
 0x1a3   :  { %3525 = vmatpush.bf16.msra.mxu1 %v7880_v54  ;;  %v8040_v13 = vor.u32 %v9868_v7, %v8039_v6  ;;  %v9860_v54 = vld [vmem:[#allocation7 + $0x4b4] sm:$0xf0]  ;;  %v7900_v6 = vor.u32 %v9830_v62, %v7897_v0  ;;  %v7959_v7 = vld [vmem:[#allocation7 + $0x448] sm:$0xf]  ;;  %v7833_v62 = vld [vmem:[#allocation7 + $0x358] sm:$0xf0] }
 0x1a4   :  { %3503 = vmatpush.bf16.msrb.mxu3 %v8068_v25  ;;  %v8008_v40 = vor.u32 %v9860_v54, %v8007_v37  ;;  %v7740_v25 = vor.u32 %v9790_v56, %v7737_v1  ;;  %v9848_v8 = vld [vmem:[#allocation7 + $0x454] sm:$0xf0]  ;;  %v8167_v54 = vld [vmem:[#allocation7 + $0x5e8] sm:$0xf]  ;;  %v9862_v0 = vld [vmem:[#allocation7 + $0x4cc] sm:$0xf] }
 0x1a5   :  { %3536 = vmatpush.bf16.msra.mxu2 %v8040_v13  ;;  %v2102_v52 = vpop.f32.mrf.mxu2  ;;  %v2090_v13 = vadd.f32 %v10594_v30, %v10592_v23  ;;  %v7960_v14 = vor.u32 %v9848_v8, %v7959_v7  ;;  %v8025_v56 = vld [vmem:[#allocation7 + $0x4d8] sm:$0xf0]  ;;  %v8287_v1 = vld [vmem:[#allocation8 + $0xe0] sm:$0xf]  ;;  %v9892_v8 = vld [vmem:[#allocation7 + $0x5b4] sm:$0xf0] }
 0x1a6   :  { %3513 = vmatpush.bf16.msra.mxu0 %v7736_v42  ;;  %v8023_v42 = vld [vmem:[#allocation7 + $0x4c8] sm:$0xf]  ;;  %v8028_v9 = vor.u32 %v9862_v0, %v8025_v56  ;;  %v9915_v0 = vld [vmem:[#allocation8 + $0x6c] sm:$0xf0] }
 0x1a7   :  { %3526 = vmatpush.bf16.msra.mxu1 %v7864_v57  ;;  %v8024_v29 = vor.u32 %v9864_v20, %v8023_v42  ;;  %v7975_v57 = vld [vmem:[#allocation7 + $0x468] sm:$0xf]  ;;  %v2103_v19 = vadd.f32 %v2102_v52, %v2090_v13  ;;  %v9844_v20 = vld [vmem:[#allocation7 + $0x434] sm:$0xf0]  ;;  %v9931_v52 = vld [vmem:[#allocation8 + $0xec] sm:$0xf0] }
 0x1a8   :  { %3504 = vmatpush.bf16.msrb.mxu3 %v8052_v63  ;;  %v7976_v4 = vor.u32 %v9852_v61, %v7975_v57  ;;  %v9822_v63 = vld [vmem:[#allocation7 + $0x38c] sm:$0xf]  ;;  %v7944_v30 = vor.u32 %v9844_v20, %v7943_v16  ;;  %v8288_v13 = vor.u32 %v9931_v52, %v8287_v1  ;;  %v9927_v16 = vld [vmem:[#allocation8 + $0xcc] sm:$0xf0]  ;;  %v8119_v20 = vld [vmem:[#allocation7 + $0x588] sm:$0xf] }
 0x1a9   :  { %3537 = vmatpush.bf16.msra.mxu2 %v8024_v29  ;;  %v7868_v29 = vor.u32 %v9822_v63, %v7865_v21  ;;  %v9814_v61 = vld [vmem:[#allocation7 + $0x34c] sm:$0xf]  ;;  %v9888_v63 = vld [vmem:[#allocation7 + $0x594] sm:$0xf0]  ;;  %v8383_v52 = vld [vmem:[#allocation8 + $0x1a0] sm:$0xf] }
 0x1aa   :  { %3514 = vmatpush.bf16.msra.mxu0 %v7720_v38  ;;  %v9798_v38 = vld [vmem:[#allocation7 + $0x2cc] sm:$0xf]  ;;  %v7836_v7 = vor.u32 %v9814_v61, %v7833_v62  ;;  %v7961_v61 = vld [vmem:[#allocation7 + $0x458] sm:$0xf0]  ;;  %v8223_v62 = vld [vmem:[#allocation8 + $0x60] sm:$0xf] }
 0x1ab   :  { %3527 = vmatpush.bf16.msra.mxu1 %v7848_v11  ;;  %v7772_v43 = vor.u32 %v9798_v38, %v7769_v39  ;;  %v7721_v11 = vld [vmem:[#allocation7 + $0x278] sm:$0xf0]  ;;  %3492 = vmatmul.bf16.vlgmr.msrb.gmra.mxu2 %v10600_v17  ;;  %v2115_v22 = vpop.f32.mrf.mxu3  ;;  %v9900_v38 = vld [vmem:[#allocation7 + $0x5f4] sm:$0xf0]  ;;  %v9778_v39 = vld [vmem:[#allocation7 + $0x22c] sm:$0xf] }
 0x1ac   :  { %v7724_v42 = vor.u32 %v9786_v10, %v7721_v11  ;;  %v8168_v44 = vor.u32 %v9900_v38, %v8167_v54  ;;  %v9810_v10 = vld [vmem:[#allocation7 + $0x32c] sm:$0xf]  ;;  %v7817_v11 = vld [vmem:[#allocation7 + $0x338] sm:$0xf0]  ;;  %v9884_v54 = vld [vmem:[#allocation7 + $0x574] sm:$0xf0] }
 0x1ad   :  { %3538 = vmatpush.bf16.msra.mxu2 %v8008_v40  ;;  %v2104_v23 = vpop.f32.mrf.mxu2  ;;  %v9818_v40 = vld [vmem:[#allocation7 + $0x36c] sm:$0xf] }
 0x1ae   :  { %3515 = vmatpush.bf16.msra.mxu0 %v7704_v60  ;;  %v7756_v60 = vor.u32 %v9794_v48, %v7753_v49  ;;  %v7852_v49 = vor.u32 %v9818_v40, %v7849_v33  ;;  %v8255_v23 = vld [vmem:[#allocation8 + $0xa0] sm:$0xf]  ;;  %v7977_v33 = vld [vmem:[#allocation7 + $0x478] sm:$0xf0] }
 0x1af   :  { %3528 = vmatpush.bf16.msra.mxu1 %v7832_v28  ;;  %v7705_v28 = vld [vmem:[#allocation7 + $0x258] sm:$0xf0] }
 0x1b0   :  { %v7708_v37 = vor.u32 %v9782_v27, %v7705_v28  ;;  %v7801_v27 = vld [vmem:[#allocation7 + $0x318] sm:$0xf0]  ;;  %v9854_v28 = vld [vmem:[#allocation7 + $0x48c] sm:$0xf] }
 0x1b1   :  { %3539 = vmatpush.bf16.msra.mxu2 %v7992_v32  ;;  %v9774_v32 = vld [vmem:[#allocation7 + $0x20c] sm:$0xf] }
 0x1b2   :  { %3516 = vmatpush.bf16.msra.mxu0 %v7688_v12  ;;  %v1134_v12 = vperm.slane %v10571_v3, 3 }
 0x1b3   :  { %3529 = vmatpush.bf16.msra.mxu1 %v7816_v24  ;;  %v7689_v24 = vld [vmem:[#allocation7 + $0x238] sm:$0xf0]  ;;  %v2117_v57 = vpop.f32.mrf.mxu3 }
 0x1b4   :  { %v1142_v3 = vadd.f32 %v1134_v12, %v10544_v46  ;;  %v8041_v46 = vld [vmem:[#allocation7 + $0x4f8] sm:$0xf0]  ;;  %v7692_v48 = vor.u32 %v9778_v39, %v7689_v24  ;;  %v9858_v12 = vld [vmem:[#allocation7 + $0x4ac] sm:$0xf] }
 0x1b5   :  { %3540 = vmatpush.bf16.msra.mxu2 %v7976_v4  ;;  %v9850_v24 = vld [vmem:[#allocation7 + $0x46c] sm:$0xf] }
 0x1b6   :  { %3517 = vmatpush.bf16.msra.mxu0 %v7672_v47  ;;  %v2116_v47 = vadd.f32 %v2115_v22, %v2103_v19  ;;  %v2530_v51 = vpop.f32.mrf.mxu0  ;;  %v9806_v22 = vld [vmem:[#allocation7 + $0x30c] sm:$0xf] }
 0x1b7   :  { %3530 = vmatpush.bf16.msra.mxu1 %v7800_v18  ;;  %v9896_v18 = vld [vmem:[#allocation7 + $0x5d4] sm:$0xf0] }
 0x1b8   :  { %v8152_v4 = vor.u32 %v9896_v18, %v8151_v45  ;;  %v9959_v45 = vld [vmem:[#allocation8 + $0x1cc] sm:$0xf0]  ;;  %v2543_v18 = vpop.f32.mrf.mxu1 }
 0x1b9   :  { %3518 = vmatmul.bf16.vlgmr.msra.gmra.mxu0 %v10581_v59  ;;  %3541 = vmatpush.bf16.msra.mxu2 %v7960_v14  ;;  %v8009_v14 = vld [vmem:[#allocation7 + $0x4b8] sm:$0xf0] }
 0x1ba   :  { %3562 = vmatpush.bf16.msrb.mxu0 %v7788_v36  ;;  %3531 = vmatmul.bf16.vlgmr.msra.gmra.mxu1 %v10588_v55  ;;  %v2122_v36 = vadd.f32 %v2116_v47, %v1142_v3  ;;  %v8012_v21 = vor.u32 %v9858_v12, %v8009_v14  ;;  %v7993_v47 = vld [vmem:[#allocation7 + $0x498] sm:$0xf0]  ;;  %v9911_v12 = vld [vmem:[#allocation8 + $0x4c] sm:$0xf0] }
 0x1bb   :  { %3575 = vmatpush.bf16.msrb.mxu1 %v7916_v50  ;;  %v7673_v50 = vld [vmem:[#allocation7 + $0x218] sm:$0xf0]  ;;  %v7996_v39 = vor.u32 %v9854_v28, %v7993_v47  ;;  %v8191_v47 = vld [vmem:[#allocation8 + $0x20] sm:$0xf] }
 0x1bc   :  { %v2126_v2 = vmax.f32 %v2122_v36, 0.0  ;;  %v7804_v36 = vor.u32 %v9806_v22, %v7801_v27  ;;  %v9898_v22 = vld [vmem:[#allocation7 + $0x5ec] sm:$0xf]  ;;  %v8169_v27 = vld [vmem:[#allocation7 + $0x5f8] sm:$0xf0] }
 0x1bd   :  { %3542 = vmatpush.bf16.msra.mxu2 %v7944_v30  ;;  %v9923_v30 = vld [vmem:[#allocation8 + $0xac] sm:$0xf0] }
 0x1be   :  { %3563 = vmatpush.bf16.msrb.mxu0 %v7772_v43  ;;  %v7928_v43 = vor.u32 %v9840_v34, %v7927_v31  ;;  %v10611_v53 = vpack.c.bf16 %v2126_v2, %v2126_v2  ;;  %v8415_v31 = vld [vmem:[#allocation8 + $0x1e0] sm:$0xf]  ;;  %v9963_v34 = vld [vmem:[#allocation8 + $0x1ec] sm:$0xf0]  ;;  %v2532_v38 = vpop.f32.mrf.mxu0  ;;  %v8256_v40 = vor.u32 %v9923_v30, %v8255_v23 }
 0x1bf   :  { %3576 = vmatpush.bf16.msrb.mxu1 %v7900_v6  ;;  %v7676_v6 = vor.u32 %v9774_v32, %v7673_v50  ;;  %v8239_v2 = vld [vmem:[#allocation8 + $0x80] sm:$0xf]  ;;  %v7980_v32 = vor.u32 %v9850_v24, %v7977_v33  ;;  %v9846_v50 = vld [vmem:[#allocation7 + $0x44c] sm:$0xf]  ;;  %v9907_v23 = vld [vmem:[#allocation8 + $0x2c] sm:$0xf0] }
 0x1c0   :  { %3453 = vmatmul.bf16.vlgmr.msra.gmra.mxu3 %v10611_v53  ;;  %v9894_v24 = vld [vmem:[#allocation7 + $0x5cc] sm:$0xf]  ;;  %v8192_v33 = vor.u32 %v9907_v23, %v8191_v47  ;;  %v8241_v23 = vld [vmem:[#allocation8 + $0x90] sm:$0xf0] }
 0x1c1   :  { %3543 = vmatpush.bf16.msra.mxu2 %v7928_v43  ;;  %3549 = vmatpush.bf16.msra.mxu3 %v8168_v44  ;;  %v8399_v44 = vld [vmem:[#allocation8 + $0x1c0] sm:$0xf] }
 0x1c2   :  { %3564 = vmatpush.bf16.msrb.mxu0 %v7756_v60  ;;  %v8044_v60 = vor.u32 %v9866_v41, %v8041_v46  ;;  %v9919_v41 = vld [vmem:[#allocation8 + $0x8c] sm:$0xf0]  ;;  %v8416_v46 = vor.u32 %v9963_v34, %v8415_v31  ;;  %v8400_v56 = vor.u32 %v9959_v45, %v8399_v44  ;;  %v8351_v31 = vld [vmem:[#allocation8 + $0x160] sm:$0xf]  ;;  %v9932_v44 = vld [vmem:[#allocation8 + $0xf4] sm:$0xf0] }
 0x1c3   :  { %3577 = vmatpush.bf16.msrb.mxu1 %v7884_v15  ;;  %v8271_v15 = vld [vmem:[#allocation8 + $0xc0] sm:$0xf]  ;;  %v8240_v57 = vor.u32 %v9919_v41, %v8239_v2  ;;  %v9947_v34 = vld [vmem:[#allocation8 + $0x16c] sm:$0xf0] }
 0x1c4   :  { %3544 = vmatmul.bf16.vlgmr.msra.gmra.mxu2 %v10600_v17  ;;  %v8272_v3 = vor.u32 %v9927_v16, %v8271_v15  ;;  %v8367_v15 = vld [vmem:[#allocation8 + $0x180] sm:$0xf]  ;;  %v9951_v16 = vld [vmem:[#allocation8 + $0x18c] sm:$0xf0] }
 0x1c5   :  { %3588 = vmatpush.bf16.msrb.mxu2 %v8044_v60  ;;  %3550 = vmatpush.bf16.msra.mxu3 %v8152_v4  ;;  %v10616_v60 = vadd.f32 %v2543_v18, %v2530_v51  ;;  %v9955_v4 = vld [vmem:[#allocation8 + $0x1ac] sm:$0xf0]  ;;  %v9842_v51 = vld [vmem:[#allocation7 + $0x42c] sm:$0xf]  ;;  %v8368_v30 = vor.u32 %v9951_v16, %v8367_v15  ;;  %v8175_v2 = vld [vmem:[#allocation8] sm:$0xf]  ;;  %v2556_v18 = vpop.f32.mrf.mxu2 }
 0x1c6   :  { %3565 = vmatpush.bf16.msrb.mxu0 %v7740_v25  ;;  %v8135_v25 = vld [vmem:[#allocation7 + $0x5a8] sm:$0xf]  ;;  %v9903_v41 = vld [vmem:[#allocation8 + $0xc] sm:$0xf0]  ;;  %v9886_v15 = vld [vmem:[#allocation7 + $0x58c] sm:$0xf] }
 0x1c7   :  { %3578 = vmatpush.bf16.msrb.mxu1 %v7868_v29  ;;  %v8136_v19 = vor.u32 %v9892_v8, %v8135_v25  ;;  %v8120_v29 = vor.u32 %v9888_v63, %v8119_v20  ;;  %v7964_v8 = vor.u32 %v9846_v50, %v7961_v61  ;;  %v2545_v20 = vpop.f32.mrf.mxu1  ;;  %v8273_v61 = vld [vmem:[#allocation8 + $0xd0] sm:$0xf0] }
 0x1c9   :  { %3589 = vmatpush.bf16.msrb.mxu2 %v8028_v9  ;;  %3551 = vmatpush.bf16.msra.mxu3 %v8136_v19  ;;  %v8224_v9 = vor.u32 %v9915_v0, %v8223_v62  ;;  %v8055_v19 = vld [vmem:[#allocation7 + $0x508] sm:$0xf] }
 0x1ca   :  { %3566 = vmatpush.bf16.msrb.mxu0 %v7724_v42  ;;  %v7820_v42 = vor.u32 %v9810_v10, %v7817_v11  ;;  %v7945_v10 = vld [vmem:[#allocation7 + $0x438] sm:$0xf0]  ;;  %v8207_v11 = vld [vmem:[#allocation8 + $0x40] sm:$0xf] }
 0x1cb   :  { %3579 = vmatpush.bf16.msrb.mxu1 %v7852_v49  ;;  %v9880_v49 = vld [vmem:[#allocation7 + $0x554] sm:$0xf0]  ;;  %v7948_v63 = vor.u32 %v9842_v51, %v7945_v10  ;;  %v8208_v28 = vor.u32 %v9911_v12, %v8207_v11  ;;  %v8319_v10 = vld [vmem:[#allocation8 + $0x120] sm:$0xf]  ;;  %v9939_v11 = vld [vmem:[#allocation8 + $0x12c] sm:$0xf0] }
 0x1cc   :  { %v9928_v51 = vld [vmem:[#allocation8 + $0xd4] sm:$0xf0]  ;;  %v8320_v20 = vor.u32 %v9939_v11, %v8319_v10  ;;  %v9905_v11 = vld [vmem:[#allocation8 + $0x24] sm:$0xf] }
 0x1cd   :  { %3590 = vmatpush.bf16.msrb.mxu2 %v8012_v21  ;;  %3552 = vmatpush.bf16.msra.mxu3 %v8120_v29  ;;  %v9838_v21 = vld [vmem:[#allocation7 + $0x40c] sm:$0xf] }
 0x1ce   :  { %3567 = vmatpush.bf16.msrb.mxu0 %v7708_v37  ;;  %v8103_v37 = vld [vmem:[#allocation7 + $0x568] sm:$0xf] }
 0x1cf   :  { %3580 = vmatpush.bf16.msrb.mxu1 %v7836_v7  ;;  %v8104_v43 = vor.u32 %v9884_v54, %v8103_v37  ;;  %v9876_v7 = vld [vmem:[#allocation7 + $0x534] sm:$0xf0]  ;;  %v9929_v37 = vld [vmem:[#allocation8 + $0xe4] sm:$0xf]  ;;  %v8289_v54 = vld [vmem:[#allocation8 + $0xf0] sm:$0xf0] }
 0x1d0   :  { %3505 = vmatmul.bf16.vlgmr.msrb.gmra.mxu3 %v10611_v53  ;;  %v8292_v45 = vor.u32 %v9929_v37, %v8289_v54 }
 0x1d1   :  { %3591 = vmatpush.bf16.msrb.mxu2 %v7996_v39  ;;  %3553 = vmatpush.bf16.msra.mxu3 %v8104_v43  ;;  %v8352_v43 = vor.u32 %v9947_v34, %v8351_v31  ;;  %v9882_v34 = vld [vmem:[#allocation7 + $0x56c] sm:$0xf] }
 0x1d2   :  { %3568 = vmatpush.bf16.msrb.mxu0 %v7692_v48  ;;  %v8087_v48 = vld [vmem:[#allocation7 + $0x548] sm:$0xf] }
 0x1d3   :  { %3581 = vmatpush.bf16.msrb.mxu1 %v7820_v42  ;;  %v8088_v1 = vor.u32 %v9880_v49, %v8087_v48  ;;  %v9872_v42 = vld [vmem:[#allocation7 + $0x514] sm:$0xf0]  ;;  %v8335_v48 = vld [vmem:[#allocation8 + $0x140] sm:$0xf]  ;;  %v9943_v49 = vld [vmem:[#allocation8 + $0x14c] sm:$0xf0] }
 0x1d4   :  { %v8056_v29 = vor.u32 %v9872_v42, %v8055_v19  ;;  %v8263_v19 = vld [vmem:[#allocation8 + $0xa8] sm:$0xf]  ;;  %v9924_v42 = vld [vmem:[#allocation8 + $0xb4] sm:$0xf0] }
 0x1d5   :  { %3592 = vmatpush.bf16.msrb.mxu2 %v7980_v32  ;;  %3554 = vmatpush.bf16.msra.mxu3 %v8088_v1  ;;  %v2569_v32 = vpop.f32.mrf.mxu3  ;;  %v8137_v1 = vld [vmem:[#allocation7 + $0x5b8] sm:$0xf0]  ;;  %v8264_v37 = vor.u32 %v9924_v42, %v8263_v19  ;;  %v9870_v19 = vld [vmem:[#allocation7 + $0x50c] sm:$0xf] }
 0x1d6   :  { %3569 = vmatpush.bf16.msrb.mxu0 %v7676_v6  ;;  %v8071_v6 = vld [vmem:[#allocation7 + $0x528] sm:$0xf]  ;;  %v10620_v25 = vpop.f32.mrf.mxu0  ;;  %v10622_v62 = vadd.f32 %v2569_v32, %v2556_v18  ;;  %v9916_v18 = vld [vmem:[#allocation8 + $0x74] sm:$0xf0]  ;;  %v8057_v42 = vld [vmem:[#allocation7 + $0x518] sm:$0xf0] }
 0x1d7   :  { %3582 = vmatpush.bf16.msrb.mxu1 %v7804_v36  ;;  %v8072_v14 = vor.u32 %v9876_v7, %v8071_v6  ;;  %v8172_v36 = vor.u32 %v9898_v22, %v8169_v27  ;;  %v2595_v0 = vpop.f32.mrf.mxu1  ;;  %v8279_v7 = vld [vmem:[#allocation8 + $0xc8] sm:$0xf]  ;;  %v9935_v22 = vld [vmem:[#allocation8 + $0x10c] sm:$0xf0]  ;;  %v9917_v27 = vld [vmem:[#allocation8 + $0x84] sm:$0xf] }
 0x1d8   :  { %v8280_v16 = vor.u32 %v9928_v51, %v8279_v7  ;;  %v9912_v51 = vld [vmem:[#allocation8 + $0x54] sm:$0xf0] }
 0x1d9   :  { %3570 = vmatmul.bf16.vlgmr.msrb.gmra.mxu0 %v10581_v59  ;;  %3593 = vmatpush.bf16.msrb.mxu2 %v7964_v8  ;;  %v8336_v8 = vor.u32 %v9943_v49, %v8335_v48  ;;  %v8231_v49 = vld [vmem:[#allocation8 + $0x68] sm:$0xf] }
 0x1da   :  { %4016 = vmatpush.bf16.msra.mxu0 %v8288_v13  ;;  %3583 = vmatmul.bf16.vlgmr.msrb.gmra.mxu1 %v10588_v55  ;;  %v8384_v13 = vor.u32 %v9955_v4, %v8383_v52  ;;  %v8176_v52 = vor.u32 %v9903_v41, %v8175_v2  ;;  %v10625_v4 = vadd.f32 %v2595_v0, %v10620_v25  ;;  %v8121_v25 = vld [vmem:[#allocation7 + $0x598] sm:$0xf0]  ;;  %v8225_v41 = vld [vmem:[#allocation8 + $0x70] sm:$0xf0] }
 0x1db   :  { %4029 = vmatpush.bf16.msra.mxu1 %v8416_v46  ;;  %3555 = vmatpush.bf16.msra.mxu3 %v8072_v14  ;;  %v8295_v46 = vld [vmem:[#allocation8 + $0xe8] sm:$0xf]  ;;  %v8257_v14 = vld [vmem:[#allocation8 + $0xb0] sm:$0xf0]  ;;  %v8124_v47 = vor.u32 %v9886_v15, %v8121_v25  ;;  %v8232_v7 = vor.u32 %v9916_v18, %v8231_v49 }
 0x1dc   :  { %v8296_v6 = vor.u32 %v9932_v44, %v8295_v46  ;;  %v8407_v46 = vld [vmem:[#allocation8 + $0x1c8] sm:$0xf]  ;;  %v9878_v44 = vld [vmem:[#allocation7 + $0x54c] sm:$0xf]  ;;  %v8209_v0 = vld [vmem:[#allocation8 + $0x50] sm:$0xf0] }
 0x1dd   :  { %3594 = vmatpush.bf16.msrb.mxu2 %v7948_v63  ;;  %v8193_v15 = vld [vmem:[#allocation8 + $0x30] sm:$0xf0]  ;;  %v8375_v25 = vld [vmem:[#allocation8 + $0x188] sm:$0xf] }
 0x1de   :  { %4017 = vmatpush.bf16.msra.mxu0 %v8272_v3  ;;  %v7929_v3 = vld [vmem:[#allocation7 + $0x418] sm:$0xf0]  ;;  %v2584_v38 = vpop.f32.mrf.mxu0 }
 0x1df   :  { %4030 = vmatpush.bf16.msra.mxu1 %v8400_v56  ;;  %v7932_v39 = vor.u32 %v9838_v21, %v7929_v3  ;;  %3556 = vmatpush.bf16.msra.mxu3 %v8056_v29  ;;  %v9890_v56 = vld [vmem:[#allocation7 + $0x5ac] sm:$0xf]  ;;  %v8303_v21 = vld [vmem:[#allocation8 + $0x100] sm:$0xf]  ;;  %v2571_v3 = vpop.f32.mrf.mxu3  ;;  %v9964_v29 = vld [vmem:[#allocation8 + $0x1f4] sm:$0xf0]  ;;  %v2597_v31 = vpop.f32.mrf.mxu1 }
 0x1e0   :  { %v8140_v12 = vor.u32 %v9890_v56, %v8137_v1  ;;  %v8304_v54 = vor.u32 %v9935_v22, %v8303_v21  ;;  %v8247_v38 = vld [vmem:[#allocation8 + $0x88] sm:$0xf]  ;;  %v9956_v1 = vld [vmem:[#allocation8 + $0x1b4] sm:$0xf0]  ;;  %v8417_v21 = vld [vmem:[#allocation8 + $0x1f0] sm:$0xf0] }
 0x1e1   :  { %3595 = vmatpush.bf16.msrb.mxu2 %v7932_v39  ;;  %v9920_v39 = vld [vmem:[#allocation8 + $0x94] sm:$0xf0]  ;;  %v8391_v56 = vld [vmem:[#allocation8 + $0x1a8] sm:$0xf] }
 0x1e2   :  { %4018 = vmatpush.bf16.msra.mxu0 %v8256_v40  ;;  %v8153_v40 = vld [vmem:[#allocation7 + $0x5d8] sm:$0xf0]  ;;  %3557 = vmatmul.bf16.vlgmr.msra.gmra.mxu3 %v10611_v53  ;;  %v8248_v48 = vor.u32 %v9920_v39, %v8247_v38  ;;  %v8392_v10 = vor.u32 %v9956_v1, %v8391_v56  ;;  %v8199_v22 = vld [vmem:[#allocation8 + $0x28] sm:$0xf]  ;;  %v9957_v38 = vld [vmem:[#allocation8 + $0x1c4] sm:$0xf] }
 0x1e3   :  { %4031 = vmatpush.bf16.msra.mxu1 %v8384_v13  ;;  %3601 = vmatpush.bf16.msrb.mxu3 %v8172_v36  ;;  %v8156_v50 = vor.u32 %v9894_v24, %v8153_v40  ;;  %v9921_v13 = vld [vmem:[#allocation8 + $0xa4] sm:$0xf]  ;;  %v8105_v36 = vld [vmem:[#allocation7 + $0x578] sm:$0xf0]  ;;  %v8244_v24 = vor.u32 %v9917_v27, %v8241_v23  ;;  %v9908_v27 = vld [vmem:[#allocation8 + $0x34] sm:$0xf0] }
 0x1e4   :  { %3596 = vmatmul.bf16.vlgmr.msrb.gmra.mxu2 %v10600_v17  ;;  %v8260_v63 = vor.u32 %v9921_v13, %v8257_v14  ;;  %v8108_v2 = vor.u32 %v9882_v34, %v8105_v36  ;;  %v9901_v23 = vld [vmem:[#allocation8 + $0x4] sm:$0xf]  ;;  %v9948_v34 = vld [vmem:[#allocation8 + $0x174] sm:$0xf0]  ;;  %v9930_v36 = vld [vmem:[#allocation8 + $0xec] sm:$0xf] }
 0x1e5   :  { %4042 = vmatpush.bf16.msra.mxu2 %v8292_v45  ;;  %v8089_v45 = vld [vmem:[#allocation7 + $0x558] sm:$0xf0]  ;;  %v8401_v39 = vld [vmem:[#allocation8 + $0x1d0] sm:$0xf0] }
 0x1e6   :  { %4019 = vmatpush.bf16.msra.mxu0 %v8240_v57  ;;  %v9925_v57 = vld [vmem:[#allocation8 + $0xc4] sm:$0xf]  ;;  %v8404_v18 = vor.u32 %v9957_v38, %v8401_v39  ;;  %v8385_v56 = vld [vmem:[#allocation8 + $0x1b0] sm:$0xf0] }
 0x1e7   :  { %4032 = vmatpush.bf16.msra.mxu1 %v8368_v30  ;;  %3602 = vmatpush.bf16.msrb.mxu3 %v8156_v50  ;;  %v8423_v30 = vld [vmem:[#allocation8 + $0x1e8] sm:$0xf] }
 0x1e8   :  { %v8424_v40 = vor.u32 %v9964_v29, %v8423_v30  ;;  %v8177_v30 = vld [vmem:[#allocation8 + $0x10] sm:$0xf0]  ;;  %v8359_v29 = vld [vmem:[#allocation8 + $0x168] sm:$0xf] }
 0x1ea   :  { %4020 = vmatpush.bf16.msra.mxu0 %v8224_v9  ;;  %v8276_v9 = vor.u32 %v9925_v57, %v8273_v61  ;;  %v9909_v57 = vld [vmem:[#allocation8 + $0x44] sm:$0xf]  ;;  %v8092_v61 = vor.u32 %v9878_v44, %v8089_v45  ;;  %v8360_v44 = vor.u32 %v9948_v34, %v8359_v29  ;;  %v10027_v29 = vld [vmem:[#allocation8 + $0x3ec] sm:$0xf0]  ;;  %v8353_v34 = vld [vmem:[#allocation8 + $0x170] sm:$0xf0] }
 0x1eb   :  { %4033 = vmatpush.bf16.msra.mxu1 %v8352_v43  ;;  %3603 = vmatpush.bf16.msrb.mxu3 %v8140_v12  ;;  %v9960_v43 = vld [vmem:[#allocation8 + $0x1d4] sm:$0xf0] }
 0x1ec   :  { %4043 = vmatpush.bf16.msra.mxu2 %v8276_v9  ;;  %v8408_v50 = vor.u32 %v9960_v43, %v8407_v46  ;;  %v8212_v9 = vor.u32 %v9909_v57, %v8209_v0  ;;  %v10629_v12 = vld [vmem:[#allocation1] sm:$0xff]  ;;  %v8543_v46 = vld [vmem:[#allocation8 + $0x2e0] sm:$0xf]  ;;  %v9995_v43 = vld [vmem:[#allocation8 + $0x2ec] sm:$0xf0] }
 0x1ed   :  { %v8281_v57 = vld [vmem:[#allocation8 + $0xd8] sm:$0xf0]  ;;  %v9953_v0 = vld [vmem:[#allocation8 + $0x1a4] sm:$0xf]  ;;  %v8544_v1 = vor.u32 %v9995_v43, %v8543_v46  ;;  %v10023_v46 = vld [vmem:[#allocation8 + $0x3cc] sm:$0xf0] }
 0x1ee   :  { %4021 = vmatpush.bf16.msra.mxu0 %v8208_v28  ;;  %v2558_v28 = vpop.f32.mrf.mxu2  ;;  %v9941_v43 = vld [vmem:[#allocation8 + $0x144] sm:$0xf] }
 0x1ef   :  { %4034 = vmatpush.bf16.msra.mxu1 %v8336_v8  ;;  %3604 = vmatpush.bf16.msrb.mxu3 %v8124_v47  ;;  %v8215_v8 = vld [vmem:[#allocation8 + $0x48] sm:$0xf]  ;;  %v8196_v28 = vor.u32 %v9905_v11, %v8193_v15  ;;  %v8060_v47 = vor.u32 %v9870_v19, %v8057_v42  ;;  %v9922_v11 = vld [vmem:[#allocation8 + $0xac] sm:$0xf]  ;;  %v8369_v15 = vld [vmem:[#allocation8 + $0x190] sm:$0xf0] }
 0x1f0   :  { %4044 = vmatpush.bf16.msra.mxu2 %v8260_v63  ;;  %v9961_v63 = vld [vmem:[#allocation8 + $0x1e4] sm:$0xf]  ;;  %v8511_v19 = vld [vmem:[#allocation8 + $0x2a0] sm:$0xf] }
 0x1f1   :  { %v8420_v31 = vor.u32 %v9961_v63, %v8417_v21  ;;  %v10638_v42 = vld [vmem:[#allocation1 + $0x9] sm:$0xff]  ;;  %v9987_v63 = vld [vmem:[#allocation8 + $0x2ac] sm:$0xf0] }
 0x1f2   :  { %4022 = vmatpush.bf16.msra.mxu0 %v8192_v33  ;;  %v9913_v33 = vld [vmem:[#allocation8 + $0x64] sm:$0xf] }
 0x1f3   :  { %4035 = vmatpush.bf16.msra.mxu1 %v8320_v20  ;;  %v8228_v32 = vor.u32 %v9913_v33, %v8225_v41  ;;  %3605 = vmatpush.bf16.msrb.mxu3 %v8108_v2  ;;  %v8216_v20 = vor.u32 %v9912_v51, %v8215_v8  ;;  %v8180_v33 = vor.u32 %v9901_v23, %v8177_v30  ;;  %v2621_v2 = vpop.f32.mrf.mxu3  ;;  %v8327_v51 = vld [vmem:[#allocation8 + $0x128] sm:$0xf]  ;;  %v8249_v23 = vld [vmem:[#allocation8 + $0x98] sm:$0xf0]  ;;  %v8671_v30 = vld [vmem:[#allocation8 + $0x3e0] sm:$0xf] }
 0x1f4   :  { %4045 = vmatpush.bf16.msra.mxu2 %v8244_v24  ;;  %v8183_v24 = vld [vmem:[#allocation8 + $0x8] sm:$0xf] }
 0x1f6   :  { %4023 = vmatpush.bf16.msra.mxu0 %v8176_v52  ;;  %v9874_v52 = vld [vmem:[#allocation7 + $0x52c] sm:$0xf]  ;;  %v2608_v13 = vpop.f32.mrf.mxu2 }
 0x1f7   :  { %4036 = vmatpush.bf16.msra.mxu1 %v8304_v54  ;;  %3606 = vmatpush.bf16.msrb.mxu3 %v8092_v61  ;;  %v8200_v54 = vor.u32 %v9908_v27, %v8199_v22  ;;  %v10632_v49 = vadd.f32 %v2621_v2, %v2608_v13  ;;  %v8265_v13 = vld [vmem:[#allocation8 + $0xb8] sm:$0xf0]  ;;  %v8311_v27 = vld [vmem:[#allocation8 + $0x108] sm:$0xf] }
 0x1f8   :  { %4046 = vmatpush.bf16.msra.mxu2 %v8228_v32  ;;  %v9944_v32 = vld [vmem:[#allocation8 + $0x154] sm:$0xf0]  ;;  %v8268_v22 = vor.u32 %v9922_v11, %v8265_v13  ;;  %v8233_v2 = vld [vmem:[#allocation8 + $0x78] sm:$0xf0] }
 0x1f9   :  { %4024 = vmatmul.bf16.vlgmr.msra.gmra.mxu0 %v10629_v12 }
 0x1fa   :  { %4068 = vmatpush.bf16.msrb.mxu0 %v8296_v6  ;;  %v8073_v6 = vld [vmem:[#allocation7 + $0x538] sm:$0xf0]  ;;  %4037 = vmatmul.bf16.vlgmr.msra.gmra.mxu1 %v10638_v42 }
 0x1fb   :  { %4081 = vmatpush.bf16.msrb.mxu1 %v8424_v40  ;;  %v8076_v14 = vor.u32 %v9874_v52, %v8073_v6  ;;  %v9904_v40 = vld [vmem:[#allocation8 + $0x14] sm:$0xf0]  ;;  %v8527_v52 = vld [vmem:[#allocation8 + $0x2c0] sm:$0xf]  ;;  %v9991_v6 = vld [vmem:[#allocation8 + $0x2cc] sm:$0xf0] }
 0x1fc   :  { %4047 = vmatpush.bf16.msra.mxu2 %v8212_v9  ;;  %v8184_v61 = vor.u32 %v9904_v40, %v8183_v24  ;;  %v8388_v9 = vor.u32 %v9953_v0, %v8385_v56  ;;  %v8672_v24 = vor.u32 %v10027_v29, %v8671_v30  ;;  %v9910_v0 = vld [vmem:[#allocation8 + $0x4c] sm:$0xf]  ;;  %v8217_v56 = vld [vmem:[#allocation8 + $0x58] sm:$0xf0] }
 0x1fd   :  { %3607 = vmatpush.bf16.msrb.mxu3 %v8076_v14  ;;  %v9949_v14 = vld [vmem:[#allocation8 + $0x184] sm:$0xf] }
 0x1fe   :  { %4069 = vmatpush.bf16.msrb.mxu0 %v8280_v16  ;;  %v9952_v16 = vld [vmem:[#allocation8 + $0x194] sm:$0xf0]  ;;  %v2610_v41 = vpop.f32.mrf.mxu2 }
 0x1ff   :  { %4082 = vmatpush.bf16.msrb.mxu1 %v8408_v50  ;;  %v8376_v3 = vor.u32 %v9952_v16, %v8375_v25  ;;  %v9926_v50 = vld [vmem:[#allocation8 + $0xcc] sm:$0xf]  ;;  %v10636_v25 = vpop.f32.mrf.mxu0  ;;  %v8528_v16 = vor.u32 %v9991_v6, %v8527_v52  ;;  %v8655_v41 = vld [vmem:[#allocation8 + $0x3c0] sm:$0xf]  ;;  %v10019_v52 = vld [vmem:[#allocation8 + $0x3ac] sm:$0xf0] }
 0x200   :  { %4048 = vmatpush.bf16.msra.mxu2 %v8196_v28  ;;  %v8284_v8 = vor.u32 %v9926_v50, %v8281_v57  ;;  %v9936_v28 = vld [vmem:[#allocation8 + $0x114] sm:$0xf0]  ;;  %v8656_v57 = vor.u32 %v10023_v46, %v8655_v41  ;;  %v9937_v6 = vld [vmem:[#allocation8 + $0x124] sm:$0xf]  ;;  %v8431_v41 = vld [vmem:[#allocation8 + $0x200] sm:$0xf] }
 0x201   :  { %3608 = vmatpush.bf16.msrb.mxu3 %v8060_v47  ;;  %v9918_v47 = vld [vmem:[#allocation8 + $0x8c] sm:$0xf]  ;;  %v8312_v38 = vor.u32 %v9936_v28, %v8311_v27  ;;  %v9967_v46 = vld [vmem:[#allocation8 + $0x20c] sm:$0xf0] }
 0x202   :  { %4070 = vmatpush.bf16.msrb.mxu0 %v8264_v37  ;;  %v8297_v37 = vld [vmem:[#allocation8 + $0xf8] sm:$0xf0]  ;;  %v8252_v39 = vor.u32 %v9918_v47, %v8249_v23  ;;  %v9962_v28 = vld [vmem:[#allocation8 + $0x1ec] sm:$0xf]  ;;  %v8447_v47 = vld [vmem:[#allocation8 + $0x220] sm:$0xf] }
 0x203   :  { %4083 = vmatpush.bf16.msrb.mxu1 %v8392_v10  ;;  %v8300_v45 = vor.u32 %v9930_v36, %v8297_v37  ;;  %v9940_v10 = vld [vmem:[#allocation8 + $0x134] sm:$0xf0]  ;;  %v8512_v36 = vor.u32 %v9987_v63, %v8511_v19  ;;  %v8495_v37 = vld [vmem:[#allocation8 + $0x280] sm:$0xf]  ;;  %v9933_v63 = vld [vmem:[#allocation8 + $0x104] sm:$0xf] }
 0x204   :  { %3609 = vmatmul.bf16.vlgmr.msrb.gmra.mxu3 %v10611_v53  ;;  %4049 = vmatpush.bf16.msra.mxu2 %v8180_v33  ;;  %v8328_v21 = vor.u32 %v9940_v10, %v8327_v51  ;;  %v9914_v33 = vld [vmem:[#allocation8 + $0x6c] sm:$0xf]  ;;  %v8463_v51 = vld [vmem:[#allocation8 + $0x240] sm:$0xf]  ;;  %v8220_v10 = vor.u32 %v9910_v0, %v8217_v56  ;;  %v9971_v23 = vld [vmem:[#allocation8 + $0x22c] sm:$0xf0] }
 0x205   :  { %4055 = vmatpush.bf16.msra.mxu3 %v8420_v31  ;;  %v9945_v31 = vld [vmem:[#allocation8 + $0x164] sm:$0xf]  ;;  %v8236_v50 = vor.u32 %v9914_v33, %v8233_v2  ;;  %v9958_v33 = vld [vmem:[#allocation8 + $0x1cc] sm:$0xf]  ;;  %v8409_v2 = vld [vmem:[#allocation8 + $0x1d8] sm:$0xf0] }
 0x206   :  { %4071 = vmatpush.bf16.msrb.mxu0 %v8248_v48  ;;  %v8343_v48 = vld [vmem:[#allocation8 + $0x148] sm:$0xf]  ;;  %v8356_v40 = vor.u32 %v9945_v31, %v8353_v34  ;;  %v10642_v19 = vpop.f32.mrf.mxu1  ;;  %v9902_v34 = vld [vmem:[#allocation8 + $0xc] sm:$0xf]  ;;  %v8783_v0 = vld [vmem:[#allocation8 + $0x4c0] sm:$0xf] }
 0x207   :  { %4084 = vmatpush.bf16.msrb.mxu1 %v8376_v3  ;;  %4050 = vmatmul.bf16.vlgmr.msra.gmra.mxu2 %v10629_v12  ;;  %v8372_v3 = vor.u32 %v9949_v14, %v8369_v15  ;;  %v9906_v14 = vld [vmem:[#allocation8 + $0x2c] sm:$0xf]  ;;  %v8201_v15 = vld [vmem:[#allocation8 + $0x38] sm:$0xf0]  ;;  %v10055_v56 = vld [vmem:[#allocation8 + $0x4cc] sm:$0xf0] }
 0x208   :  { %4094 = vmatpush.bf16.msrb.mxu2 %v8300_v45  ;;  %v3417_v45 = vpop.f32.mrf.mxu0  ;;  %v8204_v30 = vor.u32 %v9906_v14, %v8201_v15  ;;  %v10003_v15 = vld [vmem:[#allocation8 + $0x32c] sm:$0xf0] }
 0x209   :  { %4056 = vmatpush.bf16.msra.mxu3 %v8404_v18  ;;  %v8479_v18 = vld [vmem:[#allocation8 + $0x260] sm:$0xf]  ;;  %v8545_v45 = vld [vmem:[#allocation8 + $0x2f0] sm:$0xf0] }
 0x20a   :  { %4072 = vmatpush.bf16.msrb.mxu0 %v8232_v7  ;;  %v8344_v7 = vor.u32 %v9944_v32, %v8343_v48  ;;  %v9979_v32 = vld [vmem:[#allocation8 + $0x26c] sm:$0xf0] }
 0x20b   :  { %4085 = vmatpush.bf16.msrb.mxu1 %v8360_v44  ;;  %v8337_v44 = vld [vmem:[#allocation8 + $0x150] sm:$0xf0] }
 0x20c   :  { %4095 = vmatpush.bf16.msrb.mxu2 %v8284_v8  ;;  %v8480_v8 = vor.u32 %v9979_v32, %v8479_v18  ;;  %v8591_v32 = vld [vmem:[#allocation8 + $0x340] sm:$0xf] }
 0x20d   :  { %4057 = vmatpush.bf16.msra.mxu3 %v8388_v9  ;;  %v9975_v9 = vld [vmem:[#allocation8 + $0x24c] sm:$0xf0] }
 0x20e   :  { %4073 = vmatpush.bf16.msrb.mxu0 %v8216_v20  ;;  %v2623_v20 = vpop.f32.mrf.mxu3  ;;  %v8464_v27 = vor.u32 %v9975_v9, %v8463_v51  ;;  %v9989_v51 = vld [vmem:[#allocation8 + $0x2c4] sm:$0xf]  ;;  %v8529_v9 = vld [vmem:[#allocation8 + $0x2d0] sm:$0xf0] }
 0x20f   :  { %4086 = vmatpush.bf16.msrb.mxu1 %v8344_v7  ;;  %v8321_v7 = vld [vmem:[#allocation8 + $0x130] sm:$0xf0]  ;;  %v10015_v20 = vld [vmem:[#allocation8 + $0x38c] sm:$0xf0] }
 0x210   :  { %4096 = vmatpush.bf16.msrb.mxu2 %v8268_v22  ;;  %v8324_v13 = vor.u32 %v9937_v6, %v8321_v7  ;;  %v9954_v6 = vld [vmem:[#allocation8 + $0x1ac] sm:$0xf]  ;;  %v8393_v7 = vld [vmem:[#allocation8 + $0x1b8] sm:$0xf0] }
 0x211   :  { %4058 = vmatpush.bf16.msra.mxu3 %v8372_v3  ;;  %v8425_v3 = vld [vmem:[#allocation8 + $0x1f8] sm:$0xf0]  ;;  %v8396_v14 = vor.u32 %v9954_v6, %v8393_v7 }
 0x212   :  { %4074 = vmatpush.bf16.msrb.mxu0 %v8200_v54  ;;  %v9983_v54 = vld [vmem:[#allocation8 + $0x28c] sm:$0xf0] }
 0x213   :  { %4087 = vmatpush.bf16.msrb.mxu1 %v8328_v21  ;;  %v8496_v48 = vor.u32 %v9983_v54, %v8495_v37  ;;  %v8305_v21 = vld [vmem:[#allocation8 + $0x110] sm:$0xf0]  ;;  %v8607_v37 = vld [vmem:[#allocation8 + $0x360] sm:$0xf]  ;;  %v8428_v54 = vor.u32 %v9962_v28, %v8425_v3  ;;  %v9985_v28 = vld [vmem:[#allocation8 + $0x2a4] sm:$0xf] }
 0x214   :  { %4097 = vmatpush.bf16.msrb.mxu2 %v8252_v39  ;;  %v8308_v31 = vor.u32 %v9933_v63, %v8305_v21  ;;  %v8799_v39 = vld [vmem:[#allocation8 + $0x4e0] sm:$0xf]  ;;  %v9950_v63 = vld [vmem:[#allocation8 + $0x18c] sm:$0xf]  ;;  %v8377_v21 = vld [vmem:[#allocation8 + $0x198] sm:$0xf0] }
 0x215   :  { %4059 = vmatpush.bf16.msra.mxu3 %v8356_v40  ;;  %v8448_v40 = vor.u32 %v9971_v23, %v8447_v47  ;;  %v8513_v3 = vld [vmem:[#allocation8 + $0x2b0] sm:$0xf0] }
 0x216   :  { %4075 = vmatpush.bf16.msrb.mxu0 %v8184_v61  ;;  %v8340_v61 = vor.u32 %v9941_v43, %v8337_v44  ;;  %v10644_v22 = vpop.f32.mrf.mxu0  ;;  %v9993_v44 = vld [vmem:[#allocation8 + $0x2e4] sm:$0xf] }
 0x217   :  { %4088 = vmatpush.bf16.msrb.mxu1 %v8312_v38  ;;  %v10011_v38 = vld [vmem:[#allocation8 + $0x36c] sm:$0xf0] }
 0x218   :  { %4098 = vmatpush.bf16.msrb.mxu2 %v8236_v50  ;;  %v3430_v50 = vpop.f32.mrf.mxu1 }
 0x219   :  { %4076 = vmatmul.bf16.vlgmr.msrb.gmra.mxu0 %v10629_v12  ;;  %4060 = vmatpush.bf16.msra.mxu3 %v8340_v61  ;;  %v10007_v61 = vld [vmem:[#allocation8 + $0x34c] sm:$0xf0]  ;;  %v8345_v50 = vld [vmem:[#allocation8 + $0x158] sm:$0xf0] }
 0x21a   :  { %4901 = vmatpush.bf16.msra.mxu0 %v8544_v1  ;;  %v8639_v1 = vld [vmem:[#allocation8 + $0x3a0] sm:$0xf]  ;;  %4089 = vmatmul.bf16.vlgmr.msrb.gmra.mxu1 %v10638_v42 }
 0x21b   :  { %4914 = vmatpush.bf16.msra.mxu1 %v8672_v24  ;;  %v8640_v11 = vor.u32 %v10019_v52, %v8639_v1  ;;  %v10059_v24 = vld [vmem:[#allocation8 + $0x4ec] sm:$0xf0]  ;;  %v8432_v52 = vor.u32 %v9967_v46, %v8431_v41 }
 0x21c   :  { %4099 = vmatpush.bf16.msrb.mxu2 %v8220_v10  ;;  %v8800_v18 = vor.u32 %v10059_v24, %v8799_v39  ;;  %v8592_v10 = vor.u32 %v10007_v61, %v8591_v32  ;;  %v9946_v39 = vld [vmem:[#allocation8 + $0x16c] sm:$0xf]  ;;  %v8516_v24 = vor.u32 %v9985_v28, %v8513_v3  ;;  %v8703_v28 = vld [vmem:[#allocation8 + $0x420] sm:$0xf]  ;;  %v10035_v3 = vld [vmem:[#allocation8 + $0x42c] sm:$0xf0] }
 0x21d   :  { %4061 = vmatpush.bf16.msra.mxu3 %v8324_v13  ;;  %v8575_v13 = vld [vmem:[#allocation8 + $0x320] sm:$0xf]  ;;  %v9942_v32 = vld [vmem:[#allocation8 + $0x14c] sm:$0xf] }
 0x21e   :  { %4902 = vmatpush.bf16.msra.mxu0 %v8528_v16  ;;  %v8623_v16 = vld [vmem:[#allocation8 + $0x380] sm:$0xf]  ;;  %v3469_v1 = vpop.f32.mrf.mxu0  ;;  %v8576_v47 = vor.u32 %v10003_v15, %v8575_v13  ;;  %v10651_v61 = vpop.f32.mrf.mxu2  ;;  %v8348_v7 = vor.u32 %v9942_v32, %v8345_v50  ;;  %v9938_v13 = vld [vmem:[#allocation8 + $0x12c] sm:$0xf] }
 0x21f   :  { %4915 = vmatpush.bf16.msra.mxu1 %v8656_v57  ;;  %v8624_v29 = vor.u32 %v10015_v20, %v8623_v16  ;;  %v8412_v57 = vor.u32 %v9958_v33, %v8409_v2  ;;  %v8767_v16 = vld [vmem:[#allocation8 + $0x4a0] sm:$0xf]  ;;  %v10051_v20 = vld [vmem:[#allocation8 + $0x4ac] sm:$0xf0]  ;;  %v8497_v33 = vld [vmem:[#allocation8 + $0x290] sm:$0xf0] }
 0x220   :  { %4100 = vmatpush.bf16.msrb.mxu2 %v8204_v30  ;;  %v8768_v23 = vor.u32 %v10051_v20, %v8767_v16  ;;  %v8559_v30 = vld [vmem:[#allocation8 + $0x300] sm:$0xf]  ;;  %v9973_v16 = vld [vmem:[#allocation8 + $0x244] sm:$0xf]  ;;  %v8465_v20 = vld [vmem:[#allocation8 + $0x250] sm:$0xf0] }
 0x221   :  { %4062 = vmatpush.bf16.msra.mxu3 %v8308_v31  ;;  %v10649_v31 = vpop.f32.mrf.mxu1  ;;  %v8911_v50 = vld [vmem:[#allocation8 + $0x5c0] sm:$0xf] }
 0x222   :  { %4903 = vmatpush.bf16.msra.mxu0 %v8512_v36  ;;  %v8185_v36 = vld [vmem:[#allocation8 + $0x18] sm:$0xf0] }
 0x223   :  { %4916 = vmatpush.bf16.msra.mxu1 %v8640_v11  ;;  %v8188_v43 = vor.u32 %v9902_v34, %v8185_v36  ;;  %v8784_v11 = vor.u32 %v10055_v56, %v8783_v0  ;;  %v8380_v34 = vor.u32 %v9950_v63, %v8377_v21  ;;  %v8751_v36 = vld [vmem:[#allocation8 + $0x480] sm:$0xf]  ;;  %v9977_v0 = vld [vmem:[#allocation8 + $0x264] sm:$0xf]  ;;  %v8481_v56 = vld [vmem:[#allocation8 + $0x270] sm:$0xf0] }
 0x224   :  { %4063 = vmatmul.bf16.vlgmr.msra.gmra.mxu3 %v10638_v42  ;;  %v8484_v15 = vor.u32 %v9977_v0, %v8481_v56  ;;  %v9965_v0 = vld [vmem:[#allocation8 + $0x204] sm:$0xf]  ;;  %v8433_v56 = vld [vmem:[#allocation8 + $0x210] sm:$0xf0] }
 0x225   :  { %4107 = vmatpush.bf16.msrb.mxu3 %v8428_v54  ;;  %4101 = vmatpush.bf16.msrb.mxu2 %v8188_v43  ;;  %v10025_v54 = vld [vmem:[#allocation8 + $0x3e4] sm:$0xf] }
 0x226   :  { %4904 = vmatpush.bf16.msra.mxu0 %v8496_v48  ;;  %v8608_v48 = vor.u32 %v10011_v38, %v8607_v37  ;;  %v10047_v37 = vld [vmem:[#allocation8 + $0x48c] sm:$0xf0]  ;;  %v8673_v38 = vld [vmem:[#allocation8 + $0x3f0] sm:$0xf0] }
 0x227   :  { %4917 = vmatpush.bf16.msra.mxu1 %v8624_v29  ;;  %v9999_v29 = vld [vmem:[#allocation8 + $0x30c] sm:$0xf0]  ;;  %v8752_v41 = vor.u32 %v10047_v37, %v8751_v36  ;;  %v8676_v46 = vor.u32 %v10025_v54, %v8673_v38  ;;  %v8927_v36 = vld [vmem:[#allocation8 + $0x5e0] sm:$0xf]  ;;  %v3443_v54 = vpop.f32.mrf.mxu2  ;;  %v9969_v38 = vld [vmem:[#allocation8 + $0x224] sm:$0xf] }
 0x228   :  { %4102 = vmatmul.bf16.vlgmr.msrb.gmra.mxu2 %v10629_v12  ;;  %v8361_v12 = vld [vmem:[#allocation8 + $0x178] sm:$0xf0]  ;;  %v8560_v2 = vor.u32 %v9999_v29, %v8559_v30  ;;  %v9934_v30 = vld [vmem:[#allocation8 + $0x10c] sm:$0xf]  ;;  %v10091_v37 = vld [vmem:[#allocation8 + $0x5ec] sm:$0xf0] }
 0x229   :  { %4927 = vmatpush.bf16.msra.mxu2 %v8800_v18  ;;  %4108 = vmatpush.bf16.msrb.mxu3 %v8412_v57  ;;  %v8364_v43 = vor.u32 %v9946_v39, %v8361_v12  ;;  %v8657_v18 = vld [vmem:[#allocation8 + $0x3d0] sm:$0xf0]  ;;  %v8313_v29 = vld [vmem:[#allocation8 + $0x118] sm:$0xf0]  ;;  %v8704_v12 = vor.u32 %v10035_v3, %v8703_v28 }
 0x22a   :  { %4905 = vmatpush.bf16.msra.mxu0 %v8480_v8  ;;  %v8548_v8 = vor.u32 %v9993_v44, %v8545_v45  ;;  %v8735_v44 = vld [vmem:[#allocation8 + $0x460] sm:$0xf]  ;;  %v10043_v45 = vld [vmem:[#allocation8 + $0x46c] sm:$0xf0]  ;;  %v8449_v39 = vld [vmem:[#allocation8 + $0x230] sm:$0xf0] }
 0x22b   :  { %4918 = vmatpush.bf16.msra.mxu1 %v8608_v48  ;;  %v10021_v48 = vld [vmem:[#allocation8 + $0x3c4] sm:$0xf]  ;;  %v8736_v1 = vor.u32 %v10043_v45, %v8735_v44  ;;  %v8928_v44 = vor.u32 %v10091_v37, %v8927_v36  ;;  %v8609_v45 = vld [vmem:[#allocation8 + $0x370] sm:$0xf0]  ;;  %v8452_v32 = vor.u32 %v9969_v38, %v8449_v39 }
 0x22c   :  { %v8660_v6 = vor.u32 %v10021_v48, %v8657_v18  ;;  %v10057_v48 = vld [vmem:[#allocation8 + $0x4e4] sm:$0xf]  ;;  %v8801_v18 = vld [vmem:[#allocation8 + $0x4f0] sm:$0xf0] }
 0x22d   :  { %4928 = vmatpush.bf16.msra.mxu2 %v8784_v11  ;;  %4109 = vmatpush.bf16.msrb.mxu3 %v8396_v14  ;;  %v8641_v11 = vld [vmem:[#allocation8 + $0x3b0] sm:$0xf0]  ;;  %v8329_v14 = vld [vmem:[#allocation8 + $0x138] sm:$0xf0]  ;;  %v9997_v37 = vld [vmem:[#allocation8 + $0x304] sm:$0xf] }
 0x22e   :  { %4906 = vmatpush.bf16.msra.mxu0 %v8464_v27  ;;  %v8532_v27 = vor.u32 %v9989_v51, %v8529_v9  ;;  %v10039_v51 = vld [vmem:[#allocation8 + $0x44c] sm:$0xf0]  ;;  %v10017_v9 = vld [vmem:[#allocation8 + $0x3a4] sm:$0xf]  ;;  %v8577_v3 = vld [vmem:[#allocation8 + $0x330] sm:$0xf0] }
 0x22f   :  { %4919 = vmatpush.bf16.msra.mxu1 %v8592_v10  ;;  %v8644_v21 = vor.u32 %v10017_v9, %v8641_v11  ;;  %v10053_v9 = vld [vmem:[#allocation8 + $0x4c4] sm:$0xf]  ;;  %v8785_v11 = vld [vmem:[#allocation8 + $0x4d0] sm:$0xf0] }
 0x230   :  { %v8561_v38 = vld [vmem:[#allocation8 + $0x310] sm:$0xf0]  ;;  %v10045_v39 = vld [vmem:[#allocation8 + $0x484] sm:$0xf] }
 0x231   :  { %4929 = vmatpush.bf16.msra.mxu2 %v8768_v23  ;;  %4110 = vmatpush.bf16.msrb.mxu3 %v8380_v34  ;;  %v8625_v23 = vld [vmem:[#allocation8 + $0x390] sm:$0xf0]  ;;  %v8468_v34 = vor.u32 %v9973_v16, %v8465_v20  ;;  %v10657_v16 = vpop.f32.mrf.mxu2 }
 0x232   :  { %4907 = vmatpush.bf16.msra.mxu0 %v8448_v40  ;;  %v9981_v40 = vld [vmem:[#allocation8 + $0x284] sm:$0xf] }
 0x233   :  { %4920 = vmatpush.bf16.msra.mxu1 %v8576_v47  ;;  %v8500_v57 = vor.u32 %v9981_v40, %v8497_v33  ;;  %v10013_v47 = vld [vmem:[#allocation8 + $0x384] sm:$0xf]  ;;  %v8316_v33 = vor.u32 %v9934_v30, %v8313_v29  ;;  %v8879_v30 = vld [vmem:[#allocation8 + $0x580] sm:$0xf]  ;;  %v10079_v29 = vld [vmem:[#allocation8 + $0x58c] sm:$0xf0] }
 0x234   :  { %v8628_v40 = vor.u32 %v10013_v47, %v8625_v23  ;;  %v10049_v47 = vld [vmem:[#allocation8 + $0x4a4] sm:$0xf]  ;;  %v8769_v23 = vld [vmem:[#allocation8 + $0x4b0] sm:$0xf0]  ;;  %v8880_v54 = vor.u32 %v10079_v29, %v8879_v30 }
 0x235   :  { %4930 = vmatpush.bf16.msra.mxu2 %v8752_v41  ;;  %4111 = vmatpush.bf16.msrb.mxu3 %v8364_v43  ;;  %v10031_v41 = vld [vmem:[#allocation8 + $0x40c] sm:$0xf0]  ;;  %v8772_v36 = vor.u32 %v10049_v47, %v8769_v23  ;;  %v8815_v47 = vld [vmem:[#allocation8 + $0x500] sm:$0xf]  ;;  %v10089_v29 = vld [vmem:[#allocation8 + $0x5e4] sm:$0xf] }
 0x236   :  { %4908 = vmatpush.bf16.msra.mxu0 %v8432_v52  ;;  %v3482_v52 = vpop.f32.mrf.mxu1  ;;  %v10653_v10 = vpop.f32.mrf.mxu0  ;;  %v10063_v23 = vld [vmem:[#allocation8 + $0x50c] sm:$0xf0] }
 0x237   :  { %4921 = vmatpush.bf16.msra.mxu1 %v8560_v2  ;;  %v8687_v2 = vld [vmem:[#allocation8 + $0x400] sm:$0xf] }
 0x239   :  { %4931 = vmatpush.bf16.msra.mxu2 %v8736_v1  ;;  %4112 = vmatpush.bf16.msrb.mxu3 %v8348_v7  ;;  %v8688_v1 = vor.u32 %v10031_v41, %v8687_v2  ;;  %v10005_v7 = vld [vmem:[#allocation8 + $0x344] sm:$0xf]  ;;  %v3495_v2 = vpop.f32.mrf.mxu2 }
 0x23a   :  { %4953 = vmatpush.bf16.msrb.mxu0 %v8548_v8  ;;  %v8719_v8 = vld [vmem:[#allocation8 + $0x440] sm:$0xf]  ;;  %v9988_v2 = vld [vmem:[#allocation8 + $0x2b4] sm:$0xf0] }
 0x23b   :  { %4966 = vmatpush.bf16.msrb.mxu1 %v8676_v46  ;;  %v8720_v63 = vor.u32 %v10039_v51, %v8719_v8  ;;  %v10009_v46 = vld [vmem:[#allocation8 + $0x364] sm:$0xf]  ;;  %v8593_v51 = vld [vmem:[#allocation8 + $0x350] sm:$0xf0] }
 0x23c   :  { %v8612_v52 = vor.u32 %v10009_v46, %v8609_v45  ;;  %v3429_v46 = vadd.f32 %v10642_v19, %v10636_v25  ;;  %v8551_v25 = vld [vmem:[#allocation8 + $0x2e8] sm:$0xf] }
 0x23d   :  { %4932 = vmatpush.bf16.msra.mxu2 %v8720_v63  ;;  %v8596_v63 = vor.u32 %v10005_v7, %v8593_v51  ;;  %v8721_v7 = vld [vmem:[#allocation8 + $0x450] sm:$0xf0] }
 0x23e   :  { %4954 = vmatpush.bf16.msrb.mxu0 %v8532_v27  ;;  %v8332_v27 = vor.u32 %v9938_v13, %v8329_v14  ;;  %v3521_v43 = vpop.f32.mrf.mxu0  ;;  %v8436_v13 = vor.u32 %v9965_v0, %v8433_v56  ;;  %v8895_v14 = vld [vmem:[#allocation8 + $0x5a0] sm:$0xf] }
 0x23f   :  { %4967 = vmatpush.bf16.msrb.mxu1 %v8660_v6  ;;  %v8804_v6 = vor.u32 %v10057_v48, %v8801_v18  ;;  %v8564_v43 = vor.u32 %v9997_v37, %v8561_v38  ;;  %v10041_v48 = vld [vmem:[#allocation8 + $0x464] sm:$0xf]  ;;  %v8737_v18 = vld [vmem:[#allocation8 + $0x470] sm:$0xf0] }
 0x240   :  { %4113 = vmatpush.bf16.msrb.mxu3 %v8332_v27  ;;  %v10001_v27 = vld [vmem:[#allocation8 + $0x324] sm:$0xf] }
 0x241   :  { %4933 = vmatpush.bf16.msra.mxu2 %v8704_v12  ;;  %v8753_v12 = vld [vmem:[#allocation8 + $0x490] sm:$0xf0]  ;;  %v10029_v38 = vld [vmem:[#allocation8 + $0x404] sm:$0xf] }
 0x242   :  { %4955 = vmatpush.bf16.msrb.mxu0 %v8516_v24  ;;  %v10655_v24 = vpop.f32.mrf.mxu1 }
 0x243   :  { %4968 = vmatpush.bf16.msrb.mxu1 %v8644_v21  ;;  %v8788_v21 = vor.u32 %v10053_v9, %v8785_v11  ;;  %v3454_v0 = vpop.f32.mrf.mxu3  ;;  %v9996_v9 = vld [vmem:[#allocation8 + $0x2f4] sm:$0xf0]  ;;  %v8831_v11 = vld [vmem:[#allocation8 + $0x520] sm:$0xf] }
 0x244   :  { %4114 = vmatpush.bf16.msrb.mxu3 %v8316_v33  ;;  %v10075_v33 = vld [vmem:[#allocation8 + $0x56c] sm:$0xf0] }
 0x245   :  { %4934 = vmatpush.bf16.msra.mxu2 %v8688_v1 }
 0x246   :  { %4956 = vmatpush.bf16.msrb.mxu0 %v8500_v57  ;;  %v10087_v57 = vld [vmem:[#allocation8 + $0x5cc] sm:$0xf0] }
 0x247   :  { %4969 = vmatpush.bf16.msrb.mxu1 %v8628_v40  ;;  %v8912_v8 = vor.u32 %v10087_v57, %v8911_v50  ;;  %4115 = vmatmul.bf16.vlgmr.msrb.gmra.mxu3 %v10638_v42  ;;  %v8580_v42 = vor.u32 %v10001_v27, %v8577_v3  ;;  %v8863_v40 = vld [vmem:[#allocation8 + $0x560] sm:$0xf]  ;;  %v10071_v57 = vld [vmem:[#allocation8 + $0x54c] sm:$0xf0]  ;;  %v8705_v27 = vld [vmem:[#allocation8 + $0x430] sm:$0xf0] }
 0x248   :  { %4940 = vmatpush.bf16.msra.mxu3 %v8928_v44  ;;  %v8756_v44 = vor.u32 %v10045_v39, %v8753_v12  ;;  %v8864_v45 = vor.u32 %v10075_v33, %v8863_v40  ;;  %v8847_v50 = vld [vmem:[#allocation8 + $0x540] sm:$0xf]  ;;  %v9992_v3 = vld [vmem:[#allocation8 + $0x2d4] sm:$0xf0]  ;;  %v8689_v39 = vld [vmem:[#allocation8 + $0x410] sm:$0xf0] }
 0x249   :  { %4979 = vmatpush.bf16.msrb.mxu2 %v8804_v6  ;;  %v8848_v19 = vor.u32 %v10071_v57, %v8847_v50  ;;  %v10037_v6 = vld [vmem:[#allocation8 + $0x444] sm:$0xf]  ;;  %v8519_v33 = vld [vmem:[#allocation8 + $0x2a8] sm:$0xf] }
 0x24a   :  { %4957 = vmatpush.bf16.msrb.mxu0 %v8484_v15  ;;  %v10083_v15 = vld [vmem:[#allocation8 + $0x5ac] sm:$0xf0]  ;;  %v3534_v20 = vpop.f32.mrf.mxu1  ;;  %v8503_v57 = vld [vmem:[#allocation8 + $0x288] sm:$0xf] }
 0x24b   :  { %4970 = vmatpush.bf16.msrb.mxu1 %v8612_v52  ;;  %v8896_v28 = vor.u32 %v10083_v15, %v8895_v14  ;;  %v8740_v52 = vor.u32 %v10041_v48, %v8737_v18  ;;  %v8552_v15 = vor.u32 %v9996_v9, %v8551_v25  ;;  %v8535_v20 = vld [vmem:[#allocation8 + $0x2c8] sm:$0xf]  ;;  %v3456_v30 = vpop.f32.mrf.mxu3  ;;  %v3481_v48 = vadd.f32 %v10649_v31, %v10644_v22  ;;  %v8897_v25 = vld [vmem:[#allocation8 + $0x5b0] sm:$0xf0]  ;;  %v9980_v9 = vld [vmem:[#allocation8 + $0x274] sm:$0xf0] }
 0x24c   :  { %4941 = vmatpush.bf16.msra.mxu3 %v8912_v8  ;;  %v8536_v37 = vor.u32 %v9992_v3, %v8535_v20  ;;  %v8692_v18 = vor.u32 %v10029_v38, %v8689_v39  ;;  %v8487_v31 = vld [vmem:[#allocation8 + $0x268] sm:$0xf]  ;;  %v9972_v38 = vld [vmem:[#allocation8 + $0x234] sm:$0xf0] }
 0x24d   :  { %4980 = vmatpush.bf16.msrb.mxu2 %v8788_v21  ;;  %v10033_v21 = vld [vmem:[#allocation8 + $0x424] sm:$0xf]  ;;  %v3494_v50 = vadd.f32 %v10657_v16, %v3481_v48  ;;  %v8488_v20 = vor.u32 %v9980_v9, %v8487_v31  ;;  %v8663_v3 = vld [vmem:[#allocation8 + $0x3c8] sm:$0xf]  ;;  %v10012_v9 = vld [vmem:[#allocation8 + $0x374] sm:$0xf0] }
 0x24e   :  { %4958 = vmatpush.bf16.msrb.mxu0 %v8468_v34  ;;  %v10663_v34 = vld [vmem:[%s10792_s6] sm:$0xf]  ;;  %v8647_v39 = vld [vmem:[#allocation8 + $0x3a8] sm:$0xf] }
 0x24f   :  { %4971 = vmatpush.bf16.msrb.mxu1 %v8596_v63  ;;  %v2626_v41 = vperm.slane %v10663_v34, 0  ;;  %v8439_v48 = vld [vmem:[#allocation8 + $0x208] sm:$0xf] }
 0x250   :  { %4942 = vmatpush.bf16.msra.mxu3 %v8896_v28 }
 0x251   :  { %4981 = vmatpush.bf16.msrb.mxu2 %v8772_v36  ;;  %v2634_v56 = vadd.f32 %v2626_v41, %v10616_v60  ;;  %v8724_v60 = vor.u32 %v10037_v6, %v8721_v7  ;;  %v8708_v36 = vor.u32 %v10033_v21, %v8705_v27  ;;  %v8471_v21 = vld [vmem:[#allocation8 + $0x248] sm:$0xf]  ;;  %v9976_v27 = vld [vmem:[#allocation8 + $0x254] sm:$0xf0] }
 0x252   :  { %4959 = vmatpush.bf16.msrb.mxu0 %v8452_v32  ;;  %v3442_v32 = vadd.f32 %v10651_v61, %v3429_v46  ;;  %v10067_v61 = vld [vmem:[#allocation8 + $0x52c] sm:$0xf0] }
 0x253   :  { %4972 = vmatpush.bf16.msrb.mxu1 %v8580_v42  ;;  %v8832_v63 = vor.u32 %v10067_v61, %v8831_v11  ;;  %v8929_v42 = vld [vmem:[#allocation8 + $0x5f0] sm:$0xf0]  ;;  %v8679_v11 = vld [vmem:[#allocation8 + $0x3e8] sm:$0xf]  ;;  %v10028_v61 = vld [vmem:[#allocation8 + $0x3f4] sm:$0xf0] }
 0x254   :  { %4943 = vmatpush.bf16.msra.mxu3 %v8880_v54  ;;  %v3455_v1 = vadd.f32 %v3454_v0, %v3442_v32  ;;  %v8816_v54 = vor.u32 %v10063_v23, %v8815_v47  ;;  %v8932_v41 = vor.u32 %v10089_v29, %v8929_v42  ;;  %v8520_v32 = vor.u32 %v9988_v2, %v8519_v33  ;;  %v9984_v0 = vld [vmem:[#allocation8 + $0x294] sm:$0xf0]  ;;  %v10073_v29 = vld [vmem:[#allocation8 + $0x564] sm:$0xf]  ;;  %v8865_v42 = vld [vmem:[#allocation8 + $0x570] sm:$0xf0] }
 0x255   :  { %4982 = vmatpush.bf16.msrb.mxu2 %v8756_v44  ;;  %v8913_v44 = vld [vmem:[#allocation8 + $0x5d0] sm:$0xf0]  ;;  %v8504_v22 = vor.u32 %v9984_v0, %v8503_v57  ;;  %v10024_v47 = vld [vmem:[#allocation8 + $0x3d4] sm:$0xf0]  ;;  %v8868_v33 = vor.u32 %v10073_v29, %v8865_v42  ;;  %v10069_v2 = vld [vmem:[#allocation8 + $0x544] sm:$0xf] }
 0x256   :  { %4960 = vmatpush.bf16.msrb.mxu0 %v8436_v13  ;;  %v3614_v8 = vadd.f32 %v3455_v1, %v2634_v56  ;;  %v10670_v51 = vpop.f32.mrf.mxu0  ;;  %v10672_v13 = vpop.f32.mrf.mxu2  ;;  %v10016_v57 = vld [vmem:[#allocation8 + $0x394] sm:$0xf0]  ;;  %v9994_v0 = vld [vmem:[#allocation8 + $0x2ec] sm:$0xf] }
 0x257   :  { %4973 = vmatpush.bf16.msrb.mxu1 %v8564_v43  ;;  %v10677_v40 = vpop.f32.mrf.mxu1  ;;  %v10085_v43 = vld [vmem:[#allocation8 + $0x5c4] sm:$0xf]  ;;  %v3506_v1 = vpop.f32.mrf.mxu3  ;;  %v10056_v42 = vld [vmem:[#allocation8 + $0x4d4] sm:$0xf0] }
 0x258   :  { %4944 = vmatpush.bf16.msra.mxu3 %v8864_v45  ;;  %v3618_v14 = vmax.f32 %v3614_v8, 0.0  ;;  %v2627_v45 = vperm.slane %v10663_v34, 1  ;;  %v8916_v56 = vor.u32 %v10085_v43, %v8913_v44  ;;  %v3507_v6 = vadd.f32 %v3506_v1, %v3494_v50  ;;  %v8631_v50 = vld [vmem:[#allocation8 + $0x388] sm:$0xf] }
 0x259   :  { %4983 = vmatpush.bf16.msrb.mxu2 %v8740_v52  ;;  %v10081_v52 = vld [vmem:[#allocation8 + $0x5a4] sm:$0xf]  ;;  %v3533_v43 = vadd.f32 %v10655_v24, %v10653_v10  ;;  %v8632_v31 = vor.u32 %v10016_v57, %v8631_v50  ;;  %v8567_v50 = vld [vmem:[#allocation8 + $0x308] sm:$0xf]  ;;  %v10000_v57 = vld [vmem:[#allocation8 + $0x314] sm:$0xf0] }
 0x25a   :  { %v10674_v28 = vpack.c.bf16 %v3618_v14, %v3618_v14  ;;  %v8900_v16 = vor.u32 %v10081_v52, %v8897_v25  ;;  %v10077_v14 = vld [vmem:[#allocation8 + $0x584] sm:$0xf]  ;;  %v8553_v52 = vld [vmem:[#allocation8 + $0x2f8] sm:$0xf0] }
 0x25b   :  { %v10065_v25 = vld [vmem:[#allocation8 + $0x524] sm:$0xf] }
 0x25c   :  { %4945 = vmatpush.bf16.msra.mxu3 %v8848_v19  ;;  %4909 = vmatmul.bf16.vlgmr.msra.gmra.mxu0 %v10674_v28  ;;  %v2635_v19 = vadd.f32 %v2627_v45, %v10622_v62 }
 0x25d   :  { %4984 = vmatpush.bf16.msrb.mxu2 %v8724_v60  ;;  %5005 = vmatpush.bf16.msra.mxu0 %v8552_v15  ;;  %v8881_v60 = vld [vmem:[#allocation8 + $0x590] sm:$0xf0] }
 0x25e   :  { %v3573_v12 = vpop.f32.mrf.mxu0  ;;  %v3547_v46 = vpop.f32.mrf.mxu2  ;;  %v3615_v7 = vadd.f32 %v3507_v6, %v2635_v19  ;;  %v8884_v23 = vor.u32 %v10077_v14, %v8881_v60  ;;  %v8833_v19 = vld [vmem:[#allocation8 + $0x530] sm:$0xf0]  ;;  %v9990_v14 = vld [vmem:[#allocation8 + $0x2cc] sm:$0xf]  ;;  %v8537_v60 = vld [vmem:[#allocation8 + $0x2d8] sm:$0xf0] }
 0x25f   :  { %v3586_v8 = vpop.f32.mrf.mxu1  ;;  %v3508_v30 = vpop.f32.mrf.mxu3  ;;  %v10020_v12 = vld [vmem:[#allocation8 + $0x3b4] sm:$0xf0]  ;;  %v2628_v46 = vperm.slane %v10663_v34, 2 }
 0x260   :  { %4946 = vmatpush.bf16.msra.mxu3 %v8832_v63  ;;  %v3619_v15 = vmax.f32 %v3615_v7, 0.0  ;;  %v8680_v63 = vor.u32 %v10028_v61, %v8679_v11  ;;  %v8648_v45 = vor.u32 %v10020_v12, %v8647_v39  ;;  %v8615_v8 = vld [vmem:[#allocation8 + $0x368] sm:$0xf]  ;;  %v8836_v61 = vor.u32 %v10065_v25, %v8833_v19  ;;  %v10026_v25 = vld [vmem:[#allocation8 + $0x3ec] sm:$0xf] }
 0x261   :  { %4985 = vmatpush.bf16.msrb.mxu2 %v8708_v36  ;;  %5006 = vmatpush.bf16.msra.mxu0 %v8536_v37  ;;  %v8472_v36 = vor.u32 %v9976_v27, %v8471_v21  ;;  %v8664_v37 = vor.u32 %v10024_v47, %v8663_v3  ;;  %v2636_v6 = vadd.f32 %v2628_v46, %v10625_v4  ;;  %v8807_v11 = vld [vmem:[#allocation8 + $0x4e8] sm:$0xf]  ;;  %v8817_v4 = vld [vmem:[#allocation8 + $0x510] sm:$0xf0]  ;;  %v8681_v19 = vld [vmem:[#allocation8 + $0x3f8] sm:$0xf0] }
 0x262   :  { %v10684_v62 = vpack.c.bf16 %v3619_v15, %v3619_v15  ;;  %v8540_v3 = vor.u32 %v9990_v14, %v8537_v60  ;;  %v8599_v47 = vld [vmem:[#allocation8 + $0x348] sm:$0xf] }
 0x263   :  { %v8791_v30 = vld [vmem:[#allocation8 + $0x4c8] sm:$0xf] }
 0x264   :  { %4947 = vmatpush.bf16.msra.mxu3 %v8816_v54  ;;  %4922 = vmatmul.bf16.vlgmr.msra.gmra.mxu1 %v10684_v62  ;;  %v8455_v54 = vld [vmem:[#allocation8 + $0x228] sm:$0xf]  ;;  %v8792_v12 = vor.u32 %v10056_v42, %v8791_v30 }
 0x265   :  { %4986 = vmatpush.bf16.msrb.mxu2 %v8692_v18  ;;  %5007 = vmatpush.bf16.msra.mxu0 %v8520_v32  ;;  %v8456_v44 = vor.u32 %v9972_v38, %v8455_v54  ;;  %v9968_v18 = vld [vmem:[#allocation8 + $0x214] sm:$0xf0]  ;;  %v3546_v32 = vadd.f32 %v10672_v13, %v3533_v43  ;;  %v8556_v13 = vor.u32 %v9994_v0, %v8553_v52  ;;  %v8775_v46 = vld [vmem:[#allocation8 + $0x4a8] sm:$0xf]  ;;  %v8489_v52 = vld [vmem:[#allocation8 + $0x278] sm:$0xf0] }
 0x266   :  { %5018 = vmatpush.bf16.msra.mxu1 %v8680_v63  ;;  %v8616_v63 = vor.u32 %v10012_v9, %v8615_v8  ;;  %v10052_v43 = vld [vmem:[#allocation8 + $0x4b4] sm:$0xf0]  ;;  %v8759_v0 = vld [vmem:[#allocation8 + $0x488] sm:$0xf]  ;;  %v9974_v8 = vld [vmem:[#allocation8 + $0x24c] sm:$0xf] }
 0x267   :  { %v3558_v1 = vpop.f32.mrf.mxu3  ;;  %v10693_v24 = vpop.f32.mrf.mxu2  ;;  %v8473_v9 = vld [vmem:[#allocation8 + $0x258] sm:$0xf0]  ;;  %v8727_v60 = vld [vmem:[#allocation8 + $0x448] sm:$0xf] }
 0x268   :  { %4992 = vmatpush.bf16.msrb.mxu3 %v8932_v41  ;;  %v8849_v41 = vld [vmem:[#allocation8 + $0x550] sm:$0xf0]  ;;  %v3559_v10 = vadd.f32 %v3558_v1, %v3546_v32  ;;  %v9978_v1 = vld [vmem:[#allocation8 + $0x26c] sm:$0xf]  ;;  %v8476_v14 = vor.u32 %v9974_v8, %v8473_v9  ;;  %v8711_v42 = vld [vmem:[#allocation8 + $0x428] sm:$0xf] }
 0x269   :  { %5008 = vmatpush.bf16.msra.mxu0 %v8504_v22  ;;  %v8440_v22 = vor.u32 %v9968_v18, %v8439_v48  ;;  %v8776_v18 = vor.u32 %v10052_v43, %v8775_v46  ;;  %v10100_v46 = vld [vmem:[#allocation10 + $0x38] sm:$0xff]  ;;  %v8695_v43 = vld [vmem:[#allocation8 + $0x408] sm:$0xf]  ;;  %v10054_v8 = vld [vmem:[#allocation8 + $0x4cc] sm:$0xf] }
 0x26a   :  { %5019 = vmatpush.bf16.msra.mxu1 %v8664_v37  ;;  %v3616_v7 = vadd.f32 %v3559_v10, %v2636_v6  ;;  %v8521_v37 = vld [vmem:[#allocation8 + $0x2b8] sm:$0xf0]  ;;  %v8568_v6 = vor.u32 %v10000_v57, %v8567_v50  ;;  %v10058_v57 = vld [vmem:[#allocation8 + $0x4ec] sm:$0xf] }
 0x26b   :  { %v8617_v50 = vld [vmem:[#allocation8 + $0x378] sm:$0xf0] }
 0x26c   :  { %4993 = vmatpush.bf16.msrb.mxu3 %v8916_v56  ;;  %4961 = vmatmul.bf16.vlgmr.msrb.gmra.mxu0 %v10674_v28  ;;  %v8852_v56 = vor.u32 %v10069_v2, %v8849_v41  ;;  %v3620_v15 = vmax.f32 %v3616_v7, 0.0  ;;  %v8583_v2 = vld [vmem:[#allocation8 + $0x328] sm:$0xf]  ;;  %v10004_v41 = vld [vmem:[#allocation8 + $0x334] sm:$0xf0]  ;;  %v8684_v7 = vor.u32 %v10026_v25, %v8681_v19 }
 0x26d   :  { %5009 = vmatpush.bf16.msra.mxu0 %v8488_v20  ;;  %v10061_v20 = vld [vmem:[#allocation8 + $0x504] sm:$0xf]  ;;  %v8584_v48 = vor.u32 %v10004_v41, %v8583_v2  ;;  %v8633_v2 = vld [vmem:[#allocation8 + $0x398] sm:$0xf0] }
 0x26e   :  { %5020 = vmatpush.bf16.msra.mxu1 %v8648_v45  ;;  %v10695_v21 = vpack.c.bf16 %v3620_v15, %v3620_v15  ;;  %v8820_v54 = vor.u32 %v10061_v20, %v8817_v4  ;;  %v8505_v45 = vld [vmem:[#allocation8 + $0x298] sm:$0xf0]  ;;  %v10040_v20 = vld [vmem:[#allocation8 + $0x454] sm:$0xf0]  ;;  %v9970_v4 = vld [vmem:[#allocation8 + $0x22c] sm:$0xf] }
 0x26f   :  { %v3560_v29 = vpop.f32.mrf.mxu3  ;;  %v3599_v38 = vpop.f32.mrf.mxu2  ;;  %v8728_v30 = vor.u32 %v10040_v20, %v8727_v60  ;;  %v8793_v9 = vld [vmem:[#allocation8 + $0x4d8] sm:$0xf0]  ;;  %v10084_v20 = vld [vmem:[#allocation8 + $0x5b4] sm:$0xf0] }
 0x270   :  { %4994 = vmatpush.bf16.msrb.mxu3 %v8900_v16  ;;  %v10060_v16 = vld [vmem:[#allocation8 + $0x4f4] sm:$0xf0]  ;;  %4935 = vmatmul.bf16.vlgmr.msra.gmra.mxu2 %v10695_v21  ;;  %v9966_v38 = vld [vmem:[#allocation8 + $0x20c] sm:$0xf]  ;;  %v8796_v60 = vor.u32 %v10054_v8, %v8793_v9  ;;  %v10093_v9 = vld [vmem:[#allocation10] sm:$0xff] }
 0x271   :  { %5010 = vmatpush.bf16.msra.mxu0 %v8472_v36  ;;  %v8808_v27 = vor.u32 %v10060_v16, %v8807_v11  ;;  %v9986_v36 = vld [vmem:[#allocation8 + $0x2ac] sm:$0xf] }
 0x272   :  { %5021 = vmatpush.bf16.msra.mxu1 %v8632_v31  ;;  %v8743_v31 = vld [vmem:[#allocation8 + $0x468] sm:$0xf]  ;;  %v10022_v11 = vld [vmem:[#allocation8 + $0x3cc] sm:$0xf] }
 0x273   :  { %5031 = vmatpush.bf16.msra.mxu2 %v8808_v27  ;;  %v10018_v27 = vld [vmem:[#allocation8 + $0x3ac] sm:$0xf] }
 0x274   :  { %4995 = vmatpush.bf16.msrb.mxu3 %v8884_v23  ;;  %v10008_v23 = vld [vmem:[#allocation8 + $0x354] sm:$0xf0]  ;;  %4974 = vmatmul.bf16.vlgmr.msrb.gmra.mxu1 %v10684_v62 }
 0x275   :  { %5011 = vmatpush.bf16.msra.mxu0 %v8456_v44  ;;  %v8600_v39 = vor.u32 %v10008_v23, %v8599_v47  ;;  %v9982_v44 = vld [vmem:[#allocation8 + $0x28c] sm:$0xf]  ;;  %v2629_v47 = vperm.slane %v10663_v34, 3  ;;  %v3585_v23 = vadd.f32 %v10677_v40, %v10670_v51 }
 0x276   :  { %5022 = vmatpush.bf16.msra.mxu1 %v8616_v63  ;;  %v8508_v32 = vor.u32 %v9982_v44, %v8505_v45  ;;  %v8457_v63 = vld [vmem:[#allocation8 + $0x238] sm:$0xf0]  ;;  %v10032_v44 = vld [vmem:[#allocation8 + $0x414] sm:$0xf0] }
 0x277   :  { %5032 = vmatpush.bf16.msra.mxu2 %v8792_v12  ;;  %v8460_v29 = vor.u32 %v9970_v4, %v8457_v63  ;;  %v2637_v34 = vadd.f32 %v2629_v47, %v10632_v49  ;;  %v8696_v49 = vor.u32 %v10032_v44, %v8695_v43  ;;  %v10002_v4 = vld [vmem:[#allocation8 + $0x32c] sm:$0xf]  ;;  %v8585_v63 = vld [vmem:[#allocation8 + $0x338] sm:$0xf0] }
 0x278   :  { %4996 = vmatpush.bf16.msrb.mxu3 %v8868_v33  ;;  %v8524_v33 = vor.u32 %v9986_v36, %v8521_v37  ;;  %v3598_v36 = vadd.f32 %v10693_v24, %v3585_v23  ;;  %v10097_v23 = vld [vmem:[#allocation10 + $0x20] sm:$0xff]  ;;  %v10042_v43 = vld [vmem:[#allocation8 + $0x46c] sm:$0xf]  ;;  %v8745_v44 = vld [vmem:[#allocation8 + $0x478] sm:$0xf0] }
 0x279   :  { %5012 = vmatpush.bf16.msra.mxu0 %v8440_v22  ;;  %v8492_v22 = vor.u32 %v9978_v1, %v8489_v52  ;;  %v10099_v52 = vld [vmem:[#allocation10 + $0x30] sm:$0xff] }
 0x27a   :  { %5023 = vmatpush.bf16.msra.mxu1 %v8600_v39  ;;  %v8441_v39 = vld [vmem:[#allocation8 + $0x218] sm:$0xf0] }
 0x27b   :  { %5033 = vmatpush.bf16.msra.mxu2 %v8776_v18  ;;  %v8444_v40 = vor.u32 %v9966_v38, %v8441_v39  ;;  %v10092_v18 = vld [vmem:[#allocation8 + $0x5f4] sm:$0xf0]  ;;  %v10046_v38 = vld [vmem:[#allocation8 + $0x48c] sm:$0xf]  ;;  %v8761_v39 = vld [vmem:[#allocation8 + $0x498] sm:$0xf0] }
 0x27c   :  { %4997 = vmatpush.bf16.msrb.mxu3 %v8852_v56  ;;  %5013 = vmatmul.bf16.vlgmr.msra.gmra.mxu0 %v10674_v28  ;;  %v10048_v56 = vld [vmem:[#allocation8 + $0x494] sm:$0xf0] }
 0x27d   :  { %5057 = vmatpush.bf16.msrb.mxu0 %v8556_v13  ;;  %v8760_v10 = vor.u32 %v10048_v56, %v8759_v0  ;;  %v10044_v13 = vld [vmem:[#allocation8 + $0x474] sm:$0xf0]  ;;  %v8809_v0 = vld [vmem:[#allocation8 + $0x4f8] sm:$0xf0] }
 0x27e   :  { %5024 = vmatpush.bf16.msra.mxu1 %v8584_v48  ;;  %v8744_v16 = vor.u32 %v10044_v13, %v8743_v31  ;;  %v8935_v48 = vld [vmem:[#allocation8 + $0x5e8] sm:$0xf]  ;;  %v10006_v31 = vld [vmem:[#allocation8 + $0x34c] sm:$0xf]  ;;  %v8601_v13 = vld [vmem:[#allocation8 + $0x358] sm:$0xf0] }
 0x27f   :  { %5034 = vmatpush.bf16.msra.mxu2 %v8760_v10  ;;  %v8936_v1 = vor.u32 %v10092_v18, %v8935_v48  ;;  %v8919_v10 = vld [vmem:[#allocation8 + $0x5c8] sm:$0xf]  ;;  %v10095_v48 = vld [vmem:[#allocation10 + $0x10] sm:$0xff] }
 0x280   :  { %4998 = vmatpush.bf16.msrb.mxu3 %v8836_v61  ;;  %v8665_v61 = vld [vmem:[#allocation8 + $0x3d8] sm:$0xf0]  ;;  %4987 = vmatmul.bf16.vlgmr.msrb.gmra.mxu2 %v10695_v21  ;;  %v8855_v18 = vld [vmem:[#allocation8 + $0x548] sm:$0xf] }
 0x281   :  { %5058 = vmatpush.bf16.msrb.mxu0 %v8540_v3  ;;  %v8668_v15 = vor.u32 %v10022_v11, %v8665_v61  ;;  %v8649_v3 = vld [vmem:[#allocation8 + $0x3b8] sm:$0xf0]  ;;  %v10098_v61 = vld [vmem:[#allocation10 + $0x28] sm:$0xff] }
 0x282   :  { %5025 = vmatpush.bf16.msra.mxu1 %v8568_v6  ;;  %v8652_v37 = vor.u32 %v10018_v27, %v8649_v3  ;;  %v8812_v6 = vor.u32 %v10058_v57, %v8809_v0  ;;  %v10050_v27 = vld [vmem:[#allocation8 + $0x4ac] sm:$0xf]  ;;  %v8777_v3 = vld [vmem:[#allocation8 + $0x4b8] sm:$0xf0] }
 0x283   :  { %5035 = vmatpush.bf16.msra.mxu2 %v8744_v16  ;;  %v10711_v16 = vpop.f32.mrf.mxu0  ;;  %v10038_v57 = vld [vmem:[#allocation8 + $0x44c] sm:$0xf]  ;;  %v8729_v0 = vld [vmem:[#allocation8 + $0x458] sm:$0xf0] }
 0x284   :  { %4999 = vmatpush.bf16.msrb.mxu3 %v8820_v54  ;;  %v10036_v54 = vld [vmem:[#allocation8 + $0x434] sm:$0xf0] }
 0x285   :  { %5059 = vmatpush.bf16.msrb.mxu0 %v8524_v33  ;;  %5026 = vmatmul.bf16.vlgmr.msra.gmra.mxu1 %v10684_v62  ;;  %v10014_v33 = vld [vmem:[#allocation8 + $0x38c] sm:$0xf]  ;;  %v8712_v51 = vor.u32 %v10036_v54, %v8711_v42  ;;  %v8887_v42 = vld [vmem:[#allocation8 + $0x588] sm:$0xf]  ;;  %v8569_v54 = vld [vmem:[#allocation8 + $0x318] sm:$0xf0] }
 0x286   :  { %5070 = vmatpush.bf16.msrb.mxu1 %v8684_v7  ;;  %v8636_v24 = vor.u32 %v10014_v33, %v8633_v2 }
 0x287   :  { %v3610_v12 = vpop.f32.mrf.mxu3  ;;  %5036 = vmatpush.bf16.msra.mxu2 %v8728_v30  ;;  %v8588_v30 = vor.u32 %v10002_v4, %v8585_v63  ;;  %v10090_v4 = vld [vmem:[#allocation8 + $0x5ec] sm:$0xf]  ;;  %v10132_v63 = vld [vmem:[#allocation10 + $0x138] sm:$0xff] }
 0x288   :  { %v3611_v41 = vadd.f32 %v3610_v12, %v3598_v36  ;;  %v10080_v36 = vld [vmem:[#allocation8 + $0x594] sm:$0xf0] }
 0x289   :  { %5060 = vmatpush.bf16.msrb.mxu0 %v8508_v32  ;;  %v10010_v32 = vld [vmem:[#allocation8 + $0x36c] sm:$0xf]  ;;  %v8888_v12 = vor.u32 %v10080_v36, %v8887_v42  ;;  %v8921_v36 = vld [vmem:[#allocation8 + $0x5d8] sm:$0xf0] }
 0x28a   :  { %5071 = vmatpush.bf16.msrb.mxu1 %v8668_v15  ;;  %v3617_v45 = vadd.f32 %v3611_v41, %v2637_v34  ;;  %v8620_v19 = vor.u32 %v10010_v32, %v8617_v50  ;;  %v8903_v15 = vld [vmem:[#allocation8 + $0x5a8] sm:$0xf]  ;;  %v8764_v34 = vor.u32 %v10046_v38, %v8761_v39  ;;  %v10096_v41 = vld [vmem:[#allocation10 + $0x18] sm:$0xff]  ;;  %v10107_v50 = vld [vmem:[#allocation10 + $0x70] sm:$0xff] }
 0x28b   :  { %5037 = vmatpush.bf16.msra.mxu2 %v8712_v51  ;;  %v8904_v47 = vor.u32 %v10084_v20, %v8903_v15  ;;  %v4027_v33 = vpop.f32.mrf.mxu0  ;;  %v8871_v51 = vld [vmem:[#allocation8 + $0x568] sm:$0xf]  ;;  %v10072_v32 = vld [vmem:[#allocation8 + $0x554] sm:$0xf0]  ;;  %v10030_v15 = vld [vmem:[#allocation8 + $0x40c] sm:$0xf] }
 0x28c   :  { %v3621_v56 = vmax.f32 %v3617_v45, 0.0  ;;  %v8697_v20 = vld [vmem:[#allocation8 + $0x418] sm:$0xf0]  ;;  %v10086_v42 = vld [vmem:[#allocation8 + $0x5cc] sm:$0xf]  ;;  %v10103_v39 = vld [vmem:[#allocation10 + $0x50] sm:$0xff] }
 0x28d   :  { %5061 = vmatpush.bf16.msrb.mxu0 %v8492_v22  ;;  %v10088_v22 = vld [vmem:[#allocation8 + $0x5d4] sm:$0xf0]  ;;  %v8924_v38 = vor.u32 %v10086_v42, %v8921_v36  ;;  %v8905_v33 = vld [vmem:[#allocation8 + $0x5b8] sm:$0xf0]  ;;  %v10109_v42 = vld [vmem:[#allocation10 + $0x80] sm:$0xff] }
 0x28e   :  { %5072 = vmatpush.bf16.msrb.mxu1 %v8652_v37  ;;  %v10707_v25 = vpack.c.bf16 %v3621_v56, %v3621_v56  ;;  %v8920_v11 = vor.u32 %v10088_v22, %v8919_v10  ;;  %v9998_v37 = vld [vmem:[#allocation8 + $0x30c] sm:$0xf]  ;;  %v8856_v56 = vor.u32 %v10072_v32, %v8855_v18  ;;  %v10068_v10 = vld [vmem:[#allocation8 + $0x534] sm:$0xf0]  ;;  %v10129_v18 = vld [vmem:[#allocation10 + $0x120] sm:$0xff] }
 0x28f   :  { %v3612_v7 = vpop.f32.mrf.mxu3  ;;  %5038 = vmatpush.bf16.msra.mxu2 %v8696_v49  ;;  %v8572_v2 = vor.u32 %v9998_v37, %v8569_v54  ;;  %v4038_v49 = vpop.f32.mrf.mxu1  ;;  %v10116_v37 = vld [vmem:[#allocation10 + $0xb8] sm:$0xff]  ;;  %v10131_v54 = vld [vmem:[#allocation10 + $0x130] sm:$0xff] }
 0x290   :  { %4948 = vmatmul.bf16.vlgmr.msra.gmra.mxu3 %v10707_v25  ;;  %v10719_v22 = vadd.f32 %v4038_v49, %v10711_v16  ;;  %v10034_v7 = vld [vmem:[#allocation8 + $0x42c] sm:$0xf]  ;;  %v8937_v16 = vld [vmem:[#allocation8 + $0x5f8] sm:$0xf0]  ;;  %v10113_v49 = vld [vmem:[#allocation10 + $0xa0] sm:$0xff] }
 0x291   :  { %5062 = vmatpush.bf16.msrb.mxu0 %v8476_v14  ;;  %5044 = vmatpush.bf16.msra.mxu3 %v8936_v1  ;;  %v8604_v14 = vor.u32 %v10006_v31, %v8601_v13  ;;  %v10106_v31 = vld [vmem:[#allocation10 + $0x68] sm:$0xff]  ;;  %v8713_v13 = vld [vmem:[#allocation8 + $0x438] sm:$0xf0] }
 0x292   :  { %5073 = vmatpush.bf16.msrb.mxu1 %v8636_v24  ;;  %5039 = vmatmul.bf16.vlgmr.msra.gmra.mxu2 %v10695_v21  ;;  %v8748_v24 = vor.u32 %v10042_v43, %v8745_v44  ;;  %v10102_v43 = vld [vmem:[#allocation10 + $0x48] sm:$0xff]  ;;  %v8889_v44 = vld [vmem:[#allocation8 + $0x598] sm:$0xf0] }
 0x293   :  { %5083 = vmatpush.bf16.msrb.mxu2 %v8812_v6  ;;  %v8839_v6 = vld [vmem:[#allocation8 + $0x528] sm:$0xf]  ;;  %v10136_v36 = vld [vmem:[#allocation10 + $0x158] sm:$0xff] }
 0x294   :  { %v8840_v8 = vor.u32 %v10068_v10, %v8839_v6 }
 0x295   :  { %5063 = vmatpush.bf16.msrb.mxu0 %v8460_v29  ;;  %5045 = vmatpush.bf16.msra.mxu3 %v8920_v11  ;;  %v8780_v29 = vor.u32 %v10050_v27, %v8777_v3  ;;  %v10105_v11 = vld [vmem:[#allocation10 + $0x60] sm:$0xff] }
 0x296   :  { %5074 = vmatpush.bf16.msrb.mxu1 %v8620_v19  ;;  %v10716_v1 = vpop.f32.mrf.mxu0  ;;  %v10094_v19 = vld [vmem:[#allocation10 + $0x8] sm:$0xff] }
 0x297   :  { %5084 = vmatpush.bf16.msrb.mxu2 %v8796_v60  ;;  %v10064_v60 = vld [vmem:[#allocation8 + $0x514] sm:$0xf0]  ;;  %v4040_v3 = vpop.f32.mrf.mxu1 }
 0x298   :  { %v10125_v3 = vld [vmem:[#allocation10 + $0x100] sm:$0xff] }
 0x299   :  { %5064 = vmatpush.bf16.msrb.mxu0 %v8444_v40  ;;  %5046 = vmatpush.bf16.msra.mxu3 %v8904_v47  ;;  %v10076_v40 = vld [vmem:[#allocation8 + $0x574] sm:$0xf0] }
 0x29a   :  { %5075 = vmatpush.bf16.msrb.mxu1 %v8604_v14  ;;  %v8872_v45 = vor.u32 %v10076_v40, %v8871_v51  ;;  %v8823_v14 = vld [vmem:[#allocation8 + $0x508] sm:$0xf] }
 0x29b   :  { %5085 = vmatpush.bf16.msrb.mxu2 %v8780_v29  ;;  %v8824_v27 = vor.u32 %v10064_v60, %v8823_v14  ;;  %v10104_v29 = vld [vmem:[#allocation10 + $0x58] sm:$0xff]  ;;  %v10111_v60 = vld [vmem:[#allocation10 + $0x90] sm:$0xff] }
 0x29c   :  { %5065 = vmatmul.bf16.vlgmr.msrb.gmra.mxu0 %v10674_v28  ;;  %v8841_v14 = vld [vmem:[#allocation8 + $0x538] sm:$0xf0] }
 0x29d   :  { %5378 = vmatpush.bf16.msra.mxu0 %v10100_v46  ;;  %v10108_v46 = vld [vmem:[#allocation10 + $0x78] sm:$0xff]  ;;  %5047 = vmatpush.bf16.msra.mxu3 %v8888_v12  ;;  %v10082_v12 = vld [vmem:[#allocation8 + $0x5ac] sm:$0xf] }
 0x29e   :  { %5076 = vmatpush.bf16.msrb.mxu1 %v8588_v30  ;;  %v4079_v47 = vpop.f32.mrf.mxu0  ;;  %v8940_v30 = vor.u32 %v10090_v4, %v8937_v16  ;;  %v8908_v51 = vor.u32 %v10082_v12, %v8905_v33  ;;  %v10062_v16 = vld [vmem:[#allocation8 + $0x50c] sm:$0xf]  ;;  %v10147_v12 = vld [vmem:[#allocation10 + $0x1b0] sm:$0xff] }
 0x29f   :  { %5086 = vmatpush.bf16.msrb.mxu2 %v8764_v34  ;;  %v10115_v34 = vld [vmem:[#allocation10 + $0xb0] sm:$0xff]  ;;  %v10137_v47 = vld [vmem:[#allocation10 + $0x160] sm:$0xff]  ;;  %v10162_v33 = vld [vmem:[#allocation10 + $0x228] sm:$0xff] }
 0x2a0   :  { %5000 = vmatmul.bf16.vlgmr.msrb.gmra.mxu3 %v10707_v25 }
 0x2a1   :  { %5379 = vmatpush.bf16.msra.mxu0 %v10099_v52  ;;  %5048 = vmatpush.bf16.msra.mxu3 %v8872_v45  ;;  %v8732_v52 = vor.u32 %v10038_v57, %v8729_v0  ;;  %v10074_v57 = vld [vmem:[#allocation8 + $0x56c] sm:$0xf]  ;;  %v8873_v0 = vld [vmem:[#allocation8 + $0x578] sm:$0xf0] }
 0x2a2   :  { %5077 = vmatpush.bf16.msrb.mxu1 %v8572_v2  ;;  %v4051_v2 = vpop.f32.mrf.mxu2  ;;  %v8876_v6 = vor.u32 %v10074_v57, %v8873_v0  ;;  %v10144_v0 = vld [vmem:[#allocation10 + $0x198] sm:$0xff] }
 0x2a3   :  { %5087 = vmatpush.bf16.msrb.mxu2 %v8748_v24 }
 0x2a5   :  { %5380 = vmatpush.bf16.msra.mxu0 %v10098_v61  ;;  %5078 = vmatmul.bf16.vlgmr.msrb.gmra.mxu1 %v10684_v62  ;;  %v8716_v61 = vor.u32 %v10034_v7, %v8713_v13  ;;  %v8857_v7 = vld [vmem:[#allocation8 + $0x558] sm:$0xf0] }
 0x2a6   :  { %5391 = vmatpush.bf16.msra.mxu1 %v10108_v46  ;;  %5049 = vmatpush.bf16.msra.mxu3 %v8856_v56  ;;  %v4090_v46 = vpop.f32.mrf.mxu1  ;;  %v10112_v13 = vld [vmem:[#allocation10 + $0x98] sm:$0xff] }
 0x2a7   :  { %5088 = vmatpush.bf16.msrb.mxu2 %v8732_v52  ;;  %v4064_v40 = vpop.f32.mrf.mxu3  ;;  %v10727_v24 = vadd.f32 %v4090_v46, %v10716_v1  ;;  %v10128_v52 = vld [vmem:[#allocation10 + $0x118] sm:$0xff]  ;;  %v10146_v46 = vld [vmem:[#allocation10 + $0x1a8] sm:$0xff] }
 0x2a8   :  { %v10724_v45 = vadd.f32 %v4064_v40, %v4051_v2 }
 0x2a9   :  { %5381 = vmatpush.bf16.msra.mxu0 %v10097_v23  ;;  %v8700_v23 = vor.u32 %v10030_v15, %v8697_v20  ;;  %v10126_v15 = vld [vmem:[#allocation10 + $0x108] sm:$0xff] }
 0x2aa   :  { %5392 = vmatpush.bf16.msra.mxu1 %v10107_v50  ;;  %5050 = vmatpush.bf16.msra.mxu3 %v8840_v8  ;;  %v10101_v50 = vld [vmem:[#allocation10 + $0x40] sm:$0xff]  ;;  %v4053_v56 = vpop.f32.mrf.mxu2  ;;  %v10127_v8 = vld [vmem:[#allocation10 + $0x110] sm:$0xff]  ;;  %v10138_v20 = vld [vmem:[#allocation10 + $0x168] sm:$0xff] }
 0x2ab   :  { %5089 = vmatpush.bf16.msrb.mxu2 %v8716_v61  ;;  %v10066_v61 = vld [vmem:[#allocation8 + $0x52c] sm:$0xf]  ;;  %v10159_v56 = vld [vmem:[#allocation10 + $0x210] sm:$0xff] }
 0x2ac   :  { %v8844_v4 = vor.u32 %v10066_v61, %v8841_v14  ;;  %v10156_v61 = vld [vmem:[#allocation10 + $0x1f8] sm:$0xff]  ;;  %v10141_v14 = vld [vmem:[#allocation10 + $0x180] sm:$0xff] }
 0x2ad   :  { %5382 = vmatpush.bf16.msra.mxu0 %v10096_v41  ;;  %v10130_v41 = vld [vmem:[#allocation10 + $0x128] sm:$0xff] }
 0x2ae   :  { %5393 = vmatpush.bf16.msra.mxu1 %v10106_v31  ;;  %5051 = vmatpush.bf16.msra.mxu3 %v8824_v27  ;;  %v4092_v10 = vpop.f32.mrf.mxu1  ;;  %v10070_v31 = vld [vmem:[#allocation8 + $0x54c] sm:$0xf] }
 0x2af   :  { %5090 = vmatpush.bf16.msrb.mxu2 %v8700_v23  ;;  %v4066_v1 = vpop.f32.mrf.mxu3  ;;  %v10110_v27 = vld [vmem:[#allocation10 + $0x88] sm:$0xff] }
 0x2b0   :  { %v10170_v1 = vld [vmem:[#allocation10 + $0x268] sm:$0xff] }
 0x2b1   :  { %5383 = vmatpush.bf16.msra.mxu0 %v10095_v48  ;;  %5052 = vmatmul.bf16.vlgmr.msra.gmra.mxu3 %v10707_v25  ;;  %v10114_v48 = vld [vmem:[#allocation10 + $0xa8] sm:$0xff] }
 0x2b2   :  { %5394 = vmatpush.bf16.msra.mxu1 %v10105_v11  ;;  %5096 = vmatpush.bf16.msrb.mxu3 %v8940_v30  ;;  %v8860_v11 = vor.u32 %v10070_v31, %v8857_v7  ;;  %v10124_v30 = vld [vmem:[#allocation10 + $0xf8] sm:$0xff]  ;;  %v10118_v10 = vld [vmem:[#allocation10 + $0xc8] sm:$0xff] }
 0x2b3   :  { %5404 = vmatpush.bf16.msra.mxu2 %v10116_v37  ;;  %v10148_v37 = vld [vmem:[#allocation10 + $0x1b8] sm:$0xff] }
 0x2b4   :  { %5091 = vmatmul.bf16.vlgmr.msrb.gmra.mxu2 %v10695_v21 }
 0x2b5   :  { %5384 = vmatpush.bf16.msra.mxu0 %v10094_v19  ;;  %v10140_v19 = vld [vmem:[#allocation10 + $0x178] sm:$0xff] }
 0x2b6   :  { %5395 = vmatpush.bf16.msra.mxu1 %v10104_v29  ;;  %5097 = vmatpush.bf16.msrb.mxu3 %v8924_v38  ;;  %v4103_v29 = vpop.f32.mrf.mxu2  ;;  %v10123_v38 = vld [vmem:[#allocation10 + $0xf0] sm:$0xff] }
 0x2b7   :  { %5405 = vmatpush.bf16.msra.mxu2 %v10115_v34  ;;  %v10122_v34 = vld [vmem:[#allocation10 + $0xe8] sm:$0xff] }
 0x2b9   :  { %5385 = vmatpush.bf16.msra.mxu0 %v10093_v9  ;;  %v10139_v9 = vld [vmem:[#allocation10 + $0x170] sm:$0xff] }
 0x2ba   :  { %5396 = vmatpush.bf16.msra.mxu1 %v10103_v39  ;;  %5098 = vmatpush.bf16.msrb.mxu3 %v8908_v51  ;;  %v10135_v39 = vld [vmem:[#allocation10 + $0x150] sm:$0xff] }
 0x2bb   :  { %5406 = vmatpush.bf16.msra.mxu2 %v10114_v48  ;;  %v10145_v48 = vld [vmem:[#allocation10 + $0x1a0] sm:$0xff] }
 0x2bc   :  { %5386 = vmatmul.bf16.vlgmr.msra.gmra.mxu0 %v10513_v5  ;;  %v10078_v5 = vld [vmem:[#allocation8 + $0x58c] sm:$0xf] }
 0x2bd   :  { %5690 = vmatpush.bf16.msrb.mxu0 %v10132_v63  ;;  %v8892_v32 = vor.u32 %v10078_v5, %v8889_v44  ;;  %v8825_v63 = vld [vmem:[#allocation8 + $0x518] sm:$0xf0]  ;;  %v10121_v5 = vld [vmem:[#allocation10 + $0xe0] sm:$0xff] }
 0x2be   :  { %5397 = vmatpush.bf16.msra.mxu1 %v10102_v43  ;;  %v8828_v23 = vor.u32 %v10062_v16, %v8825_v63  ;;  %v4105_v51 = vpop.f32.mrf.mxu2  ;;  %v10161_v43 = vld [vmem:[#allocation10 + $0x220] sm:$0xff]  ;;  %v10155_v63 = vld [vmem:[#allocation10 + $0x1f0] sm:$0xff] }
 0x2bf   :  { %5099 = vmatpush.bf16.msrb.mxu3 %v8892_v32  ;;  %5407 = vmatpush.bf16.msra.mxu2 %v10113_v49  ;;  %v10133_v44 = vld [vmem:[#allocation10 + $0x140] sm:$0xff]  ;;  %v10171_v49 = vld [vmem:[#allocation10 + $0x270] sm:$0xff] }
 0x2c0   :  { %v10151_v51 = vld [vmem:[#allocation10 + $0x1d0] sm:$0xff] }
 0x2c1   :  { %5691 = vmatpush.bf16.msrb.mxu0 %v10131_v54  ;;  %v10163_v54 = vld [vmem:[#allocation10 + $0x230] sm:$0xff] }
 0x2c2   :  { %5398 = vmatpush.bf16.msra.mxu1 %v10101_v50  ;;  %v10120_v50 = vld [vmem:[#allocation10 + $0xd8] sm:$0xff] }
 0x2c3   :  { %5100 = vmatpush.bf16.msrb.mxu3 %v8876_v6  ;;  %5408 = vmatpush.bf16.msra.mxu2 %v10112_v13  ;;  %v10158_v6 = vld [vmem:[#allocation10 + $0x208] sm:$0xff] }
 0x2c4   :  { %v10142_v13 = vld [vmem:[#allocation10 + $0x188] sm:$0xff] }
 0x2c5   :  { %5692 = vmatpush.bf16.msrb.mxu0 %v10130_v41  ;;  %5399 = vmatmul.bf16.vlgmr.msra.gmra.mxu1 %v10516_v35  ;;  %v10164_v35 = vld [vmem:[#allocation10 + $0x238] sm:$0xff] }
 0x2c6   :  { %5703 = vmatpush.bf16.msrb.mxu1 %v10140_v19  ;;  %v10143_v19 = vld [vmem:[#allocation10 + $0x190] sm:$0xff] }
 0x2c7   :  { %5101 = vmatpush.bf16.msrb.mxu3 %v8860_v11  ;;  %5409 = vmatpush.bf16.msra.mxu2 %v10111_v60  ;;  %v10196_v11 = vld [vmem:[#allocation10 + $0x338] sm:$0xff] }
 0x2c8   :  { %v10168_v60 = vld [vmem:[#allocation10 + $0x258] sm:$0xff] }
 0x2c9   :  { %5693 = vmatpush.bf16.msrb.mxu0 %v10129_v18  ;;  %v10172_v18 = vld [vmem:[#allocation10 + $0x278] sm:$0xff] }
 0x2ca   :  { %5704 = vmatpush.bf16.msrb.mxu1 %v10139_v9  ;;  %v4116_v2 = vpop.f32.mrf.mxu3  ;;  %v10169_v9 = vld [vmem:[#allocation10 + $0x260] sm:$0xff] }
 0x2cb   :  { %5102 = vmatpush.bf16.msrb.mxu3 %v8844_v4  ;;  %5410 = vmatpush.bf16.msra.mxu2 %v10110_v27  ;;  %v10733_v41 = vadd.f32 %v4116_v2, %v4103_v29  ;;  %v10167_v27 = vld [vmem:[#allocation10 + $0x250] sm:$0xff]  ;;  %v10193_v29 = vld [vmem:[#allocation10 + $0x320] sm:$0xff] }
 0x2cc   :  { %v10203_v2 = vld [vmem:[#allocation10 + $0x370] sm:$0xff] }
 0x2cd   :  { %5694 = vmatpush.bf16.msrb.mxu0 %v10128_v52  ;;  %v10119_v52 = vld [vmem:[#allocation10 + $0xd0] sm:$0xff] }
 0x2ce   :  { %5705 = vmatpush.bf16.msrb.mxu1 %v10138_v20  ;;  %v10195_v20 = vld [vmem:[#allocation10 + $0x330] sm:$0xff] }
 0x2cf   :  { %5103 = vmatpush.bf16.msrb.mxu3 %v8828_v23  ;;  %5411 = vmatpush.bf16.msra.mxu2 %v10109_v42  ;;  %v10166_v23 = vld [vmem:[#allocation10 + $0x248] sm:$0xff]  ;;  %v10153_v42 = vld [vmem:[#allocation10 + $0x1e0] sm:$0xff] }
 0x2d1   :  { %5695 = vmatpush.bf16.msrb.mxu0 %v10127_v8  ;;  %v10157_v8 = vld [vmem:[#allocation10 + $0x200] sm:$0xff] }
 0x2d2   :  { %5706 = vmatpush.bf16.msrb.mxu1 %v10137_v47  ;;  %5104 = vmatmul.bf16.vlgmr.msrb.gmra.mxu3 %v10707_v25  ;;  %v4118_v32 = vpop.f32.mrf.mxu3  ;;  %v10194_v47 = vld [vmem:[#allocation10 + $0x328] sm:$0xff] }
 0x2d3   :  { %5417 = vmatpush.bf16.msra.mxu3 %v10124_v30  ;;  %5716 = vmatpush.bf16.msrb.mxu2 %v10148_v37  ;;  %v10178_v30 = vld [vmem:[#allocation10 + $0x2a8] sm:$0xff]  ;;  %v10177_v37 = vld [vmem:[#allocation10 + $0x2a0] sm:$0xff] }
 0x2d4   :  { %5412 = vmatmul.bf16.vlgmr.msra.gmra.mxu2 %v10523_v26  ;;  %v10160_v26 = vld [vmem:[#allocation10 + $0x218] sm:$0xff]  ;;  %v10201_v32 = vld [vmem:[#allocation10 + $0x360] sm:$0xff] }
 0x2d5   :  { %5696 = vmatpush.bf16.msrb.mxu0 %v10126_v15  ;;  %v10180_v15 = vld [vmem:[#allocation10 + $0x2b8] sm:$0xff] }
 0x2d6   :  { %5707 = vmatpush.bf16.msrb.mxu1 %v10136_v36 }
 0x2d7   :  { %5418 = vmatpush.bf16.msra.mxu3 %v10123_v38  ;;  %5717 = vmatpush.bf16.msrb.mxu2 %v10147_v12  ;;  %v10152_v38 = vld [vmem:[#allocation10 + $0x1d8] sm:$0xff] }
 0x2d8   :  { %v10176_v12 = vld [vmem:[#allocation10 + $0x298] sm:$0xff] }
 0x2d9   :  { %5697 = vmatpush.bf16.msrb.mxu0 %v10125_v3  ;;  %v10735_v40 = vpop.f32.mrf.mxu0  ;;  %v10179_v3 = vld [vmem:[#allocation10 + $0x2b0] sm:$0xff] }
 0x2da   :  { %5708 = vmatpush.bf16.msrb.mxu1 %v10135_v39 }
 0x2db   :  { %5419 = vmatpush.bf16.msra.mxu3 %v10122_v34  ;;  %5718 = vmatpush.bf16.msrb.mxu2 %v10146_v46  ;;  %v10175_v46 = vld [vmem:[#allocation10 + $0x290] sm:$0xff] }
 0x2dc   :  { %5698 = vmatmul.bf16.vlgmr.msrb.gmra.mxu0 %v10581_v59  ;;  %v10134_v59 = vld [vmem:[#allocation10 + $0x148] sm:$0xff] }
 0x2dd   :  { %5999 = vmatpush.bf16.msra.mxu0 %v10164_v35  ;;  %v10154_v35 = vld [vmem:[#allocation10 + $0x1e8] sm:$0xff] }
 0x2de   :  { %5709 = vmatpush.bf16.msrb.mxu1 %v10134_v59 }
 0x2df   :  { %5420 = vmatpush.bf16.msra.mxu3 %v10121_v5  ;;  %5719 = vmatpush.bf16.msrb.mxu2 %v10145_v48  ;;  %v10202_v5 = vld [vmem:[#allocation10 + $0x368] sm:$0xff] }
 0x2e1   :  { %6000 = vmatpush.bf16.msra.mxu0 %v10163_v54  ;;  %v4912_v57 = vpop.f32.mrf.mxu0  ;;  %v10738_v31 = vpop.f32.mrf.mxu1  ;;  %v10204_v54 = vld [vmem:[#allocation10 + $0x378] sm:$0xff] }
 0x2e2   :  { %5710 = vmatpush.bf16.msrb.mxu1 %v10133_v44  ;;  %v10150_v44 = vld [vmem:[#allocation10 + $0x1c8] sm:$0xff]  ;;  %v10188_v57 = vld [vmem:[#allocation10 + $0x2f8] sm:$0xff] }
 0x2e3   :  { %5421 = vmatpush.bf16.msra.mxu3 %v10120_v50  ;;  %5720 = vmatpush.bf16.msrb.mxu2 %v10144_v0  ;;  %v10173_v0 = vld [vmem:[#allocation10 + $0x280] sm:$0xff] }
 0x2e5   :  { %6001 = vmatpush.bf16.msra.mxu0 %v10162_v33  ;;  %5711 = vmatmul.bf16.vlgmr.msrb.gmra.mxu1 %v10588_v55  ;;  %v10117_v55 = vld [vmem:[#allocation10 + $0xc0] sm:$0xff]  ;;  %v10191_v33 = vld [vmem:[#allocation10 + $0x310] sm:$0xff] }
 0x2e6   :  { %6012 = vmatpush.bf16.msra.mxu1 %v10172_v18  ;;  %v10189_v18 = vld [vmem:[#allocation10 + $0x300] sm:$0xff] }
 0x2e7   :  { %5422 = vmatpush.bf16.msra.mxu3 %v10119_v52  ;;  %5721 = vmatpush.bf16.msrb.mxu2 %v10143_v19  ;;  %v10187_v52 = vld [vmem:[#allocation10 + $0x2f0] sm:$0xff] }
 0x2e9   :  { %6002 = vmatpush.bf16.msra.mxu0 %v10161_v43  ;;  %v10740_v7 = vpop.f32.mrf.mxu0  ;;  %v4925_v4 = vpop.f32.mrf.mxu1  ;;  %v10190_v43 = vld [vmem:[#allocation10 + $0x308] sm:$0xff] }
 0x2ea   :  { %6013 = vmatpush.bf16.msra.mxu1 %v10171_v49  ;;  %v10212_v49 = vld [vmem:[#allocation10 + $0x3b8] sm:$0xff] }
 0x2eb   :  { %5423 = vmatpush.bf16.msra.mxu3 %v10118_v10  ;;  %5722 = vmatpush.bf16.msrb.mxu2 %v10142_v13  ;;  %v10211_v10 = vld [vmem:[#allocation10 + $0x3b0] sm:$0xff]  ;;  %v10186_v13 = vld [vmem:[#allocation10 + $0x2e8] sm:$0xff] }
 0x2ed   :  { %6003 = vmatpush.bf16.msra.mxu0 %v10160_v26  ;;  %v10174_v26 = vld [vmem:[#allocation10 + $0x288] sm:$0xff] }
 0x2ee   :  { %6014 = vmatpush.bf16.msra.mxu1 %v10170_v1 }
 0x2ef   :  { %5424 = vmatpush.bf16.msra.mxu3 %v10117_v55  ;;  %5723 = vmatpush.bf16.msrb.mxu2 %v10141_v14  ;;  %v10759_v55 = vld [vmem:[%s10794_s8] sm:$0xf]  ;;  %v10197_v14 = vld [vmem:[#allocation10 + $0x340] sm:$0xff] }
 0x2f1   :  { %6004 = vmatpush.bf16.msra.mxu0 %v10159_v56  ;;  %v4964_v16 = vpop.f32.mrf.mxu0  ;;  %v10200_v56 = vld [vmem:[#allocation10 + $0x358] sm:$0xff] }
 0x2f2   :  { %6015 = vmatpush.bf16.msra.mxu1 %v10169_v9  ;;  %5425 = vmatmul.bf16.vlgmr.msra.gmra.mxu3 %v10526_v58  ;;  %v10165_v58 = vld [vmem:[#allocation10 + $0x240] sm:$0xff]  ;;  %v10210_v9 = vld [vmem:[#allocation10 + $0x3a8] sm:$0xff] }
 0x2f3   :  { %5729 = vmatpush.bf16.msrb.mxu3 %v10156_v61  ;;  %6025 = vmatpush.bf16.msra.mxu2 %v10180_v15  ;;  %v10749_v39 = vpop.f32.mrf.mxu2  ;;  %v10209_v15 = vld [vmem:[#allocation10 + $0x3a0] sm:$0xff] }
 0x2f4   :  { %5724 = vmatmul.bf16.vlgmr.msrb.gmra.mxu2 %v10600_v17  ;;  %v10192_v17 = vld [vmem:[#allocation10 + $0x318] sm:$0xff] }
 0x2f5   :  { %6005 = vmatpush.bf16.msra.mxu0 %v10158_v6  ;;  %v10199_v6 = vld [vmem:[#allocation10 + $0x350] sm:$0xff] }
 0x2f6   :  { %6016 = vmatpush.bf16.msra.mxu1 %v10168_v60  ;;  %v4924_v60 = vadd.f32 %v10738_v31, %v10735_v40  ;;  %v10207_v40 = vld [vmem:[#allocation10 + $0x390] sm:$0xff]  ;;  %v10182_v31 = vld [vmem:[#allocation10 + $0x2c8] sm:$0xff] }
 0x2f7   :  { %5730 = vmatpush.bf16.msrb.mxu3 %v10155_v63  ;;  %6026 = vmatpush.bf16.msra.mxu2 %v10179_v3  ;;  %v10208_v3 = vld [vmem:[#allocation10 + $0x398] sm:$0xff] }
 0x2f8   :  { %v4937_v4 = vadd.f32 %v10749_v39, %v4924_v60  ;;  %v4122_v39 = vperm.slane %v10759_v55, 1 }
 0x2f9   :  { %6006 = vmatpush.bf16.msra.mxu0 %v10157_v8  ;;  %v10747_v36 = vpop.f32.mrf.mxu0  ;;  %v10198_v8 = vld [vmem:[#allocation10 + $0x348] sm:$0xff] }
 0x2fa   :  { %6017 = vmatpush.bf16.msra.mxu1 %v10167_v27 }
 0x2fb   :  { %5731 = vmatpush.bf16.msrb.mxu3 %v10154_v35  ;;  %6027 = vmatpush.bf16.msra.mxu2 %v10178_v30  ;;  %v4938_v48 = vpop.f32.mrf.mxu2  ;;  %v10183_v35 = vld [vmem:[#allocation10 + $0x2d0] sm:$0xff] }
 0x2fc   :  { %6007 = vmatmul.bf16.vlgmr.msra.gmra.mxu0 %v10674_v28  ;;  %v10745_v28 = vpop.f32.mrf.mxu1 }
 0x2fd   :  { %6308 = vmatpush.bf16.msrb.mxu0 %v10196_v11  ;;  %v10185_v11 = vld [vmem:[#allocation10 + $0x2e0] sm:$0xff] }
 0x2fe   :  { %6018 = vmatpush.bf16.msra.mxu1 %v10166_v23 }
 0x2ff   :  { %5732 = vmatpush.bf16.msrb.mxu3 %v10153_v42  ;;  %6028 = vmatpush.bf16.msra.mxu2 %v10177_v37  ;;  %v10206_v37 = vld [vmem:[#allocation10 + $0x388] sm:$0xff] }
 0x301   :  { %6309 = vmatpush.bf16.msrb.mxu0 %v10195_v20  ;;  %v5016_v59 = vpop.f32.mrf.mxu0  ;;  %v10184_v20 = vld [vmem:[#allocation10 + $0x2d8] sm:$0xff] }
 0x302   :  { %6019 = vmatpush.bf16.msra.mxu1 %v10165_v58  ;;  %v4130_v59 = vadd.f32 %v4122_v39, %v10724_v45 }
 0x303   :  { %5733 = vmatpush.bf16.msrb.mxu3 %v10152_v38  ;;  %6029 = vmatpush.bf16.msra.mxu2 %v10176_v12  ;;  %v4988_v19 = vpop.f32.mrf.mxu2  ;;  %v4976_v12 = vadd.f32 %v10745_v28, %v10740_v7  ;;  %v10217_v7 = vld [vmem:[#allocation10 + $0x3e0] sm:$0xff] }
 0x304   :  { %v4977_v34 = vpop.f32.mrf.mxu1 }
 0x305   :  { %6310 = vmatpush.bf16.msrb.mxu0 %v10194_v47  ;;  %6020 = vmatmul.bf16.vlgmr.msra.gmra.mxu1 %v10684_v62  ;;  %v10149_v62 = vld [vmem:[#allocation10 + $0x1c0] sm:$0xff]  ;;  %v10219_v34 = vld [vmem:[#allocation10 + $0x3f0] sm:$0xff] }
 0x306   :  { %6321 = vmatpush.bf16.msrb.mxu1 %v10204_v54  ;;  %v10220_v54 = vld [vmem:[#allocation10 + $0x3f8] sm:$0xff] }
 0x307   :  { %5734 = vmatpush.bf16.msrb.mxu3 %v10151_v51  ;;  %6030 = vmatpush.bf16.msra.mxu2 %v10175_v46 }
 0x309   :  { %6311 = vmatpush.bf16.msrb.mxu0 %v10193_v29 }
 0x30a   :  { %6322 = vmatpush.bf16.msrb.mxu1 %v10203_v2  ;;  %v4989_v2 = vadd.f32 %v4988_v19, %v4976_v12  ;;  %v10231_v12 = vld [vmem:[%s10796_s10] ss:$0 sm:$0xff]  ;;  %s10393_s10 = smov [#allocation11]  }
 0x30b   :  { %5735 = vmatpush.bf16.msrb.mxu3 %v10150_v44  ;;  %6031 = vmatpush.bf16.msra.mxu2 %v10174_v26  ;;  %v4990_v61 = vpop.f32.mrf.mxu2  ;;  %v10218_v44 = vld [vmem:[#allocation10 + $0x3e8] sm:$0xff]  ;;  %s6367_s12 = sshll.u32 %s10393_s10, 4  ;;  %s6368_s12 = int_to_ptr.vmem [resolvable:$true] %s6367_s12 }
 0x30c   :  { %v10752_v50 = vpop.f32.mrf.mxu1 }
 0x30d   :  { %6312 = vmatpush.bf16.msrb.mxu0 %v10192_v17  ;;  %v5028_v45 = vadd.f32 %v10752_v50, %v10747_v36 }
 0x30e   :  { %6323 = vmatpush.bf16.msrb.mxu1 %v10202_v5 }
 0x30f   :  { %5736 = vmatpush.bf16.msrb.mxu3 %v10149_v62  ;;  %6032 = vmatpush.bf16.msra.mxu2 %v10173_v0  ;;  %v4123_v62 = vperm.slane %v10759_v55, 2 }
 0x311   :  { %6313 = vmatpush.bf16.msrb.mxu0 %v10191_v33  ;;  %v10205_v33 = vld [vmem:[#allocation10 + $0x380] sm:$0xff] }
 0x312   :  { %6324 = vmatpush.bf16.msrb.mxu1 %v10201_v32  ;;  %5737 = vmatmul.bf16.vlgmr.msrb.gmra.mxu3 %v10611_v53  ;;  %v10216_v32 = vld [vmem:[#allocation10 + $0x3d8] sm:$0xff] }
 0x313   :  { %6038 = vmatpush.bf16.msra.mxu3 %v10188_v57  ;;  %6334 = vmatpush.bf16.msrb.mxu2 %v10212_v49  ;;  %v4949_v16 = vpop.f32.mrf.mxu3  ;;  %v4131_v49 = vadd.f32 %v4123_v62, %v10727_v24 }
 0x314   :  { %v5029_v1 = vpop.f32.mrf.mxu1  ;;  %6033 = vmatmul.bf16.vlgmr.msra.gmra.mxu2 %v10695_v21  ;;  %v4121_v21 = vperm.slane %v10759_v55, 0  ;;  %v4950_v27 = vadd.f32 %v4949_v16, %v4937_v4 }
 0x315   :  { %6314 = vmatpush.bf16.msrb.mxu0 %v10190_v43  ;;  %v5040_v30 = vpop.f32.mrf.mxu2 }
 0x316   :  { %6325 = vmatpush.bf16.msrb.mxu1 %v10200_v56  ;;  %v4129_v63 = vadd.f32 %v4121_v21, %v10719_v22  ;;  %v10181_v22 = vld [vmem:[#allocation10 + $0x2c0] sm:$0xff]  ;;  %v5041_v57 = vadd.f32 %v5040_v30, %v5028_v45  ;;  %v4124_v21 = vperm.slane %v10759_v55, 3 }
 0x317   :  { %6039 = vmatpush.bf16.msra.mxu3 %v10187_v52  ;;  %6335 = vmatpush.bf16.msrb.mxu2 %v10211_v10 }
 0x318   :  { %v5109_v23 = vadd.f32 %v4950_v27, %v4129_v63  ;;  %v4132_v4 = vadd.f32 %v4124_v21, %v10733_v41 }
 0x319   :  { %6315 = vmatpush.bf16.msrb.mxu0 %v10189_v18  ;;  %v10761_v53 = vpop.f32.mrf.mxu0 }
 0x31a   :  { %6326 = vmatpush.bf16.msrb.mxu1 %v10199_v6  ;;  %v5113_v29 = vmax.f32 %v5109_v23, 0.0  ;;  %v10214_v6 = vld [vmem:[#allocation10 + $0x3c8] sm:$0xff] }
 0x31b   :  { %6040 = vmatpush.bf16.msra.mxu3 %v10186_v13  ;;  %6336 = vmatpush.bf16.msrb.mxu2 %v10210_v9  ;;  %v4951_v58 = vpop.f32.mrf.mxu3  ;;  %v10213_v13 = vld [vmem:[#allocation10 + $0x3c0] sm:$0xff] }
 0x31c   :  { %v5117_v42 = vpack.c.bf16 %v5113_v29, %v5113_v29 }
 0x31d   :  { %v5042_v38 = vpop.f32.mrf.mxu2 }
 0x31e   :  { %6327 = vmatpush.bf16.msrb.mxu1 %v10198_v8  ;;  %6316 = vmatmul.bf16.vlgmr.msrb.gmra.mxu0 %v5117_v42 }
 0x31f   :  { %6041 = vmatpush.bf16.msra.mxu3 %v10185_v11  ;;  %6337 = vmatpush.bf16.msrb.mxu2 %v10209_v15 }
 0x321   :  { %v5068_v47 = vpop.f32.mrf.mxu0 }
 0x322   :  { %6328 = vmatpush.bf16.msrb.mxu1 %v10197_v14  ;;  %v5079_v17 = vpop.f32.mrf.mxu1 }
 0x323   :  { %6042 = vmatpush.bf16.msra.mxu3 %v10184_v20  ;;  %6338 = vmatpush.bf16.msrb.mxu2 %v10208_v3  ;;  %v5001_v51 = vpop.f32.mrf.mxu3  ;;  %v5080_v24 = vadd.f32 %v5079_v17, %v10761_v53 }
 0x324   :  { %v5002_v46 = vadd.f32 %v5001_v51, %v4989_v2 }
 0x326   :  { %v5110_v43 = vadd.f32 %v5002_v46, %v4130_v59 }
 0x327   :  { %6043 = vmatpush.bf16.msra.mxu3 %v10183_v35  ;;  %6339 = vmatpush.bf16.msrb.mxu2 %v10207_v40 }
 0x328   :  { %v5114_v48 = vmax.f32 %v5110_v43, 0.0 }
 0x32a   :  { %v5081_v5 = vpop.f32.mrf.mxu1  ;;  %v5118_v26 = vpack.c.bf16 %v5114_v48, %v5114_v48 }
 0x32b   :  { %6044 = vmatpush.bf16.msra.mxu3 %v10182_v31  ;;  %6340 = vmatpush.bf16.msrb.mxu2 %v10206_v37  ;;  %v5003_v28 = vpop.f32.mrf.mxu3 }
 0x32c   :  { %6329 = vmatmul.bf16.vlgmr.msrb.gmra.mxu1 %v5118_v26 }
 0x32f   :  { %6045 = vmatpush.bf16.msra.mxu3 %v10181_v22  ;;  %6341 = vmatpush.bf16.msrb.mxu2 %v10205_v33 }
 0x332   :  { %6046 = vmatmul.bf16.vlgmr.msra.gmra.mxu3 %v10707_v25  ;;  %v10215_v25 = vld [vmem:[#allocation10 + $0x3d0] sm:$0xff] }
 0x333   :  { %6347 = vmatpush.bf16.msrb.mxu3 %v10220_v54 }
 0x334   :  { %v5053_v56 = vpop.f32.mrf.mxu3 }
 0x335   :  { %v5054_v52 = vadd.f32 %v5053_v56, %v5041_v57 }
 0x337   :  { %6348 = vmatpush.bf16.msrb.mxu3 %v10219_v34  ;;  %v5092_v19 = vpop.f32.mrf.mxu2  ;;  %v5111_v1 = vadd.f32 %v5054_v52, %v4131_v49 }
 0x338   :  { %v5093_v60 = vadd.f32 %v5092_v19, %v5080_v24 }
 0x339   :  { %v5387_v18 = vpop.f32.mrf.mxu0  ;;  %v5115_v10 = vmax.f32 %v5111_v1, 0.0 }
 0x33b   :  { %6349 = vmatpush.bf16.msrb.mxu3 %v10218_v44  ;;  %v5119_v8 = vpack.c.bf16 %v5115_v10, %v5115_v10 }
 0x33c   :  { %v5055_v61 = vpop.f32.mrf.mxu3 }
 0x33d   :  { %6342 = vmatmul.bf16.vlgmr.msrb.gmra.mxu2 %v5119_v8 }
 0x33f   :  { %6350 = vmatpush.bf16.msrb.mxu3 %v10217_v7  ;;  %v5094_v36 = vpop.f32.mrf.mxu2 }
 0x341   :  { %v5389_v0 = vpop.f32.mrf.mxu0 }
 0x342   :  { %v5400_v9 = vpop.f32.mrf.mxu1 }
 0x343   :  { %6351 = vmatpush.bf16.msrb.mxu3 %v10216_v32  ;;  %v5401_v11 = vadd.f32 %v5400_v9, %v5387_v18 }
 0x347   :  { %6352 = vmatpush.bf16.msrb.mxu3 %v10215_v25 }
 0x34a   :  { %v5402_v50 = vpop.f32.mrf.mxu1 }
 0x34b   :  { %6353 = vmatpush.bf16.msrb.mxu3 %v10214_v6 }
 0x34f   :  { %6354 = vmatpush.bf16.msrb.mxu3 %v10213_v13 }
 0x355   :  { %v5105_v20 = vpop.f32.mrf.mxu3 }
 0x356   :  { %v5106_v16 = vadd.f32 %v5105_v20, %v5093_v60 }
 0x357   :  { %v5413_v63 = vpop.f32.mrf.mxu2 }
 0x358   :  { %v5414_v27 = vadd.f32 %v5413_v63, %v5401_v11  ;;  %v5112_v3 = vadd.f32 %v5106_v16, %v4132_v4 }
 0x359   :  { %v5699_v14 = vpop.f32.mrf.mxu0 }
 0x35a   :  { %v5116_v47 = vmax.f32 %v5112_v3, 0.0 }
 0x35c   :  { %v5120_v35 = vpack.c.bf16 %v5116_v47, %v5116_v47 }
 0x35d   :  { %v5107_v23 = vpop.f32.mrf.mxu3 }
 0x35e   :  { %6355 = vmatmul.bf16.vlgmr.msrb.gmra.mxu3 %v5120_v35 }
 0x35f   :  { %v5415_v40 = vpop.f32.mrf.mxu2 }
 0x361   :  { %v5701_v15 = vpop.f32.mrf.mxu0 }
 0x362   :  { %v5712_v30 = vpop.f32.mrf.mxu1 }
 0x363   :  { %v5713_v29 = vadd.f32 %v5712_v30, %v5699_v14 }
 0x36a   :  { %v5714_v31 = vpop.f32.mrf.mxu1 }
 0x375   :  { %v5426_v42 = vpop.f32.mrf.mxu3 }
 0x376   :  { %v5427_v58 = vadd.f32 %v5426_v42, %v5414_v27 }
 0x377   :  { %v5725_v37 = vpop.f32.mrf.mxu2 }
 0x378   :  { %v5726_v22 = vadd.f32 %v5725_v37, %v5713_v29  ;;  %v5433_v2 = vadd.f32 %v10231_v12, %v5427_v58 }
 0x379   :  { %v6008_v55 = vpop.f32.mrf.mxu0 }
 0x37d   :  { %v5428_v17 = vpop.f32.mrf.mxu3 }
 0x37f   :  { %v5727_v38 = vpop.f32.mrf.mxu2 }
 0x381   :  { %v6010_v53 = vpop.f32.mrf.mxu0 }
 0x382   :  { %v6021_v41 = vpop.f32.mrf.mxu1 }
 0x383   :  { %v6022_v54 = vadd.f32 %v6021_v41, %v6008_v55 }
 0x38a   :  { %v6023_v39 = vpop.f32.mrf.mxu1 }
 0x395   :  { %v5738_v33 = vpop.f32.mrf.mxu3 }
 0x396   :  { %v5739_v34 = vadd.f32 %v5738_v33, %v5726_v22 }
 0x397   :  { %v6034_v51 = vpop.f32.mrf.mxu2 }
 0x398   :  { %v5742_v59 = vadd.f32 %v5739_v34, %v5433_v2  ;;  %v6035_v46 = vadd.f32 %v6034_v51, %v6022_v54 }
 0x39b   :  { %v6317_v44 = vpop.f32.mrf.mxu0 }
 0x39d   :  { %v5740_v43 = vpop.f32.mrf.mxu3 }
 0x39f   :  { %v6036_v5 = vpop.f32.mrf.mxu2 }
 0x3a3   :  { %v6319_v48 = vpop.f32.mrf.mxu0 }
 0x3a9   :  { %v6330_v28 = vpop.f32.mrf.mxu1 }
 0x3aa   :  { %v6331_v57 = vadd.f32 %v6330_v28, %v6317_v44 }
 0x3b1   :  { %v6332_v62 = vpop.f32.mrf.mxu1 }
 0x3b5   :  { %v6047_v26 = vpop.f32.mrf.mxu3 }
 0x3b6   :  { %v6048_v7 = vadd.f32 %v6047_v26, %v6035_v46 }
 0x3b8   :  { %v6051_v18 = vadd.f32 %v6048_v7, %v5742_v59 }
 0x3bd   :  { %v6049_v32 = vpop.f32.mrf.mxu3 }
 0x3c0   :  { %v6343_v45 = vpop.f32.mrf.mxu2 }
 0x3c1   :  { %v6344_v0 = vadd.f32 %v6343_v45, %v6331_v57 }
 0x3c8   :  { %v6345_v25 = vpop.f32.mrf.mxu2 }
 0x3e1   :  { %v6356_v56 = vpop.f32.mrf.mxu3 }
 0x3e2   :  { %v6357_v49 = vadd.f32 %v6356_v56, %v6344_v0 }
 0x3e4   :  { %v6360_v52 = vadd.f32 %v6357_v49, %v6051_v18 }
 0x3e6   :  { %6361 = vst [vmem:[#allocation11] sm:$0x3] %v6360_v52 }
 0x3e7   :  { %6372 = dma.vmem_to_hbm [thread:$0]  %s6368_s12, 32, %s6370_s14, [#allocation4]  }
 0x3e9   :  { %v6358_v19 = vpop.f32.mrf.mxu3 }
 0x3ea   :  { %10382 = dma.done.wait [#allocation4], 32  }
 0x3eb   :  { %10383 = vsyncadd [#allocation4], 4294967264 }
 0x3ec   :  { %6377 = vsyncpa [#allocation3], 1 }
 0x3ed   :  { %6378 = vsyncpa [#allocation6], 1 }
 0x3ee   :  { %6379 = vsyncpa [#allocation9], 1 }
 0x3ef   :  { %6380 = vsyncpa [#allocation4], 1 }

</bundles_post_ra>
